<compile_context>
chip_gen: v7x
topology: tpu7x:2x2x1
jax: 0.10.0
libtpu: 0.0.40
codegen_flags: <defaults>
</compile_context>

<pallas_src>
import math
from functools import partial

import jax
import jax.numpy as jnp
from jax import lax
from jax.experimental import pallas as pl
from jax.experimental.pallas import tpu as pltpu


SOS_IDX = 0
NEG_INF = -1e9
LN_EPS = 1e-5


# --------------------------------------------------------------------------
# In-kernel helpers (traced inside the Pallas kernel bodies)
# --------------------------------------------------------------------------
def _layer_norm(y, g, b):
    mu = jnp.mean(y, axis=-1, keepdims=True)
    var = jnp.mean(jnp.square(y - mu), axis=-1, keepdims=True)
    return (y - mu) * lax.rsqrt(var + LN_EPS) * g + b


def _mha_block(q, k, v, wo, bo, mask, *, nhead, scale):
    """Multi-head attention + output projection, fully in VMEM/vregs.

    q: (Mq, D) f32, k/v: (Mk, D) f32 or bf16, wo: (D, D) bf16, bo: (1, D) f32,
    mask: (Mq, Mk) additive f32.  Returns softmax(qk^T*scale+mask) v @ wo + bo.
    Per-head Python loop -> only static lane/sublane slices and 2-D matmuls
    (robust Mosaic lowering); head outputs are folded straight into the
    out-projection so nothing lane-sparse is ever stored.
    """
    Mq, D = q.shape
    dh = D // nhead
    qb = q.astype(jnp.bfloat16)
    kb = k.astype(jnp.bfloat16)
    vb = v.astype(jnp.bfloat16)
    out = jnp.zeros((Mq, D), jnp.float32)
    for h in range(nhead):
        sl = slice(h * dh, (h + 1) * dh)
        # q_h @ k_h^T via dot_general contraction on the last dims (no transpose)
        s = lax.dot_general(qb[:, sl], kb[:, sl],
                            (((1,), (1,)), ((), ())),
                            preferred_element_type=jnp.float32) * scale
        s = s + mask
        s = s - jnp.max(s, axis=-1, keepdims=True)
        p = jnp.exp(s)
        p = p * pl.reciprocal(jnp.sum(p, axis=-1, keepdims=True), approx=False)
        oh = jnp.dot(p.astype(jnp.bfloat16), vb[:, sl],
                     preferred_element_type=jnp.float32)            # (Mq, dh)
        out = out + jnp.dot(oh.astype(jnp.bfloat16), wo[sl, :],
                            preferred_element_type=jnp.float32)     # (Mq, D)
    return out + bo


# --------------------------------------------------------------------------
# Fused encoder stack kernel: grid axis = layer index, activation carried in
# VMEM scratch, weights selected per layer via the BlockSpec index_map.
# --------------------------------------------------------------------------
def _encoder_stack_kernel(x_ref, mask_ref,
                          wqkv_ref, bqkv_ref, wo_ref, bo_ref,
                          ln1g_ref, ln1b_ref, w1_ref, b1_ref,
                          w2_ref, b2_ref, ln2g_ref, ln2b_ref,
                          o_ref, h_ref, *, nhead, scale):
    layer = pl.program_id(0)

    @pl.when(layer == 0)
    def _():
        h_ref[...] = x_ref[...]

    x = h_ref[...]                                              # (M, D) f32
    D = x.shape[1]
    mask = mask_ref[...]                                        # (M, M) f32

    qkv = jnp.dot(x.astype(jnp.bfloat16), wqkv_ref[...],
                  preferred_element_type=jnp.float32) + bqkv_ref[...]
    a = _mha_block(qkv[:, :D], qkv[:, D:2 * D], qkv[:, 2 * D:],
                   wo_ref[...], bo_ref[...], mask, nhead=nhead, scale=scale)
    y = _layer_norm(x + a, ln1g_ref[...], ln1b_ref[...])

    hmid = jnp.maximum(
        jnp.dot(y.astype(jnp.bfloat16), w1_ref[...],
                preferred_element_type=jnp.float32) + b1_ref[...], 0.0)
    ffn = jnp.dot(hmid.astype(jnp.bfloat16), w2_ref[...],
                  preferred_element_type=jnp.float32) + b2_ref[...]
    z = _layer_norm(y + ffn, ln2g_ref[...], ln2b_ref[...])
    h_ref[...] = z

    @pl.when(layer == pl.num_programs(0) - 1)
    def _():
        o_ref[...] = z


def _stacked_spec(shape):
    nd = len(shape)
    return pl.BlockSpec((None,) + tuple(shape), lambda l: (l,) + (0,) * nd)


def _whole_spec(shape):
    nd = len(shape)
    return pl.BlockSpec(tuple(shape), lambda l: (0,) * nd)


def encoder_stack(x2, mask, p, *, nhead):
    M, D = x2.shape
    nl = p["wqkv"].shape[0]
    F = p["w1"].shape[-1]
    scale = 1.0 / math.sqrt(D // nhead)
    return pl.pallas_call(
        partial(_encoder_stack_kernel, nhead=nhead, scale=scale),
        grid=(nl,),
        out_shape=jax.ShapeDtypeStruct((M, D), jnp.float32),
        in_specs=[_whole_spec((M, D)),                 # x (pos-encoded)
                  _whole_spec((M, M)),                 # batch-block mask
                  _stacked_spec((D, 3 * D)), _stacked_spec((1, 3 * D)),
                  _stacked_spec((D, D)), _stacked_spec((1, D)),
                  _stacked_spec((1, D)), _stacked_spec((1, D)),
                  _stacked_spec((D, F)), _stacked_spec((1, F)),
                  _stacked_spec((F, D)), _stacked_spec((1, D)),
                  _stacked_spec((1, D)), _stacked_spec((1, D))],
        out_specs=_whole_spec((M, D)),
        scratch_shapes=[pltpu.VMEM((M, D), jnp.float32)],
        compiler_params=pltpu.CompilerParams(
            dimension_semantics=("arbitrary",)),       # layers are sequential
    )(x2, mask,
      p["wqkv"], p["bqkv"], p["wo"], p["bo"], p["ln1_g"], p["ln1_b"],
      p["w1"], p["b1"], p["w2"], p["b2"], p["ln2_g"], p["ln2_b"])


# --------------------------------------------------------------------------
# Per-layer cross-attention K/V of the fixed encoder memory (computed once).
# --------------------------------------------------------------------------
def _mem_kv_kernel(mem_ref, wkv_ref, bkv_ref, o_ref):
    o_ref[...] = (jnp.dot(mem_ref[...], wkv_ref[...],
                          preferred_element_type=jnp.float32)
                  + bkv_ref[...]).astype(jnp.bfloat16)


def precompute_memory_kv(mem_bf16, wkv, bkv):
    Mm, D = mem_bf16.shape
    nl = wkv.shape[0]
    return pl.pallas_call(
        _mem_kv_kernel,
        grid=(nl,),
        out_shape=jax.ShapeDtypeStruct((nl, Mm, 2 * D), jnp.bfloat16),
        in_specs=[_whole_spec((Mm, D)),
                  _stacked_spec((D, 2 * D)),
                  _stacked_spec((1, 2 * D))],
        out_specs=_stacked_spec((Mm, 2 * D)),
        compiler_params=pltpu.CompilerParams(
            dimension_semantics=("parallel",)),        # layers independent here
    )(mem_bf16, wkv, bkv)


# --------------------------------------------------------------------------
# Fused decoder stack kernel (self-attn + cross-attn + FFN per layer).
# --------------------------------------------------------------------------
def _decoder_stack_kernel(tgt_ref, smask_ref, cmask_ref, memkv_ref,
                          wqkv_ref, bqkv_ref, wos_ref, bos_ref,
                          ln1g_ref, ln1b_ref,
                          wqc_ref, bqc_ref, woc_ref, boc_ref,
                          ln2g_ref, ln2b_ref,
                          w1_ref, b1_ref, w2_ref, b2_ref,
                          ln3g_ref, ln3b_ref,
                          o_ref, h_ref, *, nhead, scale):
    layer = pl.program_id(0)

    @pl.when(layer == 0)
    def _():
        h_ref[...] = tgt_ref[...]

    x = h_ref[...]                                              # (Mt, D) f32
    D = x.shape[1]

    # ---- self-attention (unmasked prefix; padded key cols masked out) ----
    qkv = jnp.dot(x.astype(jnp.bfloat16), wqkv_ref[...],
                  preferred_element_type=jnp.float32) + bqkv_ref[...]
    a = _mha_block(qkv[:, :D], qkv[:, D:2 * D], qkv[:, 2 * D:],
                   wos_ref[...], bos_ref[...], smask_ref[...],
                   nhead=nhead, scale=scale)
    y = _layer_norm(x + a, ln1g_ref[...], ln1b_ref[...])

    # ---- cross-attention over precomputed encoder-memory K/V (bf16) ----
    qc = jnp.dot(y.astype(jnp.bfloat16), wqc_ref[...],
                 preferred_element_type=jnp.float32) + bqc_ref[...]
    memkv = memkv_ref[...]                                      # (Mm, 2D) bf16
    ac = _mha_block(qc, memkv[:, :D], memkv[:, D:],
                    woc_ref[...], boc_ref[...], cmask_ref[...],
                    nhead=nhead, scale=scale)
    y2 = _layer_norm(y + ac, ln2g_ref[...], ln2b_ref[...])

    # ---- feed-forward ----
    hmid = jnp.maximum(
        jnp.dot(y2.astype(jnp.bfloat16), w1_ref[...],
                preferred_element_type=jnp.float32) + b1_ref[...], 0.0)
    ffn = jnp.dot(hmid.astype(jnp.bfloat16), w2_ref[...],
                  preferred_element_type=jnp.float32) + b2_ref[...]
    z = _layer_norm(y2 + ffn, ln3g_ref[...], ln3b_ref[...])
    h_ref[...] = z

    @pl.when(layer == pl.num_programs(0) - 1)
    def _():
        o_ref[...] = z


def decoder_stack(tgt2, self_mask, cross_mask, mem_kv, p, *, nhead):
    Mt, D = tgt2.shape
    nl, Mm, _ = mem_kv.shape
    F = p["w1"].shape[-1]
    scale = 1.0 / math.sqrt(D // nhead)
    return pl.pallas_call(
        partial(_decoder_stack_kernel, nhead=nhead, scale=scale),
        grid=(nl,),
        out_shape=jax.ShapeDtypeStruct((Mt, D), jnp.float32),
        in_specs=[_whole_spec((Mt, D)),                # tgt (pos-encoded)
                  _whole_spec((Mt, Mt)),               # self-attn mask
                  _whole_spec((Mt, Mm)),               # cross-attn batch mask
                  _stacked_spec((Mm, 2 * D)),          # per-layer memory K/V
                  _stacked_spec((D, 3 * D)), _stacked_spec((1, 3 * D)),
                  _stacked_spec((D, D)), _stacked_spec((1, D)),
                  _stacked_spec((1, D)), _stacked_spec((1, D)),
                  _stacked_spec((D, D)), _stacked_spec((1, D)),
                  _stacked_spec((D, D)), _stacked_spec((1, D)),
                  _stacked_spec((1, D)), _stacked_spec((1, D)),
                  _stacked_spec((D, F)), _stacked_spec((1, F)),
                  _stacked_spec((F, D)), _stacked_spec((1, D)),
                  _stacked_spec((1, D)), _stacked_spec((1, D))],
        out_specs=_whole_spec((Mt, D)),
        scratch_shapes=[pltpu.VMEM((Mt, D), jnp.float32)],
        compiler_params=pltpu.CompilerParams(
            dimension_semantics=("arbitrary",)),
    )(tgt2, self_mask, cross_mask, mem_kv,
      p["wqkv"], p["bqkv"], p["wo_s"], p["bo_s"], p["ln1_g"], p["ln1_b"],
      p["wq_c"], p["bq_c"], p["wo_c"], p["bo_c"], p["ln2_g"], p["ln2_b"],
      p["w1"], p["b1"], p["w2"], p["b2"], p["ln3_g"], p["ln3_b"])


# --------------------------------------------------------------------------
# Parameters (deterministic, synthetic, stacked per layer, bf16 matmul weights)
# --------------------------------------------------------------------------
def make_positional_encoding(max_len, d_model):
    position = jnp.arange(max_len, dtype=jnp.float32)[:, None]
    div_term = jnp.exp(jnp.arange(0, d_model, 2, dtype=jnp.float32)
                       * (-math.log(10000.0) / d_model))
    pe = jnp.zeros((max_len, d_model), jnp.float32)
    pe = pe.at[:, 0::2].set(jnp.sin(position * div_term))
    pe = pe.at[:, 1::2].set(jnp.cos(position * div_term))
    return pe[:, None, :]                               # (max_len, 1, D)


def _w(key, shape, scale=0.05):
    return (scale * jax.random.normal(key, shape, jnp.float32)).astype(jnp.bfloat16)


def init_params(key, D, dff, vocab, num_layers, max_len=300):
    nl = num_layers
    ks = iter(jax.random.split(key, 16))
    ones_d = jnp.ones((nl, 1, D), jnp.float32)
    zeros_d = jnp.zeros((nl, 1, D), jnp.float32)
    encoder = {
        "wqkv": _w(next(ks), (nl, D, 3 * D)),
        "bqkv": jnp.zeros((nl, 1, 3 * D), jnp.float32),
        "wo": _w(next(ks), (nl, D, D)), "bo": zeros_d,
        "ln1_g": ones_d, "ln1_b": zeros_d,
        "w1": _w(next(ks), (nl, D, dff)),
        "b1": jnp.zeros((nl, 1, dff), jnp.float32),
        "w2": _w(next(ks), (nl, dff, D)), "b2": zeros_d,
        "ln2_g": ones_d, "ln2_b": zeros_d,
    }
    decoder = {
        "wqkv": _w(next(ks), (nl, D, 3 * D)),
        "bqkv": jnp.zeros((nl, 1, 3 * D), jnp.float32),
        "wo_s": _w(next(ks), (nl, D, D)), "bo_s": zeros_d,
        "ln1_g": ones_d, "ln1_b": zeros_d,
        "wq_c": _w(next(ks), (nl, D, D)), "bq_c": zeros_d,
        "wkv_c": _w(next(ks), (nl, D, 2 * D)),
        "bkv_c": jnp.zeros((nl, 1, 2 * D), jnp.float32),
        "wo_c": _w(next(ks), (nl, D, D)), "bo_c": zeros_d,
        "ln2_g": ones_d, "ln2_b": zeros_d,
        "w1": _w(next(ks), (nl, D, dff)),
        "b1": jnp.zeros((nl, 1, dff), jnp.float32),
        "w2": _w(next(ks), (nl, dff, D)), "b2": zeros_d,
        "ln3_g": ones_d, "ln3_b": zeros_d,
    }
    return {
        "pe": make_positional_encoding(max_len, D),
        "encoder": encoder,
        "decoder": decoder,
        "emb": jax.random.normal(next(ks), (vocab, D), jnp.float32),
        "pred_w": 0.05 * jax.random.normal(next(ks), (D, vocab), jnp.float32),
        "pred_b": jnp.zeros((vocab,), jnp.float32),
    }


# --------------------------------------------------------------------------
# BoardEncodedtoSkills forward (single jit; fori_loop greedy decode)
# --------------------------------------------------------------------------
@partial(jax.jit, static_argnames=("output_len", "nhead"))
def board_encoded_to_skills_forward(params, x, *, output_len, nhead):
    bs, L, D = x.shape
    T = output_len - 1
    pe = params["pe"]

    # Positional encoding (dropout = eval identity); batch-major flatten so
    # each batch element's rows are contiguous (one block-diagonal attention).
    x2 = (x + pe[:L, 0][None, :, :]).reshape(bs * L, D)

    row_l = jnp.arange(bs * L) // L
    enc_mask = jnp.where(row_l[:, None] == row_l[None, :],
                         0.0, NEG_INF).astype(jnp.float32)
    mem = encoder_stack(x2, enc_mask, params["encoder"], nhead=nhead)

    # Cross-attention K/V of the fixed memory: computed ONCE, bf16.
    mem_kv = precompute_memory_kv(mem.astype(jnp.bfloat16),
                                  params["decoder"]["wkv_c"],
                                  params["decoder"]["bkv_c"])

    row_t = jnp.arange(bs * T) // T
    cross_mask = jnp.where(row_t[:, None] == row_l[None, :],
                           0.0, NEG_INF).astype(jnp.float32)
    tgt_batch_eq = row_t[:, None] == row_t[None, :]

    emb = params["emb"]
    pe_t = pe[:T, 0]                                   # (T, D)

    def decode_step(t, carry):
        tokens, _ = carry                              # (output_len, bs) int32
        tgt = emb[tokens[:T]] + pe_t[:, None, :]       # (T, bs, D)
        tgt2 = tgt.transpose(1, 0, 2).reshape(bs * T, D)
        # PyTorch never passes tgt_mask -> the generated prefix is UNMASKED;
        # only pad key columns l > t (not yet generated) are excluded.
        col_valid = jnp.tile(jnp.arange(T) <= t, bs)   # (bs*T,)
        self_mask = jnp.where(tgt_batch_eq & col_valid[None, :],
                              0.0, NEG_INF).astype(jnp.float32)
        h2 = decoder_stack(tgt2, self_mask, cross_mask, mem_kv,
                           params["decoder"], nhead=nhead)
        h3 = h2.reshape(bs, T, D)
        h_t = lax.dynamic_slice_in_dim(h3, t, 1, axis=1)[:, 0, :]   # (bs, D)
        # Tiny prediction head + argmax: plain XLA (fuses, no pallas launch).
        pred = h_t @ params["pred_w"] + params["pred_b"]
        next_tok = jnp.argmax(pred, axis=1).astype(jnp.int32)
        tokens = lax.dynamic_update_slice_in_dim(tokens, next_tok[None, :],
                                                 t + 1, axis=0)
        return tokens, h3

    tokens0 = jnp.full((output_len, bs), SOS_IDX, jnp.int32)
    h0 = jnp.zeros((bs, T, D), jnp.float32)
    _, dec_out = lax.fori_loop(0, T, decode_step, (tokens0, h0))

    # matches: return decoder_output.transpose(0, 1)  -> (bs, T, D)
    return dec_out


# --------------------------------------------------------------------------
if __name__ == "__main__":
    # Small shapes consistent with the module's forward (scaled-down d_model;
    # module hardcodes nhead=8 and 8 encoder + 8 decoder layers).
    BS = 2
    INPUT_LEN = 16
    OUTPUT_LEN = 6
    D_MODEL = 128
    NHEAD = 8
    DFF = 256
    VOCAB = 32
    NUM_LAYERS = 8

    key = jax.random.PRNGKey(0)
    pkey, xkey = jax.random.split(key)
    params = init_params(pkey, D_MODEL, DFF, VOCAB, NUM_LAYERS)
    x = jax.random.normal(xkey, (BS, INPUT_LEN, D_MODEL), jnp.float32)

    out = board_encoded_to_skills_forward(params, x,
                                          output_len=OUTPUT_LEN, nhead=NHEAD)
    out = jax.block_until_ready(out)
    assert out.shape == (BS, OUTPUT_LEN - 1, D_MODEL), out.shape
    assert jnp.isfinite(out).all()
    print("KERNEL_OK")
</pallas_src>

<mosaic_0001>
module attributes {stable_mosaic.version = 11 : i64} {
  func.func @_encoder_stack_kernel(%arg0: i32, %arg1: memref<32x128xf32, #tpu.memory_space<vmem>>, %arg2: memref<32x32xf32, #tpu.memory_space<vmem>>, %arg3: memref<1x128x384xbf16, #tpu.memory_space<vmem>>, %arg4: memref<1x1x384xf32, #tpu.memory_space<vmem>>, %arg5: memref<1x128x128xbf16, #tpu.memory_space<vmem>>, %arg6: memref<1x1x128xf32, #tpu.memory_space<vmem>>, %arg7: memref<1x1x128xf32, #tpu.memory_space<vmem>>, %arg8: memref<1x1x128xf32, #tpu.memory_space<vmem>>, %arg9: memref<1x128x256xbf16, #tpu.memory_space<vmem>>, %arg10: memref<1x1x256xf32, #tpu.memory_space<vmem>>, %arg11: memref<1x256x128xbf16, #tpu.memory_space<vmem>>, %arg12: memref<1x1x128xf32, #tpu.memory_space<vmem>>, %arg13: memref<1x1x128xf32, #tpu.memory_space<vmem>>, %arg14: memref<1x1x128xf32, #tpu.memory_space<vmem>>, %arg15: memref<32x128xf32, #tpu.memory_space<vmem>>, %arg16: memref<32x128xf32, #tpu.memory_space<vmem>>) attributes {dimension_semantics = [#tpu.dimension_semantics<arbitrary>], iteration_bounds = array<i64: 8>, scalar_prefetch = 0 : i64, scratch_operands = 1 : i64, tpu.core_type = #tpu.core_type<tc>, window_params = [{pipeline_mode = #tpu.pipeline_mode<synchronous>, transform_indices = @transform_0, window_bounds = array<i64: 32, 128>}, {pipeline_mode = #tpu.pipeline_mode<synchronous>, transform_indices = @transform_1, window_bounds = array<i64: 32, 32>}, {transform_indices = @transform_2, window_bounds = array<i64: 1, 128, 384>}, {transform_indices = @transform_3, window_bounds = array<i64: 1, 1, 384>}, {transform_indices = @transform_4, window_bounds = array<i64: 1, 128, 128>}, {transform_indices = @transform_5, window_bounds = array<i64: 1, 1, 128>}, {transform_indices = @transform_6, window_bounds = array<i64: 1, 1, 128>}, {transform_indices = @transform_7, window_bounds = array<i64: 1, 1, 128>}, {transform_indices = @transform_8, window_bounds = array<i64: 1, 128, 256>}, {transform_indices = @transform_9, window_bounds = array<i64: 1, 1, 256>}, {transform_indices = @transform_10, window_bounds = array<i64: 1, 256, 128>}, {transform_indices = @transform_11, window_bounds = array<i64: 1, 1, 128>}, {transform_indices = @transform_12, window_bounds = array<i64: 1, 1, 128>}, {transform_indices = @transform_13, window_bounds = array<i64: 1, 1, 128>}, {pipeline_mode = #tpu.pipeline_mode<synchronous>, transform_indices = @transform_14, window_bounds = array<i64: 32, 128>}]} {
    %c0_i32 = arith.constant 0 : i32
    %0 = arith.cmpi eq, %arg0, %c0_i32 : i32
    %1 = arith.extui %0 : i1 to i32
    %c0_i32_0 = arith.constant 0 : i32
    %2 = arith.cmpi ne, %1, %c0_i32_0 : i32
    scf.if %2 {
      %c0_105 = arith.constant 0 : index
      %c0_106 = arith.constant 0 : index
      %286 = vector.load %arg1[%c0_105, %c0_106] : memref<32x128xf32, #tpu.memory_space<vmem>>, vector<32x128xf32>
      %c0_107 = arith.constant 0 : index
      %c0_108 = arith.constant 0 : index
      %287 = vector.load %arg16[%c0_107, %c0_108] : memref<32x128xf32, #tpu.memory_space<vmem>>, vector<32x128xf32>
      tpu.vector_store %arg16[%c0_107, %c0_108], %286 {strides = array<i32>} : memref<32x128xf32, #tpu.memory_space<vmem>>, vector<32x128xf32>,
    } else {
    }
    %c0 = arith.constant 0 : index
    %c0_1 = arith.constant 0 : index
    %3 = vector.load %arg16[%c0, %c0_1] : memref<32x128xf32, #tpu.memory_space<vmem>>, vector<32x128xf32>
    %c0_2 = arith.constant 0 : index
    %c0_3 = arith.constant 0 : index
    %4 = vector.load %arg2[%c0_2, %c0_3] : memref<32x32xf32, #tpu.memory_space<vmem>>, vector<32x32xf32>
    %5 = arith.truncf %3 : vector<32x128xf32> to vector<32x128xbf16>
    %c0_4 = arith.constant 0 : index
    %c0_5 = arith.constant 0 : index
    %c0_6 = arith.constant 0 : index
    %6 = vector.load %arg3[%c0_4, %c0_5, %c0_6] : memref<1x128x384xbf16, #tpu.memory_space<vmem>>, vector<1x128x384xbf16>
    %7 = vector.shape_cast %6 : vector<1x128x384xbf16> to vector<128x384xbf16>
    %cst = arith.constant dense<0.000000e+00> : vector<32x384xf32>
    %8 = tpu.matmul %5, %7, %cst {dimension_numbers = #tpu.dot_dimension_numbers<[1], [0], [0], [1], [0, 0, 1, 1], [], []>} : vector<32x128xbf16>, vector<128x384xbf16>, vector<32x384xf32> -> vector<32x384xf32>
    %c0_7 = arith.constant 0 : index
    %c0_8 = arith.constant 0 : index
    %c0_9 = arith.constant 0 : index
    %9 = vector.load %arg4[%c0_7, %c0_8, %c0_9] : memref<1x1x384xf32, #tpu.memory_space<vmem>>, vector<1x1x384xf32>
    %10 = vector.shape_cast %9 : vector<1x1x384xf32> to vector<1x384xf32>
    %11 = vector.broadcast %10 : vector<1x384xf32> to vector<32x384xf32>
    %12 = arith.addf %8, %11 : vector<32x384xf32>
    %13 = vector.extract_strided_slice %12 {offsets = [0, 0], sizes = [32, 128], strides = [1, 1]} : vector<32x384xf32> to vector<32x128xf32>
    %14 = vector.extract_strided_slice %12 {offsets = [0, 128], sizes = [32, 128], strides = [1, 1]} : vector<32x384xf32> to vector<32x128xf32>
    %15 = vector.extract_strided_slice %12 {offsets = [0, 256], sizes = [32, 128], strides = [1, 1]} : vector<32x384xf32> to vector<32x128xf32>
    %c0_10 = arith.constant 0 : index
    %c0_11 = arith.constant 0 : index
    %c0_12 = arith.constant 0 : index
    %16 = vector.load %arg5[%c0_10, %c0_11, %c0_12] : memref<1x128x128xbf16, #tpu.memory_space<vmem>>, vector<1x128x128xbf16>
    %17 = vector.shape_cast %16 : vector<1x128x128xbf16> to vector<128x128xbf16>
    %c0_13 = arith.constant 0 : index
    %c0_14 = arith.constant 0 : index
    %c0_15 = arith.constant 0 : index
    %18 = vector.load %arg6[%c0_13, %c0_14, %c0_15] : memref<1x1x128xf32, #tpu.memory_space<vmem>>, vector<1x1x128xf32>
    %19 = vector.shape_cast %18 : vector<1x1x128xf32> to vector<1x128xf32>
    %20 = arith.truncf %13 : vector<32x128xf32> to vector<32x128xbf16>
    %21 = arith.truncf %14 : vector<32x128xf32> to vector<32x128xbf16>
    %22 = arith.truncf %15 : vector<32x128xf32> to vector<32x128xbf16>
    %cst_16 = arith.constant 0.000000e+00 : f32
    %23 = vector.broadcast %cst_16 : f32 to vector<32x128xf32>
    %24 = vector.extract_strided_slice %20 {offsets = [0, 0], sizes = [32, 16], strides = [1, 1]} : vector<32x128xbf16> to vector<32x16xbf16>
    %25 = vector.extract_strided_slice %21 {offsets = [0, 0], sizes = [32, 16], strides = [1, 1]} : vector<32x128xbf16> to vector<32x16xbf16>
    %cst_17 = arith.constant dense<0.000000e+00> : vector<32x32xf32>
    %26 = tpu.matmul %24, %25, %cst_17 {dimension_numbers = #tpu.dot_dimension_numbers<[1], [1], [0], [0], [0, 0, 1, 0], [], []>} : vector<32x16xbf16>, vector<32x16xbf16>, vector<32x32xf32> -> vector<32x32xf32>
    %cst_18 = arith.constant 2.500000e-01 : f32
    %27 = vector.broadcast %cst_18 : f32 to vector<32x32xf32>
    %28 = arith.mulf %26, %27 : vector<32x32xf32>
    %29 = arith.addf %28, %4 : vector<32x32xf32>
    %cst_19 = arith.constant dense<0xFF800000> : vector<32xf32>
    %30 = vector.multi_reduction <maximumf>, %29, %cst_19 [1] : vector<32x32xf32> to vector<32xf32>
    %31 = vector.shape_cast %30 : vector<32xf32> to vector<32x1xf32>
    %32 = vector.broadcast %31 : vector<32x1xf32> to vector<32x32xf32>
    %33 = arith.subf %29, %32 : vector<32x32xf32>
    %34 = math.exp %33 : vector<32x32xf32>
    %cst_20 = arith.constant dense<0.000000e+00> : vector<32xf32>
    %35 = vector.multi_reduction <add>, %34, %cst_20 [1] : vector<32x32xf32> to vector<32xf32>
    %36 = vector.shape_cast %35 : vector<32xf32> to vector<32x1xf32>
    %37 = tpu.reciprocal %36 : vector<32x1xf32> -> vector<32x1xf32>
    %38 = vector.broadcast %37 : vector<32x1xf32> to vector<32x32xf32>
    %39 = arith.mulf %34, %38 : vector<32x32xf32>
    %40 = arith.truncf %39 : vector<32x32xf32> to vector<32x32xbf16>
    %41 = vector.extract_strided_slice %22 {offsets = [0, 0], sizes = [32, 16], strides = [1, 1]} : vector<32x128xbf16> to vector<32x16xbf16>
    %cst_21 = arith.constant dense<0.000000e+00> : vector<32x16xf32>
    %42 = tpu.matmul %40, %41, %cst_21 {dimension_numbers = #tpu.dot_dimension_numbers<[1], [0], [0], [1], [0, 0, 1, 1], [], []>} : vector<32x32xbf16>, vector<32x16xbf16>, vector<32x16xf32> -> vector<32x16xf32>
    %43 = arith.truncf %42 : vector<32x16xf32> to vector<32x16xbf16>
    %44 = vector.extract_strided_slice %17 {offsets = [0, 0], sizes = [16, 128], strides = [1, 1]} : vector<128x128xbf16> to vector<16x128xbf16>
    %cst_22 = arith.constant dense<0.000000e+00> : vector<32x128xf32>
    %45 = tpu.matmul %43, %44, %cst_22 {dimension_numbers = #tpu.dot_dimension_numbers<[1], [0], [0], [1], [0, 0, 1, 1], [], []>} : vector<32x16xbf16>, vector<16x128xbf16>, vector<32x128xf32> -> vector<32x128xf32>
    %46 = arith.addf %23, %45 : vector<32x128xf32>
    %47 = vector.extract_strided_slice %20 {offsets = [0, 16], sizes = [32, 16], strides = [1, 1]} : vector<32x128xbf16> to vector<32x16xbf16>
    %48 = vector.extract_strided_slice %21 {offsets = [0, 16], sizes = [32, 16], strides = [1, 1]} : vector<32x128xbf16> to vector<32x16xbf16>
    %cst_23 = arith.constant dense<0.000000e+00> : vector<32x32xf32>
    %49 = tpu.matmul %47, %48, %cst_23 {dimension_numbers = #tpu.dot_dimension_numbers<[1], [1], [0], [0], [0, 0, 1, 0], [], []>} : vector<32x16xbf16>, vector<32x16xbf16>, vector<32x32xf32> -> vector<32x32xf32>
    %cst_24 = arith.constant 2.500000e-01 : f32
    %50 = vector.broadcast %cst_24 : f32 to vector<32x32xf32>
    %51 = arith.mulf %49, %50 : vector<32x32xf32>
    %52 = arith.addf %51, %4 : vector<32x32xf32>
    %cst_25 = arith.constant dense<0xFF800000> : vector<32xf32>
    %53 = vector.multi_reduction <maximumf>, %52, %cst_25 [1] : vector<32x32xf32> to vector<32xf32>
    %54 = vector.shape_cast %53 : vector<32xf32> to vector<32x1xf32>
    %55 = vector.broadcast %54 : vector<32x1xf32> to vector<32x32xf32>
    %56 = arith.subf %52, %55 : vector<32x32xf32>
    %57 = math.exp %56 : vector<32x32xf32>
    %cst_26 = arith.constant dense<0.000000e+00> : vector<32xf32>
    %58 = vector.multi_reduction <add>, %57, %cst_26 [1] : vector<32x32xf32> to vector<32xf32>
    %59 = vector.shape_cast %58 : vector<32xf32> to vector<32x1xf32>
    %60 = tpu.reciprocal %59 : vector<32x1xf32> -> vector<32x1xf32>
    %61 = vector.broadcast %60 : vector<32x1xf32> to vector<32x32xf32>
    %62 = arith.mulf %57, %61 : vector<32x32xf32>
    %63 = arith.truncf %62 : vector<32x32xf32> to vector<32x32xbf16>
    %64 = vector.extract_strided_slice %22 {offsets = [0, 16], sizes = [32, 16], strides = [1, 1]} : vector<32x128xbf16> to vector<32x16xbf16>
    %cst_27 = arith.constant dense<0.000000e+00> : vector<32x16xf32>
    %65 = tpu.matmul %63, %64, %cst_27 {dimension_numbers = #tpu.dot_dimension_numbers<[1], [0], [0], [1], [0, 0, 1, 1], [], []>} : vector<32x32xbf16>, vector<32x16xbf16>, vector<32x16xf32> -> vector<32x16xf32>
    %66 = arith.truncf %65 : vector<32x16xf32> to vector<32x16xbf16>
    %67 = vector.extract_strided_slice %17 {offsets = [16, 0], sizes = [16, 128], strides = [1, 1]} : vector<128x128xbf16> to vector<16x128xbf16>
    %cst_28 = arith.constant dense<0.000000e+00> : vector<32x128xf32>
    %68 = tpu.matmul %66, %67, %cst_28 {dimension_numbers = #tpu.dot_dimension_numbers<[1], [0], [0], [1], [0, 0, 1, 1], [], []>} : vector<32x16xbf16>, vector<16x128xbf16>, vector<32x128xf32> -> vector<32x128xf32>
    %69 = arith.addf %46, %68 : vector<32x128xf32>
    %70 = vector.extract_strided_slice %20 {offsets = [0, 32], sizes = [32, 16], strides = [1, 1]} : vector<32x128xbf16> to vector<32x16xbf16>
    %71 = vector.extract_strided_slice %21 {offsets = [0, 32], sizes = [32, 16], strides = [1, 1]} : vector<32x128xbf16> to vector<32x16xbf16>
    %cst_29 = arith.constant dense<0.000000e+00> : vector<32x32xf32>
    %72 = tpu.matmul %70, %71, %cst_29 {dimension_numbers = #tpu.dot_dimension_numbers<[1], [1], [0], [0], [0, 0, 1, 0], [], []>} : vector<32x16xbf16>, vector<32x16xbf16>, vector<32x32xf32> -> vector<32x32xf32>
    %cst_30 = arith.constant 2.500000e-01 : f32
    %73 = vector.broadcast %cst_30 : f32 to vector<32x32xf32>
    %74 = arith.mulf %72, %73 : vector<32x32xf32>
    %75 = arith.addf %74, %4 : vector<32x32xf32>
    %cst_31 = arith.constant dense<0xFF800000> : vector<32xf32>
    %76 = vector.multi_reduction <maximumf>, %75, %cst_31 [1] : vector<32x32xf32> to vector<32xf32>
    %77 = vector.shape_cast %76 : vector<32xf32> to vector<32x1xf32>
    %78 = vector.broadcast %77 : vector<32x1xf32> to vector<32x32xf32>
    %79 = arith.subf %75, %78 : vector<32x32xf32>
    %80 = math.exp %79 : vector<32x32xf32>
    %cst_32 = arith.constant dense<0.000000e+00> : vector<32xf32>
    %81 = vector.multi_reduction <add>, %80, %cst_32 [1] : vector<32x32xf32> to vector<32xf32>
    %82 = vector.shape_cast %81 : vector<32xf32> to vector<32x1xf32>
    %83 = tpu.reciprocal %82 : vector<32x1xf32> -> vector<32x1xf32>
    %84 = vector.broadcast %83 : vector<32x1xf32> to vector<32x32xf32>
    %85 = arith.mulf %80, %84 : vector<32x32xf32>
    %86 = arith.truncf %85 : vector<32x32xf32> to vector<32x32xbf16>
    %87 = vector.extract_strided_slice %22 {offsets = [0, 32], sizes = [32, 16], strides = [1, 1]} : vector<32x128xbf16> to vector<32x16xbf16>
    %cst_33 = arith.constant dense<0.000000e+00> : vector<32x16xf32>
    %88 = tpu.matmul %86, %87, %cst_33 {dimension_numbers = #tpu.dot_dimension_numbers<[1], [0], [0], [1], [0, 0, 1, 1], [], []>} : vector<32x32xbf16>, vector<32x16xbf16>, vector<32x16xf32> -> vector<32x16xf32>
    %89 = arith.truncf %88 : vector<32x16xf32> to vector<32x16xbf16>
    %90 = vector.extract_strided_slice %17 {offsets = [32, 0], sizes = [16, 128], strides = [1, 1]} : vector<128x128xbf16> to vector<16x128xbf16>
    %cst_34 = arith.constant dense<0.000000e+00> : vector<32x128xf32>
    %91 = tpu.matmul %89, %90, %cst_34 {dimension_numbers = #tpu.dot_dimension_numbers<[1], [0], [0], [1], [0, 0, 1, 1], [], []>} : vector<32x16xbf16>, vector<16x128xbf16>, vector<32x128xf32> -> vector<32x128xf32>
    %92 = arith.addf %69, %91 : vector<32x128xf32>
    %93 = vector.extract_strided_slice %20 {offsets = [0, 48], sizes = [32, 16], strides = [1, 1]} : vector<32x128xbf16> to vector<32x16xbf16>
    %94 = vector.extract_strided_slice %21 {offsets = [0, 48], sizes = [32, 16], strides = [1, 1]} : vector<32x128xbf16> to vector<32x16xbf16>
    %cst_35 = arith.constant dense<0.000000e+00> : vector<32x32xf32>
    %95 = tpu.matmul %93, %94, %cst_35 {dimension_numbers = #tpu.dot_dimension_numbers<[1], [1], [0], [0], [0, 0, 1, 0], [], []>} : vector<32x16xbf16>, vector<32x16xbf16>, vector<32x32xf32> -> vector<32x32xf32>
    %cst_36 = arith.constant 2.500000e-01 : f32
    %96 = vector.broadcast %cst_36 : f32 to vector<32x32xf32>
    %97 = arith.mulf %95, %96 : vector<32x32xf32>
    %98 = arith.addf %97, %4 : vector<32x32xf32>
    %cst_37 = arith.constant dense<0xFF800000> : vector<32xf32>
    %99 = vector.multi_reduction <maximumf>, %98, %cst_37 [1] : vector<32x32xf32> to vector<32xf32>
    %100 = vector.shape_cast %99 : vector<32xf32> to vector<32x1xf32>
    %101 = vector.broadcast %100 : vector<32x1xf32> to vector<32x32xf32>
    %102 = arith.subf %98, %101 : vector<32x32xf32>
    %103 = math.exp %102 : vector<32x32xf32>
    %cst_38 = arith.constant dense<0.000000e+00> : vector<32xf32>
    %104 = vector.multi_reduction <add>, %103, %cst_38 [1] : vector<32x32xf32> to vector<32xf32>
    %105 = vector.shape_cast %104 : vector<32xf32> to vector<32x1xf32>
    %106 = tpu.reciprocal %105 : vector<32x1xf32> -> vector<32x1xf32>
    %107 = vector.broadcast %106 : vector<32x1xf32> to vector<32x32xf32>
    %108 = arith.mulf %103, %107 : vector<32x32xf32>
    %109 = arith.truncf %108 : vector<32x32xf32> to vector<32x32xbf16>
    %110 = vector.extract_strided_slice %22 {offsets = [0, 48], sizes = [32, 16], strides = [1, 1]} : vector<32x128xbf16> to vector<32x16xbf16>
    %cst_39 = arith.constant dense<0.000000e+00> : vector<32x16xf32>
    %111 = tpu.matmul %109, %110, %cst_39 {dimension_numbers = #tpu.dot_dimension_numbers<[1], [0], [0], [1], [0, 0, 1, 1], [], []>} : vector<32x32xbf16>, vector<32x16xbf16>, vector<32x16xf32> -> vector<32x16xf32>
    %112 = arith.truncf %111 : vector<32x16xf32> to vector<32x16xbf16>
    %113 = vector.extract_strided_slice %17 {offsets = [48, 0], sizes = [16, 128], strides = [1, 1]} : vector<128x128xbf16> to vector<16x128xbf16>
    %cst_40 = arith.constant dense<0.000000e+00> : vector<32x128xf32>
    %114 = tpu.matmul %112, %113, %cst_40 {dimension_numbers = #tpu.dot_dimension_numbers<[1], [0], [0], [1], [0, 0, 1, 1], [], []>} : vector<32x16xbf16>, vector<16x128xbf16>, vector<32x128xf32> -> vector<32x128xf32>
    %115 = arith.addf %92, %114 : vector<32x128xf32>
    %116 = vector.extract_strided_slice %20 {offsets = [0, 64], sizes = [32, 16], strides = [1, 1]} : vector<32x128xbf16> to vector<32x16xbf16>
    %117 = vector.extract_strided_slice %21 {offsets = [0, 64], sizes = [32, 16], strides = [1, 1]} : vector<32x128xbf16> to vector<32x16xbf16>
    %cst_41 = arith.constant dense<0.000000e+00> : vector<32x32xf32>
    %118 = tpu.matmul %116, %117, %cst_41 {dimension_numbers = #tpu.dot_dimension_numbers<[1], [1], [0], [0], [0, 0, 1, 0], [], []>} : vector<32x16xbf16>, vector<32x16xbf16>, vector<32x32xf32> -> vector<32x32xf32>
    %cst_42 = arith.constant 2.500000e-01 : f32
    %119 = vector.broadcast %cst_42 : f32 to vector<32x32xf32>
    %120 = arith.mulf %118, %119 : vector<32x32xf32>
    %121 = arith.addf %120, %4 : vector<32x32xf32>
    %cst_43 = arith.constant dense<0xFF800000> : vector<32xf32>
    %122 = vector.multi_reduction <maximumf>, %121, %cst_43 [1] : vector<32x32xf32> to vector<32xf32>
    %123 = vector.shape_cast %122 : vector<32xf32> to vector<32x1xf32>
    %124 = vector.broadcast %123 : vector<32x1xf32> to vector<32x32xf32>
    %125 = arith.subf %121, %124 : vector<32x32xf32>
    %126 = math.exp %125 : vector<32x32xf32>
    %cst_44 = arith.constant dense<0.000000e+00> : vector<32xf32>
    %127 = vector.multi_reduction <add>, %126, %cst_44 [1] : vector<32x32xf32> to vector<32xf32>
    %128 = vector.shape_cast %127 : vector<32xf32> to vector<32x1xf32>
    %129 = tpu.reciprocal %128 : vector<32x1xf32> -> vector<32x1xf32>
    %130 = vector.broadcast %129 : vector<32x1xf32> to vector<32x32xf32>
    %131 = arith.mulf %126, %130 : vector<32x32xf32>
    %132 = arith.truncf %131 : vector<32x32xf32> to vector<32x32xbf16>
    %133 = vector.extract_strided_slice %22 {offsets = [0, 64], sizes = [32, 16], strides = [1, 1]} : vector<32x128xbf16> to vector<32x16xbf16>
    %cst_45 = arith.constant dense<0.000000e+00> : vector<32x16xf32>
    %134 = tpu.matmul %132, %133, %cst_45 {dimension_numbers = #tpu.dot_dimension_numbers<[1], [0], [0], [1], [0, 0, 1, 1], [], []>} : vector<32x32xbf16>, vector<32x16xbf16>, vector<32x16xf32> -> vector<32x16xf32>
    %135 = arith.truncf %134 : vector<32x16xf32> to vector<32x16xbf16>
    %136 = vector.extract_strided_slice %17 {offsets = [64, 0], sizes = [16, 128], strides = [1, 1]} : vector<128x128xbf16> to vector<16x128xbf16>
    %cst_46 = arith.constant dense<0.000000e+00> : vector<32x128xf32>
    %137 = tpu.matmul %135, %136, %cst_46 {dimension_numbers = #tpu.dot_dimension_numbers<[1], [0], [0], [1], [0, 0, 1, 1], [], []>} : vector<32x16xbf16>, vector<16x128xbf16>, vector<32x128xf32> -> vector<32x128xf32>
    %138 = arith.addf %115, %137 : vector<32x128xf32>
    %139 = vector.extract_strided_slice %20 {offsets = [0, 80], sizes = [32, 16], strides = [1, 1]} : vector<32x128xbf16> to vector<32x16xbf16>
    %140 = vector.extract_strided_slice %21 {offsets = [0, 80], sizes = [32, 16], strides = [1, 1]} : vector<32x128xbf16> to vector<32x16xbf16>
    %cst_47 = arith.constant dense<0.000000e+00> : vector<32x32xf32>
    %141 = tpu.matmul %139, %140, %cst_47 {dimension_numbers = #tpu.dot_dimension_numbers<[1], [1], [0], [0], [0, 0, 1, 0], [], []>} : vector<32x16xbf16>, vector<32x16xbf16>, vector<32x32xf32> -> vector<32x32xf32>
    %cst_48 = arith.constant 2.500000e-01 : f32
    %142 = vector.broadcast %cst_48 : f32 to vector<32x32xf32>
    %143 = arith.mulf %141, %142 : vector<32x32xf32>
    %144 = arith.addf %143, %4 : vector<32x32xf32>
    %cst_49 = arith.constant dense<0xFF800000> : vector<32xf32>
    %145 = vector.multi_reduction <maximumf>, %144, %cst_49 [1] : vector<32x32xf32> to vector<32xf32>
    %146 = vector.shape_cast %145 : vector<32xf32> to vector<32x1xf32>
    %147 = vector.broadcast %146 : vector<32x1xf32> to vector<32x32xf32>
    %148 = arith.subf %144, %147 : vector<32x32xf32>
    %149 = math.exp %148 : vector<32x32xf32>
    %cst_50 = arith.constant dense<0.000000e+00> : vector<32xf32>
    %150 = vector.multi_reduction <add>, %149, %cst_50 [1] : vector<32x32xf32> to vector<32xf32>
    %151 = vector.shape_cast %150 : vector<32xf32> to vector<32x1xf32>
    %152 = tpu.reciprocal %151 : vector<32x1xf32> -> vector<32x1xf32>
    %153 = vector.broadcast %152 : vector<32x1xf32> to vector<32x32xf32>
    %154 = arith.mulf %149, %153 : vector<32x32xf32>
    %155 = arith.truncf %154 : vector<32x32xf32> to vector<32x32xbf16>
    %156 = vector.extract_strided_slice %22 {offsets = [0, 80], sizes = [32, 16], strides = [1, 1]} : vector<32x128xbf16> to vector<32x16xbf16>
    %cst_51 = arith.constant dense<0.000000e+00> : vector<32x16xf32>
    %157 = tpu.matmul %155, %156, %cst_51 {dimension_numbers = #tpu.dot_dimension_numbers<[1], [0], [0], [1], [0, 0, 1, 1], [], []>} : vector<32x32xbf16>, vector<32x16xbf16>, vector<32x16xf32> -> vector<32x16xf32>
    %158 = arith.truncf %157 : vector<32x16xf32> to vector<32x16xbf16>
    %159 = vector.extract_strided_slice %17 {offsets = [80, 0], sizes = [16, 128], strides = [1, 1]} : vector<128x128xbf16> to vector<16x128xbf16>
    %cst_52 = arith.constant dense<0.000000e+00> : vector<32x128xf32>
    %160 = tpu.matmul %158, %159, %cst_52 {dimension_numbers = #tpu.dot_dimension_numbers<[1], [0], [0], [1], [0, 0, 1, 1], [], []>} : vector<32x16xbf16>, vector<16x128xbf16>, vector<32x128xf32> -> vector<32x128xf32>
    %161 = arith.addf %138, %160 : vector<32x128xf32>
    %162 = vector.extract_strided_slice %20 {offsets = [0, 96], sizes = [32, 16], strides = [1, 1]} : vector<32x128xbf16> to vector<32x16xbf16>
    %163 = vector.extract_strided_slice %21 {offsets = [0, 96], sizes = [32, 16], strides = [1, 1]} : vector<32x128xbf16> to vector<32x16xbf16>
    %cst_53 = arith.constant dense<0.000000e+00> : vector<32x32xf32>
    %164 = tpu.matmul %162, %163, %cst_53 {dimension_numbers = #tpu.dot_dimension_numbers<[1], [1], [0], [0], [0, 0, 1, 0], [], []>} : vector<32x16xbf16>, vector<32x16xbf16>, vector<32x32xf32> -> vector<32x32xf32>
    %cst_54 = arith.constant 2.500000e-01 : f32
    %165 = vector.broadcast %cst_54 : f32 to vector<32x32xf32>
    %166 = arith.mulf %164, %165 : vector<32x32xf32>
    %167 = arith.addf %166, %4 : vector<32x32xf32>
    %cst_55 = arith.constant dense<0xFF800000> : vector<32xf32>
    %168 = vector.multi_reduction <maximumf>, %167, %cst_55 [1] : vector<32x32xf32> to vector<32xf32>
    %169 = vector.shape_cast %168 : vector<32xf32> to vector<32x1xf32>
    %170 = vector.broadcast %169 : vector<32x1xf32> to vector<32x32xf32>
    %171 = arith.subf %167, %170 : vector<32x32xf32>
    %172 = math.exp %171 : vector<32x32xf32>
    %cst_56 = arith.constant dense<0.000000e+00> : vector<32xf32>
    %173 = vector.multi_reduction <add>, %172, %cst_56 [1] : vector<32x32xf32> to vector<32xf32>
    %174 = vector.shape_cast %173 : vector<32xf32> to vector<32x1xf32>
    %175 = tpu.reciprocal %174 : vector<32x1xf32> -> vector<32x1xf32>
    %176 = vector.broadcast %175 : vector<32x1xf32> to vector<32x32xf32>
    %177 = arith.mulf %172, %176 : vector<32x32xf32>
    %178 = arith.truncf %177 : vector<32x32xf32> to vector<32x32xbf16>
    %179 = vector.extract_strided_slice %22 {offsets = [0, 96], sizes = [32, 16], strides = [1, 1]} : vector<32x128xbf16> to vector<32x16xbf16>
    %cst_57 = arith.constant dense<0.000000e+00> : vector<32x16xf32>
    %180 = tpu.matmul %178, %179, %cst_57 {dimension_numbers = #tpu.dot_dimension_numbers<[1], [0], [0], [1], [0, 0, 1, 1], [], []>} : vector<32x32xbf16>, vector<32x16xbf16>, vector<32x16xf32> -> vector<32x16xf32>
    %181 = arith.truncf %180 : vector<32x16xf32> to vector<32x16xbf16>
    %182 = vector.extract_strided_slice %17 {offsets = [96, 0], sizes = [16, 128], strides = [1, 1]} : vector<128x128xbf16> to vector<16x128xbf16>
    %cst_58 = arith.constant dense<0.000000e+00> : vector<32x128xf32>
    %183 = tpu.matmul %181, %182, %cst_58 {dimension_numbers = #tpu.dot_dimension_numbers<[1], [0], [0], [1], [0, 0, 1, 1], [], []>} : vector<32x16xbf16>, vector<16x128xbf16>, vector<32x128xf32> -> vector<32x128xf32>
    %184 = arith.addf %161, %183 : vector<32x128xf32>
    %185 = vector.extract_strided_slice %20 {offsets = [0, 112], sizes = [32, 16], strides = [1, 1]} : vector<32x128xbf16> to vector<32x16xbf16>
    %186 = vector.extract_strided_slice %21 {offsets = [0, 112], sizes = [32, 16], strides = [1, 1]} : vector<32x128xbf16> to vector<32x16xbf16>
    %cst_59 = arith.constant dense<0.000000e+00> : vector<32x32xf32>
    %187 = tpu.matmul %185, %186, %cst_59 {dimension_numbers = #tpu.dot_dimension_numbers<[1], [1], [0], [0], [0, 0, 1, 0], [], []>} : vector<32x16xbf16>, vector<32x16xbf16>, vector<32x32xf32> -> vector<32x32xf32>
    %cst_60 = arith.constant 2.500000e-01 : f32
    %188 = vector.broadcast %cst_60 : f32 to vector<32x32xf32>
    %189 = arith.mulf %187, %188 : vector<32x32xf32>
    %190 = arith.addf %189, %4 : vector<32x32xf32>
    %cst_61 = arith.constant dense<0xFF800000> : vector<32xf32>
    %191 = vector.multi_reduction <maximumf>, %190, %cst_61 [1] : vector<32x32xf32> to vector<32xf32>
    %192 = vector.shape_cast %191 : vector<32xf32> to vector<32x1xf32>
    %193 = vector.broadcast %192 : vector<32x1xf32> to vector<32x32xf32>
    %194 = arith.subf %190, %193 : vector<32x32xf32>
    %195 = math.exp %194 : vector<32x32xf32>
    %cst_62 = arith.constant dense<0.000000e+00> : vector<32xf32>
    %196 = vector.multi_reduction <add>, %195, %cst_62 [1] : vector<32x32xf32> to vector<32xf32>
    %197 = vector.shape_cast %196 : vector<32xf32> to vector<32x1xf32>
    %198 = tpu.reciprocal %197 : vector<32x1xf32> -> vector<32x1xf32>
    %199 = vector.broadcast %198 : vector<32x1xf32> to vector<32x32xf32>
    %200 = arith.mulf %195, %199 : vector<32x32xf32>
    %201 = arith.truncf %200 : vector<32x32xf32> to vector<32x32xbf16>
    %202 = vector.extract_strided_slice %22 {offsets = [0, 112], sizes = [32, 16], strides = [1, 1]} : vector<32x128xbf16> to vector<32x16xbf16>
    %cst_63 = arith.constant dense<0.000000e+00> : vector<32x16xf32>
    %203 = tpu.matmul %201, %202, %cst_63 {dimension_numbers = #tpu.dot_dimension_numbers<[1], [0], [0], [1], [0, 0, 1, 1], [], []>} : vector<32x32xbf16>, vector<32x16xbf16>, vector<32x16xf32> -> vector<32x16xf32>
    %204 = arith.truncf %203 : vector<32x16xf32> to vector<32x16xbf16>
    %205 = vector.extract_strided_slice %17 {offsets = [112, 0], sizes = [16, 128], strides = [1, 1]} : vector<128x128xbf16> to vector<16x128xbf16>
    %cst_64 = arith.constant dense<0.000000e+00> : vector<32x128xf32>
    %206 = tpu.matmul %204, %205, %cst_64 {dimension_numbers = #tpu.dot_dimension_numbers<[1], [0], [0], [1], [0, 0, 1, 1], [], []>} : vector<32x16xbf16>, vector<16x128xbf16>, vector<32x128xf32> -> vector<32x128xf32>
    %207 = arith.addf %184, %206 : vector<32x128xf32>
    %208 = vector.broadcast %19 : vector<1x128xf32> to vector<32x128xf32>
    %209 = arith.addf %207, %208 : vector<32x128xf32>
    %210 = arith.addf %3, %209 : vector<32x128xf32>
    %c0_65 = arith.constant 0 : index
    %c0_66 = arith.constant 0 : index
    %c0_67 = arith.constant 0 : index
    %211 = vector.load %arg7[%c0_65, %c0_66, %c0_67] : memref<1x1x128xf32, #tpu.memory_space<vmem>>, vector<1x1x128xf32>
    %212 = vector.shape_cast %211 : vector<1x1x128xf32> to vector<1x128xf32>
    %c0_68 = arith.constant 0 : index
    %c0_69 = arith.constant 0 : index
    %c0_70 = arith.constant 0 : index
    %213 = vector.load %arg8[%c0_68, %c0_69, %c0_70] : memref<1x1x128xf32, #tpu.memory_space<vmem>>, vector<1x1x128xf32>
    %214 = vector.shape_cast %213 : vector<1x1x128xf32> to vector<1x128xf32>
    %cst_71 = arith.constant dense<0.000000e+00> : vector<32xf32>
    %215 = vector.multi_reduction <add>, %210, %cst_71 [1] : vector<32x128xf32> to vector<32xf32>
    %216 = vector.shape_cast %215 : vector<32xf32> to vector<32x1xf32>
    %cst_72 = arith.constant 1.280000e+02 : f32
    %217 = vector.broadcast %cst_72 : f32 to vector<32x1xf32>
    %218 = arith.divf %216, %217 : vector<32x1xf32>
    %219 = vector.broadcast %218 : vector<32x1xf32> to vector<32x128xf32>
    %220 = arith.subf %210, %219 : vector<32x128xf32>
    %221 = arith.mulf %220, %220 : vector<32x128xf32>
    %cst_73 = arith.constant dense<0.000000e+00> : vector<32xf32>
    %222 = vector.multi_reduction <add>, %221, %cst_73 [1] : vector<32x128xf32> to vector<32xf32>
    %223 = vector.shape_cast %222 : vector<32xf32> to vector<32x1xf32>
    %cst_74 = arith.constant 1.280000e+02 : f32
    %224 = vector.broadcast %cst_74 : f32 to vector<32x1xf32>
    %225 = arith.divf %223, %224 : vector<32x1xf32>
    %226 = vector.broadcast %218 : vector<32x1xf32> to vector<32x128xf32>
    %227 = arith.subf %210, %226 : vector<32x128xf32>
    %cst_75 = arith.constant 9.99999974E-6 : f32
    %228 = vector.broadcast %cst_75 : f32 to vector<32x1xf32>
    %229 = arith.addf %225, %228 : vector<32x1xf32>
    %230 = math.rsqrt %229 : vector<32x1xf32>
    %231 = vector.broadcast %230 : vector<32x1xf32> to vector<32x128xf32>
    %232 = arith.mulf %227, %231 : vector<32x128xf32>
    %233 = vector.broadcast %212 : vector<1x128xf32> to vector<32x128xf32>
    %234 = arith.mulf %232, %233 : vector<32x128xf32>
    %235 = vector.broadcast %214 : vector<1x128xf32> to vector<32x128xf32>
    %236 = arith.addf %234, %235 : vector<32x128xf32>
    %237 = arith.truncf %236 : vector<32x128xf32> to vector<32x128xbf16>
    %c0_76 = arith.constant 0 : index
    %c0_77 = arith.constant 0 : index
    %c0_78 = arith.constant 0 : index
    %238 = vector.load %arg9[%c0_76, %c0_77, %c0_78] : memref<1x128x256xbf16, #tpu.memory_space<vmem>>, vector<1x128x256xbf16>
    %239 = vector.shape_cast %238 : vector<1x128x256xbf16> to vector<128x256xbf16>
    %cst_79 = arith.constant dense<0.000000e+00> : vector<32x256xf32>
    %240 = tpu.matmul %237, %239, %cst_79 {dimension_numbers = #tpu.dot_dimension_numbers<[1], [0], [0], [1], [0, 0, 1, 1], [], []>} : vector<32x128xbf16>, vector<128x256xbf16>, vector<32x256xf32> -> vector<32x256xf32>
    %c0_80 = arith.constant 0 : index
    %c0_81 = arith.constant 0 : index
    %c0_82 = arith.constant 0 : index
    %241 = vector.load %arg10[%c0_80, %c0_81, %c0_82] : memref<1x1x256xf32, #tpu.memory_space<vmem>>, vector<1x1x256xf32>
    %242 = vector.shape_cast %241 : vector<1x1x256xf32> to vector<1x256xf32>
    %243 = vector.broadcast %242 : vector<1x256xf32> to vector<32x256xf32>
    %244 = arith.addf %240, %243 : vector<32x256xf32>
    %cst_83 = arith.constant 0.000000e+00 : f32
    %245 = vector.broadcast %cst_83 : f32 to vector<32x256xf32>
    %246 = arith.maximumf %244, %245 : vector<32x256xf32>
    %247 = arith.truncf %246 : vector<32x256xf32> to vector<32x256xbf16>
    %c0_84 = arith.constant 0 : index
    %c0_85 = arith.constant 0 : index
    %c0_86 = arith.constant 0 : index
    %248 = vector.load %arg11[%c0_84, %c0_85, %c0_86] : memref<1x256x128xbf16, #tpu.memory_space<vmem>>, vector<1x256x128xbf16>
    %249 = vector.shape_cast %248 : vector<1x256x128xbf16> to vector<256x128xbf16>
    %cst_87 = arith.constant dense<0.000000e+00> : vector<32x128xf32>
    %250 = tpu.matmul %247, %249, %cst_87 {dimension_numbers = #tpu.dot_dimension_numbers<[1], [0], [0], [1], [0, 0, 1, 1], [], []>} : vector<32x256xbf16>, vector<256x128xbf16>, vector<32x128xf32> -> vector<32x128xf32>
    %c0_88 = arith.constant 0 : index
    %c0_89 = arith.constant 0 : index
    %c0_90 = arith.constant 0 : index
    %251 = vector.load %arg12[%c0_88, %c0_89, %c0_90] : memref<1x1x128xf32, #tpu.memory_space<vmem>>, vector<1x1x128xf32>
    %252 = vector.shape_cast %251 : vector<1x1x128xf32> to vector<1x128xf32>
    %253 = vector.broadcast %252 : vector<1x128xf32> to vector<32x128xf32>
    %254 = arith.addf %250, %253 : vector<32x128xf32>
    %255 = arith.addf %236, %254 : vector<32x128xf32>
    %c0_91 = arith.constant 0 : index
    %c0_92 = arith.constant 0 : index
    %c0_93 = arith.constant 0 : index
    %256 = vector.load %arg13[%c0_91, %c0_92, %c0_93] : memref<1x1x128xf32, #tpu.memory_space<vmem>>, vector<1x1x128xf32>
    %257 = vector.shape_cast %256 : vector<1x1x128xf32> to vector<1x128xf32>
    %c0_94 = arith.constant 0 : index
    %c0_95 = arith.constant 0 : index
    %c0_96 = arith.constant 0 : index
    %258 = vector.load %arg14[%c0_94, %c0_95, %c0_96] : memref<1x1x128xf32, #tpu.memory_space<vmem>>, vector<1x1x128xf32>
    %259 = vector.shape_cast %258 : vector<1x1x128xf32> to vector<1x128xf32>
    %cst_97 = arith.constant dense<0.000000e+00> : vector<32xf32>
    %260 = vector.multi_reduction <add>, %255, %cst_97 [1] : vector<32x128xf32> to vector<32xf32>
    %261 = vector.shape_cast %260 : vector<32xf32> to vector<32x1xf32>
    %cst_98 = arith.constant 1.280000e+02 : f32
    %262 = vector.broadcast %cst_98 : f32 to vector<32x1xf32>
    %263 = arith.divf %261, %262 : vector<32x1xf32>
    %264 = vector.broadcast %263 : vector<32x1xf32> to vector<32x128xf32>
    %265 = arith.subf %255, %264 : vector<32x128xf32>
    %266 = arith.mulf %265, %265 : vector<32x128xf32>
    %cst_99 = arith.constant dense<0.000000e+00> : vector<32xf32>
    %267 = vector.multi_reduction <add>, %266, %cst_99 [1] : vector<32x128xf32> to vector<32xf32>
    %268 = vector.shape_cast %267 : vector<32xf32> to vector<32x1xf32>
    %cst_100 = arith.constant 1.280000e+02 : f32
    %269 = vector.broadcast %cst_100 : f32 to vector<32x1xf32>
    %270 = arith.divf %268, %269 : vector<32x1xf32>
    %271 = vector.broadcast %263 : vector<32x1xf32> to vector<32x128xf32>
    %272 = arith.subf %255, %271 : vector<32x128xf32>
    %cst_101 = arith.constant 9.99999974E-6 : f32
    %273 = vector.broadcast %cst_101 : f32 to vector<32x1xf32>
    %274 = arith.addf %270, %273 : vector<32x1xf32>
    %275 = math.rsqrt %274 : vector<32x1xf32>
    %276 = vector.broadcast %275 : vector<32x1xf32> to vector<32x128xf32>
    %277 = arith.mulf %272, %276 : vector<32x128xf32>
    %278 = vector.broadcast %257 : vector<1x128xf32> to vector<32x128xf32>
    %279 = arith.mulf %277, %278 : vector<32x128xf32>
    %280 = vector.broadcast %259 : vector<1x128xf32> to vector<32x128xf32>
    %281 = arith.addf %279, %280 : vector<32x128xf32>
    %c0_102 = arith.constant 0 : index
    %c0_103 = arith.constant 0 : index
    %282 = vector.load %arg16[%c0_102, %c0_103] : memref<32x128xf32, #tpu.memory_space<vmem>>, vector<32x128xf32>
    tpu.vector_store %arg16[%c0_102, %c0_103], %281 {strides = array<i32>} : memref<32x128xf32, #tpu.memory_space<vmem>>, vector<32x128xf32>,
    %c7_i32 = arith.constant 7 : i32
    %283 = arith.cmpi eq, %arg0, %c7_i32 : i32
    %284 = arith.extui %283 : i1 to i32
    %c0_i32_104 = arith.constant 0 : i32
    %285 = arith.cmpi ne, %284, %c0_i32_104 : i32
    scf.if %285 {
      %c0_105 = arith.constant 0 : index
      %c0_106 = arith.constant 0 : index
      %286 = vector.load %arg15[%c0_105, %c0_106] : memref<32x128xf32, #tpu.memory_space<vmem>>, vector<32x128xf32>
      tpu.vector_store %arg15[%c0_105, %c0_106], %281 {strides = array<i32>} : memref<32x128xf32, #tpu.memory_space<vmem>>, vector<32x128xf32>,
    } else {
    }
    return
  }
  func.func @transform_0(%arg0: i32) -> (i32, i32) {
    %c0_i32 = arith.constant 0 : i32
    %c0_i32_0 = arith.constant 0 : i32
    %c0_i32_1 = arith.constant 0 : i32
    return %c0_i32, %c0_i32_0 : i32, i32
  }
  func.func @transform_1(%arg0: i32) -> (i32, i32) {
    %c0_i32 = arith.constant 0 : i32
    %c0_i32_0 = arith.constant 0 : i32
    %c0_i32_1 = arith.constant 0 : i32
    return %c0_i32, %c0_i32_0 : i32, i32
  }
  func.func @transform_2(%arg0: i32) -> (i32, i32, i32) {
    %c0_i32 = arith.constant 0 : i32
    %c0_i32_0 = arith.constant 0 : i32
    %c0_i32_1 = arith.constant 0 : i32
    return %arg0, %c0_i32, %c0_i32_0 : i32, i32, i32
  }
  func.func @transform_3(%arg0: i32) -> (i32, i32, i32) {
    %c0_i32 = arith.constant 0 : i32
    %c0_i32_0 = arith.constant 0 : i32
    %c0_i32_1 = arith.constant 0 : i32
    return %arg0, %c0_i32, %c0_i32_0 : i32, i32, i32
  }
  func.func @transform_4(%arg0: i32) -> (i32, i32, i32) {
    %c0_i32 = arith.constant 0 : i32
    %c0_i32_0 = arith.constant 0 : i32
    %c0_i32_1 = arith.constant 0 : i32
    return %arg0, %c0_i32, %c0_i32_0 : i32, i32, i32
  }
  func.func @transform_5(%arg0: i32) -> (i32, i32, i32) {
    %c0_i32 = arith.constant 0 : i32
    %c0_i32_0 = arith.constant 0 : i32
    %c0_i32_1 = arith.constant 0 : i32
    return %arg0, %c0_i32, %c0_i32_0 : i32, i32, i32
  }
  func.func @transform_6(%arg0: i32) -> (i32, i32, i32) {
    %c0_i32 = arith.constant 0 : i32
    %c0_i32_0 = arith.constant 0 : i32
    %c0_i32_1 = arith.constant 0 : i32
    return %arg0, %c0_i32, %c0_i32_0 : i32, i32, i32
  }
  func.func @transform_7(%arg0: i32) -> (i32, i32, i32) {
    %c0_i32 = arith.constant 0 : i32
    %c0_i32_0 = arith.constant 0 : i32
    %c0_i32_1 = arith.constant 0 : i32
    return %arg0, %c0_i32, %c0_i32_0 : i32, i32, i32
  }
  func.func @transform_8(%arg0: i32) -> (i32, i32, i32) {
    %c0_i32 = arith.constant 0 : i32
    %c0_i32_0 = arith.constant 0 : i32
    %c0_i32_1 = arith.constant 0 : i32
    return %arg0, %c0_i32, %c0_i32_0 : i32, i32, i32
  }
  func.func @transform_9(%arg0: i32) -> (i32, i32, i32) {
    %c0_i32 = arith.constant 0 : i32
    %c0_i32_0 = arith.constant 0 : i32
    %c0_i32_1 = arith.constant 0 : i32
    return %arg0, %c0_i32, %c0_i32_0 : i32, i32, i32
  }
  func.func @transform_10(%arg0: i32) -> (i32, i32, i32) {
    %c0_i32 = arith.constant 0 : i32
    %c0_i32_0 = arith.constant 0 : i32
    %c0_i32_1 = arith.constant 0 : i32
    return %arg0, %c0_i32, %c0_i32_0 : i32, i32, i32
  }
  func.func @transform_11(%arg0: i32) -> (i32, i32, i32) {
    %c0_i32 = arith.constant 0 : i32
    %c0_i32_0 = arith.constant 0 : i32
    %c0_i32_1 = arith.constant 0 : i32
    return %arg0, %c0_i32, %c0_i32_0 : i32, i32, i32
  }
  func.func @transform_12(%arg0: i32) -> (i32, i32, i32) {
    %c0_i32 = arith.constant 0 : i32
    %c0_i32_0 = arith.constant 0 : i32
    %c0_i32_1 = arith.constant 0 : i32
    return %arg0, %c0_i32, %c0_i32_0 : i32, i32, i32
  }
  func.func @transform_13(%arg0: i32) -> (i32, i32, i32) {
    %c0_i32 = arith.constant 0 : i32
    %c0_i32_0 = arith.constant 0 : i32
    %c0_i32_1 = arith.constant 0 : i32
    return %arg0, %c0_i32, %c0_i32_0 : i32, i32, i32
  }
  func.func @transform_14(%arg0: i32) -> (i32, i32) {
    %c0_i32 = arith.constant 0 : i32
    %c0_i32_0 = arith.constant 0 : i32
    %c0_i32_1 = arith.constant 0 : i32
    return %c0_i32, %c0_i32_0 : i32, i32
  }
}

module attributes {stable_mosaic.version = 11 : i64} {
  func.func @_mem_kv_kernel(%arg0: i32, %arg1: memref<32x128xbf16, #tpu.memory_space<vmem>>, %arg2: memref<1x128x256xbf16, #tpu.memory_space<vmem>>, %arg3: memref<1x1x256xf32, #tpu.memory_space<vmem>>, %arg4: memref<1x32x256xbf16, #tpu.memory_space<vmem>>) attributes {dimension_semantics = [#tpu.dimension_semantics<parallel>], iteration_bounds = array<i64: 8>, scalar_prefetch = 0 : i64, scratch_operands = 0 : i64, tpu.core_type = #tpu.core_type<tc>, window_params = [{pipeline_mode = #tpu.pipeline_mode<synchronous>, transform_indices = @transform_0, window_bounds = array<i64: 32, 128>}, {transform_indices = @transform_1, window_bounds = array<i64: 1, 128, 256>}, {transform_indices = @transform_2, window_bounds = array<i64: 1, 1, 256>}, {transform_indices = @transform_3, window_bounds = array<i64: 1, 32, 256>}]} {
    %c0 = arith.constant 0 : index
    %c0_0 = arith.constant 0 : index
    %0 = vector.load %arg1[%c0, %c0_0] : memref<32x128xbf16, #tpu.memory_space<vmem>>, vector<32x128xbf16>
    %c0_1 = arith.constant 0 : index
    %c0_2 = arith.constant 0 : index
    %c0_3 = arith.constant 0 : index
    %1 = vector.load %arg2[%c0_1, %c0_2, %c0_3] : memref<1x128x256xbf16, #tpu.memory_space<vmem>>, vector<1x128x256xbf16>
    %2 = vector.shape_cast %1 : vector<1x128x256xbf16> to vector<128x256xbf16>
    %cst = arith.constant dense<0.000000e+00> : vector<32x256xf32>
    %3 = tpu.matmul %0, %2, %cst {dimension_numbers = #tpu.dot_dimension_numbers<[1], [0], [0], [1], [0, 0, 1, 1], [], []>} : vector<32x128xbf16>, vector<128x256xbf16>, vector<32x256xf32> -> vector<32x256xf32>
    %c0_4 = arith.constant 0 : index
    %c0_5 = arith.constant 0 : index
    %c0_6 = arith.constant 0 : index
    %4 = vector.load %arg3[%c0_4, %c0_5, %c0_6] : memref<1x1x256xf32, #tpu.memory_space<vmem>>, vector<1x1x256xf32>
    %5 = vector.shape_cast %4 : vector<1x1x256xf32> to vector<1x256xf32>
    %6 = vector.broadcast %5 : vector<1x256xf32> to vector<32x256xf32>
    %7 = arith.addf %3, %6 : vector<32x256xf32>
    %8 = arith.truncf %7 : vector<32x256xf32> to vector<32x256xbf16>
    %c0_7 = arith.constant 0 : index
    %c0_8 = arith.constant 0 : index
    %c0_9 = arith.constant 0 : index
    %9 = vector.load %arg4[%c0_7, %c0_8, %c0_9] : memref<1x32x256xbf16, #tpu.memory_space<vmem>>, vector<1x32x256xbf16>
    %10 = vector.shape_cast %9 : vector<1x32x256xbf16> to vector<32x256xbf16>
    %11 = vector.shape_cast %8 : vector<32x256xbf16> to vector<1x32x256xbf16>
    tpu.vector_store %arg4[%c0_7, %c0_8, %c0_9], %11 {strides = array<i32>} : memref<1x32x256xbf16, #tpu.memory_space<vmem>>, vector<1x32x256xbf16>,
    return
  }
  func.func @transform_0(%arg0: i32) -> (i32, i32) {
    %c0_i32 = arith.constant 0 : i32
    %c0_i32_0 = arith.constant 0 : i32
    %c0_i32_1 = arith.constant 0 : i32
    return %c0_i32, %c0_i32_0 : i32, i32
  }
  func.func @transform_1(%arg0: i32) -> (i32, i32, i32) {
    %c0_i32 = arith.constant 0 : i32
    %c0_i32_0 = arith.constant 0 : i32
    %c0_i32_1 = arith.constant 0 : i32
    return %arg0, %c0_i32, %c0_i32_0 : i32, i32, i32
  }
  func.func @transform_2(%arg0: i32) -> (i32, i32, i32) {
    %c0_i32 = arith.constant 0 : i32
    %c0_i32_0 = arith.constant 0 : i32
    %c0_i32_1 = arith.constant 0 : i32
    return %arg0, %c0_i32, %c0_i32_0 : i32, i32, i32
  }
  func.func @transform_3(%arg0: i32) -> (i32, i32, i32) {
    %c0_i32 = arith.constant 0 : i32
    %c0_i32_0 = arith.constant 0 : i32
    %c0_i32_1 = arith.constant 0 : i32
    return %arg0, %c0_i32, %c0_i32_0 : i32, i32, i32
  }
}

module attributes {stable_mosaic.version = 11 : i64} {
  func.func @_decoder_stack_kernel(%arg0: i32, %arg1: memref<10x128xf32, #tpu.memory_space<vmem>>, %arg2: memref<10x10xf32, #tpu.memory_space<vmem>>, %arg3: memref<10x32xf32, #tpu.memory_space<vmem>>, %arg4: memref<1x32x256xbf16, #tpu.memory_space<vmem>>, %arg5: memref<1x128x384xbf16, #tpu.memory_space<vmem>>, %arg6: memref<1x1x384xf32, #tpu.memory_space<vmem>>, %arg7: memref<1x128x128xbf16, #tpu.memory_space<vmem>>, %arg8: memref<1x1x128xf32, #tpu.memory_space<vmem>>, %arg9: memref<1x1x128xf32, #tpu.memory_space<vmem>>, %arg10: memref<1x1x128xf32, #tpu.memory_space<vmem>>, %arg11: memref<1x128x128xbf16, #tpu.memory_space<vmem>>, %arg12: memref<1x1x128xf32, #tpu.memory_space<vmem>>, %arg13: memref<1x128x128xbf16, #tpu.memory_space<vmem>>, %arg14: memref<1x1x128xf32, #tpu.memory_space<vmem>>, %arg15: memref<1x1x128xf32, #tpu.memory_space<vmem>>, %arg16: memref<1x1x128xf32, #tpu.memory_space<vmem>>, %arg17: memref<1x128x256xbf16, #tpu.memory_space<vmem>>, %arg18: memref<1x1x256xf32, #tpu.memory_space<vmem>>, %arg19: memref<1x256x128xbf16, #tpu.memory_space<vmem>>, %arg20: memref<1x1x128xf32, #tpu.memory_space<vmem>>, %arg21: memref<1x1x128xf32, #tpu.memory_space<vmem>>, %arg22: memref<1x1x128xf32, #tpu.memory_space<vmem>>, %arg23: memref<10x128xf32, #tpu.memory_space<vmem>>, %arg24: memref<10x128xf32, #tpu.memory_space<vmem>>) attributes {dimension_semantics = [#tpu.dimension_semantics<arbitrary>], iteration_bounds = array<i64: 8>, scalar_prefetch = 0 : i64, scratch_operands = 1 : i64, tpu.core_type = #tpu.core_type<tc>, window_params = [{pipeline_mode = #tpu.pipeline_mode<synchronous>, transform_indices = @transform_0, window_bounds = array<i64: 10, 128>}, {pipeline_mode = #tpu.pipeline_mode<synchronous>, transform_indices = @transform_1, window_bounds = array<i64: 10, 10>}, {pipeline_mode = #tpu.pipeline_mode<synchronous>, transform_indices = @transform_2, window_bounds = array<i64: 10, 32>}, {transform_indices = @transform_3, window_bounds = array<i64: 1, 32, 256>}, {transform_indices = @transform_4, window_bounds = array<i64: 1, 128, 384>}, {transform_indices = @transform_5, window_bounds = array<i64: 1, 1, 384>}, {transform_indices = @transform_6, window_bounds = array<i64: 1, 128, 128>}, {transform_indices = @transform_7, window_bounds = array<i64: 1, 1, 128>}, {transform_indices = @transform_8, window_bounds = array<i64: 1, 1, 128>}, {transform_indices = @transform_9, window_bounds = array<i64: 1, 1, 128>}, {transform_indices = @transform_10, window_bounds = array<i64: 1, 128, 128>}, {transform_indices = @transform_11, window_bounds = array<i64: 1, 1, 128>}, {transform_indices = @transform_12, window_bounds = array<i64: 1, 128, 128>}, {transform_indices = @transform_13, window_bounds = array<i64: 1, 1, 128>}, {transform_indices = @transform_14, window_bounds = array<i64: 1, 1, 128>}, {transform_indices = @transform_15, window_bounds = array<i64: 1, 1, 128>}, {transform_indices = @transform_16, window_bounds = array<i64: 1, 128, 256>}, {transform_indices = @transform_17, window_bounds = array<i64: 1, 1, 256>}, {transform_indices = @transform_18, window_bounds = array<i64: 1, 256, 128>}, {transform_indices = @transform_19, window_bounds = array<i64: 1, 1, 128>}, {transform_indices = @transform_20, window_bounds = array<i64: 1, 1, 128>}, {transform_indices = @transform_21, window_bounds = array<i64: 1, 1, 128>}, {pipeline_mode = #tpu.pipeline_mode<synchronous>, transform_indices = @transform_22, window_bounds = array<i64: 10, 128>}]} {
    %c0_i32 = arith.constant 0 : i32
    %0 = arith.cmpi eq, %arg0, %c0_i32 : i32
    %1 = arith.extui %0 : i1 to i32
    %c0_i32_0 = arith.constant 0 : i32
    %2 = arith.cmpi ne, %1, %c0_i32_0 : i32
    scf.if %2 {
      %c0_183 = arith.constant 0 : index
      %c0_184 = arith.constant 0 : index
      %518 = vector.load %arg1[%c0_183, %c0_184] : memref<10x128xf32, #tpu.memory_space<vmem>>, vector<10x128xf32>
      %c0_185 = arith.constant 0 : index
      %c0_186 = arith.constant 0 : index
      %519 = vector.load %arg24[%c0_185, %c0_186] : memref<10x128xf32, #tpu.memory_space<vmem>>, vector<10x128xf32>
      tpu.vector_store %arg24[%c0_185, %c0_186], %518 {strides = array<i32>} : memref<10x128xf32, #tpu.memory_space<vmem>>, vector<10x128xf32>,
    } else {
    }
    %c0 = arith.constant 0 : index
    %c0_1 = arith.constant 0 : index
    %3 = vector.load %arg24[%c0, %c0_1] : memref<10x128xf32, #tpu.memory_space<vmem>>, vector<10x128xf32>
    %4 = arith.truncf %3 : vector<10x128xf32> to vector<10x128xbf16>
    %c0_2 = arith.constant 0 : index
    %c0_3 = arith.constant 0 : index
    %c0_4 = arith.constant 0 : index
    %5 = vector.load %arg5[%c0_2, %c0_3, %c0_4] : memref<1x128x384xbf16, #tpu.memory_space<vmem>>, vector<1x128x384xbf16>
    %6 = vector.shape_cast %5 : vector<1x128x384xbf16> to vector<128x384xbf16>
    %cst = arith.constant dense<0.000000e+00> : vector<10x384xf32>
    %7 = tpu.matmul %4, %6, %cst {dimension_numbers = #tpu.dot_dimension_numbers<[1], [0], [0], [1], [0, 0, 1, 1], [], []>} : vector<10x128xbf16>, vector<128x384xbf16>, vector<10x384xf32> -> vector<10x384xf32>
    %c0_5 = arith.constant 0 : index
    %c0_6 = arith.constant 0 : index
    %c0_7 = arith.constant 0 : index
    %8 = vector.load %arg6[%c0_5, %c0_6, %c0_7] : memref<1x1x384xf32, #tpu.memory_space<vmem>>, vector<1x1x384xf32>
    %9 = vector.shape_cast %8 : vector<1x1x384xf32> to vector<1x384xf32>
    %10 = vector.broadcast %9 : vector<1x384xf32> to vector<10x384xf32>
    %11 = arith.addf %7, %10 : vector<10x384xf32>
    %12 = vector.extract_strided_slice %11 {offsets = [0, 0], sizes = [10, 128], strides = [1, 1]} : vector<10x384xf32> to vector<10x128xf32>
    %13 = vector.extract_strided_slice %11 {offsets = [0, 128], sizes = [10, 128], strides = [1, 1]} : vector<10x384xf32> to vector<10x128xf32>
    %14 = vector.extract_strided_slice %11 {offsets = [0, 256], sizes = [10, 128], strides = [1, 1]} : vector<10x384xf32> to vector<10x128xf32>
    %c0_8 = arith.constant 0 : index
    %c0_9 = arith.constant 0 : index
    %c0_10 = arith.constant 0 : index
    %15 = vector.load %arg7[%c0_8, %c0_9, %c0_10] : memref<1x128x128xbf16, #tpu.memory_space<vmem>>, vector<1x128x128xbf16>
    %16 = vector.shape_cast %15 : vector<1x128x128xbf16> to vector<128x128xbf16>
    %c0_11 = arith.constant 0 : index
    %c0_12 = arith.constant 0 : index
    %c0_13 = arith.constant 0 : index
    %17 = vector.load %arg8[%c0_11, %c0_12, %c0_13] : memref<1x1x128xf32, #tpu.memory_space<vmem>>, vector<1x1x128xf32>
    %18 = vector.shape_cast %17 : vector<1x1x128xf32> to vector<1x128xf32>
    %c0_14 = arith.constant 0 : index
    %c0_15 = arith.constant 0 : index
    %19 = vector.load %arg2[%c0_14, %c0_15] : memref<10x10xf32, #tpu.memory_space<vmem>>, vector<10x10xf32>
    %20 = arith.truncf %12 : vector<10x128xf32> to vector<10x128xbf16>
    %21 = arith.truncf %13 : vector<10x128xf32> to vector<10x128xbf16>
    %22 = arith.truncf %14 : vector<10x128xf32> to vector<10x128xbf16>
    %cst_16 = arith.constant 0.000000e+00 : f32
    %23 = vector.broadcast %cst_16 : f32 to vector<10x128xf32>
    %24 = vector.extract_strided_slice %20 {offsets = [0, 0], sizes = [10, 16], strides = [1, 1]} : vector<10x128xbf16> to vector<10x16xbf16>
    %25 = vector.extract_strided_slice %21 {offsets = [0, 0], sizes = [10, 16], strides = [1, 1]} : vector<10x128xbf16> to vector<10x16xbf16>
    %cst_17 = arith.constant dense<0.000000e+00> : vector<10x10xf32>
    %26 = tpu.matmul %24, %25, %cst_17 {dimension_numbers = #tpu.dot_dimension_numbers<[1], [1], [0], [0], [0, 0, 1, 0], [], []>} : vector<10x16xbf16>, vector<10x16xbf16>, vector<10x10xf32> -> vector<10x10xf32>
    %cst_18 = arith.constant 2.500000e-01 : f32
    %27 = vector.broadcast %cst_18 : f32 to vector<10x10xf32>
    %28 = arith.mulf %26, %27 : vector<10x10xf32>
    %29 = arith.addf %28, %19 : vector<10x10xf32>
    %cst_19 = arith.constant dense<0xFF800000> : vector<10xf32>
    %30 = vector.multi_reduction <maximumf>, %29, %cst_19 [1] : vector<10x10xf32> to vector<10xf32>
    %31 = vector.shape_cast %30 : vector<10xf32> to vector<10x1xf32>
    %32 = vector.broadcast %31 : vector<10x1xf32> to vector<10x10xf32>
    %33 = arith.subf %29, %32 : vector<10x10xf32>
    %34 = math.exp %33 : vector<10x10xf32>
    %cst_20 = arith.constant dense<0.000000e+00> : vector<10xf32>
    %35 = vector.multi_reduction <add>, %34, %cst_20 [1] : vector<10x10xf32> to vector<10xf32>
    %36 = vector.shape_cast %35 : vector<10xf32> to vector<10x1xf32>
    %37 = tpu.reciprocal %36 : vector<10x1xf32> -> vector<10x1xf32>
    %38 = vector.broadcast %37 : vector<10x1xf32> to vector<10x10xf32>
    %39 = arith.mulf %34, %38 : vector<10x10xf32>
    %40 = arith.truncf %39 : vector<10x10xf32> to vector<10x10xbf16>
    %41 = vector.extract_strided_slice %22 {offsets = [0, 0], sizes = [10, 16], strides = [1, 1]} : vector<10x128xbf16> to vector<10x16xbf16>
    %cst_21 = arith.constant dense<0.000000e+00> : vector<10x16xf32>
    %42 = tpu.matmul %40, %41, %cst_21 {dimension_numbers = #tpu.dot_dimension_numbers<[1], [0], [0], [1], [0, 0, 1, 1], [], []>} : vector<10x10xbf16>, vector<10x16xbf16>, vector<10x16xf32> -> vector<10x16xf32>
    %43 = arith.truncf %42 : vector<10x16xf32> to vector<10x16xbf16>
    %44 = vector.extract_strided_slice %16 {offsets = [0, 0], sizes = [16, 128], strides = [1, 1]} : vector<128x128xbf16> to vector<16x128xbf16>
    %cst_22 = arith.constant dense<0.000000e+00> : vector<10x128xf32>
    %45 = tpu.matmul %43, %44, %cst_22 {dimension_numbers = #tpu.dot_dimension_numbers<[1], [0], [0], [1], [0, 0, 1, 1], [], []>} : vector<10x16xbf16>, vector<16x128xbf16>, vector<10x128xf32> -> vector<10x128xf32>
    %46 = arith.addf %23, %45 : vector<10x128xf32>
    %47 = vector.extract_strided_slice %20 {offsets = [0, 16], sizes = [10, 16], strides = [1, 1]} : vector<10x128xbf16> to vector<10x16xbf16>
    %48 = vector.extract_strided_slice %21 {offsets = [0, 16], sizes = [10, 16], strides = [1, 1]} : vector<10x128xbf16> to vector<10x16xbf16>
    %cst_23 = arith.constant dense<0.000000e+00> : vector<10x10xf32>
    %49 = tpu.matmul %47, %48, %cst_23 {dimension_numbers = #tpu.dot_dimension_numbers<[1], [1], [0], [0], [0, 0, 1, 0], [], []>} : vector<10x16xbf16>, vector<10x16xbf16>, vector<10x10xf32> -> vector<10x10xf32>
    %cst_24 = arith.constant 2.500000e-01 : f32
    %50 = vector.broadcast %cst_24 : f32 to vector<10x10xf32>
    %51 = arith.mulf %49, %50 : vector<10x10xf32>
    %52 = arith.addf %51, %19 : vector<10x10xf32>
    %cst_25 = arith.constant dense<0xFF800000> : vector<10xf32>
    %53 = vector.multi_reduction <maximumf>, %52, %cst_25 [1] : vector<10x10xf32> to vector<10xf32>
    %54 = vector.shape_cast %53 : vector<10xf32> to vector<10x1xf32>
    %55 = vector.broadcast %54 : vector<10x1xf32> to vector<10x10xf32>
    %56 = arith.subf %52, %55 : vector<10x10xf32>
    %57 = math.exp %56 : vector<10x10xf32>
    %cst_26 = arith.constant dense<0.000000e+00> : vector<10xf32>
    %58 = vector.multi_reduction <add>, %57, %cst_26 [1] : vector<10x10xf32> to vector<10xf32>
    %59 = vector.shape_cast %58 : vector<10xf32> to vector<10x1xf32>
    %60 = tpu.reciprocal %59 : vector<10x1xf32> -> vector<10x1xf32>
    %61 = vector.broadcast %60 : vector<10x1xf32> to vector<10x10xf32>
    %62 = arith.mulf %57, %61 : vector<10x10xf32>
    %63 = arith.truncf %62 : vector<10x10xf32> to vector<10x10xbf16>
    %64 = vector.extract_strided_slice %22 {offsets = [0, 16], sizes = [10, 16], strides = [1, 1]} : vector<10x128xbf16> to vector<10x16xbf16>
    %cst_27 = arith.constant dense<0.000000e+00> : vector<10x16xf32>
    %65 = tpu.matmul %63, %64, %cst_27 {dimension_numbers = #tpu.dot_dimension_numbers<[1], [0], [0], [1], [0, 0, 1, 1], [], []>} : vector<10x10xbf16>, vector<10x16xbf16>, vector<10x16xf32> -> vector<10x16xf32>
    %66 = arith.truncf %65 : vector<10x16xf32> to vector<10x16xbf16>
    %67 = vector.extract_strided_slice %16 {offsets = [16, 0], sizes = [16, 128], strides = [1, 1]} : vector<128x128xbf16> to vector<16x128xbf16>
    %cst_28 = arith.constant dense<0.000000e+00> : vector<10x128xf32>
    %68 = tpu.matmul %66, %67, %cst_28 {dimension_numbers = #tpu.dot_dimension_numbers<[1], [0], [0], [1], [0, 0, 1, 1], [], []>} : vector<10x16xbf16>, vector<16x128xbf16>, vector<10x128xf32> -> vector<10x128xf32>
    %69 = arith.addf %46, %68 : vector<10x128xf32>
    %70 = vector.extract_strided_slice %20 {offsets = [0, 32], sizes = [10, 16], strides = [1, 1]} : vector<10x128xbf16> to vector<10x16xbf16>
    %71 = vector.extract_strided_slice %21 {offsets = [0, 32], sizes = [10, 16], strides = [1, 1]} : vector<10x128xbf16> to vector<10x16xbf16>
    %cst_29 = arith.constant dense<0.000000e+00> : vector<10x10xf32>
    %72 = tpu.matmul %70, %71, %cst_29 {dimension_numbers = #tpu.dot_dimension_numbers<[1], [1], [0], [0], [0, 0, 1, 0], [], []>} : vector<10x16xbf16>, vector<10x16xbf16>, vector<10x10xf32> -> vector<10x10xf32>
    %cst_30 = arith.constant 2.500000e-01 : f32
    %73 = vector.broadcast %cst_30 : f32 to vector<10x10xf32>
    %74 = arith.mulf %72, %73 : vector<10x10xf32>
    %75 = arith.addf %74, %19 : vector<10x10xf32>
    %cst_31 = arith.constant dense<0xFF800000> : vector<10xf32>
    %76 = vector.multi_reduction <maximumf>, %75, %cst_31 [1] : vector<10x10xf32> to vector<10xf32>
    %77 = vector.shape_cast %76 : vector<10xf32> to vector<10x1xf32>
    %78 = vector.broadcast %77 : vector<10x1xf32> to vector<10x10xf32>
    %79 = arith.subf %75, %78 : vector<10x10xf32>
    %80 = math.exp %79 : vector<10x10xf32>
    %cst_32 = arith.constant dense<0.000000e+00> : vector<10xf32>
    %81 = vector.multi_reduction <add>, %80, %cst_32 [1] : vector<10x10xf32> to vector<10xf32>
    %82 = vector.shape_cast %81 : vector<10xf32> to vector<10x1xf32>
    %83 = tpu.reciprocal %82 : vector<10x1xf32> -> vector<10x1xf32>
    %84 = vector.broadcast %83 : vector<10x1xf32> to vector<10x10xf32>
    %85 = arith.mulf %80, %84 : vector<10x10xf32>
    %86 = arith.truncf %85 : vector<10x10xf32> to vector<10x10xbf16>
    %87 = vector.extract_strided_slice %22 {offsets = [0, 32], sizes = [10, 16], strides = [1, 1]} : vector<10x128xbf16> to vector<10x16xbf16>
    %cst_33 = arith.constant dense<0.000000e+00> : vector<10x16xf32>
    %88 = tpu.matmul %86, %87, %cst_33 {dimension_numbers = #tpu.dot_dimension_numbers<[1], [0], [0], [1], [0, 0, 1, 1], [], []>} : vector<10x10xbf16>, vector<10x16xbf16>, vector<10x16xf32> -> vector<10x16xf32>
    %89 = arith.truncf %88 : vector<10x16xf32> to vector<10x16xbf16>
    %90 = vector.extract_strided_slice %16 {offsets = [32, 0], sizes = [16, 128], strides = [1, 1]} : vector<128x128xbf16> to vector<16x128xbf16>
    %cst_34 = arith.constant dense<0.000000e+00> : vector<10x128xf32>
    %91 = tpu.matmul %89, %90, %cst_34 {dimension_numbers = #tpu.dot_dimension_numbers<[1], [0], [0], [1], [0, 0, 1, 1], [], []>} : vector<10x16xbf16>, vector<16x128xbf16>, vector<10x128xf32> -> vector<10x128xf32>
    %92 = arith.addf %69, %91 : vector<10x128xf32>
    %93 = vector.extract_strided_slice %20 {offsets = [0, 48], sizes = [10, 16], strides = [1, 1]} : vector<10x128xbf16> to vector<10x16xbf16>
    %94 = vector.extract_strided_slice %21 {offsets = [0, 48], sizes = [10, 16], strides = [1, 1]} : vector<10x128xbf16> to vector<10x16xbf16>
    %cst_35 = arith.constant dense<0.000000e+00> : vector<10x10xf32>
    %95 = tpu.matmul %93, %94, %cst_35 {dimension_numbers = #tpu.dot_dimension_numbers<[1], [1], [0], [0], [0, 0, 1, 0], [], []>} : vector<10x16xbf16>, vector<10x16xbf16>, vector<10x10xf32> -> vector<10x10xf32>
    %cst_36 = arith.constant 2.500000e-01 : f32
    %96 = vector.broadcast %cst_36 : f32 to vector<10x10xf32>
    %97 = arith.mulf %95, %96 : vector<10x10xf32>
    %98 = arith.addf %97, %19 : vector<10x10xf32>
    %cst_37 = arith.constant dense<0xFF800000> : vector<10xf32>
    %99 = vector.multi_reduction <maximumf>, %98, %cst_37 [1] : vector<10x10xf32> to vector<10xf32>
    %100 = vector.shape_cast %99 : vector<10xf32> to vector<10x1xf32>
    %101 = vector.broadcast %100 : vector<10x1xf32> to vector<10x10xf32>
    %102 = arith.subf %98, %101 : vector<10x10xf32>
    %103 = math.exp %102 : vector<10x10xf32>
    %cst_38 = arith.constant dense<0.000000e+00> : vector<10xf32>
    %104 = vector.multi_reduction <add>, %103, %cst_38 [1] : vector<10x10xf32> to vector<10xf32>
    %105 = vector.shape_cast %104 : vector<10xf32> to vector<10x1xf32>
    %106 = tpu.reciprocal %105 : vector<10x1xf32> -> vector<10x1xf32>
    %107 = vector.broadcast %106 : vector<10x1xf32> to vector<10x10xf32>
    %108 = arith.mulf %103, %107 : vector<10x10xf32>
    %109 = arith.truncf %108 : vector<10x10xf32> to vector<10x10xbf16>
    %110 = vector.extract_strided_slice %22 {offsets = [0, 48], sizes = [10, 16], strides = [1, 1]} : vector<10x128xbf16> to vector<10x16xbf16>
    %cst_39 = arith.constant dense<0.000000e+00> : vector<10x16xf32>
    %111 = tpu.matmul %109, %110, %cst_39 {dimension_numbers = #tpu.dot_dimension_numbers<[1], [0], [0], [1], [0, 0, 1, 1], [], []>} : vector<10x10xbf16>, vector<10x16xbf16>, vector<10x16xf32> -> vector<10x16xf32>
    %112 = arith.truncf %111 : vector<10x16xf32> to vector<10x16xbf16>
    %113 = vector.extract_strided_slice %16 {offsets = [48, 0], sizes = [16, 128], strides = [1, 1]} : vector<128x128xbf16> to vector<16x128xbf16>
    %cst_40 = arith.constant dense<0.000000e+00> : vector<10x128xf32>
    %114 = tpu.matmul %112, %113, %cst_40 {dimension_numbers = #tpu.dot_dimension_numbers<[1], [0], [0], [1], [0, 0, 1, 1], [], []>} : vector<10x16xbf16>, vector<16x128xbf16>, vector<10x128xf32> -> vector<10x128xf32>
    %115 = arith.addf %92, %114 : vector<10x128xf32>
    %116 = vector.extract_strided_slice %20 {offsets = [0, 64], sizes = [10, 16], strides = [1, 1]} : vector<10x128xbf16> to vector<10x16xbf16>
    %117 = vector.extract_strided_slice %21 {offsets = [0, 64], sizes = [10, 16], strides = [1, 1]} : vector<10x128xbf16> to vector<10x16xbf16>
    %cst_41 = arith.constant dense<0.000000e+00> : vector<10x10xf32>
    %118 = tpu.matmul %116, %117, %cst_41 {dimension_numbers = #tpu.dot_dimension_numbers<[1], [1], [0], [0], [0, 0, 1, 0], [], []>} : vector<10x16xbf16>, vector<10x16xbf16>, vector<10x10xf32> -> vector<10x10xf32>
    %cst_42 = arith.constant 2.500000e-01 : f32
    %119 = vector.broadcast %cst_42 : f32 to vector<10x10xf32>
    %120 = arith.mulf %118, %119 : vector<10x10xf32>
    %121 = arith.addf %120, %19 : vector<10x10xf32>
    %cst_43 = arith.constant dense<0xFF800000> : vector<10xf32>
    %122 = vector.multi_reduction <maximumf>, %121, %cst_43 [1] : vector<10x10xf32> to vector<10xf32>
    %123 = vector.shape_cast %122 : vector<10xf32> to vector<10x1xf32>
    %124 = vector.broadcast %123 : vector<10x1xf32> to vector<10x10xf32>
    %125 = arith.subf %121, %124 : vector<10x10xf32>
    %126 = math.exp %125 : vector<10x10xf32>
    %cst_44 = arith.constant dense<0.000000e+00> : vector<10xf32>
    %127 = vector.multi_reduction <add>, %126, %cst_44 [1] : vector<10x10xf32> to vector<10xf32>
    %128 = vector.shape_cast %127 : vector<10xf32> to vector<10x1xf32>
    %129 = tpu.reciprocal %128 : vector<10x1xf32> -> vector<10x1xf32>
    %130 = vector.broadcast %129 : vector<10x1xf32> to vector<10x10xf32>
    %131 = arith.mulf %126, %130 : vector<10x10xf32>
    %132 = arith.truncf %131 : vector<10x10xf32> to vector<10x10xbf16>
    %133 = vector.extract_strided_slice %22 {offsets = [0, 64], sizes = [10, 16], strides = [1, 1]} : vector<10x128xbf16> to vector<10x16xbf16>
    %cst_45 = arith.constant dense<0.000000e+00> : vector<10x16xf32>
    %134 = tpu.matmul %132, %133, %cst_45 {dimension_numbers = #tpu.dot_dimension_numbers<[1], [0], [0], [1], [0, 0, 1, 1], [], []>} : vector<10x10xbf16>, vector<10x16xbf16>, vector<10x16xf32> -> vector<10x16xf32>
    %135 = arith.truncf %134 : vector<10x16xf32> to vector<10x16xbf16>
    %136 = vector.extract_strided_slice %16 {offsets = [64, 0], sizes = [16, 128], strides = [1, 1]} : vector<128x128xbf16> to vector<16x128xbf16>
    %cst_46 = arith.constant dense<0.000000e+00> : vector<10x128xf32>
    %137 = tpu.matmul %135, %136, %cst_46 {dimension_numbers = #tpu.dot_dimension_numbers<[1], [0], [0], [1], [0, 0, 1, 1], [], []>} : vector<10x16xbf16>, vector<16x128xbf16>, vector<10x128xf32> -> vector<10x128xf32>
    %138 = arith.addf %115, %137 : vector<10x128xf32>
    %139 = vector.extract_strided_slice %20 {offsets = [0, 80], sizes = [10, 16], strides = [1, 1]} : vector<10x128xbf16> to vector<10x16xbf16>
    %140 = vector.extract_strided_slice %21 {offsets = [0, 80], sizes = [10, 16], strides = [1, 1]} : vector<10x128xbf16> to vector<10x16xbf16>
    %cst_47 = arith.constant dense<0.000000e+00> : vector<10x10xf32>
    %141 = tpu.matmul %139, %140, %cst_47 {dimension_numbers = #tpu.dot_dimension_numbers<[1], [1], [0], [0], [0, 0, 1, 0], [], []>} : vector<10x16xbf16>, vector<10x16xbf16>, vector<10x10xf32> -> vector<10x10xf32>
    %cst_48 = arith.constant 2.500000e-01 : f32
    %142 = vector.broadcast %cst_48 : f32 to vector<10x10xf32>
    %143 = arith.mulf %141, %142 : vector<10x10xf32>
    %144 = arith.addf %143, %19 : vector<10x10xf32>
    %cst_49 = arith.constant dense<0xFF800000> : vector<10xf32>
    %145 = vector.multi_reduction <maximumf>, %144, %cst_49 [1] : vector<10x10xf32> to vector<10xf32>
    %146 = vector.shape_cast %145 : vector<10xf32> to vector<10x1xf32>
    %147 = vector.broadcast %146 : vector<10x1xf32> to vector<10x10xf32>
    %148 = arith.subf %144, %147 : vector<10x10xf32>
    %149 = math.exp %148 : vector<10x10xf32>
    %cst_50 = arith.constant dense<0.000000e+00> : vector<10xf32>
    %150 = vector.multi_reduction <add>, %149, %cst_50 [1] : vector<10x10xf32> to vector<10xf32>
    %151 = vector.shape_cast %150 : vector<10xf32> to vector<10x1xf32>
    %152 = tpu.reciprocal %151 : vector<10x1xf32> -> vector<10x1xf32>
    %153 = vector.broadcast %152 : vector<10x1xf32> to vector<10x10xf32>
    %154 = arith.mulf %149, %153 : vector<10x10xf32>
    %155 = arith.truncf %154 : vector<10x10xf32> to vector<10x10xbf16>
    %156 = vector.extract_strided_slice %22 {offsets = [0, 80], sizes = [10, 16], strides = [1, 1]} : vector<10x128xbf16> to vector<10x16xbf16>
    %cst_51 = arith.constant dense<0.000000e+00> : vector<10x16xf32>
    %157 = tpu.matmul %155, %156, %cst_51 {dimension_numbers = #tpu.dot_dimension_numbers<[1], [0], [0], [1], [0, 0, 1, 1], [], []>} : vector<10x10xbf16>, vector<10x16xbf16>, vector<10x16xf32> -> vector<10x16xf32>
    %158 = arith.truncf %157 : vector<10x16xf32> to vector<10x16xbf16>
    %159 = vector.extract_strided_slice %16 {offsets = [80, 0], sizes = [16, 128], strides = [1, 1]} : vector<128x128xbf16> to vector<16x128xbf16>
    %cst_52 = arith.constant dense<0.000000e+00> : vector<10x128xf32>
    %160 = tpu.matmul %158, %159, %cst_52 {dimension_numbers = #tpu.dot_dimension_numbers<[1], [0], [0], [1], [0, 0, 1, 1], [], []>} : vector<10x16xbf16>, vector<16x128xbf16>, vector<10x128xf32> -> vector<10x128xf32>
    %161 = arith.addf %138, %160 : vector<10x128xf32>
    %162 = vector.extract_strided_slice %20 {offsets = [0, 96], sizes = [10, 16], strides = [1, 1]} : vector<10x128xbf16> to vector<10x16xbf16>
    %163 = vector.extract_strided_slice %21 {offsets = [0, 96], sizes = [10, 16], strides = [1, 1]} : vector<10x128xbf16> to vector<10x16xbf16>
    %cst_53 = arith.constant dense<0.000000e+00> : vector<10x10xf32>
    %164 = tpu.matmul %162, %163, %cst_53 {dimension_numbers = #tpu.dot_dimension_numbers<[1], [1], [0], [0], [0, 0, 1, 0], [], []>} : vector<10x16xbf16>, vector<10x16xbf16>, vector<10x10xf32> -> vector<10x10xf32>
    %cst_54 = arith.constant 2.500000e-01 : f32
    %165 = vector.broadcast %cst_54 : f32 to vector<10x10xf32>
    %166 = arith.mulf %164, %165 : vector<10x10xf32>
    %167 = arith.addf %166, %19 : vector<10x10xf32>
    %cst_55 = arith.constant dense<0xFF800000> : vector<10xf32>
    %168 = vector.multi_reduction <maximumf>, %167, %cst_55 [1] : vector<10x10xf32> to vector<10xf32>
    %169 = vector.shape_cast %168 : vector<10xf32> to vector<10x1xf32>
    %170 = vector.broadcast %169 : vector<10x1xf32> to vector<10x10xf32>
    %171 = arith.subf %167, %170 : vector<10x10xf32>
    %172 = math.exp %171 : vector<10x10xf32>
    %cst_56 = arith.constant dense<0.000000e+00> : vector<10xf32>
    %173 = vector.multi_reduction <add>, %172, %cst_56 [1] : vector<10x10xf32> to vector<10xf32>
    %174 = vector.shape_cast %173 : vector<10xf32> to vector<10x1xf32>
    %175 = tpu.reciprocal %174 : vector<10x1xf32> -> vector<10x1xf32>
    %176 = vector.broadcast %175 : vector<10x1xf32> to vector<10x10xf32>
    %177 = arith.mulf %172, %176 : vector<10x10xf32>
    %178 = arith.truncf %177 : vector<10x10xf32> to vector<10x10xbf16>
    %179 = vector.extract_strided_slice %22 {offsets = [0, 96], sizes = [10, 16], strides = [1, 1]} : vector<10x128xbf16> to vector<10x16xbf16>
    %cst_57 = arith.constant dense<0.000000e+00> : vector<10x16xf32>
    %180 = tpu.matmul %178, %179, %cst_57 {dimension_numbers = #tpu.dot_dimension_numbers<[1], [0], [0], [1], [0, 0, 1, 1], [], []>} : vector<10x10xbf16>, vector<10x16xbf16>, vector<10x16xf32> -> vector<10x16xf32>
    %181 = arith.truncf %180 : vector<10x16xf32> to vector<10x16xbf16>
    %182 = vector.extract_strided_slice %16 {offsets = [96, 0], sizes = [16, 128], strides = [1, 1]} : vector<128x128xbf16> to vector<16x128xbf16>
    %cst_58 = arith.constant dense<0.000000e+00> : vector<10x128xf32>
    %183 = tpu.matmul %181, %182, %cst_58 {dimension_numbers = #tpu.dot_dimension_numbers<[1], [0], [0], [1], [0, 0, 1, 1], [], []>} : vector<10x16xbf16>, vector<16x128xbf16>, vector<10x128xf32> -> vector<10x128xf32>
    %184 = arith.addf %161, %183 : vector<10x128xf32>
    %185 = vector.extract_strided_slice %20 {offsets = [0, 112], sizes = [10, 16], strides = [1, 1]} : vector<10x128xbf16> to vector<10x16xbf16>
    %186 = vector.extract_strided_slice %21 {offsets = [0, 112], sizes = [10, 16], strides = [1, 1]} : vector<10x128xbf16> to vector<10x16xbf16>
    %cst_59 = arith.constant dense<0.000000e+00> : vector<10x10xf32>
    %187 = tpu.matmul %185, %186, %cst_59 {dimension_numbers = #tpu.dot_dimension_numbers<[1], [1], [0], [0], [0, 0, 1, 0], [], []>} : vector<10x16xbf16>, vector<10x16xbf16>, vector<10x10xf32> -> vector<10x10xf32>
    %cst_60 = arith.constant 2.500000e-01 : f32
    %188 = vector.broadcast %cst_60 : f32 to vector<10x10xf32>
    %189 = arith.mulf %187, %188 : vector<10x10xf32>
    %190 = arith.addf %189, %19 : vector<10x10xf32>
    %cst_61 = arith.constant dense<0xFF800000> : vector<10xf32>
    %191 = vector.multi_reduction <maximumf>, %190, %cst_61 [1] : vector<10x10xf32> to vector<10xf32>
    %192 = vector.shape_cast %191 : vector<10xf32> to vector<10x1xf32>
    %193 = vector.broadcast %192 : vector<10x1xf32> to vector<10x10xf32>
    %194 = arith.subf %190, %193 : vector<10x10xf32>
    %195 = math.exp %194 : vector<10x10xf32>
    %cst_62 = arith.constant dense<0.000000e+00> : vector<10xf32>
    %196 = vector.multi_reduction <add>, %195, %cst_62 [1] : vector<10x10xf32> to vector<10xf32>
    %197 = vector.shape_cast %196 : vector<10xf32> to vector<10x1xf32>
    %198 = tpu.reciprocal %197 : vector<10x1xf32> -> vector<10x1xf32>
    %199 = vector.broadcast %198 : vector<10x1xf32> to vector<10x10xf32>
    %200 = arith.mulf %195, %199 : vector<10x10xf32>
    %201 = arith.truncf %200 : vector<10x10xf32> to vector<10x10xbf16>
    %202 = vector.extract_strided_slice %22 {offsets = [0, 112], sizes = [10, 16], strides = [1, 1]} : vector<10x128xbf16> to vector<10x16xbf16>
    %cst_63 = arith.constant dense<0.000000e+00> : vector<10x16xf32>
    %203 = tpu.matmul %201, %202, %cst_63 {dimension_numbers = #tpu.dot_dimension_numbers<[1], [0], [0], [1], [0, 0, 1, 1], [], []>} : vector<10x10xbf16>, vector<10x16xbf16>, vector<10x16xf32> -> vector<10x16xf32>
    %204 = arith.truncf %203 : vector<10x16xf32> to vector<10x16xbf16>
    %205 = vector.extract_strided_slice %16 {offsets = [112, 0], sizes = [16, 128], strides = [1, 1]} : vector<128x128xbf16> to vector<16x128xbf16>
    %cst_64 = arith.constant dense<0.000000e+00> : vector<10x128xf32>
    %206 = tpu.matmul %204, %205, %cst_64 {dimension_numbers = #tpu.dot_dimension_numbers<[1], [0], [0], [1], [0, 0, 1, 1], [], []>} : vector<10x16xbf16>, vector<16x128xbf16>, vector<10x128xf32> -> vector<10x128xf32>
    %207 = arith.addf %184, %206 : vector<10x128xf32>
    %208 = vector.broadcast %18 : vector<1x128xf32> to vector<10x128xf32>
    %209 = arith.addf %207, %208 : vector<10x128xf32>
    %210 = arith.addf %3, %209 : vector<10x128xf32>
    %c0_65 = arith.constant 0 : index
    %c0_66 = arith.constant 0 : index
    %c0_67 = arith.constant 0 : index
    %211 = vector.load %arg9[%c0_65, %c0_66, %c0_67] : memref<1x1x128xf32, #tpu.memory_space<vmem>>, vector<1x1x128xf32>
    %212 = vector.shape_cast %211 : vector<1x1x128xf32> to vector<1x128xf32>
    %c0_68 = arith.constant 0 : index
    %c0_69 = arith.constant 0 : index
    %c0_70 = arith.constant 0 : index
    %213 = vector.load %arg10[%c0_68, %c0_69, %c0_70] : memref<1x1x128xf32, #tpu.memory_space<vmem>>, vector<1x1x128xf32>
    %214 = vector.shape_cast %213 : vector<1x1x128xf32> to vector<1x128xf32>
    %cst_71 = arith.constant dense<0.000000e+00> : vector<10xf32>
    %215 = vector.multi_reduction <add>, %210, %cst_71 [1] : vector<10x128xf32> to vector<10xf32>
    %216 = vector.shape_cast %215 : vector<10xf32> to vector<10x1xf32>
    %cst_72 = arith.constant 1.280000e+02 : f32
    %217 = vector.broadcast %cst_72 : f32 to vector<10x1xf32>
    %218 = arith.divf %216, %217 : vector<10x1xf32>
    %219 = vector.broadcast %218 : vector<10x1xf32> to vector<10x128xf32>
    %220 = arith.subf %210, %219 : vector<10x128xf32>
    %221 = arith.mulf %220, %220 : vector<10x128xf32>
    %cst_73 = arith.constant dense<0.000000e+00> : vector<10xf32>
    %222 = vector.multi_reduction <add>, %221, %cst_73 [1] : vector<10x128xf32> to vector<10xf32>
    %223 = vector.shape_cast %222 : vector<10xf32> to vector<10x1xf32>
    %cst_74 = arith.constant 1.280000e+02 : f32
    %224 = vector.broadcast %cst_74 : f32 to vector<10x1xf32>
    %225 = arith.divf %223, %224 : vector<10x1xf32>
    %226 = vector.broadcast %218 : vector<10x1xf32> to vector<10x128xf32>
    %227 = arith.subf %210, %226 : vector<10x128xf32>
    %cst_75 = arith.constant 9.99999974E-6 : f32
    %228 = vector.broadcast %cst_75 : f32 to vector<10x1xf32>
    %229 = arith.addf %225, %228 : vector<10x1xf32>
    %230 = math.rsqrt %229 : vector<10x1xf32>
    %231 = vector.broadcast %230 : vector<10x1xf32> to vector<10x128xf32>
    %232 = arith.mulf %227, %231 : vector<10x128xf32>
    %233 = vector.broadcast %212 : vector<1x128xf32> to vector<10x128xf32>
    %234 = arith.mulf %232, %233 : vector<10x128xf32>
    %235 = vector.broadcast %214 : vector<1x128xf32> to vector<10x128xf32>
    %236 = arith.addf %234, %235 : vector<10x128xf32>
    %237 = arith.truncf %236 : vector<10x128xf32> to vector<10x128xbf16>
    %c0_76 = arith.constant 0 : index
    %c0_77 = arith.constant 0 : index
    %c0_78 = arith.constant 0 : index
    %238 = vector.load %arg11[%c0_76, %c0_77, %c0_78] : memref<1x128x128xbf16, #tpu.memory_space<vmem>>, vector<1x128x128xbf16>
    %239 = vector.shape_cast %238 : vector<1x128x128xbf16> to vector<128x128xbf16>
    %cst_79 = arith.constant dense<0.000000e+00> : vector<10x128xf32>
    %240 = tpu.matmul %237, %239, %cst_79 {dimension_numbers = #tpu.dot_dimension_numbers<[1], [0], [0], [1], [0, 0, 1, 1], [], []>} : vector<10x128xbf16>, vector<128x128xbf16>, vector<10x128xf32> -> vector<10x128xf32>
    %c0_80 = arith.constant 0 : index
    %c0_81 = arith.constant 0 : index
    %c0_82 = arith.constant 0 : index
    %241 = vector.load %arg12[%c0_80, %c0_81, %c0_82] : memref<1x1x128xf32, #tpu.memory_space<vmem>>, vector<1x1x128xf32>
    %242 = vector.shape_cast %241 : vector<1x1x128xf32> to vector<1x128xf32>
    %243 = vector.broadcast %242 : vector<1x128xf32> to vector<10x128xf32>
    %244 = arith.addf %240, %243 : vector<10x128xf32>
    %c0_83 = arith.constant 0 : index
    %c0_84 = arith.constant 0 : index
    %c0_85 = arith.constant 0 : index
    %245 = vector.load %arg4[%c0_83, %c0_84, %c0_85] : memref<1x32x256xbf16, #tpu.memory_space<vmem>>, vector<1x32x256xbf16>
    %246 = vector.shape_cast %245 : vector<1x32x256xbf16> to vector<32x256xbf16>
    %247 = vector.extract_strided_slice %246 {offsets = [0, 0], sizes = [32, 128], strides = [1, 1]} : vector<32x256xbf16> to vector<32x128xbf16>
    %248 = vector.extract_strided_slice %246 {offsets = [0, 128], sizes = [32, 128], strides = [1, 1]} : vector<32x256xbf16> to vector<32x128xbf16>
    %c0_86 = arith.constant 0 : index
    %c0_87 = arith.constant 0 : index
    %c0_88 = arith.constant 0 : index
    %249 = vector.load %arg13[%c0_86, %c0_87, %c0_88] : memref<1x128x128xbf16, #tpu.memory_space<vmem>>, vector<1x128x128xbf16>
    %250 = vector.shape_cast %249 : vector<1x128x128xbf16> to vector<128x128xbf16>
    %c0_89 = arith.constant 0 : index
    %c0_90 = arith.constant 0 : index
    %c0_91 = arith.constant 0 : index
    %251 = vector.load %arg14[%c0_89, %c0_90, %c0_91] : memref<1x1x128xf32, #tpu.memory_space<vmem>>, vector<1x1x128xf32>
    %252 = vector.shape_cast %251 : vector<1x1x128xf32> to vector<1x128xf32>
    %c0_92 = arith.constant 0 : index
    %c0_93 = arith.constant 0 : index
    %253 = vector.load %arg3[%c0_92, %c0_93] : memref<10x32xf32, #tpu.memory_space<vmem>>, vector<10x32xf32>
    %254 = arith.truncf %244 : vector<10x128xf32> to vector<10x128xbf16>
    %cst_94 = arith.constant 0.000000e+00 : f32
    %255 = vector.broadcast %cst_94 : f32 to vector<10x128xf32>
    %256 = vector.extract_strided_slice %254 {offsets = [0, 0], sizes = [10, 16], strides = [1, 1]} : vector<10x128xbf16> to vector<10x16xbf16>
    %257 = vector.extract_strided_slice %247 {offsets = [0, 0], sizes = [32, 16], strides = [1, 1]} : vector<32x128xbf16> to vector<32x16xbf16>
    %cst_95 = arith.constant dense<0.000000e+00> : vector<10x32xf32>
    %258 = tpu.matmul %256, %257, %cst_95 {dimension_numbers = #tpu.dot_dimension_numbers<[1], [1], [0], [0], [0, 0, 1, 0], [], []>} : vector<10x16xbf16>, vector<32x16xbf16>, vector<10x32xf32> -> vector<10x32xf32>
    %cst_96 = arith.constant 2.500000e-01 : f32
    %259 = vector.broadcast %cst_96 : f32 to vector<10x32xf32>
    %260 = arith.mulf %258, %259 : vector<10x32xf32>
    %261 = arith.addf %260, %253 : vector<10x32xf32>
    %cst_97 = arith.constant dense<0xFF800000> : vector<10xf32>
    %262 = vector.multi_reduction <maximumf>, %261, %cst_97 [1] : vector<10x32xf32> to vector<10xf32>
    %263 = vector.shape_cast %262 : vector<10xf32> to vector<10x1xf32>
    %264 = vector.broadcast %263 : vector<10x1xf32> to vector<10x32xf32>
    %265 = arith.subf %261, %264 : vector<10x32xf32>
    %266 = math.exp %265 : vector<10x32xf32>
    %cst_98 = arith.constant dense<0.000000e+00> : vector<10xf32>
    %267 = vector.multi_reduction <add>, %266, %cst_98 [1] : vector<10x32xf32> to vector<10xf32>
    %268 = vector.shape_cast %267 : vector<10xf32> to vector<10x1xf32>
    %269 = tpu.reciprocal %268 : vector<10x1xf32> -> vector<10x1xf32>
    %270 = vector.broadcast %269 : vector<10x1xf32> to vector<10x32xf32>
    %271 = arith.mulf %266, %270 : vector<10x32xf32>
    %272 = arith.truncf %271 : vector<10x32xf32> to vector<10x32xbf16>
    %273 = vector.extract_strided_slice %248 {offsets = [0, 0], sizes = [32, 16], strides = [1, 1]} : vector<32x128xbf16> to vector<32x16xbf16>
    %cst_99 = arith.constant dense<0.000000e+00> : vector<10x16xf32>
    %274 = tpu.matmul %272, %273, %cst_99 {dimension_numbers = #tpu.dot_dimension_numbers<[1], [0], [0], [1], [0, 0, 1, 1], [], []>} : vector<10x32xbf16>, vector<32x16xbf16>, vector<10x16xf32> -> vector<10x16xf32>
    %275 = arith.truncf %274 : vector<10x16xf32> to vector<10x16xbf16>
    %276 = vector.extract_strided_slice %250 {offsets = [0, 0], sizes = [16, 128], strides = [1, 1]} : vector<128x128xbf16> to vector<16x128xbf16>
    %cst_100 = arith.constant dense<0.000000e+00> : vector<10x128xf32>
    %277 = tpu.matmul %275, %276, %cst_100 {dimension_numbers = #tpu.dot_dimension_numbers<[1], [0], [0], [1], [0, 0, 1, 1], [], []>} : vector<10x16xbf16>, vector<16x128xbf16>, vector<10x128xf32> -> vector<10x128xf32>
    %278 = arith.addf %255, %277 : vector<10x128xf32>
    %279 = vector.extract_strided_slice %254 {offsets = [0, 16], sizes = [10, 16], strides = [1, 1]} : vector<10x128xbf16> to vector<10x16xbf16>
    %280 = vector.extract_strided_slice %247 {offsets = [0, 16], sizes = [32, 16], strides = [1, 1]} : vector<32x128xbf16> to vector<32x16xbf16>
    %cst_101 = arith.constant dense<0.000000e+00> : vector<10x32xf32>
    %281 = tpu.matmul %279, %280, %cst_101 {dimension_numbers = #tpu.dot_dimension_numbers<[1], [1], [0], [0], [0, 0, 1, 0], [], []>} : vector<10x16xbf16>, vector<32x16xbf16>, vector<10x32xf32> -> vector<10x32xf32>
    %cst_102 = arith.constant 2.500000e-01 : f32
    %282 = vector.broadcast %cst_102 : f32 to vector<10x32xf32>
    %283 = arith.mulf %281, %282 : vector<10x32xf32>
    %284 = arith.addf %283, %253 : vector<10x32xf32>
    %cst_103 = arith.constant dense<0xFF800000> : vector<10xf32>
    %285 = vector.multi_reduction <maximumf>, %284, %cst_103 [1] : vector<10x32xf32> to vector<10xf32>
    %286 = vector.shape_cast %285 : vector<10xf32> to vector<10x1xf32>
    %287 = vector.broadcast %286 : vector<10x1xf32> to vector<10x32xf32>
    %288 = arith.subf %284, %287 : vector<10x32xf32>
    %289 = math.exp %288 : vector<10x32xf32>
    %cst_104 = arith.constant dense<0.000000e+00> : vector<10xf32>
    %290 = vector.multi_reduction <add>, %289, %cst_104 [1] : vector<10x32xf32> to vector<10xf32>
    %291 = vector.shape_cast %290 : vector<10xf32> to vector<10x1xf32>
    %292 = tpu.reciprocal %291 : vector<10x1xf32> -> vector<10x1xf32>
    %293 = vector.broadcast %292 : vector<10x1xf32> to vector<10x32xf32>
    %294 = arith.mulf %289, %293 : vector<10x32xf32>
    %295 = arith.truncf %294 : vector<10x32xf32> to vector<10x32xbf16>
    %296 = vector.extract_strided_slice %248 {offsets = [0, 16], sizes = [32, 16], strides = [1, 1]} : vector<32x128xbf16> to vector<32x16xbf16>
    %cst_105 = arith.constant dense<0.000000e+00> : vector<10x16xf32>
    %297 = tpu.matmul %295, %296, %cst_105 {dimension_numbers = #tpu.dot_dimension_numbers<[1], [0], [0], [1], [0, 0, 1, 1], [], []>} : vector<10x32xbf16>, vector<32x16xbf16>, vector<10x16xf32> -> vector<10x16xf32>
    %298 = arith.truncf %297 : vector<10x16xf32> to vector<10x16xbf16>
    %299 = vector.extract_strided_slice %250 {offsets = [16, 0], sizes = [16, 128], strides = [1, 1]} : vector<128x128xbf16> to vector<16x128xbf16>
    %cst_106 = arith.constant dense<0.000000e+00> : vector<10x128xf32>
    %300 = tpu.matmul %298, %299, %cst_106 {dimension_numbers = #tpu.dot_dimension_numbers<[1], [0], [0], [1], [0, 0, 1, 1], [], []>} : vector<10x16xbf16>, vector<16x128xbf16>, vector<10x128xf32> -> vector<10x128xf32>
    %301 = arith.addf %278, %300 : vector<10x128xf32>
    %302 = vector.extract_strided_slice %254 {offsets = [0, 32], sizes = [10, 16], strides = [1, 1]} : vector<10x128xbf16> to vector<10x16xbf16>
    %303 = vector.extract_strided_slice %247 {offsets = [0, 32], sizes = [32, 16], strides = [1, 1]} : vector<32x128xbf16> to vector<32x16xbf16>
    %cst_107 = arith.constant dense<0.000000e+00> : vector<10x32xf32>
    %304 = tpu.matmul %302, %303, %cst_107 {dimension_numbers = #tpu.dot_dimension_numbers<[1], [1], [0], [0], [0, 0, 1, 0], [], []>} : vector<10x16xbf16>, vector<32x16xbf16>, vector<10x32xf32> -> vector<10x32xf32>
    %cst_108 = arith.constant 2.500000e-01 : f32
    %305 = vector.broadcast %cst_108 : f32 to vector<10x32xf32>
    %306 = arith.mulf %304, %305 : vector<10x32xf32>
    %307 = arith.addf %306, %253 : vector<10x32xf32>
    %cst_109 = arith.constant dense<0xFF800000> : vector<10xf32>
    %308 = vector.multi_reduction <maximumf>, %307, %cst_109 [1] : vector<10x32xf32> to vector<10xf32>
    %309 = vector.shape_cast %308 : vector<10xf32> to vector<10x1xf32>
    %310 = vector.broadcast %309 : vector<10x1xf32> to vector<10x32xf32>
    %311 = arith.subf %307, %310 : vector<10x32xf32>
    %312 = math.exp %311 : vector<10x32xf32>
    %cst_110 = arith.constant dense<0.000000e+00> : vector<10xf32>
    %313 = vector.multi_reduction <add>, %312, %cst_110 [1] : vector<10x32xf32> to vector<10xf32>
    %314 = vector.shape_cast %313 : vector<10xf32> to vector<10x1xf32>
    %315 = tpu.reciprocal %314 : vector<10x1xf32> -> vector<10x1xf32>
    %316 = vector.broadcast %315 : vector<10x1xf32> to vector<10x32xf32>
    %317 = arith.mulf %312, %316 : vector<10x32xf32>
    %318 = arith.truncf %317 : vector<10x32xf32> to vector<10x32xbf16>
    %319 = vector.extract_strided_slice %248 {offsets = [0, 32], sizes = [32, 16], strides = [1, 1]} : vector<32x128xbf16> to vector<32x16xbf16>
    %cst_111 = arith.constant dense<0.000000e+00> : vector<10x16xf32>
    %320 = tpu.matmul %318, %319, %cst_111 {dimension_numbers = #tpu.dot_dimension_numbers<[1], [0], [0], [1], [0, 0, 1, 1], [], []>} : vector<10x32xbf16>, vector<32x16xbf16>, vector<10x16xf32> -> vector<10x16xf32>
    %321 = arith.truncf %320 : vector<10x16xf32> to vector<10x16xbf16>
    %322 = vector.extract_strided_slice %250 {offsets = [32, 0], sizes = [16, 128], strides = [1, 1]} : vector<128x128xbf16> to vector<16x128xbf16>
    %cst_112 = arith.constant dense<0.000000e+00> : vector<10x128xf32>
    %323 = tpu.matmul %321, %322, %cst_112 {dimension_numbers = #tpu.dot_dimension_numbers<[1], [0], [0], [1], [0, 0, 1, 1], [], []>} : vector<10x16xbf16>, vector<16x128xbf16>, vector<10x128xf32> -> vector<10x128xf32>
    %324 = arith.addf %301, %323 : vector<10x128xf32>
    %325 = vector.extract_strided_slice %254 {offsets = [0, 48], sizes = [10, 16], strides = [1, 1]} : vector<10x128xbf16> to vector<10x16xbf16>
    %326 = vector.extract_strided_slice %247 {offsets = [0, 48], sizes = [32, 16], strides = [1, 1]} : vector<32x128xbf16> to vector<32x16xbf16>
    %cst_113 = arith.constant dense<0.000000e+00> : vector<10x32xf32>
    %327 = tpu.matmul %325, %326, %cst_113 {dimension_numbers = #tpu.dot_dimension_numbers<[1], [1], [0], [0], [0, 0, 1, 0], [], []>} : vector<10x16xbf16>, vector<32x16xbf16>, vector<10x32xf32> -> vector<10x32xf32>
    %cst_114 = arith.constant 2.500000e-01 : f32
    %328 = vector.broadcast %cst_114 : f32 to vector<10x32xf32>
    %329 = arith.mulf %327, %328 : vector<10x32xf32>
    %330 = arith.addf %329, %253 : vector<10x32xf32>
    %cst_115 = arith.constant dense<0xFF800000> : vector<10xf32>
    %331 = vector.multi_reduction <maximumf>, %330, %cst_115 [1] : vector<10x32xf32> to vector<10xf32>
    %332 = vector.shape_cast %331 : vector<10xf32> to vector<10x1xf32>
    %333 = vector.broadcast %332 : vector<10x1xf32> to vector<10x32xf32>
    %334 = arith.subf %330, %333 : vector<10x32xf32>
    %335 = math.exp %334 : vector<10x32xf32>
    %cst_116 = arith.constant dense<0.000000e+00> : vector<10xf32>
    %336 = vector.multi_reduction <add>, %335, %cst_116 [1] : vector<10x32xf32> to vector<10xf32>
    %337 = vector.shape_cast %336 : vector<10xf32> to vector<10x1xf32>
    %338 = tpu.reciprocal %337 : vector<10x1xf32> -> vector<10x1xf32>
    %339 = vector.broadcast %338 : vector<10x1xf32> to vector<10x32xf32>
    %340 = arith.mulf %335, %339 : vector<10x32xf32>
    %341 = arith.truncf %340 : vector<10x32xf32> to vector<10x32xbf16>
    %342 = vector.extract_strided_slice %248 {offsets = [0, 48], sizes = [32, 16], strides = [1, 1]} : vector<32x128xbf16> to vector<32x16xbf16>
    %cst_117 = arith.constant dense<0.000000e+00> : vector<10x16xf32>
    %343 = tpu.matmul %341, %342, %cst_117 {dimension_numbers = #tpu.dot_dimension_numbers<[1], [0], [0], [1], [0, 0, 1, 1], [], []>} : vector<10x32xbf16>, vector<32x16xbf16>, vector<10x16xf32> -> vector<10x16xf32>
    %344 = arith.truncf %343 : vector<10x16xf32> to vector<10x16xbf16>
    %345 = vector.extract_strided_slice %250 {offsets = [48, 0], sizes = [16, 128], strides = [1, 1]} : vector<128x128xbf16> to vector<16x128xbf16>
    %cst_118 = arith.constant dense<0.000000e+00> : vector<10x128xf32>
    %346 = tpu.matmul %344, %345, %cst_118 {dimension_numbers = #tpu.dot_dimension_numbers<[1], [0], [0], [1], [0, 0, 1, 1], [], []>} : vector<10x16xbf16>, vector<16x128xbf16>, vector<10x128xf32> -> vector<10x128xf32>
    %347 = arith.addf %324, %346 : vector<10x128xf32>
    %348 = vector.extract_strided_slice %254 {offsets = [0, 64], sizes = [10, 16], strides = [1, 1]} : vector<10x128xbf16> to vector<10x16xbf16>
    %349 = vector.extract_strided_slice %247 {offsets = [0, 64], sizes = [32, 16], strides = [1, 1]} : vector<32x128xbf16> to vector<32x16xbf16>
    %cst_119 = arith.constant dense<0.000000e+00> : vector<10x32xf32>
    %350 = tpu.matmul %348, %349, %cst_119 {dimension_numbers = #tpu.dot_dimension_numbers<[1], [1], [0], [0], [0, 0, 1, 0], [], []>} : vector<10x16xbf16>, vector<32x16xbf16>, vector<10x32xf32> -> vector<10x32xf32>
    %cst_120 = arith.constant 2.500000e-01 : f32
    %351 = vector.broadcast %cst_120 : f32 to vector<10x32xf32>
    %352 = arith.mulf %350, %351 : vector<10x32xf32>
    %353 = arith.addf %352, %253 : vector<10x32xf32>
    %cst_121 = arith.constant dense<0xFF800000> : vector<10xf32>
    %354 = vector.multi_reduction <maximumf>, %353, %cst_121 [1] : vector<10x32xf32> to vector<10xf32>
    %355 = vector.shape_cast %354 : vector<10xf32> to vector<10x1xf32>
    %356 = vector.broadcast %355 : vector<10x1xf32> to vector<10x32xf32>
    %357 = arith.subf %353, %356 : vector<10x32xf32>
    %358 = math.exp %357 : vector<10x32xf32>
    %cst_122 = arith.constant dense<0.000000e+00> : vector<10xf32>
    %359 = vector.multi_reduction <add>, %358, %cst_122 [1] : vector<10x32xf32> to vector<10xf32>
    %360 = vector.shape_cast %359 : vector<10xf32> to vector<10x1xf32>
    %361 = tpu.reciprocal %360 : vector<10x1xf32> -> vector<10x1xf32>
    %362 = vector.broadcast %361 : vector<10x1xf32> to vector<10x32xf32>
    %363 = arith.mulf %358, %362 : vector<10x32xf32>
    %364 = arith.truncf %363 : vector<10x32xf32> to vector<10x32xbf16>
    %365 = vector.extract_strided_slice %248 {offsets = [0, 64], sizes = [32, 16], strides = [1, 1]} : vector<32x128xbf16> to vector<32x16xbf16>
    %cst_123 = arith.constant dense<0.000000e+00> : vector<10x16xf32>
    %366 = tpu.matmul %364, %365, %cst_123 {dimension_numbers = #tpu.dot_dimension_numbers<[1], [0], [0], [1], [0, 0, 1, 1], [], []>} : vector<10x32xbf16>, vector<32x16xbf16>, vector<10x16xf32> -> vector<10x16xf32>
    %367 = arith.truncf %366 : vector<10x16xf32> to vector<10x16xbf16>
    %368 = vector.extract_strided_slice %250 {offsets = [64, 0], sizes = [16, 128], strides = [1, 1]} : vector<128x128xbf16> to vector<16x128xbf16>
    %cst_124 = arith.constant dense<0.000000e+00> : vector<10x128xf32>
    %369 = tpu.matmul %367, %368, %cst_124 {dimension_numbers = #tpu.dot_dimension_numbers<[1], [0], [0], [1], [0, 0, 1, 1], [], []>} : vector<10x16xbf16>, vector<16x128xbf16>, vector<10x128xf32> -> vector<10x128xf32>
    %370 = arith.addf %347, %369 : vector<10x128xf32>
    %371 = vector.extract_strided_slice %254 {offsets = [0, 80], sizes = [10, 16], strides = [1, 1]} : vector<10x128xbf16> to vector<10x16xbf16>
    %372 = vector.extract_strided_slice %247 {offsets = [0, 80], sizes = [32, 16], strides = [1, 1]} : vector<32x128xbf16> to vector<32x16xbf16>
    %cst_125 = arith.constant dense<0.000000e+00> : vector<10x32xf32>
    %373 = tpu.matmul %371, %372, %cst_125 {dimension_numbers = #tpu.dot_dimension_numbers<[1], [1], [0], [0], [0, 0, 1, 0], [], []>} : vector<10x16xbf16>, vector<32x16xbf16>, vector<10x32xf32> -> vector<10x32xf32>
    %cst_126 = arith.constant 2.500000e-01 : f32
    %374 = vector.broadcast %cst_126 : f32 to vector<10x32xf32>
    %375 = arith.mulf %373, %374 : vector<10x32xf32>
    %376 = arith.addf %375, %253 : vector<10x32xf32>
    %cst_127 = arith.constant dense<0xFF800000> : vector<10xf32>
    %377 = vector.multi_reduction <maximumf>, %376, %cst_127 [1] : vector<10x32xf32> to vector<10xf32>
    %378 = vector.shape_cast %377 : vector<10xf32> to vector<10x1xf32>
    %379 = vector.broadcast %378 : vector<10x1xf32> to vector<10x32xf32>
    %380 = arith.subf %376, %379 : vector<10x32xf32>
    %381 = math.exp %380 : vector<10x32xf32>
    %cst_128 = arith.constant dense<0.000000e+00> : vector<10xf32>
    %382 = vector.multi_reduction <add>, %381, %cst_128 [1] : vector<10x32xf32> to vector<10xf32>
    %383 = vector.shape_cast %382 : vector<10xf32> to vector<10x1xf32>
    %384 = tpu.reciprocal %383 : vector<10x1xf32> -> vector<10x1xf32>
    %385 = vector.broadcast %384 : vector<10x1xf32> to vector<10x32xf32>
    %386 = arith.mulf %381, %385 : vector<10x32xf32>
    %387 = arith.truncf %386 : vector<10x32xf32> to vector<10x32xbf16>
    %388 = vector.extract_strided_slice %248 {offsets = [0, 80], sizes = [32, 16], strides = [1, 1]} : vector<32x128xbf16> to vector<32x16xbf16>
    %cst_129 = arith.constant dense<0.000000e+00> : vector<10x16xf32>
    %389 = tpu.matmul %387, %388, %cst_129 {dimension_numbers = #tpu.dot_dimension_numbers<[1], [0], [0], [1], [0, 0, 1, 1], [], []>} : vector<10x32xbf16>, vector<32x16xbf16>, vector<10x16xf32> -> vector<10x16xf32>
    %390 = arith.truncf %389 : vector<10x16xf32> to vector<10x16xbf16>
    %391 = vector.extract_strided_slice %250 {offsets = [80, 0], sizes = [16, 128], strides = [1, 1]} : vector<128x128xbf16> to vector<16x128xbf16>
    %cst_130 = arith.constant dense<0.000000e+00> : vector<10x128xf32>
    %392 = tpu.matmul %390, %391, %cst_130 {dimension_numbers = #tpu.dot_dimension_numbers<[1], [0], [0], [1], [0, 0, 1, 1], [], []>} : vector<10x16xbf16>, vector<16x128xbf16>, vector<10x128xf32> -> vector<10x128xf32>
    %393 = arith.addf %370, %392 : vector<10x128xf32>
    %394 = vector.extract_strided_slice %254 {offsets = [0, 96], sizes = [10, 16], strides = [1, 1]} : vector<10x128xbf16> to vector<10x16xbf16>
    %395 = vector.extract_strided_slice %247 {offsets = [0, 96], sizes = [32, 16], strides = [1, 1]} : vector<32x128xbf16> to vector<32x16xbf16>
    %cst_131 = arith.constant dense<0.000000e+00> : vector<10x32xf32>
    %396 = tpu.matmul %394, %395, %cst_131 {dimension_numbers = #tpu.dot_dimension_numbers<[1], [1], [0], [0], [0, 0, 1, 0], [], []>} : vector<10x16xbf16>, vector<32x16xbf16>, vector<10x32xf32> -> vector<10x32xf32>
    %cst_132 = arith.constant 2.500000e-01 : f32
    %397 = vector.broadcast %cst_132 : f32 to vector<10x32xf32>
    %398 = arith.mulf %396, %397 : vector<10x32xf32>
    %399 = arith.addf %398, %253 : vector<10x32xf32>
    %cst_133 = arith.constant dense<0xFF800000> : vector<10xf32>
    %400 = vector.multi_reduction <maximumf>, %399, %cst_133 [1] : vector<10x32xf32> to vector<10xf32>
    %401 = vector.shape_cast %400 : vector<10xf32> to vector<10x1xf32>
    %402 = vector.broadcast %401 : vector<10x1xf32> to vector<10x32xf32>
    %403 = arith.subf %399, %402 : vector<10x32xf32>
    %404 = math.exp %403 : vector<10x32xf32>
    %cst_134 = arith.constant dense<0.000000e+00> : vector<10xf32>
    %405 = vector.multi_reduction <add>, %404, %cst_134 [1] : vector<10x32xf32> to vector<10xf32>
    %406 = vector.shape_cast %405 : vector<10xf32> to vector<10x1xf32>
    %407 = tpu.reciprocal %406 : vector<10x1xf32> -> vector<10x1xf32>
    %408 = vector.broadcast %407 : vector<10x1xf32> to vector<10x32xf32>
    %409 = arith.mulf %404, %408 : vector<10x32xf32>
    %410 = arith.truncf %409 : vector<10x32xf32> to vector<10x32xbf16>
    %411 = vector.extract_strided_slice %248 {offsets = [0, 96], sizes = [32, 16], strides = [1, 1]} : vector<32x128xbf16> to vector<32x16xbf16>
    %cst_135 = arith.constant dense<0.000000e+00> : vector<10x16xf32>
    %412 = tpu.matmul %410, %411, %cst_135 {dimension_numbers = #tpu.dot_dimension_numbers<[1], [0], [0], [1], [0, 0, 1, 1], [], []>} : vector<10x32xbf16>, vector<32x16xbf16>, vector<10x16xf32> -> vector<10x16xf32>
    %413 = arith.truncf %412 : vector<10x16xf32> to vector<10x16xbf16>
    %414 = vector.extract_strided_slice %250 {offsets = [96, 0], sizes = [16, 128], strides = [1, 1]} : vector<128x128xbf16> to vector<16x128xbf16>
    %cst_136 = arith.constant dense<0.000000e+00> : vector<10x128xf32>
    %415 = tpu.matmul %413, %414, %cst_136 {dimension_numbers = #tpu.dot_dimension_numbers<[1], [0], [0], [1], [0, 0, 1, 1], [], []>} : vector<10x16xbf16>, vector<16x128xbf16>, vector<10x128xf32> -> vector<10x128xf32>
    %416 = arith.addf %393, %415 : vector<10x128xf32>
    %417 = vector.extract_strided_slice %254 {offsets = [0, 112], sizes = [10, 16], strides = [1, 1]} : vector<10x128xbf16> to vector<10x16xbf16>
    %418 = vector.extract_strided_slice %247 {offsets = [0, 112], sizes = [32, 16], strides = [1, 1]} : vector<32x128xbf16> to vector<32x16xbf16>
    %cst_137 = arith.constant dense<0.000000e+00> : vector<10x32xf32>
    %419 = tpu.matmul %417, %418, %cst_137 {dimension_numbers = #tpu.dot_dimension_numbers<[1], [1], [0], [0], [0, 0, 1, 0], [], []>} : vector<10x16xbf16>, vector<32x16xbf16>, vector<10x32xf32> -> vector<10x32xf32>
    %cst_138 = arith.constant 2.500000e-01 : f32
    %420 = vector.broadcast %cst_138 : f32 to vector<10x32xf32>
    %421 = arith.mulf %419, %420 : vector<10x32xf32>
    %422 = arith.addf %421, %253 : vector<10x32xf32>
    %cst_139 = arith.constant dense<0xFF800000> : vector<10xf32>
    %423 = vector.multi_reduction <maximumf>, %422, %cst_139 [1] : vector<10x32xf32> to vector<10xf32>
    %424 = vector.shape_cast %423 : vector<10xf32> to vector<10x1xf32>
    %425 = vector.broadcast %424 : vector<10x1xf32> to vector<10x32xf32>
    %426 = arith.subf %422, %425 : vector<10x32xf32>
    %427 = math.exp %426 : vector<10x32xf32>
    %cst_140 = arith.constant dense<0.000000e+00> : vector<10xf32>
    %428 = vector.multi_reduction <add>, %427, %cst_140 [1] : vector<10x32xf32> to vector<10xf32>
    %429 = vector.shape_cast %428 : vector<10xf32> to vector<10x1xf32>
    %430 = tpu.reciprocal %429 : vector<10x1xf32> -> vector<10x1xf32>
    %431 = vector.broadcast %430 : vector<10x1xf32> to vector<10x32xf32>
    %432 = arith.mulf %427, %431 : vector<10x32xf32>
    %433 = arith.truncf %432 : vector<10x32xf32> to vector<10x32xbf16>
    %434 = vector.extract_strided_slice %248 {offsets = [0, 112], sizes = [32, 16], strides = [1, 1]} : vector<32x128xbf16> to vector<32x16xbf16>
    %cst_141 = arith.constant dense<0.000000e+00> : vector<10x16xf32>
    %435 = tpu.matmul %433, %434, %cst_141 {dimension_numbers = #tpu.dot_dimension_numbers<[1], [0], [0], [1], [0, 0, 1, 1], [], []>} : vector<10x32xbf16>, vector<32x16xbf16>, vector<10x16xf32> -> vector<10x16xf32>
    %436 = arith.truncf %435 : vector<10x16xf32> to vector<10x16xbf16>
    %437 = vector.extract_strided_slice %250 {offsets = [112, 0], sizes = [16, 128], strides = [1, 1]} : vector<128x128xbf16> to vector<16x128xbf16>
    %cst_142 = arith.constant dense<0.000000e+00> : vector<10x128xf32>
    %438 = tpu.matmul %436, %437, %cst_142 {dimension_numbers = #tpu.dot_dimension_numbers<[1], [0], [0], [1], [0, 0, 1, 1], [], []>} : vector<10x16xbf16>, vector<16x128xbf16>, vector<10x128xf32> -> vector<10x128xf32>
    %439 = arith.addf %416, %438 : vector<10x128xf32>
    %440 = vector.broadcast %252 : vector<1x128xf32> to vector<10x128xf32>
    %441 = arith.addf %439, %440 : vector<10x128xf32>
    %442 = arith.addf %236, %441 : vector<10x128xf32>
    %c0_143 = arith.constant 0 : index
    %c0_144 = arith.constant 0 : index
    %c0_145 = arith.constant 0 : index
    %443 = vector.load %arg15[%c0_143, %c0_144, %c0_145] : memref<1x1x128xf32, #tpu.memory_space<vmem>>, vector<1x1x128xf32>
    %444 = vector.shape_cast %443 : vector<1x1x128xf32> to vector<1x128xf32>
    %c0_146 = arith.constant 0 : index
    %c0_147 = arith.constant 0 : index
    %c0_148 = arith.constant 0 : index
    %445 = vector.load %arg16[%c0_146, %c0_147, %c0_148] : memref<1x1x128xf32, #tpu.memory_space<vmem>>, vector<1x1x128xf32>
    %446 = vector.shape_cast %445 : vector<1x1x128xf32> to vector<1x128xf32>
    %cst_149 = arith.constant dense<0.000000e+00> : vector<10xf32>
    %447 = vector.multi_reduction <add>, %442, %cst_149 [1] : vector<10x128xf32> to vector<10xf32>
    %448 = vector.shape_cast %447 : vector<10xf32> to vector<10x1xf32>
    %cst_150 = arith.constant 1.280000e+02 : f32
    %449 = vector.broadcast %cst_150 : f32 to vector<10x1xf32>
    %450 = arith.divf %448, %449 : vector<10x1xf32>
    %451 = vector.broadcast %450 : vector<10x1xf32> to vector<10x128xf32>
    %452 = arith.subf %442, %451 : vector<10x128xf32>
    %453 = arith.mulf %452, %452 : vector<10x128xf32>
    %cst_151 = arith.constant dense<0.000000e+00> : vector<10xf32>
    %454 = vector.multi_reduction <add>, %453, %cst_151 [1] : vector<10x128xf32> to vector<10xf32>
    %455 = vector.shape_cast %454 : vector<10xf32> to vector<10x1xf32>
    %cst_152 = arith.constant 1.280000e+02 : f32
    %456 = vector.broadcast %cst_152 : f32 to vector<10x1xf32>
    %457 = arith.divf %455, %456 : vector<10x1xf32>
    %458 = vector.broadcast %450 : vector<10x1xf32> to vector<10x128xf32>
    %459 = arith.subf %442, %458 : vector<10x128xf32>
    %cst_153 = arith.constant 9.99999974E-6 : f32
    %460 = vector.broadcast %cst_153 : f32 to vector<10x1xf32>
    %461 = arith.addf %457, %460 : vector<10x1xf32>
    %462 = math.rsqrt %461 : vector<10x1xf32>
    %463 = vector.broadcast %462 : vector<10x1xf32> to vector<10x128xf32>
    %464 = arith.mulf %459, %463 : vector<10x128xf32>
    %465 = vector.broadcast %444 : vector<1x128xf32> to vector<10x128xf32>
    %466 = arith.mulf %464, %465 : vector<10x128xf32>
    %467 = vector.broadcast %446 : vector<1x128xf32> to vector<10x128xf32>
    %468 = arith.addf %466, %467 : vector<10x128xf32>
    %469 = arith.truncf %468 : vector<10x128xf32> to vector<10x128xbf16>
    %c0_154 = arith.constant 0 : index
    %c0_155 = arith.constant 0 : index
    %c0_156 = arith.constant 0 : index
    %470 = vector.load %arg17[%c0_154, %c0_155, %c0_156] : memref<1x128x256xbf16, #tpu.memory_space<vmem>>, vector<1x128x256xbf16>
    %471 = vector.shape_cast %470 : vector<1x128x256xbf16> to vector<128x256xbf16>
    %cst_157 = arith.constant dense<0.000000e+00> : vector<10x256xf32>
    %472 = tpu.matmul %469, %471, %cst_157 {dimension_numbers = #tpu.dot_dimension_numbers<[1], [0], [0], [1], [0, 0, 1, 1], [], []>} : vector<10x128xbf16>, vector<128x256xbf16>, vector<10x256xf32> -> vector<10x256xf32>
    %c0_158 = arith.constant 0 : index
    %c0_159 = arith.constant 0 : index
    %c0_160 = arith.constant 0 : index
    %473 = vector.load %arg18[%c0_158, %c0_159, %c0_160] : memref<1x1x256xf32, #tpu.memory_space<vmem>>, vector<1x1x256xf32>
    %474 = vector.shape_cast %473 : vector<1x1x256xf32> to vector<1x256xf32>
    %475 = vector.broadcast %474 : vector<1x256xf32> to vector<10x256xf32>
    %476 = arith.addf %472, %475 : vector<10x256xf32>
    %cst_161 = arith.constant 0.000000e+00 : f32
    %477 = vector.broadcast %cst_161 : f32 to vector<10x256xf32>
    %478 = arith.maximumf %476, %477 : vector<10x256xf32>
    %479 = arith.truncf %478 : vector<10x256xf32> to vector<10x256xbf16>
    %c0_162 = arith.constant 0 : index
    %c0_163 = arith.constant 0 : index
    %c0_164 = arith.constant 0 : index
    %480 = vector.load %arg19[%c0_162, %c0_163, %c0_164] : memref<1x256x128xbf16, #tpu.memory_space<vmem>>, vector<1x256x128xbf16>
    %481 = vector.shape_cast %480 : vector<1x256x128xbf16> to vector<256x128xbf16>
    %cst_165 = arith.constant dense<0.000000e+00> : vector<10x128xf32>
    %482 = tpu.matmul %479, %481, %cst_165 {dimension_numbers = #tpu.dot_dimension_numbers<[1], [0], [0], [1], [0, 0, 1, 1], [], []>} : vector<10x256xbf16>, vector<256x128xbf16>, vector<10x128xf32> -> vector<10x128xf32>
    %c0_166 = arith.constant 0 : index
    %c0_167 = arith.constant 0 : index
    %c0_168 = arith.constant 0 : index
    %483 = vector.load %arg20[%c0_166, %c0_167, %c0_168] : memref<1x1x128xf32, #tpu.memory_space<vmem>>, vector<1x1x128xf32>
    %484 = vector.shape_cast %483 : vector<1x1x128xf32> to vector<1x128xf32>
    %485 = vector.broadcast %484 : vector<1x128xf32> to vector<10x128xf32>
    %486 = arith.addf %482, %485 : vector<10x128xf32>
    %487 = arith.addf %468, %486 : vector<10x128xf32>
    %c0_169 = arith.constant 0 : index
    %c0_170 = arith.constant 0 : index
    %c0_171 = arith.constant 0 : index
    %488 = vector.load %arg21[%c0_169, %c0_170, %c0_171] : memref<1x1x128xf32, #tpu.memory_space<vmem>>, vector<1x1x128xf32>
    %489 = vector.shape_cast %488 : vector<1x1x128xf32> to vector<1x128xf32>
    %c0_172 = arith.constant 0 : index
    %c0_173 = arith.constant 0 : index
    %c0_174 = arith.constant 0 : index
    %490 = vector.load %arg22[%c0_172, %c0_173, %c0_174] : memref<1x1x128xf32, #tpu.memory_space<vmem>>, vector<1x1x128xf32>
    %491 = vector.shape_cast %490 : vector<1x1x128xf32> to vector<1x128xf32>
    %cst_175 = arith.constant dense<0.000000e+00> : vector<10xf32>
    %492 = vector.multi_reduction <add>, %487, %cst_175 [1] : vector<10x128xf32> to vector<10xf32>
    %493 = vector.shape_cast %492 : vector<10xf32> to vector<10x1xf32>
    %cst_176 = arith.constant 1.280000e+02 : f32
    %494 = vector.broadcast %cst_176 : f32 to vector<10x1xf32>
    %495 = arith.divf %493, %494 : vector<10x1xf32>
    %496 = vector.broadcast %495 : vector<10x1xf32> to vector<10x128xf32>
    %497 = arith.subf %487, %496 : vector<10x128xf32>
    %498 = arith.mulf %497, %497 : vector<10x128xf32>
    %cst_177 = arith.constant dense<0.000000e+00> : vector<10xf32>
    %499 = vector.multi_reduction <add>, %498, %cst_177 [1] : vector<10x128xf32> to vector<10xf32>
    %500 = vector.shape_cast %499 : vector<10xf32> to vector<10x1xf32>
    %cst_178 = arith.constant 1.280000e+02 : f32
    %501 = vector.broadcast %cst_178 : f32 to vector<10x1xf32>
    %502 = arith.divf %500, %501 : vector<10x1xf32>
    %503 = vector.broadcast %495 : vector<10x1xf32> to vector<10x128xf32>
    %504 = arith.subf %487, %503 : vector<10x128xf32>
    %cst_179 = arith.constant 9.99999974E-6 : f32
    %505 = vector.broadcast %cst_179 : f32 to vector<10x1xf32>
    %506 = arith.addf %502, %505 : vector<10x1xf32>
    %507 = math.rsqrt %506 : vector<10x1xf32>
    %508 = vector.broadcast %507 : vector<10x1xf32> to vector<10x128xf32>
    %509 = arith.mulf %504, %508 : vector<10x128xf32>
    %510 = vector.broadcast %489 : vector<1x128xf32> to vector<10x128xf32>
    %511 = arith.mulf %509, %510 : vector<10x128xf32>
    %512 = vector.broadcast %491 : vector<1x128xf32> to vector<10x128xf32>
    %513 = arith.addf %511, %512 : vector<10x128xf32>
    %c0_180 = arith.constant 0 : index
    %c0_181 = arith.constant 0 : index
    %514 = vector.load %arg24[%c0_180, %c0_181] : memref<10x128xf32, #tpu.memory_space<vmem>>, vector<10x128xf32>
    tpu.vector_store %arg24[%c0_180, %c0_181], %513 {strides = array<i32>} : memref<10x128xf32, #tpu.memory_space<vmem>>, vector<10x128xf32>,
    %c7_i32 = arith.constant 7 : i32
    %515 = arith.cmpi eq, %arg0, %c7_i32 : i32
    %516 = arith.extui %515 : i1 to i32
    %c0_i32_182 = arith.constant 0 : i32
    %517 = arith.cmpi ne, %516, %c0_i32_182 : i32
    scf.if %517 {
      %c0_183 = arith.constant 0 : index
      %c0_184 = arith.constant 0 : index
      %518 = vector.load %arg23[%c0_183, %c0_184] : memref<10x128xf32, #tpu.memory_space<vmem>>, vector<10x128xf32>
      tpu.vector_store %arg23[%c0_183, %c0_184], %513 {strides = array<i32>} : memref<10x128xf32, #tpu.memory_space<vmem>>, vector<10x128xf32>,
    } else {
    }
    return
  }
  func.func @transform_0(%arg0: i32) -> (i32, i32) {
    %c0_i32 = arith.constant 0 : i32
    %c0_i32_0 = arith.constant 0 : i32
    %c0_i32_1 = arith.constant 0 : i32
    return %c0_i32, %c0_i32_0 : i32, i32
  }
  func.func @transform_1(%arg0: i32) -> (i32, i32) {
    %c0_i32 = arith.constant 0 : i32
    %c0_i32_0 = arith.constant 0 : i32
    %c0_i32_1 = arith.constant 0 : i32
    return %c0_i32, %c0_i32_0 : i32, i32
  }
  func.func @transform_2(%arg0: i32) -> (i32, i32) {
    %c0_i32 = arith.constant 0 : i32
    %c0_i32_0 = arith.constant 0 : i32
    %c0_i32_1 = arith.constant 0 : i32
    return %c0_i32, %c0_i32_0 : i32, i32
  }
  func.func @transform_3(%arg0: i32) -> (i32, i32, i32) {
    %c0_i32 = arith.constant 0 : i32
    %c0_i32_0 = arith.constant 0 : i32
    %c0_i32_1 = arith.constant 0 : i32
    return %arg0, %c0_i32, %c0_i32_0 : i32, i32, i32
  }
  func.func @transform_4(%arg0: i32) -> (i32, i32, i32) {
    %c0_i32 = arith.constant 0 : i32
    %c0_i32_0 = arith.constant 0 : i32
    %c0_i32_1 = arith.constant 0 : i32
    return %arg0, %c0_i32, %c0_i32_0 : i32, i32, i32
  }
  func.func @transform_5(%arg0: i32) -> (i32, i32, i32) {
    %c0_i32 = arith.constant 0 : i32
    %c0_i32_0 = arith.constant 0 : i32
    %c0_i32_1 = arith.constant 0 : i32
    return %arg0, %c0_i32, %c0_i32_0 : i32, i32, i32
  }
  func.func @transform_6(%arg0: i32) -> (i32, i32, i32) {
    %c0_i32 = arith.constant 0 : i32
    %c0_i32_0 = arith.constant 0 : i32
    %c0_i32_1 = arith.constant 0 : i32
    return %arg0, %c0_i32, %c0_i32_0 : i32, i32, i32
  }
  func.func @transform_7(%arg0: i32) -> (i32, i32, i32) {
    %c0_i32 = arith.constant 0 : i32
    %c0_i32_0 = arith.constant 0 : i32
    %c0_i32_1 = arith.constant 0 : i32
    return %arg0, %c0_i32, %c0_i32_0 : i32, i32, i32
  }
  func.func @transform_8(%arg0: i32) -> (i32, i32, i32) {
    %c0_i32 = arith.constant 0 : i32
    %c0_i32_0 = arith.constant 0 : i32
    %c0_i32_1 = arith.constant 0 : i32
    return %arg0, %c0_i32, %c0_i32_0 : i32, i32, i32
  }
  func.func @transform_9(%arg0: i32) -> (i32, i32, i32) {
    %c0_i32 = arith.constant 0 : i32
    %c0_i32_0 = arith.constant 0 : i32
    %c0_i32_1 = arith.constant 0 : i32
    return %arg0, %c0_i32, %c0_i32_0 : i32, i32, i32
  }
  func.func @transform_10(%arg0: i32) -> (i32, i32, i32) {
    %c0_i32 = arith.constant 0 : i32
    %c0_i32_0 = arith.constant 0 : i32
    %c0_i32_1 = arith.constant 0 : i32
    return %arg0, %c0_i32, %c0_i32_0 : i32, i32, i32
  }
  func.func @transform_11(%arg0: i32) -> (i32, i32, i32) {
    %c0_i32 = arith.constant 0 : i32
    %c0_i32_0 = arith.constant 0 : i32
    %c0_i32_1 = arith.constant 0 : i32
    return %arg0, %c0_i32, %c0_i32_0 : i32, i32, i32
  }
  func.func @transform_12(%arg0: i32) -> (i32, i32, i32) {
    %c0_i32 = arith.constant 0 : i32
    %c0_i32_0 = arith.constant 0 : i32
    %c0_i32_1 = arith.constant 0 : i32
    return %arg0, %c0_i32, %c0_i32_0 : i32, i32, i32
  }
  func.func @transform_13(%arg0: i32) -> (i32, i32, i32) {
    %c0_i32 = arith.constant 0 : i32
    %c0_i32_0 = arith.constant 0 : i32
    %c0_i32_1 = arith.constant 0 : i32
    return %arg0, %c0_i32, %c0_i32_0 : i32, i32, i32
  }
  func.func @transform_14(%arg0: i32) -> (i32, i32, i32) {
    %c0_i32 = arith.constant 0 : i32
    %c0_i32_0 = arith.constant 0 : i32
    %c0_i32_1 = arith.constant 0 : i32
    return %arg0, %c0_i32, %c0_i32_0 : i32, i32, i32
  }
  func.func @transform_15(%arg0: i32) -> (i32, i32, i32) {
    %c0_i32 = arith.constant 0 : i32
    %c0_i32_0 = arith.constant 0 : i32
    %c0_i32_1 = arith.constant 0 : i32
    return %arg0, %c0_i32, %c0_i32_0 : i32, i32, i32
  }
  func.func @transform_16(%arg0: i32) -> (i32, i32, i32) {
    %c0_i32 = arith.constant 0 : i32
    %c0_i32_0 = arith.constant 0 : i32
    %c0_i32_1 = arith.constant 0 : i32
    return %arg0, %c0_i32, %c0_i32_0 : i32, i32, i32
  }
  func.func @transform_17(%arg0: i32) -> (i32, i32, i32) {
    %c0_i32 = arith.constant 0 : i32
    %c0_i32_0 = arith.constant 0 : i32
    %c0_i32_1 = arith.constant 0 : i32
    return %arg0, %c0_i32, %c0_i32_0 : i32, i32, i32
  }
  func.func @transform_18(%arg0: i32) -> (i32, i32, i32) {
    %c0_i32 = arith.constant 0 : i32
    %c0_i32_0 = arith.constant 0 : i32
    %c0_i32_1 = arith.constant 0 : i32
    return %arg0, %c0_i32, %c0_i32_0 : i32, i32, i32
  }
  func.func @transform_19(%arg0: i32) -> (i32, i32, i32) {
    %c0_i32 = arith.constant 0 : i32
    %c0_i32_0 = arith.constant 0 : i32
    %c0_i32_1 = arith.constant 0 : i32
    return %arg0, %c0_i32, %c0_i32_0 : i32, i32, i32
  }
  func.func @transform_20(%arg0: i32) -> (i32, i32, i32) {
    %c0_i32 = arith.constant 0 : i32
    %c0_i32_0 = arith.constant 0 : i32
    %c0_i32_1 = arith.constant 0 : i32
    return %arg0, %c0_i32, %c0_i32_0 : i32, i32, i32
  }
  func.func @transform_21(%arg0: i32) -> (i32, i32, i32) {
    %c0_i32 = arith.constant 0 : i32
    %c0_i32_0 = arith.constant 0 : i32
    %c0_i32_1 = arith.constant 0 : i32
    return %arg0, %c0_i32, %c0_i32_0 : i32, i32, i32
  }
  func.func @transform_22(%arg0: i32) -> (i32, i32) {
    %c0_i32 = arith.constant 0 : i32
    %c0_i32_0 = arith.constant 0 : i32
    %c0_i32_1 = arith.constant 0 : i32
    return %c0_i32, %c0_i32_0 : i32, i32
  }
}

</mosaic_0001>

<bundles_post_ra>
// kernel: custom-call.2
= control target key start
LH: loop header
LB: loop body
LE: loop exit
PB: predicated region body
PF: predicated region fallthrough
CT: control target
= control target key end

     0   :  { %s6_s0 = inlined_call_operand.hbm [shape: f32[2,5,128], index: 0, kind: output, shape index: {}]  }

// kernel: tile.27
= control target key start
LH: loop header
LB: loop body
LE: loop exit
PB: predicated region body
PF: predicated region fallthrough
CT: control target
= control target key end

     0   :  { %v13_v2 = vmov 0   ;;  %s30_s0 = inlined_call_operand.vmem [shape: pred[5], index: 0, kind: input, shape index: {}]   ;;  %s31_s1 = inlined_call_operand.vmem [shape: pred[2,5], index: 1, kind: output, shape index: {}]  }
   0x1   :  { %v4_v0 = vld [vmem:[%s30_s0] ss:$0 sm:$0xff] }
   0x2   :  { %v7_v1 = vand.u32 255, %v4_v0 }
   0x4   :  { %v8_v3 = vpack.c.b16 %v13_v2, %v7_v1 }
   0x6   :  { %v9_v4 = vpack.c.b8 %v13_v2, %v8_v3 }
   0x8   :  { %11 = vst [vmem:[%s31_s1] sm:$0x1] %v9_v4 }

// kernel: board_encoded_to_skills_forward.3
= control target key start
LH: loop header
LB: loop body
LE: loop exit
PB: predicated region body
PF: predicated region fallthrough
CT: control target
= control target key end

     0   :  { %8 = vsyncpa [#allocation3], 0  ;;  %s843_s0 = inlined_call_operand.vmem [shape: bf16[32,128], index: 0, kind: input, shape index: {}]   ;;  %s844_s1 = inlined_call_operand.hbm [shape: bf16[8,128,256], index: 1, kind: input, shape index: {}]   ;;  %s845_s2 = inlined_call_operand.vmem [shape: f32[8,1,256], index: 2, kind: input, shape index: {}]   ;;  %s846_s3 = inlined_call_operand.vmem [shape: bf16[8,32,256], index: 3, kind: output, shape index: {}]  }
   0x1   :  { %10 = vsyncpa [#allocation3 + $0x1], 0  ;;  %s708_s12 = smov 0   ;;  %s710_s13 = smov 0  }
   0x2   :  { %s712_s14 = smov 0   ;;  %s714_s15 = smov 0  }
   0x3 LB: > { %s727_s16 = sadd.s32 4294967295, %s682_s15   ;;  %s730_s17 = sadd.s32 1, %s682_s15   ;;  %s682_s15 = sphi %s714_s15, %s853_s15   ;;  %s678_s14 = sphi %s712_s14, %s852_s14   ;;  %s674_s13 = sphi %s710_s13, %s851_s13   ;;  %s670_s12 = sphi %s708_s12, %s850_s12  }
   0x4   : > { %s41_s18 = ssub.s32 %s682_s15, %s730_s17  ;;  %s44_s19 = sadd.s32 1, %s678_s14 }
   0x5   : > { %p42_p0 = scmp.eq.s32.totalorder %s41_s18, 0  ;;  %p51_p1 = scmp.ne.s32.totalorder %s678_s14, %s674_s13 }
   0x6   : > { %p52_p2 = scmp.eq.s32.totalorder %s682_s15, 0  ;;  %p57_p3 = scmp.ne.s32.totalorder %s674_s13, %s670_s12 }
   0x7   : > { %s740_s20 = scalar_select %p42_p0, %s678_s14, %s44_s19  }
   0x8   : > { %p53_p4 = por %p52_p2, %p51_p1  ;;  %p58_p5 = scmp.eq.s32.totalorder %s727_s16, 0 }
   0x9   : > { %p556_p6 = scmp.lt.s32.totalorder %s682_s15, 8  ;;  %s136_s22 = sand.u32 1, %s678_s14  }
   0xa   : > { %p744_p7 = por %p58_p5, %p57_p3  ;;  %s496_s23 = sshll.u32 %s136_s22, 7 }
   0xb   : > { %s528_s24 = sshll.u32 %s682_s15, 11  ;;  %s140_s28 = scalar_lea.vmem [#allocation2], %s496_s23 }
   0xc   : > { %s753_s27 = scalar_lea.hbm %s844_s1, %s528_s24  ;;  %s147_s29 = sshll.u32 %s140_s28, 4  ;;  %s755_s29 = int_to_ptr.vmem [resolvable:$true] %s147_s29 }
   0xd   : > { %p757_p8 = pnand %p556_p6, %p53_p4  ;;  %s762_s4 = scalar_lea.sflag [#allocation3], %s136_s22 }
   0xe   : > { %s618_s5 = scalar_lea.hbm %s753_s27, 2048  ;;  %s623_s8 = scalar_lea.hbm %s844_s1, 16384 }
   0xf   : > { %p619_p10 = scmp.ne.s32.totalorder %s753_s27, %s618_s5  ;;  %p620_p11 = pneg %p757_p8 }
  0x10   : > { %p624_p0 = scmp.lt.u32.totalorder %s753_s27, %s844_s1  ;;  %p625_p1 = scmp.lt.u32.totalorder %s623_s8, %s618_s5 }
  0x11   : > { %p621_p12 = pnand %p620_p11, %p619_p10  ;;  %p627_p3 = scmp.lt.u32.totalorder %s618_s5, %s753_s27 }
  0x12   : > { %p626_p2 = por %p625_p1, %p624_p0 }
  0x13   : > { %p622_p13 = pneg %p621_p12 }
  0x14   : > { %p628_p4 = por %p627_p3, %p626_p2 }
  0x16   : > { %p629_p5 = pnand %p628_p4, %p622_p13 }
  0x18   : > { %632 = shalt.err (!%p629_p5)
}
  0x19   : > { %s633_s11 = scalar_lea.vmem %s755_s29, 2048  ;;  %s684_s12 = smov [#allocation2]  }
  0x1a   : > { %p634_p6 = scmp.ne.s32.totalorder %s755_s29, %s633_s11  ;;  %s638_s18 = sshll.u32 %s684_s12, 4  ;;  %s639_s18 = int_to_ptr.vmem [resolvable:$false] %s638_s18 }
  0x1b   : > { %s640_s19 = scalar_lea.vmem %s639_s18, 4096  ;;  %p641_p9 = scmp.lt.s32.totalorder %s755_s29, %s639_s18 }
  0x1c   : > { %p636_p10 = pnand %p634_p6, %p620_p11  ;;  %p642_p0 = scmp.lt.s32.totalorder %s640_s19, %s633_s11 }
  0x1e   : > { %p637_p12 = pneg %p636_p10  ;;  %p643_p1 = por %p642_p0, %p641_p9 }
  0x20   : > { %p644_p2 = pnand %p643_p1, %p637_p12 }
  0x22   : > { %647 = shalt.err (!%p644_p2)
}
  0x23   : > { %s685_s22 = smov 128   ;;  %s686_s23 = smov 8  }
  0x24   : > { %555 = dma.hbm_to_vmem [thread:$0]  (!%p757_p8), %s753_s27, 2048, %s755_s29, %s762_s4, %s685_s22, %s685_s22, %s686_s23  }
  0x25   : > { %p162_p11 = scmp.lt.s32.totalorder %s682_s15, 9  ;;  %p849_p13 = scmp.ge.s32.totalorder %s682_s15, 1 }
  0x27   : > { %p163_p3 = pnand %p849_p13, %p162_p11 }
  0x28   : > { %s168_s24 = sand.u32 (!%p163_p3), 1, %s674_s13  }
  0x29   : > { %166 = sbr.rel (%p163_p3) target bundleno = 303 (0x12f), region = 32  ;;  %s500_s25 = sshll.u32 (!%p163_p3), %s168_s24, 7 }
  0x2a   : > { %s169_s26 = scalar_lea.sflag (!%p163_p3), [#allocation3], %s168_s24  ;;  %s794_s28 = scalar_lea.vmem (!%p163_p3), [#allocation2], %s500_s25 }
  0x30   : > { %665 = dma.done.wait (%p744_p7), %s169_s26, 2048  }
  0x31   : > { %667 = vsyncadd (%p744_p7), %s169_s26, 4294965248  ;;  %v687_v0 = vmov 0   ;;  %v592_v1 = vld [vmem:[%s794_s28 + $0x4] ss:$8 sps:$4 sm:$0xff]   ;;  %v594_v2 = vld [vmem:[%s794_s28] ss:$8 sps:$4 sm:$0xff]   ;;  %v231_v19 = vlaneseq }
  0x32   : > { %365 = vmatprep.mubr.bf16.mxu0 %v687_v0  ;;  %375 = vmatprep.mubr.bf16.mxu1 %v687_v0  ;;  %v595_v3 = vld [vmem:[%s794_s28 + $0x14] ss:$8 sps:$4 sm:$0xff]   ;;  %v597_v4 = vld [vmem:[%s794_s28 + $0x10] ss:$8 sps:$4 sm:$0xff]   ;;  %v598_v5 = vld [vmem:[%s794_s28 + $0x24] ss:$8 sps:$4 sm:$0xff]  }
  0x33   : > { %333 = vmatprep.subr.bf16.mxu0 %v592_v1  ;;  %534 = vmatprep.subr.bf16.mxu1 %v592_v1  ;;  %v600_v6 = vld [vmem:[%s794_s28 + $0x20] ss:$8 sps:$4 sm:$0xff]   ;;  %v601_v7 = vld [vmem:[%s794_s28 + $0x34] ss:$8 sps:$4 sm:$0xff]   ;;  %v603_v8 = vld [vmem:[%s794_s28 + $0x30] ss:$8 sps:$4 sm:$0xff]  }
  0x34   : > { %334 = vmatpush1.bf16.msra.mxu0 %v594_v2  ;;  %542 = vmatpush1.bf16.msra.mxu1 %v594_v2  ;;  %v604_v9 = vld [vmem:[%s794_s28 + $0x44] ss:$8 sps:$4 sm:$0xff]   ;;  %v606_v10 = vld [vmem:[%s794_s28 + $0x40] ss:$8 sps:$4 sm:$0xff]   ;;  %v607_v11 = vld [vmem:[%s794_s28 + $0x54] ss:$8 sps:$4 sm:$0xff]  }
  0x35   : > { %335 = vmatprep.subr.bf16.mxu0 %v595_v3  ;;  %535 = vmatprep.subr.bf16.mxu1 %v595_v3  ;;  %v609_v12 = vld [vmem:[%s794_s28 + $0x50] ss:$8 sps:$4 sm:$0xff]   ;;  %v610_v13 = vld [vmem:[%s794_s28 + $0x64] ss:$8 sps:$4 sm:$0xff]   ;;  %v612_v14 = vld [vmem:[%s794_s28 + $0x60] ss:$8 sps:$4 sm:$0xff]  }
  0x36   : > { %v613_v15 = vld [vmem:[%s794_s28 + $0x74] ss:$8 sps:$4 sm:$0xff]   ;;  %v615_v16 = vld [vmem:[%s794_s28 + $0x70] ss:$8 sps:$4 sm:$0xff]   ;;  %v616_v17 = vld [vmem:[%s843_s0] sm:$0xff]   ;;  %p199_p7 = scmp.lt.s32.totalorder %s727_s16, 7 }
  0x37   : > { %v617_v18 = vld [vmem:[%s843_s0 + $0x8] sm:$0xff]   ;;  %v232_v20 = vshrl.u32 %v231_v19, 7 }
  0x38   : > { %336 = vmatpush1.bf16.msra.mxu0 %v597_v4  ;;  %543 = vmatpush1.bf16.msra.mxu1 %v597_v4  ;;  %s855_s16 = smov (!%p199_p7, %s727_s16), 7 }
  0x39   : > { %337 = vmatprep.subr.bf16.mxu0 %v598_v5  ;;  %536 = vmatprep.subr.bf16.mxu1 %v598_v5  ;;  %s501_s30 = sshll.u32 %s855_s16, 1  ;;  %v233_v21 = vsub.s32 0, %v232_v20  ;;  %v237_v23 = vsub.s32 1, %v232_v20  ;;  %s529_s7 = sshll.u32 %s855_s16, 5 }
  0x3a   : > { %s202_s6 = scalar_lea.vmem %s845_s2, %s501_s30  ;;  %s207_s10 = scalar_lea.vmem %s846_s3, %s529_s7 }
  0x3b   : > { %v229_v22 = vld [vmem:[%s202_s6] sm:$0x3] }
  0x3c   : > { %338 = vmatpush1.bf16.msra.mxu0 %v600_v6  ;;  %544 = vmatpush1.bf16.msra.mxu1 %v600_v6  ;;  %v234_v24 = vrot.slane %v229_v22, %v233_v21  ;;  %v238_v25 = vrot.slane %v229_v22, %v237_v23 }
  0x3d   : > { %339 = vmatprep.subr.bf16.mxu0 %v601_v7  ;;  %537 = vmatprep.subr.bf16.mxu1 %v601_v7 }
  0x40   : > { %340 = vmatpush1.bf16.msra.mxu0 %v603_v8  ;;  %545 = vmatpush1.bf16.msra.mxu1 %v603_v8 }
  0x41   : > { %341 = vmatprep.subr.bf16.mxu0 %v604_v9  ;;  %538 = vmatprep.subr.bf16.mxu1 %v604_v9 }
  0x44   : > { %342 = vmatpush1.bf16.msra.mxu0 %v606_v10  ;;  %546 = vmatpush1.bf16.msra.mxu1 %v606_v10 }
  0x45   : > { %343 = vmatprep.subr.bf16.mxu0 %v607_v11  ;;  %539 = vmatprep.subr.bf16.mxu1 %v607_v11 }
  0x48   : > { %344 = vmatpush1.bf16.msra.mxu0 %v609_v12  ;;  %547 = vmatpush1.bf16.msra.mxu1 %v609_v12 }
  0x49   : > { %345 = vmatprep.subr.bf16.mxu0 %v610_v13  ;;  %540 = vmatprep.subr.bf16.mxu1 %v610_v13 }
  0x4c   : > { %346 = vmatpush1.bf16.msra.mxu0 %v612_v14  ;;  %548 = vmatpush1.bf16.msra.mxu1 %v612_v14 }
  0x4d   : > { %347 = vmatprep.subr.bf16.mxu0 %v613_v15  ;;  %541 = vmatprep.subr.bf16.mxu1 %v613_v15 }
  0x50   : > { %348 = vmatpush1.bf16.msra.mxu0 %v615_v16  ;;  %549 = vmatpush1.bf16.msra.mxu1 %v615_v16 }
  0x53   : > { %366 = vmatmul.mubr.bf16.vlgmr.msra.gmra.mrb[0].mxu0 %v616_v17  ;;  %376 = vmatmul.mubr.bf16.vlgmr.msra.gmra.mrb[0].mxu1 %v617_v18 }
 0x126   : > { %v367_v26 = vpop.f32.mrb[0].mxu0  ;;  %v377_v27 = vpop.f32.mrb[0].mxu1 }
 0x127   : > { %v368_v28 = vadd.f32 %v367_v26, %v234_v24  ;;  %v378_v29 = vadd.f32 %v377_v27, %v234_v24  ;;  %v369_v30 = vpop.f32.mrb[1].mxu0  ;;  %v379_v31 = vpop.f32.mrb[1].mxu1 }
 0x128   : > { %v370_v32 = vadd.f32 %v369_v30, %v238_v25  ;;  %v380_v33 = vadd.f32 %v379_v31, %v238_v25  ;;  %v371_v34 = vpop.f32.mrb[2].mxu0  ;;  %v381_v35 = vpop.f32.mrb[2].mxu1 }
 0x129   : > { %v372_v36 = vadd.f32 %v371_v34, %v234_v24  ;;  %v382_v37 = vadd.f32 %v381_v35, %v234_v24  ;;  %v373_v38 = vpop.f32.mrb[3].mxu0  ;;  %v383_v39 = vpop.f32.mrb[3].mxu1 }
 0x12a   : > { %v530_v40 = vpack.c.bf16 %v370_v32, %v368_v28  ;;  %v532_v41 = vpack.c.bf16 %v380_v33, %v378_v29  ;;  %v374_v42 = vadd.f32 %v373_v38, %v238_v25  ;;  %v384_v43 = vadd.f32 %v383_v39, %v238_v25 }
 0x12c   : > { %410 = vst [vmem:[%s207_s10] sm:$0xff] %v530_v40  ;;  %412 = vst [vmem:[%s207_s10 + $0x10] sm:$0xff] %v532_v41  ;;  %v531_v44 = vpack.c.bf16 %v374_v42, %v372_v36  ;;  %v533_v45 = vpack.c.bf16 %v384_v43, %v382_v37 }
 0x12e   : > { %411 = vst [vmem:[%s207_s10 + $0x8] sm:$0xff] %v531_v44  ;;  %413 = vst [vmem:[%s207_s10 + $0x18] sm:$0xff] %v533_v45 }
 0x12f PF: > { %p13_p8 = scmp.ge.s32.totalorder %s730_s17, 10   ;;  %s850_s12 = smov %s674_s13 }
 0x130   : > { %s851_s13 = smov %s678_s14  ;;  %s852_s14 = smov %s740_s20 }
 0x131   : > { %s853_s15 = smov %s730_s17  ;;  %15 = sbr.rel (!%p13_p8) target bundleno = 3 (0x3), region = 75 }
 0x138   :  { %435 = vsyncpa [#allocation3], 1 }
 0x139   :  { %437 = vsyncpa [#allocation3 + $0x1], 1 }

// kernel: board_encoded_to_skills_forward.2
= control target key start
LH: loop header
LB: loop body
LE: loop exit
PB: predicated region body
PF: predicated region fallthrough
CT: control target
= control target key end

     0   :  { %s5629_s0 = inlined_call_operand.vmem [shape: f32[32,128], index: 0, kind: input, shape index: {}]   ;;  %s5630_s1 = inlined_call_operand.vmem [shape: f32[32,32], index: 1, kind: input, shape index: {}]   ;;  %s5631_s2 = inlined_call_operand.hbm [shape: bf16[8,128,384], index: 2, kind: input, shape index: {}]   ;;  %s5632_s3 = inlined_call_operand.vmem [shape: f32[8,1,384], index: 3, kind: input, shape index: {}]   ;;  %s5633_s4 = inlined_call_operand.hbm [shape: bf16[8,128,128], index: 4, kind: input, shape index: {}]   ;;  %s5634_s5 = inlined_call_operand.vmem [shape: f32[8,1,128], index: 5, kind: input, shape index: {}]   ;;  %s5635_s6 = inlined_call_operand.vmem [shape: f32[8,1,128], index: 6, kind: input, shape index: {}]   ;;  %s5636_s7 = inlined_call_operand.vmem [shape: f32[8,1,128], index: 7, kind: input, shape index: {}]   ;;  %s5637_s8 = inlined_call_operand.hbm [shape: bf16[8,128,256], index: 8, kind: input, shape index: {}]   ;;  %s5638_s9 = inlined_call_operand.vmem [shape: f32[8,1,256], index: 9, kind: input, shape index: {}]   ;;  %s5639_s10 = inlined_call_operand.hbm [shape: bf16[8,256,128], index: 10, kind: input, shape index: {}]   ;;  %s5640_s11 = inlined_call_operand.vmem [shape: f32[8,1,128], index: 11, kind: input, shape index: {}]   ;;  %s5641_s12 = inlined_call_operand.vmem [shape: f32[8,1,128], index: 12, kind: input, shape index: {}]   ;;  %s5642_s13 = inlined_call_operand.vmem [shape: f32[8,1,128], index: 13, kind: input, shape index: {}]   ;;  %s5643_s14 = inlined_call_operand.vmem [shape: f32[32,128], index: 14, kind: output, shape index: {}]  }
   0x1   :  { %5653 = sst [smem:[#allocation16_spill]] %s5629_s0 }
   0x2   :  { %5654 = sst [smem:[#allocation17_spill]] %s5630_s1 }
   0x3   :  { %5655 = sst [smem:[#allocation18_spill]] %s5631_s2 }
   0x4   :  { %5656 = sst [smem:[#allocation19_spill]] %s5633_s4 }
   0x5   :  { %5657 = sst [smem:[#allocation20_spill]] %s5637_s8 }
   0x6   :  { %5658 = sst [smem:[#allocation21_spill]] %s5639_s10 }
   0x7   :  { %5659 = sst [smem:[#allocation22_spill]] %s5642_s13 }
   0x8   :  { %5660 = sst [smem:[#allocation23_spill]] %s5643_s14 }
   0x9   :  { %19 = vsyncpa [#allocation4], 0 }
   0xa   :  { %21 = vsyncpa [#allocation4 + $0x1], 0 }
   0xb   :  { %22 = vsyncpa [#allocation6], 0 }
   0xc   :  { %24 = vsyncpa [#allocation6 + $0x1], 0 }
   0xd   :  { %25 = vsyncpa [#allocation9], 0 }
   0xe   :  { %27 = vsyncpa [#allocation9 + $0x1], 0  ;;  %s4802_s29 = smov 0   ;;  %s4804_s30 = smov 0  }
   0xf   :  { %s4806_s15 = smov 0   ;;  %s4808_s16 = smov 0  }
  0x10 LB: > { %5661 = sst [smem:[#allocation13_spill]] %s4703_s15  ;;  %s4821_s17 = sadd.s32 4294967295, %s4707_s16   ;;  %s4707_s16 = sphi %s4808_s16, %s5685_s16   ;;  %s4703_s15 = sphi %s4806_s15, %s5687_s15   ;;  %s4699_s30 = sphi %s4804_s30, %s5689_s30   ;;  %s4695_s29 = sphi %s4802_s29, %s5688_s29  }
  0x11   : > { %s4824_s18 = sadd.s32 1, %s4707_s16   ;;  %s82_s20 = sadd.s32 1, %s4703_s15 }
  0x12   : > { %5662 = sst [smem:[#allocation14_spill]] %s4824_s18  ;;  %s79_s19 = ssub.s32 %s4707_s16, %s4824_s18 }
  0x13   : > { %p80_p0 = scmp.eq.s32.totalorder %s79_s19, 0  ;;  %p89_p1 = scmp.ne.s32.totalorder %s4703_s15, %s4699_s30 }
  0x14   : > { %p90_p2 = scmp.eq.s32.totalorder %s4707_s16, 0  ;;  %p95_p3 = scmp.ne.s32.totalorder %s4699_s30, %s4695_s29 }
  0x15   : > { %s4834_s21 = scalar_select %p80_p0, %s4703_s15, %s82_s20  }
  0x16   : > { %p91_p4 = por %p90_p2, %p89_p1  ;;  %p96_p5 = scmp.eq.s32.totalorder %s4821_s17, 0 }
  0x17   : > { %5663 = sst [smem:[#allocation15_spill]] %s4834_s21  ;;  %p4266_p6 = scmp.lt.s32.totalorder %s4707_s16, 8 }
  0x18   : > { %p4838_p7 = por %p96_p5, %p95_p3  ;;  %s4843_s23 = sand.u32 1, %s4703_s15  }
  0x19   : > { %p4845_p8 = pnand %p4266_p6, %p91_p4  ;;  %s460_s25 = sand.u32 1, %s4707_s16  }
  0x1a   : > { %s5664_s22 = scalar_select %p4838_p7, 1, 0 }
  0x1b   : > { %s3736_s26 = sshll.u32 %s4843_s23, 6  ;;  %s3872_s27 = sshll.u32 %s4707_s16, 10 }
  0x1c   : > { %s464_s28 = scalar_lea.vmem [#allocation5], %s3736_s26  ;;  %s5666_s4 = sld [smem:[#allocation19_spill]] }
  0x1d   : > { %s471_s29 = sshll.u32 %s464_s28, 4  ;;  %s4859_s15 = scalar_lea.sflag [#allocation6], %s460_s25  ;;  %s4857_s29 = int_to_ptr.vmem [resolvable:$true] %s471_s29 }
  0x1e   : > { %p4865_p10 = pneg %p4845_p8 }
  0x22   : > { %s4855_s21 = scalar_lea.hbm %s5666_s4, %s3872_s27  ;;  %s4550_s28 = scalar_lea.hbm %s5666_s4, 8192 }
  0x23   : > { %s4545_s18 = scalar_lea.hbm %s4855_s21, 1024  ;;  %p4551_p13 = scmp.lt.u32.totalorder %s4855_s21, %s5666_s4 }
  0x24   : > { %p4546_p9 = scmp.ne.s32.totalorder %s4855_s21, %s4545_s18  ;;  %p4552_p0 = scmp.lt.u32.totalorder %s4550_s28, %s4545_s18 }
  0x25   : > { %p4554_p2 = scmp.lt.u32.totalorder %s4545_s18, %s4855_s21 }
  0x26   : > { %p4548_p11 = pnand %p4865_p10, %p4546_p9  ;;  %p4553_p1 = por %p4552_p0, %p4551_p13 }
  0x28   : > { %p4549_p12 = pneg %p4548_p11  ;;  %p4555_p3 = por %p4554_p2, %p4553_p1 }
  0x2a   : > { %p4556_p4 = pnand %p4555_p3, %p4549_p12 }
  0x2c   : > { %4559 = shalt.err (!%p4556_p4)
}
  0x2d   : > { %s4560_s25 = scalar_lea.vmem %s4857_s29, 1024  ;;  %s4709_s26 = smov [#allocation5]  }
  0x2e   : > { %p4561_p5 = scmp.ne.s32.totalorder %s4857_s29, %s4560_s25  ;;  %s4565_s27 = sshll.u32 %s4709_s26, 4  ;;  %s4566_s27 = int_to_ptr.vmem [resolvable:$false] %s4565_s27 }
  0x2f   : > { %s4567_s19 = scalar_lea.vmem %s4566_s27, 2048  ;;  %p4568_p11 = scmp.lt.s32.totalorder %s4857_s29, %s4566_s27 }
  0x30   : > { %p4563_p6 = pnand %p4561_p5, %p4865_p10  ;;  %p4569_p7 = scmp.lt.s32.totalorder %s4567_s19, %s4560_s25 }
  0x32   : > { %p4564_p9 = pneg %p4563_p6  ;;  %p4570_p13 = por %p4569_p7, %p4568_p11 }
  0x34   : > { %p4571_p0 = pnand %p4570_p13, %p4564_p9 }
  0x36   : > { %4574 = shalt.err (!%p4571_p0)
}
  0x37   : > { %s5651_s18 = smov 64   ;;  %s5652_s28 = smov 4  }
  0x38   : > { %4259 = dma.hbm_to_vmem [thread:$0]  (!%p4845_p8), %s4855_s21, 1024, %s4857_s29, %s4859_s15, %s5651_s18, %s5651_s18, %s5652_s28  }
  0x39   : > { %p3745_p7 = scmp.ge.s32.totalorder %s4707_s16, 1  ;;  %p564_p12 = scmp.lt.s32.totalorder %s4707_s16, 9 }
  0x3a   : > { %s4241_s20 = smul.u32 192, %s4843_s23  ;;  %s5669_s2 = sld [smem:[#allocation18_spill]] }
  0x3b   : > { %p4895_p1 = pnand %p3745_p7, %p564_p12  ;;  %s4242_s26 = smul.u32 3072, %s4707_s16 }
  0x3c   : > { %s436_s1 = scalar_lea.vmem [#allocation3], %s4241_s20  ;;  %s433_s21 = scalar_lea.sflag [#allocation4], %s4843_s23 }
  0x3d   : > { %s5668_s25 = scalar_select %p4895_p1, 1, 0 }
  0x3e   : > { %s443_s0 = sshll.u32 %s436_s1, 4  ;;  %s4905_s0 = int_to_ptr.vmem [resolvable:$true] %s443_s0 }
  0x40   : > { %s4903_s4 = scalar_lea.hbm %s5669_s2, %s4242_s26  ;;  %s4580_s27 = scalar_lea.hbm %s5669_s2, 24576 }
  0x41   : > { %s4575_s29 = scalar_lea.hbm %s4903_s4, 3072  ;;  %p4581_p5 = scmp.lt.u32.totalorder %s4903_s4, %s5669_s2 }
  0x42   : > { %p4576_p2 = scmp.ne.s32.totalorder %s4903_s4, %s4575_s29  ;;  %p4582_p6 = scmp.lt.u32.totalorder %s4580_s27, %s4575_s29 }
  0x43   : > { %p4584_p11 = scmp.lt.u32.totalorder %s4575_s29, %s4903_s4 }
  0x44   : > { %p4578_p3 = pnand %p4576_p2, %p4865_p10  ;;  %p4583_p9 = por %p4582_p6, %p4581_p5 }
  0x46   : > { %p4579_p4 = pneg %p4578_p3  ;;  %p4585_p13 = por %p4584_p11, %p4583_p9 }
  0x48   : > { %p4586_p0 = pnand %p4585_p13, %p4579_p4 }
  0x4a   : > { %4589 = shalt.err (!%p4586_p0)
}
  0x4b   : > { %s4590_s1 = scalar_lea.vmem %s4905_s0, 3072  ;;  %s4712_s18 = smov [#allocation3]  }
  0x4c   : > { %p4591_p7 = scmp.ne.s32.totalorder %s4905_s0, %s4590_s1  ;;  %s4595_s28 = sshll.u32 %s4712_s18, 4  ;;  %s4596_s28 = int_to_ptr.vmem [resolvable:$false] %s4595_s28 }
  0x4d   : > { %s4597_s20 = scalar_lea.vmem %s4596_s28, 6144  ;;  %p4598_p3 = scmp.lt.s32.totalorder %s4905_s0, %s4596_s28 }
  0x4e   : > { %p4593_p12 = pnand %p4591_p7, %p4865_p10  ;;  %p4599_p1 = scmp.lt.s32.totalorder %s4597_s20, %s4590_s1 }
  0x50   : > { %p4594_p2 = pneg %p4593_p12  ;;  %p4600_p5 = por %p4599_p1, %p4598_p3 }
  0x52   : > { %p4601_p6 = pnand %p4600_p5, %p4594_p2 }
  0x54   : > { %4604 = shalt.err (!%p4601_p6)
}
  0x55   : > { %s4713_s29 = smov 192   ;;  %s4714_s27 = smov 12  }
  0x56   : > { %4256 = dma.hbm_to_vmem [thread:$0]  (!%p4845_p8), %s4903_s4, 3072, %s4905_s0, %s433_s21, %s4713_s29, %s4713_s29, %s4714_s27  }
  0x57   : > { %s3739_s26 = sshll.u32 %s4843_s23, 7  ;;  %s3873_s19 = sshll.u32 %s4707_s16, 11 }
  0x58   : > { %s5670_s8 = sld [smem:[#allocation20_spill]]  ;;  %s503_s20 = scalar_lea.vmem [#allocation7], %s3739_s26 }
  0x59   : > { %s510_s2 = sshll.u32 %s503_s20, 4  ;;  %s4942_s2 = int_to_ptr.vmem [resolvable:$true] %s510_s2 }
  0x5e   : > { %s4938_s28 = scalar_lea.hbm %s5670_s8, %s3873_s19  ;;  %s4610_s21 = scalar_lea.hbm %s5670_s8, 16384 }
  0x5f   : > { %s4605_s13 = scalar_lea.hbm %s4938_s28, 2048  ;;  %p4611_p11 = scmp.lt.u32.totalorder %s4938_s28, %s5670_s8 }
  0x60   : > { %p4606_p1 = scmp.ne.s32.totalorder %s4938_s28, %s4605_s13  ;;  %p4612_p13 = scmp.lt.u32.totalorder %s4610_s21, %s4605_s13 }
  0x61   : > { %p4614_p7 = scmp.lt.u32.totalorder %s4605_s13, %s4938_s28 }
  0x62   : > { %p4608_p4 = pnand %p4606_p1, %p4865_p10  ;;  %p4613_p0 = por %p4612_p13, %p4611_p11 }
  0x64   : > { %p4609_p9 = pneg %p4608_p4  ;;  %p4615_p12 = por %p4614_p7, %p4613_p0 }
  0x66   : > { %p4616_p2 = pnand %p4615_p12, %p4609_p9 }
  0x68   : > { %4619 = shalt.err (!%p4616_p2)
}
  0x69   : > { %s4620_s1 = scalar_lea.vmem %s4942_s2, 2048  ;;  %s4715_s18 = smov [#allocation7]  }
  0x6a   : > { %p4621_p3 = scmp.ne.s32.totalorder %s4942_s2, %s4620_s1  ;;  %s4625_s20 = sshll.u32 %s4715_s18, 4  ;;  %s4626_s20 = int_to_ptr.vmem [resolvable:$false] %s4625_s20 }
  0x6b   : > { %s4627_s0 = scalar_lea.vmem %s4626_s20, 4096  ;;  %p4628_p1 = scmp.lt.s32.totalorder %s4942_s2, %s4626_s20 }
  0x6c   : > { %p4623_p5 = pnand %p4621_p3, %p4865_p10  ;;  %p4629_p4 = scmp.lt.s32.totalorder %s4627_s0, %s4620_s1 }
  0x6e   : > { %p4624_p6 = pneg %p4623_p5  ;;  %p4630_p11 = por %p4629_p4, %p4628_p1 }
  0x70   : > { %p4631_p13 = pnand %p4630_p11, %p4624_p6 }
  0x72   : > { %4634 = shalt.err (!%p4631_p13)
}
  0x73   : > { %s4716_s13 = smov 128   ;;  %s4717_s4 = smov 8  }
  0x74   : > { %4262 = dma.hbm_to_vmem [thread:$0]  (!%p4845_p8), %s4938_s28, 2048, %s4942_s2, %s4859_s15, %s4716_s13, %s4716_s13, %s4717_s4  }
  0x75   : > { %s5671_s10 = sld [smem:[#allocation21_spill]]  ;;  %s531_s1 = scalar_lea.vmem [#allocation8], %s3739_s26 }
  0x76   : > { %s538_s18 = sshll.u32 %s531_s1, 4  ;;  %s528_s20 = scalar_lea.sflag [#allocation9], %s4843_s23  ;;  %s4975_s18 = int_to_ptr.vmem [resolvable:$true] %s538_s18 }
  0x7b   : > { %s4971_s27 = scalar_lea.hbm %s5671_s10, %s3873_s19  ;;  %s4640_s16 = scalar_lea.hbm %s5671_s10, 16384 }
  0x7c   : > { %s4635_s0 = scalar_lea.hbm %s4971_s27, 2048  ;;  %p4641_p12 = scmp.lt.u32.totalorder %s4971_s27, %s5671_s10 }
  0x7d   : > { %p4636_p9 = scmp.ne.s32.totalorder %s4971_s27, %s4635_s0  ;;  %p4642_p2 = scmp.lt.u32.totalorder %s4640_s16, %s4635_s0 }
  0x7e   : > { %p4644_p5 = scmp.lt.u32.totalorder %s4635_s0, %s4971_s27 }
  0x7f   : > { %p4638_p0 = pnand %p4636_p9, %p4865_p10  ;;  %p4643_p3 = por %p4642_p2, %p4641_p12 }
  0x81   : > { %p4639_p7 = pneg %p4638_p0  ;;  %p4645_p6 = por %p4644_p5, %p4643_p3 }
  0x83   : > { %p4646_p1 = pnand %p4645_p6, %p4639_p7 }
  0x85   : > { %4649 = shalt.err (!%p4646_p1)
}
  0x86   : > { %s4650_s26 = scalar_lea.vmem %s4975_s18, 2048  ;;  %s4718_s13 = smov [#allocation8]  }
  0x87   : > { %p4651_p4 = scmp.ne.s32.totalorder %s4975_s18, %s4650_s26  ;;  %s4655_s4 = sshll.u32 %s4718_s13, 4  ;;  %s4656_s4 = int_to_ptr.vmem [resolvable:$false] %s4655_s4 }
  0x88   : > { %s4657_s21 = scalar_lea.vmem %s4656_s4, 4096  ;;  %p4658_p9 = scmp.lt.s32.totalorder %s4975_s18, %s4656_s4 }
  0x89   : > { %p4653_p11 = pnand %p4651_p4, %p4865_p10  ;;  %p4659_p0 = scmp.lt.s32.totalorder %s4657_s21, %s4650_s26 }
  0x8b   : > { %p4654_p13 = pneg %p4653_p11  ;;  %p4660_p12 = por %p4659_p0, %p4658_p9 }
  0x8d   : > { %p4661_p2 = pnand %p4660_p12, %p4654_p13 }
  0x8f   : > { %4664 = shalt.err (!%p4661_p2)
}
  0x90   : > { %s5672_s29 = smov 4   ;;  %s5673_s1 = smov 64  }
  0x91   : > { %4265 = dma.hbm_to_vmem [thread:$0]  (!%p4845_p8), %s4971_s27, 2048, %s4975_s18, %s528_s20, %s5673_s1, %s5673_s1, %s5672_s29  }
  0x92   : > { %p5674_p10 = scmp.ne.s32.totalorder %s5668_s25, 0 }
  0x93   : > { %s570_s14 = sand.u32 (!%p5674_p10), 1, %s4699_s30   ;;  %p5675_p7 = scmp.ne.s32.totalorder (!%p5674_p10), %s5664_s22, 0 }
  0x94   : > { %568 = sbr.rel (%p5674_p10) target bundleno = 4954 (0x135a), region = 76  ;;  %s571_s2 = scalar_lea.sflag (!%p5674_p10), [#allocation4], %s570_s14 }
  0x95   : > { %s4243_s0 = smul.u32 (!%p5674_p10), 192, %s570_s14 }
  0x97   : > { %s5007_s15 = scalar_lea.vmem (!%p5674_p10), [#allocation3], %s4243_s0 }
  0x9b   : > { %4682 = dma.done.wait (%p5675_p7), %s571_s2, 3072  }
  0x9c   : > { %4684 = vsyncadd (%p5675_p7), %s571_s2, 4294964224  ;;  %s579_s23 = sand.u32 1, %s4821_s17   ;;  %s3746_s24 = sshll.u32 %s570_s14, 6 }
  0x9d   : > { %s580_s27 = scalar_lea.sflag [#allocation6], %s579_s23  ;;  %s5014_s18 = scalar_lea.vmem [#allocation5], %s3746_s24 }
  0x9e   : > { %4686 = dma.done.wait (%p5675_p7), %s580_s27, 3072  }
  0x9f   : > { %4688 = vsyncadd (%p5675_p7), %s580_s27, 4294964224  ;;  %s3747_s25 = sshll.u32 %s570_s14, 7  ;;  %s598_s16 = scalar_lea.sflag [#allocation9], %s570_s14 }
  0xa0   : > { %s5020_s20 = scalar_lea.vmem [#allocation7], %s3747_s25  ;;  %s5022_s19 = scalar_lea.vmem [#allocation8], %s3747_s25 }
  0xa1   : > { %4690 = dma.done.wait (%p5675_p7), %s598_s16, 2048  }
  0xa2   : > { %4692 = vsyncadd (%p5675_p7), %s598_s16, 4294965248  ;;  %p682_p8 = scmp.lt.s32.totalorder %s4821_s17, 7  ;;  %s5676_s21 = sld [smem:[#allocation22_spill]] }
  0xa3   : > { %p3750_p3 = scmp.ne.s32.totalorder %s4821_s17, 0 }
  0xa4   : > { %s5030_s28 = scalar_select %p682_p8, %s4821_s17, 7 }
  0xa5   : > { %712 = sbr.rel (%p3750_p3) target bundleno = 174 (0xae), region = 96  ;;  %s5677_s8 = sld [smem:[#allocation16_spill]] (!%p3750_p3) }
  0xa6   : > { %s4244_s26 = smul.u32 3, %s5030_s28  ;;  %s3749_s25 = sshll.u32 %s5030_s28, 1 }
  0xa7   : > { %s5054_s10 = scalar_lea.vmem %s5638_s9, %s3749_s25  ;;  %s701_s22 = scalar_lea.vmem %s5640_s11, %s5030_s28 }
  0xa8   : > { %s5048_s27 = scalar_lea.vmem %s5632_s3, %s4244_s26  ;;  %s704_s14 = scalar_lea.vmem %s5641_s12, %s5030_s28 }
  0xa9   : > { %s707_s23 = scalar_lea.vmem %s5676_s21, %s5030_s28 }
  0xab   : > { %v713_v0 = vld [vmem:[%s5677_s8] sm:$0xff] (!%p3750_p3)  ;;  %v714_v1 = vld [vmem:[%s5677_s8 + $0x8] sm:$0xff] (!%p3750_p3)  ;;  %v715_v2 = vld [vmem:[%s5677_s8 + $0x10] sm:$0xff] (!%p3750_p3) }
  0xac   : > { %717 = vst [vmem:[#allocation2] sm:$0xff] %v713_v0  ;;  %718 = vst [vmem:[#allocation2 + $0x8] sm:$0xff] %v714_v1  ;;  %v716_v3 = vld [vmem:[%s5677_s8 + $0x18] sm:$0xff] }
  0xad   : > { %719 = vst [vmem:[#allocation2 + $0x10] sm:$0xff] %v715_v2  ;;  %720 = vst [vmem:[#allocation2 + $0x18] sm:$0xff] %v716_v3 }
  0xae PF: > { %v4313_v4 = vld [vmem:[%s5007_s15 + $0x4] ss:$12 sps:$4 sm:$0xff]   ;;  %v4315_v5 = vld [vmem:[%s5007_s15] ss:$12 sps:$4 sm:$0xff]   ;;  %v4719_v6 = vmov 0   ;;  %v765_v27 = vlaneseq  ;;  %vm1033_vm0 = vcmask 130048   ;;  %s5682_s25 = scalar_lea.vmem %s5636_s7, %s5030_s28 }
  0xaf   : > { %940 = vmatprep.mubr.bf16.mxu0 %v4719_v6  ;;  %908 = vmatprep.subr.bf16.mxu0 %v4313_v4  ;;  %v4316_v7 = vld [vmem:[%s5007_s15 + $0x1c] ss:$12 sps:$4 sm:$0xff]   ;;  %v4318_v8 = vld [vmem:[%s5007_s15 + $0x18] ss:$12 sps:$4 sm:$0xff]   ;;  %v4319_v9 = vld [vmem:[%s5007_s15 + $0x34] ss:$12 sps:$4 sm:$0xff]  }
  0xb0   : > { %909 = vmatpush1.bf16.msra.mxu0 %v4315_v5  ;;  %v4321_v10 = vld [vmem:[%s5007_s15 + $0x30] ss:$12 sps:$4 sm:$0xff]   ;;  %v4322_v11 = vld [vmem:[%s5007_s15 + $0x4c] ss:$12 sps:$4 sm:$0xff]   ;;  %v4324_v13 = vld [vmem:[%s5007_s15 + $0x48] ss:$12 sps:$4 sm:$0xff]  }
  0xb1   : > { %910 = vmatprep.subr.bf16.mxu0 %v4316_v7  ;;  %v4325_v15 = vld [vmem:[%s5007_s15 + $0x64] ss:$12 sps:$4 sm:$0xff]   ;;  %v4327_v17 = vld [vmem:[%s5007_s15 + $0x60] ss:$12 sps:$4 sm:$0xff]   ;;  %v4328_v18 = vld [vmem:[%s5007_s15 + $0x7c] ss:$12 sps:$4 sm:$0xff]  }
  0xb2   : > { %v4330_v19 = vld [vmem:[%s5007_s15 + $0x78] ss:$12 sps:$4 sm:$0xff]   ;;  %v4331_v20 = vld [vmem:[%s5007_s15 + $0x94] ss:$12 sps:$4 sm:$0xff]   ;;  %v4333_v21 = vld [vmem:[%s5007_s15 + $0x90] ss:$12 sps:$4 sm:$0xff]  }
  0xb3   : > { %v4334_v22 = vld [vmem:[%s5007_s15 + $0xac] ss:$12 sps:$4 sm:$0xff]   ;;  %v4336_v23 = vld [vmem:[%s5007_s15 + $0xa8] ss:$12 sps:$4 sm:$0xff]   ;;  %v5099_v28 = vshrl.u32 %v765_v27, 7  ;;  %s5678_s29 = sld [smem:[#allocation17_spill]] }
  0xb4   : > { %911 = vmatpush1.bf16.msra.mxu0 %v4318_v8  ;;  %v723_v24 = vld [vmem:[#allocation2 + $0x10] sm:$0xff]  ;;  %v724_v25 = vld [vmem:[#allocation2 + $0x18] sm:$0xff]  ;;  %v5103_v30 = vld [vmem:[%s5048_s27] sm:$0x7]  ;;  %vm1103_vm1 = vcmask 261120   ;;  %s4720_s4 = smov 112  }
  0xb5   : > { %912 = vmatprep.subr.bf16.mxu0 %v4319_v9  ;;  %v721_v12 = vld [vmem:[#allocation2] sm:$0xff]  ;;  %v722_v14 = vld [vmem:[#allocation2 + $0x8] sm:$0xff]  ;;  %v730_v26 = vpack.c.bf16 %v724_v25, %v723_v24  ;;  %v767_v29 = vsub.s32 0, %v5099_v28  ;;  %v771_v31 = vsub.s32 1, %v5099_v28  ;;  %v4340_v59 = vld [vmem:[%s5007_s15 + $0x50] ss:$12 sps:$4 sm:$0xff]  }
  0xb6   : > { %v729_v16 = vpack.c.bf16 %v722_v14, %v721_v12  ;;  %v4337_v56 = vld [vmem:[%s5007_s15 + $0x8] ss:$12 sps:$4 sm:$0xff]   ;;  %v4338_v57 = vld [vmem:[%s5007_s15 + $0x20] ss:$12 sps:$4 sm:$0xff]   ;;  %v4339_v58 = vld [vmem:[%s5007_s15 + $0x38] ss:$12 sps:$4 sm:$0xff]  }
  0xb7   : > { %v768_v32 = vrot.slane %v5103_v30, %v767_v29  ;;  %v772_v34 = vrot.slane %v5103_v30, %v771_v31  ;;  %4001 = vmatprep.subr.bf16.mxu1 %v4337_v56  ;;  %v4341_v60 = vld [vmem:[%s5007_s15 + $0x68] ss:$12 sps:$4 sm:$0xff]   ;;  %v4342_v61 = vld [vmem:[%s5007_s15 + $0x80] ss:$12 sps:$4 sm:$0xff]   ;;  %v4343_v62 = vld [vmem:[%s5007_s15 + $0x98] ss:$12 sps:$4 sm:$0xff]  }
  0xb8   : > { %913 = vmatpush1.bf16.msra.mxu0 %v4321_v10  ;;  %4017 = vmatprep.mubr.bf16.mxu1 %v729_v16  ;;  %v4344_v63 = vld [vmem:[%s5007_s15 + $0xb0] ss:$12 sps:$4 sm:$0xff]   ;;  %s4721_s1 = smov 96   ;;  %s4722_s21 = smov 80  }
  0xb9   : > { %914 = vmatprep.subr.bf16.mxu0 %v4322_v11  ;;  %4002 = vmatpush3.bf16.msra.mxu1 %v4337_v56  ;;  %s5679_s0 = smov %s5678_s29  ;;  %v5143_v1 = vld [vmem:[%s5678_s29 + $0x10] sm:$0xff]  ;;  %s4723_s2 = smov 64  }
  0xba   : > { %4003 = vmatprep.subr.bf16.mxu1 %v4338_v57  ;;  %v5148_v4 = vld [vmem:[%s5679_s0] sm:$0xff]  ;;  %v5153_v8 = vld [vmem:[%s5679_s0 + $0x18] sm:$0xff]  ;;  %v5159_v12 = vld [vmem:[%s5679_s0 + $0x8] sm:$0xff]  ;;  %s4724_s27 = smov 48   ;;  %s4725_s29 = smov 32  }
  0xbb   : > { %s4726_s26 = smov 16   ;;  %p3869_p5 = scmp.ne.s32.totalorder %s4821_s17, 7 }
  0xbc   : > { %915 = vmatpush1.bf16.msra.mxu0 %v4324_v13 }
  0xbd   : > { %916 = vmatprep.subr.bf16.mxu0 %v4325_v15  ;;  %4004 = vmatpush3.bf16.msra.mxu1 %v4338_v57 }
  0xbe   : > { %4005 = vmatprep.subr.bf16.mxu1 %v4339_v58 }
  0xc0   : > { %917 = vmatpush1.bf16.msra.mxu0 %v4327_v17 }
  0xc1   : > { %918 = vmatprep.subr.bf16.mxu0 %v4328_v18  ;;  %4006 = vmatpush3.bf16.msra.mxu1 %v4339_v58 }
  0xc2   : > { %4007 = vmatprep.subr.bf16.mxu1 %v4340_v59 }
  0xc4   : > { %919 = vmatpush1.bf16.msra.mxu0 %v4330_v19 }
  0xc5   : > { %920 = vmatprep.subr.bf16.mxu0 %v4331_v20  ;;  %4008 = vmatpush3.bf16.msra.mxu1 %v4340_v59 }
  0xc6   : > { %4009 = vmatprep.subr.bf16.mxu1 %v4341_v60 }
  0xc8   : > { %921 = vmatpush1.bf16.msra.mxu0 %v4333_v21  ;;  %v775_v21 = vsub.s32 2, %v5099_v28 }
  0xc9   : > { %922 = vmatprep.subr.bf16.mxu0 %v4334_v22  ;;  %4010 = vmatpush3.bf16.msra.mxu1 %v4341_v60 }
  0xca   : > { %4011 = vmatprep.subr.bf16.mxu1 %v4342_v61  ;;  %v776_v22 = vrot.slane %v5103_v30, %v775_v21 }
  0xcc   : > { %923 = vmatpush1.bf16.msra.mxu0 %v4336_v23 }
  0xcd   : > { %4012 = vmatpush3.bf16.msra.mxu1 %v4342_v61 }
  0xce   : > { %4013 = vmatprep.subr.bf16.mxu1 %v4343_v62 }
  0xcf   : > { %941 = vmatmul.mubr.bf16.vlgmr.msra.gmra.mrb[0].mxu0 %v729_v16 }
  0xd0   : > { %950 = vmatprep.mubr.bf16.mxu0 %v4719_v6 }
  0xd1   : > { %4014 = vmatpush3.bf16.msra.mxu1 %v4343_v62 }
  0xd2   : > { %4015 = vmatprep.subr.bf16.mxu1 %v4344_v63 }
  0xd5   : > { %4016 = vmatpush3.bf16.msra.mxu1 %v4344_v63 }
  0xd7   : > { %951 = vmatmul.mubr.bf16.gmra.mrb[4].mxu0 %v730_v26 }
  0xd8   : > { %4018 = vmatmul.mubr.bf16.vlgmr.msra.gmra.mrb[0].mxu1 %v730_v26 }
 0x1a2   : > { %v942_v33 = vpop.f32.mrb[0].mxu0 }
 0x1a3   : > { %v944_v35 = vpop.f32.mrb[1].mxu0  ;;  %v943_v37 = vadd.f32 %v942_v33, %v768_v32 }
 0x1a4   : > { %v946_v36 = vpop.f32.mrb[2].mxu0  ;;  %v945_v40 = vadd.f32 %v944_v35, %v772_v34 }
 0x1a5   : > { %v947_v38 = vadd.f32 %v946_v36, %v768_v32  ;;  %v948_v39 = vpop.f32.mrb[3].mxu0 }
 0x1a6   : > { %v949_v41 = vadd.f32 %v948_v39, %v772_v34 }
 0x1a7   : > { %v5112_v42 = vpack.c.bf16 %v947_v38, %v943_v37 }
 0x1a8   : > { %v5114_v43 = vpack.c.bf16 %v949_v41, %v945_v40 }
 0x1a9   : > { %4025 = vmatprep.mubr.msk.bf16.mxu0 %vm1033_vm0, %v5112_v42 }
 0x1aa   : > { %v952_v44 = vpop.f32.mrb[4].mxu0  ;;  %4225 = vmatprep.subr.msk.bf16.mxu0 %vm1033_vm0, %v5114_v43  ;;  %v1041_v45 = vsel %vm1033_vm0, %v5114_v43, 0 }
 0x1ab   : > { %v954_v46 = vpop.f32.mrb[5].mxu0  ;;  %4022 = vmatpush3.bf16.xpose.msra.mxu0 %v1041_v45  ;;  %v953_v48 = vadd.f32 %v952_v44, %v768_v32  ;;  %v4019_v23 = vpop.f32.mrb[0].mxu1 }
 0x1ac   : > { %v956_v47 = vpop.f32.mrb[6].mxu0  ;;  %v955_v51 = vadd.f32 %v954_v46, %v772_v34  ;;  %v1004_v24 = vadd.f32 %v4019_v23, %v776_v22  ;;  %v995_v25 = vpop.f32.mrb[1].mxu1 }
 0x1ad   : > { %v957_v49 = vadd.f32 %v956_v47, %v768_v32  ;;  %v958_v50 = vpop.f32.mrb[7].mxu0  ;;  %v996_v26 = vadd.f32 %v995_v25, %v776_v22  ;;  %v4020_v27 = vpop.f32.mrb[2].mxu1 }
 0x1ae   : > { %v959_v52 = vadd.f32 %v958_v50, %v772_v34  ;;  %v1007_v32 = vadd.f32 %v4020_v27, %v776_v22  ;;  %v998_v33 = vpop.f32.mrb[3].mxu1 }
 0x1af   : > { %v5122_v53 = vpack.c.bf16 %v957_v49, %v953_v48  ;;  %v999_v34 = vadd.f32 %v998_v33, %v776_v22 }
 0x1b0   : > { %v5124_v54 = vpack.c.bf16 %v959_v52, %v955_v51  ;;  %v5170_v35 = vpack.c.bf16 %v1007_v32, %v1004_v24 }
 0x1b1   : > { %v5172_v36 = vpack.c.bf16 %v999_v34, %v996_v26 }
 0x1b2   : > { %4226 = vmatprep.subr.msk.bf16.mxu0 %vm1033_vm0, %v5124_v54  ;;  %v1044_v55 = vsel %vm1033_vm0, %v5124_v54, 0 }
 0x1b3   : > { %4024 = vmatpush3.bf16.xpose.msra.mxu0 %v1044_v55  ;;  %4029 = vmatprep.subr.bf16.mxu1 %v5172_v36 }
 0x1b4   : > { %4030 = vmatpush3.bf16.msra.mxu1 %v5172_v36 }
 0x1b5   : > { %4031 = vmatprep.subr.bf16.mxu1 %v5170_v35 }
 0x1b8   : > { %4032 = vmatpush3.bf16.msra.mxu1 %v5170_v35 }
 0x1ba   : > { %4026 = vmatmul.mubr.msk.bf16.vlgmr.msra.gmra.mrb[8].mxu0 %vm1033_vm0, %v5122_v53 }
 0x28d   : > { %v4027_v0 = vpop.f32.mrb[8].mxu0 }
 0x28e   : > { %v1097_v2 = vmul.f32 0.25, %v4027_v0  ;;  %v1080_v3 = vpop.f32.mrb[9].mxu0 }
 0x28f   : > { %v1095_v5 = vmul.f32 0.25, %v1080_v3  ;;  %v4028_v7 = vpop.f32.mrb[10].mxu0 }
 0x290   : > { %v1098_v9 = vmul.f32 0.25, %v4028_v7  ;;  %v1083_v10 = vpop.f32.mrb[11].mxu0  ;;  %v1101_v11 = vadd.f32 %v1097_v2, %v5143_v1 }
 0x291   : > { %v1096_v13 = vmul.f32 0.25, %v1083_v10  ;;  %v1099_v14 = vadd.f32 %v1095_v5, %v5148_v4 }
 0x292   : > { %v1110_v15 = vsel %vm1103_vm1, %v1101_v11, -inf  ;;  %v1102_v16 = vadd.f32 %v1098_v9, %v5153_v8 }
 0x293   : > { %1111 = vmax.xlane.f32.xlu1 %v1110_v15  ;;  %v1104_v17 = vsel %vm1103_vm1, %v1099_v14, -inf  ;;  %v1100_v18 = vadd.f32 %v1096_v13, %v5159_v12 }
 0x294   : > { %1105 = vmax.xlane.f32.xlu0 %v1104_v17  ;;  %v1113_v19 = vsel %vm1103_vm1, %v1102_v16, -inf }
 0x295   : > { %v1107_v20 = vsel %vm1103_vm1, %v1100_v18, -inf }
 0x297   : > { %1114 = vmax.xlane.f32.xlu1 %v1113_v19 }
 0x298   : > { %1108 = vmax.xlane.f32.xlu0 %v1107_v20 }
 0x320   : > { %v1112_v30 = vpop.xlane.xlu1 %1111 }
 0x321   : > { %v1118_v37 = vsub.f32 %v1101_v11, %v1112_v30  ;;  %v1106_v38 = vpop.xlane.xlu0 %1105 }
 0x322   : > { %v1116_v39 = vsub.f32 %v1099_v14, %v1106_v38 }
 0x323   : > { %v1124_v40 = vmul.f32 1.442695, %v1118_v37 }
 0x324   : > { %v1120_v41 = vmul.f32 1.442695, %v1116_v39  ;;  %v1115_v44 = vpop.xlane.xlu1 %1114 }
 0x325   : > { %4393 = vpow2.f32 %v1124_v40  ;;  %v1119_v45 = vsub.f32 %v1102_v16, %v1115_v44  ;;  %v1109_v46 = vpop.xlane.xlu0 %1108 }
 0x326   : > { %v1117_v47 = vsub.f32 %v1100_v18, %v1109_v46  ;;  %4395 = vpow2.f32 %v1120_v41 }
 0x327   : > { %v1126_v48 = vmul.f32 1.442695, %v1119_v45 }
 0x328   : > { %v1122_v49 = vmul.f32 1.442695, %v1117_v47 }
 0x32a   : > { %4397 = vpow2.f32 %v1122_v49 }
 0x32b   : > { %4399 = vpow2.f32 %v1126_v48 }
 0x32f   : > { %v4394_v50 = vpop.eup %4393 }
 0x330   : > { %v1134_v51 = vsel %vm1103_vm1, %v4394_v50, 0.0  ;;  %v4396_v52 = vpop.eup %4395 }
 0x331   : > { %1135 = vadd.xlane.f32.xlu0 %v1134_v51  ;;  %v1128_v56 = vsel %vm1103_vm1, %v4396_v52, 0.0 }
 0x334   : > { %v4398_v55 = vpop.eup %4397 }
 0x335   : > { %1129 = vadd.xlane.f32.xlu0 %v1128_v56  ;;  %v1131_v57 = vsel %vm1103_vm1, %v4398_v55, 0.0  ;;  %v4400_v58 = vpop.eup %4399 }
 0x336   : > { %1132 = vadd.xlane.f32.xlu1 %v1131_v57  ;;  %v1137_v59 = vsel %vm1103_vm1, %v4400_v58, 0.0 }
 0x33a   : > { %1138 = vadd.xlane.f32.xlu1 %v1137_v59 }
 0x34b   : > { %1215 = vrot.lane.b32.xlu0 %v5114_v43, %s4720_s4  ;;  %1217 = vrot.lane.b32.xlu1 %v5124_v54, %s4720_s4 }
 0x34f   : > { %1209 = vrot.lane.b32.xlu1 %v5112_v42, %s4720_s4 }
 0x353   : > { %1211 = vrot.lane.b32.xlu1 %v5122_v53, %s4720_s4 }
 0x3be   : > { %v1136_v60 = vpop.xlane.xlu0 %1135 }
 0x3c2   : > { %v1130_v61 = vpop.xlane.xlu0 %1129 }
 0x3c3   : > { %4401 = vrcp.f32 %v1130_v61  ;;  %v1133_v62 = vpop.xlane.xlu1 %1132 }
 0x3c4   : > { %4403 = vrcp.f32 %v1133_v62 }
 0x3c5   : > { %4405 = vrcp.f32 %v1136_v60 }
 0x3c6   : > { %v1216_v63 = vpop.permute.xlu0 %1215 }
 0x3c7   : > { %v1139_v0 = vpop.xlane.xlu1 %1138  ;;  %4227 = vmatprep.subr.msk.bf16.mxu1 %vm1033_vm0, %v1216_v63  ;;  %v1226_v18 = vsel %vm1033_vm0, %v1216_v63, 0 }
 0x3c8   : > { %4407 = vrcp.f32 %v1139_v0 }
 0x3cb   : > { %v1218_v10 = vpop.permute.xlu1 %1217 }
 0x3cc   : > { %v1229_v19 = vsel %vm1033_vm0, %v1218_v10, 0 }
 0x3cd   : > { %v4402_v2 = vpop.eup %4401 }
 0x3ce   : > { %v4404_v3 = vpop.eup %4403  ;;  %v1144_v5 = vmul.f32 %v4402_v2, %v4396_v52 }
 0x3cf   : > { %v1145_v7 = vmul.f32 %v4404_v3, %v4398_v55  ;;  %v4406_v9 = vpop.eup %4405  ;;  %v1210_v17 = vpop.permute.xlu1 %1209 }
 0x3d0   : > { %v1146_v14 = vmul.f32 %v4406_v9, %v4394_v50 }
 0x3d1   : > { %v1148_v11 = vpack.c.bf16 %v1145_v7, %v1144_v5 }
 0x3d2   : > { %v4408_v13 = vpop.eup %4407 }
 0x3d3   : > { %v1147_v15 = vmul.f32 %v4408_v13, %v4400_v58  ;;  %4033 = vmatprep.mubr.msk.bf16.mxu1 %vm1103_vm1, %v1148_v11  ;;  %v1212_v20 = vpop.permute.xlu1 %1211 }
 0x3d5   : > { %v1149_v16 = vpack.c.bf16 %v1147_v15, %v1146_v14 }
 0x3d7   : > { %4034 = vmatmul.mubr.msk.bf16.vlgmr.msra.gmra.mrb[4].mxu1 %vm1103_vm1, %v1149_v16 }
 0x3d8   : > { %4038 = vmatpush3.bf16.xpose.msra.mxu1 %v1226_v18  ;;  %4041 = vmatprep.mubr.msk.bf16.mxu1 %vm1033_vm0, %v1210_v17 }
 0x3d9   : > { %4228 = vmatprep.subr.msk.bf16.mxu1 %vm1033_vm0, %v1218_v10 }
 0x3e0   : > { %4040 = vmatpush3.bf16.xpose.msra.mxu1 %v1229_v19 }
 0x3e7   : > { %4042 = vmatmul.mubr.msk.bf16.vlgmr.msra.gmra.mrb[8].mxu1 %vm1033_vm0, %v1212_v20 }
 0x4aa   : > { %v5198_v21 = vpop.f32.mrb[4].mxu1 }
 0x4ab   : > { %v5200_v22 = vpop.f32.mrb[5].mxu1 }
 0x4ac   : > { %v5202_v23 = vpop.f32.mrb[6].mxu1 }
 0x4ad   : > { %v1206_v24 = vpack.c.bf16 %v5202_v23, %v5198_v21  ;;  %v5206_v25 = vpop.f32.mrb[7].mxu1 }
 0x4ae   : > { %v1205_v26 = vpack.c.bf16 %v5206_v25, %v5200_v22 }
 0x4ba   : > { %v4043_v27 = vpop.f32.mrb[8].mxu1 }
 0x4bb   : > { %v1265_v32 = vpop.f32.mrb[9].mxu1  ;;  %v1282_v33 = vmul.f32 0.25, %v4043_v27 }
 0x4bc   : > { %v1280_v34 = vmul.f32 0.25, %v1265_v32  ;;  %v4044_v30 = vpop.f32.mrb[10].mxu1 }
 0x4bd   : > { %v1268_v37 = vpop.f32.mrb[11].mxu1  ;;  %v1283_v40 = vmul.f32 0.25, %v4044_v30  ;;  %v1286_v45 = vadd.f32 %v1282_v33, %v5143_v1 }
 0x4be   : > { %v1281_v38 = vmul.f32 0.25, %v1268_v37  ;;  %v1284_v39 = vadd.f32 %v1280_v34, %v5148_v4 }
 0x4bf   : > { %v1294_v47 = vsel %vm1103_vm1, %v1286_v45, -inf  ;;  %v1287_v48 = vadd.f32 %v1283_v40, %v5153_v8 }
 0x4c0   : > { %v1288_v41 = vsel %vm1103_vm1, %v1284_v39, -inf  ;;  %v1285_v44 = vadd.f32 %v1281_v38, %v5159_v12 }
 0x4c1   : > { %1289 = vmax.xlane.f32.xlu0 %v1288_v41  ;;  %v1297_v49 = vsel %vm1103_vm1, %v1287_v48, -inf }
 0x4c2   : > { %v1291_v46 = vsel %vm1103_vm1, %v1285_v44, -inf }
 0x4c3   : > { %1292 = vmax.xlane.f32.xlu1 %v1291_v46 }
 0x4c5   : > { %1295 = vmax.xlane.f32.xlu0 %v1294_v47 }
 0x4c9   : > { %1298 = vmax.xlane.f32.xlu0 %v1297_v49 }
 0x4d4   : > { %1338 = vrot.lane.b32.xlu1 %v5170_v35, %s4720_s4 }
 0x54e   : > { %v1290_v50 = vpop.xlane.xlu0 %1289 }
 0x54f   : > { %v1300_v51 = vsub.f32 %v1284_v39, %v1290_v50 }
 0x550   : > { %v1293_v52 = vpop.xlane.xlu1 %1292 }
 0x551   : > { %v1304_v57 = vmul.f32 1.442695, %v1300_v51  ;;  %v1301_v58 = vsub.f32 %v1285_v44, %v1293_v52 }
 0x552   : > { %v1296_v55 = vpop.xlane.xlu0 %1295 }
 0x553   : > { %v1302_v56 = vsub.f32 %v1286_v45, %v1296_v55  ;;  %v1306_v62 = vmul.f32 1.442695, %v1301_v58 }
 0x554   : > { %v1339_v13 = vpop.permute.xlu1 %1338 }
 0x555   : > { %v1308_v59 = vmul.f32 1.442695, %v1302_v56  ;;  %v4345_v56 = vld [vmem:[%s5014_s18 + $0x8] sm:$0xff]  }
 0x556   : > { %v1299_v60 = vpop.xlane.xlu0 %1298  ;;  %4053 = vmatprep.subr.bf16.mxu0 %v4345_v56 }
 0x557   : > { %4409 = vpow2.f32 %v1308_v59  ;;  %v1303_v61 = vsub.f32 %v1287_v48, %v1299_v60  ;;  %4054 = vmatpush3.bf16.msra.mxu0 %v4345_v56 }
 0x558   : > { %4411 = vpow2.f32 %v1304_v57  ;;  %v4346_v57 = vld [vmem:[%s5014_s18] sm:$0xff]  }
 0x559   : > { %v1310_v63 = vmul.f32 1.442695, %v1303_v61  ;;  %4059 = vmatprep.subr.bf16.mxu0 %v4346_v57 }
 0x55b   : > { %4413 = vpow2.f32 %v1310_v63 }
 0x55c   : > { %4415 = vpow2.f32 %v1306_v62 }
 0x561   : > { %v4410_v0 = vpop.eup %4409 }
 0x562   : > { %v1318_v2 = vsel %vm1103_vm1, %v4410_v0, 0.0  ;;  %v4412_v3 = vpop.eup %4411 }
 0x563   : > { %1319 = vadd.xlane.f32.xlu0 %v1318_v2  ;;  %v1312_v7 = vsel %vm1103_vm1, %v4412_v3, 0.0 }
 0x565   : > { %v4414_v5 = vpop.eup %4413 }
 0x566   : > { %v1321_v9 = vsel %vm1103_vm1, %v4414_v5, 0.0  ;;  %v4416_v10 = vpop.eup %4415 }
 0x567   : > { %1313 = vadd.xlane.f32.xlu0 %v1312_v7  ;;  %1322 = vadd.xlane.f32.xlu1 %v1321_v9  ;;  %v1315_v11 = vsel %vm1103_vm1, %v4416_v10, 0.0 }
 0x56b   : > { %1316 = vadd.xlane.f32.xlu1 %v1315_v11 }
 0x57c   : > { %1525 = vrot.lane.b32.xlu1 %v5114_v43, %s4721_s1 }
 0x57d   : > { %1336 = vrot.lane.b32.xlu0 %v5172_v36, %s4720_s4 }
 0x580   : > { %1527 = vrot.lane.b32.xlu1 %v5124_v54, %s4721_s1 }
 0x581   : > { %1521 = vrot.lane.b32.xlu0 %v5112_v42, %s4721_s1 }
 0x584   : > { %1523 = vrot.lane.b32.xlu1 %v5122_v53, %s4721_s1 }
 0x585   : > { %1776 = vrot.lane.b32.xlu0 %v5114_v43, %s4722_s21 }
 0x588   : > { %1778 = vrot.lane.b32.xlu1 %v5124_v54, %s4722_s21 }
 0x589   : > { %1772 = vrot.lane.b32.xlu0 %v5112_v42, %s4722_s21 }
 0x58c   : > { %1774 = vrot.lane.b32.xlu1 %v5122_v53, %s4722_s21 }
 0x5f0   : > { %v1320_v14 = vpop.xlane.xlu0 %1319 }
 0x5f4   : > { %v1314_v15 = vpop.xlane.xlu0 %1313  ;;  %v1323_v16 = vpop.xlane.xlu1 %1322 }
 0x5f5   : > { %4417 = vrcp.f32 %v1323_v16 }
 0x5f6   : > { %4419 = vrcp.f32 %v1314_v15 }
 0x5f7   : > { %4421 = vrcp.f32 %v1320_v14 }
 0x5f8   : > { %v1337_v17 = vpop.permute.xlu0 %1336  ;;  %v1317_v18 = vpop.xlane.xlu1 %1316 }
 0x5f9   : > { %4423 = vrcp.f32 %v1317_v18  ;;  %4045 = vmatprep.subr.bf16.mxu1 %v1337_v17 }
 0x5fa   : > { %4046 = vmatpush3.bf16.msra.mxu1 %v1337_v17 }
 0x5fb   : > { %4047 = vmatprep.subr.bf16.mxu1 %v1339_v13 }
 0x5fc   : > { %v1526_v19 = vpop.permute.xlu1 %1525  ;;  %v1522_v41 = vpop.permute.xlu0 %1521 }
 0x5fd   : > { %v1536_v44 = vsel %vm1033_vm0, %v1526_v19, 0 }
 0x5fe   : > { %4048 = vmatpush3.bf16.msra.mxu1 %v1339_v13 }
 0x5ff   : > { %4229 = vmatprep.subr.msk.bf16.mxu1 %vm1033_vm0, %v1526_v19  ;;  %v4418_v20 = vpop.eup %4417 }
 0x600   : > { %v4420_v27 = vpop.eup %4419  ;;  %v1331_v34 = vmul.f32 %v4418_v20, %v4414_v5  ;;  %v1528_v45 = vpop.permute.xlu1 %1527 }
 0x601   : > { %v4422_v32 = vpop.eup %4421  ;;  %v1328_v30 = vmul.f32 %v4420_v27, %v4412_v3  ;;  %v1539_v46 = vsel %vm1033_vm0, %v1528_v45, 0  ;;  %v1777_v47 = vpop.permute.xlu0 %1776 }
 0x602   : > { %v1330_v38 = vmul.f32 %v4422_v32, %v4410_v0  ;;  %v1787_v49 = vsel %vm1033_vm0, %v1777_v47, 0 }
 0x603   : > { %v4424_v33 = vpop.eup %4423 }
 0x604   : > { %v1329_v37 = vmul.f32 %v4424_v33, %v4416_v10  ;;  %v1333_v40 = vpack.c.bf16 %v1331_v34, %v1330_v38  ;;  %v1524_v48 = vpop.permute.xlu1 %1523 }
 0x605   : > { %v1773_v50 = vpop.permute.xlu0 %1772 }
 0x606   : > { %v1332_v39 = vpack.c.bf16 %v1329_v37, %v1328_v30 }
 0x608   : > { %4049 = vmatprep.mubr.msk.bf16.mxu1 %vm1103_vm1, %v1332_v39  ;;  %v1779_v51 = vpop.permute.xlu1 %1778 }
 0x609   : > { %4050 = vmatmul.mubr.msk.bf16.vlgmr.msra.gmra.mrb[12].mxu1 %vm1103_vm1, %v1333_v40  ;;  %v1790_v52 = vsel %vm1033_vm0, %v1779_v51, 0 }
 0x60a   : > { %4066 = vmatpush3.bf16.xpose.msra.mxu1 %v1536_v44  ;;  %4069 = vmatprep.mubr.msk.bf16.mxu1 %vm1033_vm0, %v1522_v41 }
 0x60b   : > { %4230 = vmatprep.subr.msk.bf16.mxu1 %vm1033_vm0, %v1528_v45 }
 0x60c   : > { %v1775_v55 = vpop.permute.xlu1 %1774 }
 0x612   : > { %4068 = vmatpush3.bf16.xpose.msra.mxu1 %v1539_v46 }
 0x613   : > { %4231 = vmatprep.subr.msk.bf16.mxu1 %vm1033_vm0, %v1777_v47 }
 0x619   : > { %4070 = vmatmul.mubr.msk.bf16.vlgmr.msra.gmra.mrb[16].mxu1 %vm1033_vm0, %v1524_v48 }
 0x61a   : > { %4088 = vmatpush3.bf16.xpose.msra.mxu1 %v1787_v49  ;;  %4091 = vmatprep.mubr.msk.bf16.mxu1 %vm1033_vm0, %v1773_v50 }
 0x61b   : > { %4232 = vmatprep.subr.msk.bf16.mxu1 %vm1033_vm0, %v1779_v51 }
 0x622   : > { %4090 = vmatpush3.bf16.xpose.msra.mxu1 %v1790_v52 }
 0x629   : > { %4092 = vmatmul.mubr.msk.bf16.vlgmr.msra.gmra.mrb[20].mxu1 %vm1033_vm0, %v1775_v55 }
 0x6dc   : > { %v4051_v58 = vpop.f32.mrb[12].mxu1 }
 0x6dd   : > { %v1382_v59 = vpop.f32.mrb[13].mxu1 }
 0x6de   : > { %v4052_v60 = vpop.f32.mrb[14].mxu1 }
 0x6df   : > { %v1398_v61 = vpack.c.bf16 %v4052_v60, %v4051_v58  ;;  %v1385_v62 = vpop.f32.mrb[15].mxu1 }
 0x6e0   : > { %v1397_v63 = vpack.c.bf16 %v1385_v62, %v1382_v59 }
 0x6e2   : > { %4055 = vmatprep.mubr.msk.bf16.mxu0 %vm1033_vm0, %v1397_v63 }
 0x6e3   : > { %4056 = vmatmul.mubr.msk.bf16.vlgmr.msra.gmra.mrb[12].mxu0 %vm1033_vm0, %v1398_v61 }
 0x6e4   : > { %4061 = vmatprep.mubr.msk.bf16.mxu0 %vm1033_vm0, %v1205_v26  ;;  %4060 = vmatpush3.bf16.msra.mxu0 %v4346_v57 }
 0x6ec   : > { %v4071_v0 = vpop.f32.mrb[16].mxu1 }
 0x6ed   : > { %v1575_v2 = vpop.f32.mrb[17].mxu1  ;;  %v1592_v3 = vmul.f32 0.25, %v4071_v0 }
 0x6ee   : > { %v1590_v5 = vmul.f32 0.25, %v1575_v2  ;;  %v4072_v7 = vpop.f32.mrb[18].mxu1 }
 0x6ef   : > { %v1578_v9 = vpop.f32.mrb[19].mxu1  ;;  %4062 = vmatmul.mubr.msk.bf16.vlgmr.msra.gmra.mrb[12].mxu0 %vm1033_vm0, %v1206_v24  ;;  %v1593_v13 = vmul.f32 0.25, %v4072_v7  ;;  %v1596_v26 = vadd.f32 %v1592_v3, %v5143_v1 }
 0x6f0   : > { %v1591_v10 = vmul.f32 0.25, %v1578_v9  ;;  %v1594_v11 = vadd.f32 %v1590_v5, %v5148_v4 }
 0x6f1   : > { %v1604_v15 = vsel %vm1103_vm1, %v1596_v26, -inf  ;;  %v1597_v21 = vadd.f32 %v1593_v13, %v5153_v8 }
 0x6f2   : > { %v1598_v22 = vsel %vm1103_vm1, %v1594_v11, -inf  ;;  %v1595_v25 = vadd.f32 %v1591_v10, %v5159_v12 }
 0x6f3   : > { %1599 = vmax.xlane.f32.xlu0 %v1598_v22  ;;  %v1607_v23 = vsel %vm1103_vm1, %v1597_v21, -inf }
 0x6f4   : > { %v1601_v14 = vsel %vm1103_vm1, %v1595_v25, -inf }
 0x6f5   : > { %1602 = vmax.xlane.f32.xlu1 %v1601_v14 }
 0x6f7   : > { %1605 = vmax.xlane.f32.xlu0 %v1604_v15 }
 0x6fb   : > { %1608 = vmax.xlane.f32.xlu0 %v1607_v23 }
 0x6fc   : > { %v4093_v24 = vpop.f32.mrb[20].mxu1 }
 0x6fd   : > { %v1826_v16 = vpop.f32.mrb[21].mxu1  ;;  %v1843_v55 = vmul.f32 0.25, %v4093_v24 }
 0x6fe   : > { %v4094_v17 = vpop.f32.mrb[22].mxu1  ;;  %v1841_v52 = vmul.f32 0.25, %v1826_v16 }
 0x6ff   : > { %v1829_v18 = vpop.f32.mrb[23].mxu1  ;;  %v1844_v57 = vmul.f32 0.25, %v4094_v17  ;;  %v1847_v59 = vadd.f32 %v1843_v55, %v5143_v1 }
 0x700   : > { %v1845_v56 = vadd.f32 %v1841_v52, %v5148_v4  ;;  %v1842_v60 = vmul.f32 0.25, %v1829_v18 }
 0x701   : > { %v1855_v61 = vsel %vm1103_vm1, %v1847_v59, -inf  ;;  %v1848_v62 = vadd.f32 %v1844_v57, %v5153_v8 }
 0x702   : > { %v1849_v58 = vsel %vm1103_vm1, %v1845_v56, -inf  ;;  %v1846_v0 = vadd.f32 %v1842_v60, %v5159_v12 }
 0x703   : > { %v1858_v63 = vsel %vm1103_vm1, %v1848_v62, -inf }
 0x704   : > { %v1852_v2 = vsel %vm1103_vm1, %v1846_v0, -inf }
 0x780   : > { %v1600_v19 = vpop.xlane.xlu0 %1599 }
 0x781   : > { %v1610_v20 = vsub.f32 %v1594_v11, %v1600_v19 }
 0x782   : > { %v1603_v27 = vpop.xlane.xlu1 %1602 }
 0x783   : > { %v1614_v34 = vmul.f32 1.442695, %v1610_v20  ;;  %v1611_v30 = vsub.f32 %v1595_v25, %v1603_v27 }
 0x784   : > { %v1606_v32 = vpop.xlane.xlu0 %1605 }
 0x785   : > { %v1612_v33 = vsub.f32 %v1596_v26, %v1606_v32  ;;  %v1616_v40 = vmul.f32 1.442695, %v1611_v30 }
 0x787   : > { %v1618_v37 = vmul.f32 1.442695, %v1612_v33 }
 0x788   : > { %v1609_v38 = vpop.xlane.xlu0 %1608 }
 0x789   : > { %4425 = vpow2.f32 %v1618_v37  ;;  %v1613_v39 = vsub.f32 %v1597_v21, %v1609_v38 }
 0x78a   : > { %4427 = vpow2.f32 %v1614_v34 }
 0x78b   : > { %v1620_v41 = vmul.f32 1.442695, %v1613_v39 }
 0x78d   : > { %4429 = vpow2.f32 %v1620_v41 }
 0x78e   : > { %4431 = vpow2.f32 %v1616_v40 }
 0x793   : > { %v5276_v44 = vpop.eup %4425 }
 0x794   : > { %v1628_v45 = vsel %vm1103_vm1, %v5276_v44, 0.0  ;;  %v4428_v46 = vpop.eup %4427 }
 0x795   : > { %1629 = vadd.xlane.f32.xlu0 %v1628_v45  ;;  %v1622_v48 = vsel %vm1103_vm1, %v4428_v46, 0.0 }
 0x797   : > { %v4430_v47 = vpop.eup %4429 }
 0x798   : > { %v1631_v49 = vsel %vm1103_vm1, %v4430_v47, 0.0  ;;  %v4432_v50 = vpop.eup %4431 }
 0x799   : > { %1623 = vadd.xlane.f32.xlu0 %v1622_v48  ;;  %1632 = vadd.xlane.f32.xlu1 %v1631_v49  ;;  %v1625_v51 = vsel %vm1103_vm1, %v4432_v50, 0.0 }
 0x79d   : > { %1626 = vadd.xlane.f32.xlu1 %v1625_v51 }
 0x7ae   : > { %1646 = vrot.lane.b32.xlu1 %v5170_v35, %s4721_s1 }
 0x7af   : > { %1644 = vrot.lane.b32.xlu0 %v5172_v36, %s4721_s1 }
 0x7b2   : > { %2027 = vrot.lane.b32.xlu1 %v5114_v43, %s4723_s2 }
 0x7b3   : > { %2023 = vrot.lane.b32.xlu0 %v5112_v42, %s4723_s2 }
 0x7b6   : > { %2029 = vrot.lane.b32.xlu1 %v5124_v54, %s4723_s2 }
 0x7ba   : > { %2025 = vrot.lane.b32.xlu1 %v5122_v53, %s4723_s2 }
 0x7d2   : > { %1850 = vmax.xlane.f32.xlu0 %v1849_v58  ;;  %v4347_v58 = vld [vmem:[%s5014_s18 + $0x10] sm:$0xff]  }
 0x7d6   : > { %1856 = vmax.xlane.f32.xlu0 %v1855_v61 }
 0x7da   : > { %1859 = vmax.xlane.f32.xlu0 %v1858_v63 }
 0x7de   : > { %1853 = vmax.xlane.f32.xlu1 %v1852_v2 }
 0x822   : > { %v1630_v3 = vpop.xlane.xlu0 %1629 }
 0x826   : > { %v1624_v5 = vpop.xlane.xlu0 %1623  ;;  %v1633_v7 = vpop.xlane.xlu1 %1632 }
 0x827   : > { %4433 = vrcp.f32 %v1633_v7 }
 0x828   : > { %4435 = vrcp.f32 %v1624_v5 }
 0x829   : > { %4437 = vrcp.f32 %v1630_v3 }
 0x82a   : > { %v1645_v9 = vpop.permute.xlu0 %1644  ;;  %v1627_v10 = vpop.xlane.xlu1 %1626 }
 0x82b   : > { %4439 = vrcp.f32 %v1627_v10  ;;  %4073 = vmatprep.subr.bf16.mxu0 %v1645_v9 }
 0x82c   : > { %4074 = vmatpush3.bf16.msra.mxu0 %v1645_v9 }
 0x82e   : > { %v2024_v11 = vpop.permute.xlu0 %2023  ;;  %v1647_v13 = vpop.permute.xlu1 %1646 }
 0x82f   : > { %4075 = vmatprep.subr.bf16.mxu0 %v1647_v13  ;;  %4113 = vmatprep.mubr.msk.bf16.mxu1 %vm1033_vm0, %v2024_v11 }
 0x830   : > { %4076 = vmatpush3.bf16.msra.mxu0 %v1647_v13 }
 0x831   : > { %v4434_v22 = vpop.eup %4433  ;;  %4081 = vmatprep.subr.bf16.mxu0 %v4347_v58 }
 0x832   : > { %v2028_v25 = vpop.permute.xlu1 %2027  ;;  %v4436_v26 = vpop.eup %4435  ;;  %v1641_v23 = vmul.f32 %v4434_v22, %v4430_v47 }
 0x833   : > { %v2038_v14 = vsel %vm1033_vm0, %v2028_v25, 0  ;;  %4233 = vmatprep.subr.msk.bf16.mxu1 %vm1033_vm0, %v2028_v25  ;;  %v4438_v15 = vpop.eup %4437  ;;  %v1638_v16 = vmul.f32 %v4436_v26, %v4428_v46 }
 0x834   : > { %4110 = vmatpush3.bf16.xpose.msra.mxu1 %v2038_v14  ;;  %v1640_v18 = vmul.f32 %v4438_v15, %v5276_v44 }
 0x835   : > { %v4440_v21 = vpop.eup %4439 }
 0x836   : > { %v2030_v24 = vpop.permute.xlu1 %2029  ;;  %v1639_v17 = vmul.f32 %v4440_v21, %v4432_v50  ;;  %v1643_v20 = vpack.c.bf16 %v1641_v23, %v1640_v18 }
 0x837   : > { %4234 = vmatprep.subr.msk.bf16.mxu1 %vm1033_vm0, %v2030_v24  ;;  %v2041_v27 = vsel %vm1033_vm0, %v2030_v24, 0 }
 0x838   : > { %v1642_v19 = vpack.c.bf16 %v1639_v17, %v1638_v16 }
 0x83a   : > { %4077 = vmatprep.mubr.msk.bf16.mxu0 %vm1103_vm1, %v1642_v19  ;;  %v2026_v32 = vpop.permute.xlu1 %2025 }
 0x83b   : > { %4078 = vmatmul.mubr.msk.bf16.vlgmr.msra.gmra.mrb[16].mxu0 %vm1103_vm1, %v1643_v20 }
 0x83c   : > { %4112 = vmatpush3.bf16.xpose.msra.mxu1 %v2041_v27  ;;  %4082 = vmatpush3.bf16.msra.mxu0 %v4347_v58 }
 0x843   : > { %4114 = vmatmul.mubr.msk.bf16.vlgmr.msra.gmra.mrb[24].mxu1 %vm1033_vm0, %v2026_v32 }
 0x85f   : > { %v1851_v33 = vpop.xlane.xlu0 %1850 }
 0x860   : > { %v1861_v34 = vsub.f32 %v1845_v56, %v1851_v33 }
 0x862   : > { %v1865_v38 = vmul.f32 1.442695, %v1861_v34 }
 0x863   : > { %v1857_v30 = vpop.xlane.xlu0 %1856 }
 0x864   : > { %v1863_v37 = vsub.f32 %v1847_v59, %v1857_v30 }
 0x866   : > { %v1869_v39 = vmul.f32 1.442695, %v1863_v37 }
 0x867   : > { %v1860_v40 = vpop.xlane.xlu0 %1859 }
 0x868   : > { %4441 = vpow2.f32 %v1869_v39  ;;  %v1864_v41 = vsub.f32 %v1848_v62, %v1860_v40 }
 0x869   : > { %4443 = vpow2.f32 %v1865_v38 }
 0x86a   : > { %v1871_v44 = vmul.f32 1.442695, %v1864_v41 }
 0x86b   : > { %v1854_v45 = vpop.xlane.xlu1 %1853 }
 0x86c   : > { %4445 = vpow2.f32 %v1871_v44  ;;  %v1862_v46 = vsub.f32 %v1846_v0, %v1854_v45 }
 0x86e   : > { %v1867_v47 = vmul.f32 1.442695, %v1862_v46 }
 0x870   : > { %4447 = vpow2.f32 %v1867_v47 }
 0x872   : > { %v5312_v48 = vpop.eup %4441 }
 0x873   : > { %v1879_v49 = vsel %vm1103_vm1, %v5312_v48, 0.0  ;;  %v4444_v50 = vpop.eup %4443 }
 0x874   : > { %1880 = vadd.xlane.f32.xlu0 %v1879_v49  ;;  %v1873_v52 = vsel %vm1103_vm1, %v4444_v50, 0.0 }
 0x876   : > { %v4446_v51 = vpop.eup %4445 }
 0x877   : > { %v1882_v55 = vsel %vm1103_vm1, %v4446_v51, 0.0 }
 0x878   : > { %1874 = vadd.xlane.f32.xlu0 %v1873_v52  ;;  %1883 = vadd.xlane.f32.xlu1 %v1882_v55 }
 0x87a   : > { %v4448_v56 = vpop.eup %4447 }
 0x87b   : > { %v1876_v57 = vsel %vm1103_vm1, %v4448_v56, 0.0 }
 0x87c   : > { %1877 = vadd.xlane.f32.xlu1 %v1876_v57 }
 0x88d   : > { %1897 = vrot.lane.b32.xlu1 %v5170_v35, %s4722_s21 }
 0x88e   : > { %1895 = vrot.lane.b32.xlu0 %v5172_v36, %s4722_s21 }
 0x891   : > { %2278 = vrot.lane.b32.xlu1 %v5114_v43, %s4724_s27 }
 0x892   : > { %2274 = vrot.lane.b32.xlu0 %v5112_v42, %s4724_s27 }
 0x895   : > { %2280 = vrot.lane.b32.xlu1 %v5124_v54, %s4724_s27 }
 0x899   : > { %2276 = vrot.lane.b32.xlu1 %v5122_v53, %s4724_s27 }
 0x901   : > { %v1881_v59 = vpop.xlane.xlu0 %1880 }
 0x905   : > { %v1875_v60 = vpop.xlane.xlu0 %1874  ;;  %v1884_v61 = vpop.xlane.xlu1 %1883 }
 0x906   : > { %4449 = vrcp.f32 %v1875_v60 }
 0x907   : > { %4451 = vrcp.f32 %v1884_v61 }
 0x909   : > { %v1896_v62 = vpop.permute.xlu0 %1895  ;;  %v1878_v63 = vpop.xlane.xlu1 %1877 }
 0x90a   : > { %4453 = vrcp.f32 %v1878_v63  ;;  %4095 = vmatprep.subr.bf16.mxu0 %v1896_v62 }
 0x90b   : > { %4455 = vrcp.f32 %v1881_v59 }
 0x90d   : > { %v2275_v0 = vpop.permute.xlu0 %2274  ;;  %v1898_v2 = vpop.permute.xlu1 %1897 }
 0x90e   : > { %v4079_v3 = vpop.f32.mrb[16].mxu0  ;;  %4135 = vmatprep.mubr.msk.bf16.mxu1 %vm1033_vm0, %v2275_v0 }
 0x90f   : > { %v1690_v5 = vpop.f32.mrb[17].mxu0 }
 0x910   : > { %v4080_v7 = vpop.f32.mrb[18].mxu0  ;;  %v4450_v13 = vpop.eup %4449 }
 0x911   : > { %v1706_v9 = vpack.c.bf16 %v4080_v7, %v4079_v3  ;;  %v1693_v10 = vpop.f32.mrb[19].mxu0  ;;  %v2279_v11 = vpop.permute.xlu1 %2278  ;;  %v1889_v21 = vmul.f32 %v4450_v13, %v4444_v50 }
 0x912   : > { %v1705_v22 = vpack.c.bf16 %v1693_v10, %v1690_v5  ;;  %v2289_v25 = vsel %vm1033_vm0, %v2279_v11, 0  ;;  %4235 = vmatprep.subr.msk.bf16.mxu1 %vm1033_vm0, %v2279_v11  ;;  %v4452_v26 = vpop.eup %4451 }
 0x913   : > { %4132 = vmatpush3.bf16.xpose.msra.mxu1 %v2289_v25  ;;  %v1892_v17 = vmul.f32 %v4452_v26, %v4446_v51  ;;  %v4348_v51 = vld [vmem:[%s5014_s18 + $0x18] sm:$0xff]  }
 0x914   : > { %v4454_v14 = vpop.eup %4453  ;;  %4083 = vmatprep.mubr.msk.bf16.mxu0 %vm1033_vm0, %v1705_v22 }
 0x915   : > { %4084 = vmatmul.mubr.msk.bf16.vlgmr.msra.gmra.mrb[12].mxu0 %vm1033_vm0, %v1706_v9  ;;  %v2281_v15 = vpop.permute.xlu1 %2280  ;;  %v1890_v23 = vmul.f32 %v4454_v14, %v4448_v56  ;;  %v4456_v24 = vpop.eup %4455 }
 0x916   : > { %4096 = vmatpush3.bf16.msra.mxu0 %v1896_v62  ;;  %v4115_v16 = vpop.f32.mrb[24].mxu1  ;;  %4236 = vmatprep.subr.msk.bf16.mxu1 %vm1033_vm0, %v2281_v15  ;;  %v1891_v33 = vmul.f32 %v4456_v24, %v5312_v48  ;;  %v2292_v30 = vsel %vm1033_vm0, %v2281_v15, 0 }
 0x917   : > { %4097 = vmatprep.subr.bf16.mxu0 %v1898_v2  ;;  %v2077_v18 = vpop.f32.mrb[25].mxu1  ;;  %v1893_v19 = vpack.c.bf16 %v1890_v23, %v1889_v21  ;;  %v2094_v20 = vmul.f32 0.25, %v4115_v16 }
 0x918   : > { %v2092_v27 = vmul.f32 0.25, %v2077_v18  ;;  %v4116_v32 = vpop.f32.mrb[26].mxu1  ;;  %v1894_v39 = vpack.c.bf16 %v1892_v17, %v1891_v33 }
 0x919   : > { %4099 = vmatprep.mubr.msk.bf16.mxu0 %vm1103_vm1, %v1893_v19  ;;  %v2080_v34 = vpop.f32.mrb[27].mxu1  ;;  %v2095_v40 = vmul.f32 0.25, %v4116_v32  ;;  %v2098_v45 = vadd.f32 %v2094_v20, %v5143_v1  ;;  %v2277_v49 = vpop.permute.xlu1 %2276 }
 0x91a   : > { %4098 = vmatpush3.bf16.msra.mxu0 %v1898_v2  ;;  %v2093_v37 = vmul.f32 0.25, %v2080_v34  ;;  %v2096_v38 = vadd.f32 %v2092_v27, %v5148_v4 }
 0x91b   : > { %4134 = vmatpush3.bf16.xpose.msra.mxu1 %v2292_v30  ;;  %v2106_v47 = vsel %vm1103_vm1, %v2098_v45, -inf  ;;  %v2099_v48 = vadd.f32 %v2095_v40, %v5153_v8  ;;  %4103 = vmatprep.subr.bf16.mxu0 %v4348_v51 }
 0x91c   : > { %v2100_v41 = vsel %vm1103_vm1, %v2096_v38, -inf  ;;  %v2097_v44 = vadd.f32 %v2093_v37, %v5159_v12 }
 0x91d   : > { %2101 = vmax.xlane.f32.xlu0 %v2100_v41  ;;  %4100 = vmatmul.mubr.msk.bf16.vlgmr.msra.gmra.mrb[20].mxu0 %vm1103_vm1, %v1894_v39  ;;  %v2109_v50 = vsel %vm1103_vm1, %v2099_v48, -inf }
 0x91e   : > { %v2103_v46 = vsel %vm1103_vm1, %v2097_v44, -inf  ;;  %4104 = vmatpush3.bf16.msra.mxu0 %v4348_v51 }
 0x91f   : > { %2104 = vmax.xlane.f32.xlu1 %v2103_v46 }
 0x921   : > { %2107 = vmax.xlane.f32.xlu0 %v2106_v47 }
 0x922   : > { %4136 = vmatmul.mubr.msk.bf16.vlgmr.msra.gmra.mrb[28].mxu1 %vm1033_vm0, %v2277_v49 }
 0x925   : > { %2110 = vmax.xlane.f32.xlu0 %v2109_v50 }
 0x9aa   : > { %v2102_v52 = vpop.xlane.xlu0 %2101 }
 0x9ab   : > { %v2112_v55 = vsub.f32 %v2096_v38, %v2102_v52 }
 0x9ac   : > { %v2105_v56 = vpop.xlane.xlu1 %2104 }
 0x9ad   : > { %v2116_v59 = vmul.f32 1.442695, %v2112_v55  ;;  %v2113_v60 = vsub.f32 %v2097_v44, %v2105_v56 }
 0x9ae   : > { %v2108_v57 = vpop.xlane.xlu0 %2107 }
 0x9af   : > { %v2114_v58 = vsub.f32 %v2098_v45, %v2108_v57  ;;  %v2118_v0 = vmul.f32 1.442695, %v2113_v60 }
 0x9b1   : > { %v2120_v61 = vmul.f32 1.442695, %v2114_v58 }
 0x9b2   : > { %v2111_v62 = vpop.xlane.xlu0 %2110 }
 0x9b3   : > { %4457 = vpow2.f32 %v2120_v61  ;;  %v2115_v63 = vsub.f32 %v2099_v48, %v2111_v62 }
 0x9b4   : > { %4459 = vpow2.f32 %v2116_v59 }
 0x9b5   : > { %v2122_v2 = vmul.f32 1.442695, %v2115_v63 }
 0x9b7   : > { %4461 = vpow2.f32 %v2122_v2 }
 0x9b8   : > { %4463 = vpow2.f32 %v2118_v0 }
 0x9bd   : > { %v5352_v3 = vpop.eup %4457 }
 0x9be   : > { %v2130_v5 = vsel %vm1103_vm1, %v5352_v3, 0.0  ;;  %v5356_v7 = vpop.eup %4459 }
 0x9bf   : > { %2131 = vadd.xlane.f32.xlu0 %v2130_v5  ;;  %v2124_v10 = vsel %vm1103_vm1, %v5356_v7, 0.0 }
 0x9c1   : > { %v5358_v9 = vpop.eup %4461 }
 0x9c2   : > { %v2133_v11 = vsel %vm1103_vm1, %v5358_v9, 0.0  ;;  %v5364_v13 = vpop.eup %4463 }
 0x9c3   : > { %2125 = vadd.xlane.f32.xlu0 %v2124_v10  ;;  %2134 = vadd.xlane.f32.xlu1 %v2133_v11  ;;  %v2127_v22 = vsel %vm1103_vm1, %v5364_v13, 0.0 }
 0x9c7   : > { %2128 = vadd.xlane.f32.xlu1 %v2127_v22 }
 0x9d8   : > { %2148 = vrot.lane.b32.xlu1 %v5170_v35, %s4723_s2 }
 0x9d9   : > { %2146 = vrot.lane.b32.xlu0 %v5172_v36, %s4723_s2 }
 0x9dc   : > { %2529 = vrot.lane.b32.xlu1 %v5114_v43, %s4725_s29 }
 0x9dd   : > { %2525 = vrot.lane.b32.xlu0 %v5112_v42, %s4725_s29 }
 0x9e0   : > { %2531 = vrot.lane.b32.xlu1 %v5124_v54, %s4725_s29 }
 0x9e4   : > { %2527 = vrot.lane.b32.xlu1 %v5122_v53, %s4725_s29 }
 0x9f0   : > { %v4101_v25 = vpop.f32.mrb[20].mxu0 }
 0x9f1   : > { %v1941_v26 = vpop.f32.mrb[21].mxu0 }
 0x9f2   : > { %v4102_v14 = vpop.f32.mrb[22].mxu0 }
 0x9f3   : > { %v1957_v15 = vpack.c.bf16 %v4102_v14, %v4101_v25  ;;  %v1944_v21 = vpop.f32.mrb[23].mxu0 }
 0x9f4   : > { %v1956_v23 = vpack.c.bf16 %v1944_v21, %v1941_v26 }
 0x9f5   : > { %v4137_v24 = vpop.f32.mrb[28].mxu1 }
 0x9f6   : > { %4105 = vmatprep.mubr.msk.bf16.mxu0 %vm1033_vm0, %v1956_v23  ;;  %v2328_v16 = vpop.f32.mrb[29].mxu1  ;;  %v2345_v17 = vmul.f32 0.25, %v4137_v24 }
 0x9f7   : > { %v2343_v18 = vmul.f32 0.25, %v2328_v16  ;;  %4106 = vmatmul.mubr.msk.bf16.vlgmr.msra.gmra.mrb[12].mxu0 %vm1033_vm0, %v1957_v15  ;;  %v4138_v19 = vpop.f32.mrb[30].mxu1 }
 0x9f8   : > { %v2331_v20 = vpop.f32.mrb[31].mxu1  ;;  %v2346_v32 = vmul.f32 0.25, %v4138_v19  ;;  %v2349_v34 = vadd.f32 %v2345_v17, %v5143_v1  ;;  %v4349_v19 = vld [vmem:[%s5014_s18 + $0x20] sm:$0xff]  }
 0x9f9   : > { %v2347_v27 = vadd.f32 %v2343_v18, %v5148_v4  ;;  %v2344_v30 = vmul.f32 0.25, %v2331_v20 }
 0x9fa   : > { %v2357_v37 = vsel %vm1103_vm1, %v2349_v34, -inf  ;;  %v2350_v38 = vadd.f32 %v2346_v32, %v5153_v8 }
 0x9fb   : > { %v2351_v33 = vsel %vm1103_vm1, %v2347_v27, -inf  ;;  %v2348_v40 = vadd.f32 %v2344_v30, %v5159_v12 }
 0x9fc   : > { %2352 = vmax.xlane.f32.xlu0 %v2351_v33  ;;  %v2360_v39 = vsel %vm1103_vm1, %v2350_v38, -inf }
 0x9fd   : > { %v2354_v41 = vsel %vm1103_vm1, %v2348_v40, -inf }
 0xa00   : > { %2358 = vmax.xlane.f32.xlu0 %v2357_v37 }
 0xa04   : > { %2361 = vmax.xlane.f32.xlu0 %v2360_v39 }
 0xa08   : > { %2355 = vmax.xlane.f32.xlu1 %v2354_v41 }
 0xa4c   : > { %v2132_v4 = vpop.xlane.xlu0 %2131 }
 0xa50   : > { %v2126_v44 = vpop.xlane.xlu0 %2125  ;;  %v2135_v45 = vpop.xlane.xlu1 %2134 }
 0xa51   : > { %4465 = vrcp.f32 %v2135_v45 }
 0xa52   : > { %4467 = vrcp.f32 %v2126_v44 }
 0xa53   : > { %4469 = vrcp.f32 %v2132_v4 }
 0xa54   : > { %v2147_v1 = vpop.permute.xlu0 %2146  ;;  %v2129_v46 = vpop.xlane.xlu1 %2128 }
 0xa55   : > { %4471 = vrcp.f32 %v2129_v46  ;;  %4117 = vmatprep.subr.bf16.mxu0 %v2147_v1 }
 0xa56   : > { %4118 = vmatpush3.bf16.msra.mxu0 %v2147_v1 }
 0xa58   : > { %v2526_v8 = vpop.permute.xlu0 %2525  ;;  %v2149_v47 = vpop.permute.xlu1 %2148 }
 0xa59   : > { %4119 = vmatprep.subr.bf16.mxu0 %v2149_v47  ;;  %4157 = vmatprep.mubr.msk.bf16.mxu1 %vm1033_vm0, %v2526_v8 }
 0xa5a   : > { %4120 = vmatpush3.bf16.msra.mxu0 %v2149_v47 }
 0xa5b   : > { %v4466_v12 = vpop.eup %4465  ;;  %4125 = vmatprep.subr.bf16.mxu0 %v4349_v19 }
 0xa5c   : > { %v2530_v48 = vpop.permute.xlu1 %2529  ;;  %v4468_v49 = vpop.eup %4467  ;;  %v2143_v55 = vmul.f32 %v4466_v12, %v5358_v9 }
 0xa5d   : > { %v2540_v50 = vsel %vm1033_vm0, %v2530_v48, 0  ;;  %4237 = vmatprep.subr.msk.bf16.mxu1 %vm1033_vm0, %v2530_v48  ;;  %v4470_v51 = vpop.eup %4469  ;;  %v2140_v57 = vmul.f32 %v4468_v49, %v5356_v7 }
 0xa5e   : > { %4154 = vmatpush3.bf16.xpose.msra.mxu1 %v2540_v50  ;;  %v2142_v59 = vmul.f32 %v4470_v51, %v5352_v3 }
 0xa5f   : > { %v4472_v52 = vpop.eup %4471 }
 0xa60   : > { %v2532_v56 = vpop.permute.xlu1 %2531  ;;  %v2141_v58 = vmul.f32 %v4472_v52, %v5364_v13  ;;  %v2145_v61 = vpack.c.bf16 %v2143_v55, %v2142_v59 }
 0xa61   : > { %4238 = vmatprep.subr.msk.bf16.mxu1 %vm1033_vm0, %v2532_v56  ;;  %v2543_v62 = vsel %vm1033_vm0, %v2532_v56, 0 }
 0xa62   : > { %v2144_v60 = vpack.c.bf16 %v2141_v58, %v2140_v57 }
 0xa64   : > { %4121 = vmatprep.mubr.msk.bf16.mxu0 %vm1103_vm1, %v2144_v60  ;;  %v2528_v63 = vpop.permute.xlu1 %2527  ;;  %v5434_v60 = vld [vmem:[%s5679_s0] sm:$0xff] }
 0xa65   : > { %4122 = vmatmul.mubr.msk.bf16.vlgmr.msra.gmra.mrb[24].mxu0 %vm1103_vm1, %v2145_v61 }
 0xa66   : > { %4156 = vmatpush3.bf16.xpose.msra.mxu1 %v2543_v62  ;;  %4126 = vmatpush3.bf16.msra.mxu0 %v4349_v19 }
 0xa6d   : > { %4158 = vmatmul.mubr.msk.bf16.vlgmr.msra.gmra.mrb[32].mxu1 %vm1033_vm0, %v2528_v63 }
 0xa89   : > { %v2353_v0 = vpop.xlane.xlu0 %2352 }
 0xa8a   : > { %v2363_v2 = vsub.f32 %v2347_v27, %v2353_v0 }
 0xa8c   : > { %v2367_v9 = vmul.f32 1.442695, %v2363_v2  ;;  %v5441_v2 = vld [vmem:[%s5679_s0 + $0x8] sm:$0xff] }
 0xa8d   : > { %v2359_v5 = vpop.xlane.xlu0 %2358 }
 0xa8e   : > { %v2365_v7 = vsub.f32 %v2349_v34, %v2359_v5 }
 0xa90   : > { %v2371_v3 = vmul.f32 1.442695, %v2365_v7  ;;  %v5447_v7 = vld [vmem:[%s5679_s0 + $0x10] sm:$0xff] }
 0xa91   : > { %v2362_v10 = vpop.xlane.xlu0 %2361 }
 0xa92   : > { %4473 = vpow2.f32 %v2371_v3  ;;  %v2366_v11 = vsub.f32 %v2350_v38, %v2362_v10 }
 0xa93   : > { %4475 = vpow2.f32 %v2367_v9 }
 0xa94   : > { %v2373_v13 = vmul.f32 1.442695, %v2366_v11  ;;  %v4540_v11 = vld [vmem:[%s5679_s0 + $0x18] sm:$0xff] }
 0xa95   : > { %v2356_v22 = vpop.xlane.xlu1 %2355 }
 0xa96   : > { %4477 = vpow2.f32 %v2373_v13  ;;  %v2364_v25 = vsub.f32 %v2348_v40, %v2356_v22 }
 0xa98   : > { %v2369_v26 = vmul.f32 1.442695, %v2364_v25 }
 0xa9a   : > { %4479 = vpow2.f32 %v2369_v26  ;;  %v4350_v26 = vld [vmem:[%s5014_s18 + $0x28] sm:$0xff]  }
 0xa9c   : > { %v5402_v14 = vpop.eup %4473 }
 0xa9d   : > { %v2381_v15 = vsel %vm1103_vm1, %v5402_v14, 0.0  ;;  %v4476_v21 = vpop.eup %4475 }
 0xa9e   : > { %2382 = vadd.xlane.f32.xlu0 %v2381_v15  ;;  %v2375_v24 = vsel %vm1103_vm1, %v4476_v21, 0.0 }
 0xaa0   : > { %v4478_v23 = vpop.eup %4477 }
 0xaa1   : > { %v2384_v16 = vsel %vm1103_vm1, %v4478_v23, 0.0 }
 0xaa2   : > { %2376 = vadd.xlane.f32.xlu0 %v2375_v24  ;;  %2385 = vadd.xlane.f32.xlu1 %v2384_v16 }
 0xaa4   : > { %v4480_v17 = vpop.eup %4479 }
 0xaa5   : > { %v2378_v18 = vsel %vm1103_vm1, %v4480_v17, 0.0 }
 0xaa6   : > { %2379 = vadd.xlane.f32.xlu1 %v2378_v18 }
 0xab7   : > { %2399 = vrot.lane.b32.xlu1 %v5170_v35, %s4724_s27 }
 0xab8   : > { %2397 = vrot.lane.b32.xlu0 %v5172_v36, %s4724_s27 }
 0xabb   : > { %2780 = vrot.lane.b32.xlu1 %v5114_v43, %s4726_s26 }
 0xabc   : > { %2776 = vrot.lane.b32.xlu0 %v5112_v42, %s4726_s26 }
 0xabf   : > { %2782 = vrot.lane.b32.xlu1 %v5124_v54, %s4726_s26 }
 0xac3   : > { %2778 = vrot.lane.b32.xlu1 %v5122_v53, %s4726_s26 }
 0xb2b   : > { %v2383_v20 = vpop.xlane.xlu0 %2382 }
 0xb2f   : > { %v2377_v27 = vpop.xlane.xlu0 %2376  ;;  %v2386_v32 = vpop.xlane.xlu1 %2385 }
 0xb30   : > { %4481 = vrcp.f32 %v2377_v27 }
 0xb31   : > { %4483 = vrcp.f32 %v2386_v32 }
 0xb33   : > { %v2398_v33 = vpop.permute.xlu0 %2397  ;;  %v2380_v34 = vpop.xlane.xlu1 %2379 }
 0xb34   : > { %4485 = vrcp.f32 %v2380_v34  ;;  %4139 = vmatprep.subr.bf16.mxu0 %v2398_v33 }
 0xb35   : > { %4487 = vrcp.f32 %v2383_v20 }
 0xb37   : > { %v2777_v43 = vpop.permute.xlu0 %2776  ;;  %v2400_v30 = vpop.permute.xlu1 %2399 }
 0xb38   : > { %v4123_v37 = vpop.f32.mrb[24].mxu0  ;;  %4179 = vmatprep.mubr.msk.bf16.mxu1 %vm1033_vm0, %v2777_v43 }
 0xb39   : > { %v2192_v42 = vpop.f32.mrb[25].mxu0 }
 0xb3a   : > { %v4124_v54 = vpop.f32.mrb[26].mxu0  ;;  %v4482_v40 = vpop.eup %4481 }
 0xb3b   : > { %v2208_v38 = vpack.c.bf16 %v4124_v54, %v4123_v37  ;;  %v2195_v39 = vpop.f32.mrb[27].mxu0  ;;  %v2781_v53 = vpop.permute.xlu1 %2780  ;;  %v2391_v46 = vmul.f32 %v4482_v40, %v4476_v21 }
 0xb3c   : > { %v2207_v41 = vpack.c.bf16 %v2195_v39, %v2192_v42  ;;  %v2791_v4 = vsel %vm1033_vm0, %v2781_v53, 0  ;;  %4239 = vmatprep.subr.msk.bf16.mxu1 %vm1033_vm0, %v2781_v53  ;;  %v4484_v44 = vpop.eup %4483 }
 0xb3d   : > { %4176 = vmatpush3.bf16.xpose.msra.mxu1 %v2791_v4  ;;  %v2394_v48 = vmul.f32 %v4484_v44, %v4478_v23 }
 0xb3e   : > { %v4486_v45 = vpop.eup %4485  ;;  %4127 = vmatprep.mubr.msk.bf16.mxu0 %vm1033_vm0, %v2207_v41 }
 0xb3f   : > { %4128 = vmatmul.mubr.msk.bf16.vlgmr.msra.gmra.mrb[12].mxu0 %vm1033_vm0, %v2208_v38  ;;  %v2783_v1 = vpop.permute.xlu1 %2782  ;;  %v2392_v8 = vmul.f32 %v4486_v45, %v4480_v17  ;;  %v4488_v47 = vpop.eup %4487 }
 0xb40   : > { %4140 = vmatpush3.bf16.msra.mxu0 %v2398_v33  ;;  %v4159_v12 = vpop.f32.mrb[32].mxu1  ;;  %4240 = vmatprep.subr.msk.bf16.mxu1 %vm1033_vm0, %v2783_v1  ;;  %v2393_v56 = vmul.f32 %v4488_v47, %v5402_v14  ;;  %v2794_v58 = vsel %vm1033_vm0, %v2783_v1, 0 }
 0xb41   : > { %4141 = vmatprep.subr.bf16.mxu0 %v2400_v30  ;;  %v2579_v49 = vpop.f32.mrb[33].mxu1  ;;  %v2395_v50 = vpack.c.bf16 %v2392_v8, %v2391_v46  ;;  %v2596_v51 = vmul.f32 0.25, %v4159_v12 }
 0xb42   : > { %v2594_v52 = vmul.f32 0.25, %v2579_v49  ;;  %v4160_v55 = vpop.f32.mrb[34].mxu1  ;;  %v2396_v62 = vpack.c.bf16 %v2394_v48, %v2393_v56 }
 0xb43   : > { %4143 = vmatprep.mubr.msk.bf16.mxu0 %vm1103_vm1, %v2395_v50  ;;  %v2582_v57 = vpop.f32.mrb[35].mxu1  ;;  %v2597_v63 = vmul.f32 0.25, %v4160_v55  ;;  %v2600_v9 = vadd.f32 %v5447_v7, %v2596_v51  ;;  %v2779_v22 = vpop.permute.xlu1 %2778 }
 0xb44   : > { %4142 = vmatpush3.bf16.msra.mxu0 %v2400_v30  ;;  %v2595_v59 = vmul.f32 0.25, %v2582_v57  ;;  %v2598_v61 = vadd.f32 %v5434_v60, %v2594_v52 }
 0xb45   : > { %4178 = vmatpush3.bf16.xpose.msra.mxu1 %v2794_v58  ;;  %v2608_v10 = vsel %vm1103_vm1, %v2600_v9, -inf  ;;  %v2601_v13 = vadd.f32 %v4540_v11, %v2597_v63  ;;  %4147 = vmatprep.subr.bf16.mxu0 %v4350_v26 }
 0xb46   : > { %v2602_v0 = vsel %vm1103_vm1, %v2598_v61, -inf  ;;  %v2599_v5 = vadd.f32 %v5441_v2, %v2595_v59 }
 0xb47   : > { %2603 = vmax.xlane.f32.xlu0 %v2602_v0  ;;  %4144 = vmatmul.mubr.msk.bf16.vlgmr.msra.gmra.mrb[28].mxu0 %vm1103_vm1, %v2396_v62  ;;  %v2611_v25 = vsel %vm1103_vm1, %v2601_v13, -inf }
 0xb48   : > { %v2605_v3 = vsel %vm1103_vm1, %v2599_v5, -inf  ;;  %4148 = vmatpush3.bf16.msra.mxu0 %v4350_v26 }
 0xb49   : > { %2606 = vmax.xlane.f32.xlu1 %v2605_v3 }
 0xb4b   : > { %2609 = vmax.xlane.f32.xlu0 %v2608_v10 }
 0xb4c   : > { %4180 = vmatmul.mubr.msk.bf16.vlgmr.msra.gmra.mrb[36].mxu1 %vm1033_vm0, %v2779_v22 }
 0xb4d   : > { %3250 = vmatprep.mubr.bf16.mxu1 %v4719_v6 }
 0xb4f   : > { %2612 = vmax.xlane.f32.xlu0 %v2611_v25 }
 0xbd4   : > { %v2604_v14 = vpop.xlane.xlu0 %2603 }
 0xbd5   : > { %v2614_v15 = vsub.f32 %v2598_v61, %v2604_v14 }
 0xbd6   : > { %v2607_v21 = vpop.xlane.xlu1 %2606 }
 0xbd7   : > { %v2618_v16 = vmul.f32 1.442695, %v2614_v15  ;;  %v2615_v17 = vsub.f32 %v2599_v5, %v2607_v21 }
 0xbd8   : > { %v2610_v23 = vpop.xlane.xlu0 %2609 }
 0xbd9   : > { %v2616_v24 = vsub.f32 %v2600_v9, %v2610_v23  ;;  %v2620_v27 = vmul.f32 1.442695, %v2615_v17 }
 0xbdb   : > { %v2622_v18 = vmul.f32 1.442695, %v2616_v24 }
 0xbdc   : > { %v2613_v19 = vpop.xlane.xlu0 %2612 }
 0xbdd   : > { %4489 = vpow2.f32 %v2622_v18  ;;  %v2617_v20 = vsub.f32 %v2601_v13, %v2613_v19 }
 0xbde   : > { %4491 = vpow2.f32 %v2618_v16 }
 0xbdf   : > { %v2624_v32 = vmul.f32 1.442695, %v2617_v20 }
 0xbe1   : > { %4493 = vpow2.f32 %v2624_v32 }
 0xbe2   : > { %4495 = vpow2.f32 %v2620_v27 }
 0xbe7   : > { %v5460_v33 = vpop.eup %4489 }
 0xbe8   : > { %v2632_v34 = vsel %vm1103_vm1, %v5460_v33, 0.0  ;;  %v4492_v43 = vpop.eup %4491 }
 0xbe9   : > { %2633 = vadd.xlane.f32.xlu0 %v2632_v34  ;;  %v2626_v37 = vsel %vm1103_vm1, %v4492_v43, 0.0 }
 0xbeb   : > { %v4494_v30 = vpop.eup %4493 }
 0xbec   : > { %v2635_v42 = vsel %vm1103_vm1, %v4494_v30, 0.0  ;;  %v4496_v54 = vpop.eup %4495 }
 0xbed   : > { %2627 = vadd.xlane.f32.xlu0 %v2626_v37  ;;  %2636 = vadd.xlane.f32.xlu1 %v2635_v42  ;;  %v2629_v38 = vsel %vm1103_vm1, %v4496_v54, 0.0 }
 0xbf1   : > { %2630 = vadd.xlane.f32.xlu1 %v2629_v38 }
 0xc02   : > { %2650 = vrot.lane.b32.xlu1 %v5170_v35, %s4725_s29 }
 0xc03   : > { %2648 = vrot.lane.b32.xlu0 %v5172_v36, %s4725_s29 }
 0xc1a   : > { %v4145_v39 = vpop.f32.mrb[28].mxu0 }
 0xc1b   : > { %v2443_v53 = vpop.f32.mrb[29].mxu0 }
 0xc1c   : > { %v4146_v40 = vpop.f32.mrb[30].mxu0 }
 0xc1d   : > { %v2459_v41 = vpack.c.bf16 %v4146_v40, %v4145_v39  ;;  %v2446_v4 = vpop.f32.mrb[31].mxu0  ;;  %v4351_v39 = vld [vmem:[%s5014_s18 + $0x30] sm:$0xff]  }
 0xc1e   : > { %v2458_v44 = vpack.c.bf16 %v2446_v4, %v2443_v53 }
 0xc1f   : > { %v4181_v45 = vpop.f32.mrb[36].mxu1 }
 0xc20   : > { %4149 = vmatprep.mubr.msk.bf16.mxu0 %vm1033_vm0, %v2458_v44  ;;  %v2830_v1 = vpop.f32.mrb[37].mxu1  ;;  %v2847_v48 = vmul.f32 0.25, %v4181_v45 }
 0xc21   : > { %v2845_v46 = vmul.f32 0.25, %v2830_v1  ;;  %4150 = vmatmul.mubr.msk.bf16.vlgmr.msra.gmra.mrb[12].mxu0 %vm1033_vm0, %v2459_v41  ;;  %v4182_v8 = vpop.f32.mrb[38].mxu1 }
 0xc22   : > { %v2848_v47 = vmul.f32 0.25, %v4182_v8  ;;  %v2833_v12 = vpop.f32.mrb[39].mxu1  ;;  %v2851_v56 = vadd.f32 %v5447_v7, %v2847_v48 }
 0xc23   : > { %v2846_v49 = vmul.f32 0.25, %v2833_v12  ;;  %v2849_v50 = vadd.f32 %v5434_v60, %v2845_v46 }
 0xc24   : > { %v2852_v51 = vadd.f32 %v4540_v11, %v2848_v47  ;;  %v2859_v59 = vsel %vm1103_vm1, %v2851_v56, -inf }
 0xc25   : > { %v2853_v52 = vsel %vm1103_vm1, %v2849_v50, -inf  ;;  %v2850_v55 = vadd.f32 %v5441_v2, %v2846_v49 }
 0xc26   : > { %2854 = vmax.xlane.f32.xlu1 %v2853_v52  ;;  %v2862_v58 = vsel %vm1103_vm1, %v2852_v51, -inf }
 0xc27   : > { %v2856_v57 = vsel %vm1103_vm1, %v2850_v55, -inf }
 0xc28   : > { %2857 = vmax.xlane.f32.xlu0 %v2856_v57  ;;  %v4352_v57 = vld [vmem:[%s5014_s18 + $0x38] sm:$0xff]   ;;  %s5680_s18 = scalar_lea.vmem %s5634_s5, %s5030_s28 }
 0xc2a   : > { %2863 = vmax.xlane.f32.xlu1 %v2862_v58 }
 0xc2c   : > { %2860 = vmax.xlane.f32.xlu0 %v2859_v59 }
 0xc76   : > { %v2634_v61 = vpop.xlane.xlu0 %2633 }
 0xc7a   : > { %v2628_v62 = vpop.xlane.xlu0 %2627  ;;  %v2637_v60 = vpop.xlane.xlu1 %2636 }
 0xc7b   : > { %4497 = vrcp.f32 %v2637_v60 }
 0xc7c   : > { %4499 = vrcp.f32 %v2628_v62 }
 0xc7d   : > { %4501 = vrcp.f32 %v2634_v61 }
 0xc7e   : > { %v2649_v63 = vpop.permute.xlu0 %2648  ;;  %v2631_v0 = vpop.xlane.xlu1 %2630 }
 0xc7f   : > { %4503 = vrcp.f32 %v2631_v0  ;;  %4161 = vmatprep.subr.bf16.mxu0 %v2649_v63 }
 0xc80   : > { %4162 = vmatpush3.bf16.msra.mxu0 %v2649_v63 }
 0xc82   : > { %v2651_v2 = vpop.permute.xlu1 %2650 }
 0xc83   : > { %4163 = vmatprep.subr.bf16.mxu0 %v2651_v2 }
 0xc84   : > { %4164 = vmatpush3.bf16.msra.mxu0 %v2651_v2 }
 0xc85   : > { %v4498_v5 = vpop.eup %4497  ;;  %4169 = vmatprep.subr.bf16.mxu0 %v4351_v39 }
 0xc86   : > { %v4500_v7 = vpop.eup %4499  ;;  %v2645_v10 = vmul.f32 %v4498_v5, %v4494_v30  ;;  %v3831_v5 = vld [vmem:[%s5680_s18] ss:$0 sm:$0xff] }
 0xc87   : > { %v4502_v9 = vpop.eup %4501  ;;  %v2642_v11 = vmul.f32 %v4500_v7, %v4492_v43 }
 0xc88   : > { %v2644_v22 = vmul.f32 %v4502_v9, %v5460_v33 }
 0xc89   : > { %v4504_v3 = vpop.eup %4503 }
 0xc8a   : > { %v2643_v13 = vmul.f32 %v4504_v3, %v4496_v54  ;;  %v2647_v26 = vpack.c.bf16 %v2645_v10, %v2644_v22 }
 0xc8c   : > { %v2646_v25 = vpack.c.bf16 %v2643_v13, %v2642_v11  ;;  %v4541_v13 = vld [vmem:[#allocation2] sm:$0xff] }
 0xc8e   : > { %4165 = vmatprep.mubr.msk.bf16.mxu0 %vm1103_vm1, %v2646_v25 }
 0xc8f   : > { %4166 = vmatmul.mubr.msk.bf16.vlgmr.msra.gmra.mrb[32].mxu0 %vm1103_vm1, %v2647_v26 }
 0xc90   : > { %4170 = vmatpush3.bf16.msra.mxu0 %v4351_v39 }
 0xcb3   : > { %v2855_v14 = vpop.xlane.xlu1 %2854 }
 0xcb4   : > { %v2865_v24 = vsub.f32 %v2849_v50, %v2855_v14 }
 0xcb5   : > { %v2858_v15 = vpop.xlane.xlu0 %2857 }
 0xcb6   : > { %v2866_v21 = vsub.f32 %v2850_v55, %v2858_v15  ;;  %v2869_v27 = vmul.f32 1.442695, %v2865_v24  ;;  %v4542_v15 = vld [vmem:[#allocation2 + $0x8] sm:$0xff] }
 0xcb7   : > { %v2864_v23 = vpop.xlane.xlu1 %2863 }
 0xcb8   : > { %v2868_v16 = vsub.f32 %v2852_v51, %v2864_v23  ;;  %v2871_v17 = vmul.f32 1.442695, %v2866_v21  ;;  %v4543_v23 = vld [vmem:[#allocation2 + $0x18] sm:$0xff] }
 0xcb9   : > { %v2861_v18 = vpop.xlane.xlu0 %2860 }
 0xcba   : > { %v2875_v19 = vmul.f32 1.442695, %v2868_v16  ;;  %v2867_v20 = vsub.f32 %v2851_v56, %v2861_v18  ;;  %v4544_v16 = vld [vmem:[#allocation2 + $0x10] sm:$0xff]  ;;  %v4353_v18 = vld [vmem:[%s5020_s20] ss:$8 sps:$4 sm:$0xff]  }
 0xcbc   : > { %4505 = vpow2.f32 %v2875_v19  ;;  %v2873_v32 = vmul.f32 1.442695, %v2867_v20  ;;  %v4355_v19 = vld [vmem:[%s5020_s20 + $0x4] ss:$8 sps:$4 sm:$0xff]   ;;  %v4358_v20 = vld [vmem:[%s5020_s20 + $0x14] ss:$8 sps:$4 sm:$0xff]  }
 0xcbd   : > { %4507 = vpow2.f32 %v2871_v17  ;;  %3218 = vmatprep.subr.bf16.mxu1 %v4355_v19  ;;  %v3833_v19 = vld [vmem:[%s5682_s25] ss:$0 sm:$0xff] }
 0xcbe   : > { %4509 = vpow2.f32 %v2873_v32  ;;  %3219 = vmatpush1.bf16.msra.mxu1 %v4353_v18 }
 0xcbf   : > { %4511 = vpow2.f32 %v2869_v27  ;;  %v4356_v27 = vld [vmem:[%s5020_s20 + $0x10] ss:$8 sps:$4 sm:$0xff]   ;;  %3220 = vmatprep.subr.bf16.mxu1 %v4358_v20 }
 0xcc2   : > { %3221 = vmatpush1.bf16.msra.mxu1 %v4356_v27 }
 0xcc6   : > { %v4506_v33 = vpop.eup %4505 }
 0xcc7   : > { %v4508_v34 = vpop.eup %4507  ;;  %v2886_v43 = vsel %vm1103_vm1, %v4506_v33, 0.0 }
 0xcc8   : > { %v4510_v30 = vpop.eup %4509  ;;  %2887 = vadd.xlane.f32.xlu1 %v2886_v43  ;;  %v2880_v54 = vsel %vm1103_vm1, %v4508_v34, 0.0 }
 0xcc9   : > { %v2883_v37 = vsel %vm1103_vm1, %v4510_v30, 0.0  ;;  %v4512_v42 = vpop.eup %4511 }
 0xcca   : > { %2884 = vadd.xlane.f32.xlu0 %v2883_v37  ;;  %v2877_v38 = vsel %vm1103_vm1, %v4512_v42, 0.0 }
 0xccc   : > { %2881 = vadd.xlane.f32.xlu1 %v2880_v54 }
 0xcce   : > { %2878 = vadd.xlane.f32.xlu0 %v2877_v38 }
 0xcdd   : > { %2901 = vrot.lane.b32.xlu1 %v5170_v35, %s4726_s26 }
 0xce4   : > { %2899 = vrot.lane.b32.xlu0 %v5172_v36, %s4726_s26  ;;  %s5681_s26 = scalar_lea.vmem %s5635_s6, %s5030_s28 }
 0xd55   : > { %v2888_v53 = vpop.xlane.xlu1 %2887 }
 0xd57   : > { %v2885_v40 = vpop.xlane.xlu0 %2884 }
 0xd59   : > { %v2882_v41 = vpop.xlane.xlu1 %2881 }
 0xd5a   : > { %4513 = vrcp.f32 %v2882_v41 }
 0xd5b   : > { %v2879_v4 = vpop.xlane.xlu0 %2878 }
 0xd5c   : > { %4515 = vrcp.f32 %v2879_v4 }
 0xd5d   : > { %4517 = vrcp.f32 %v2885_v40  ;;  %v2902_v55 = vpop.permute.xlu1 %2901 }
 0xd5e   : > { %4519 = vrcp.f32 %v2888_v53 }
 0xd5f   : > { %v2900_v44 = vpop.permute.xlu0 %2899 }
 0xd60   : > { %4183 = vmatprep.subr.bf16.mxu0 %v2900_v44 }
 0xd62   : > { %v4167_v45 = vpop.f32.mrb[32].mxu0 }
 0xd63   : > { %v2694_v1 = vpop.f32.mrb[33].mxu0 }
 0xd64   : > { %v4514_v46 = vpop.eup %4513  ;;  %v4168_v35 = vpop.f32.mrb[34].mxu0 }
 0xd65   : > { %v2710_v8 = vpack.c.bf16 %v4168_v35, %v4167_v45  ;;  %v2697_v47 = vpop.f32.mrb[35].mxu0  ;;  %v2894_v49 = vmul.f32 %v4514_v46, %v4508_v34  ;;  %v4359_v46 = vld [vmem:[%s5020_s20 + $0x20] ss:$8 sps:$4 sm:$0xff]   ;;  %v4364_v35 = vld [vmem:[%s5020_s20 + $0x34] ss:$8 sps:$4 sm:$0xff]  }
 0xd66   : > { %v4516_v12 = vpop.eup %4515  ;;  %v2709_v48 = vpack.c.bf16 %v2697_v47, %v2694_v1  ;;  %v4361_v1 = vld [vmem:[%s5020_s20 + $0x24] ss:$8 sps:$4 sm:$0xff]  }
 0xd67   : > { %v2893_v36 = vmul.f32 %v4516_v12, %v4512_v42  ;;  %v4518_v50 = vpop.eup %4517  ;;  %3222 = vmatprep.subr.bf16.mxu1 %v4361_v1  ;;  %v4367_v47 = vld [vmem:[%s5020_s20 + $0x44] ss:$8 sps:$4 sm:$0xff]   ;;  %v4365_v12 = vld [vmem:[%s5020_s20 + $0x40] ss:$8 sps:$4 sm:$0xff]  }
 0xd68   : > { %4171 = vmatprep.mubr.msk.bf16.mxu0 %vm1033_vm0, %v2709_v48  ;;  %v4520_v52 = vpop.eup %4519  ;;  %v2895_v56 = vmul.f32 %v4518_v50, %v4510_v30  ;;  %3223 = vmatpush1.bf16.msra.mxu1 %v4359_v46  ;;  %v4370_v48 = vld [vmem:[%s5020_s20 + $0x54] ss:$8 sps:$4 sm:$0xff]   ;;  %v4371_v50 = vld [vmem:[%s5020_s20 + $0x60] ss:$8 sps:$4 sm:$0xff]  }
 0xd69   : > { %4172 = vmatmul.mubr.msk.bf16.vlgmr.msra.gmra.mrb[12].mxu0 %vm1033_vm0, %v2710_v8  ;;  %v2897_v51 = vpack.c.bf16 %v2894_v49, %v2893_v36  ;;  %v2896_v58 = vmul.f32 %v4520_v52, %v4506_v33  ;;  %v4362_v8 = vld [vmem:[%s5020_s20 + $0x30] ss:$8 sps:$4 sm:$0xff]   ;;  %3224 = vmatprep.subr.bf16.mxu1 %v4364_v35  ;;  %v4373_v49 = vld [vmem:[%s5020_s20 + $0x64] ss:$8 sps:$4 sm:$0xff]   ;;  %v3126_v1 = vld [vmem:[%s5054_s10] sm:$0x3] }
 0xd6a   : > { %4184 = vmatpush3.bf16.msra.mxu0 %v2900_v44  ;;  %v4368_v36 = vld [vmem:[%s5020_s20 + $0x50] ss:$8 sps:$4 sm:$0xff]   ;;  %v3135_v46 = vrot.slane %v3126_v1, %v771_v31 }
 0xd6b   : > { %4185 = vmatprep.subr.bf16.mxu0 %v2902_v55  ;;  %4187 = vmatprep.mubr.msk.bf16.mxu0 %vm1103_vm1, %v2897_v51  ;;  %v2898_v59 = vpack.c.bf16 %v2896_v58, %v2895_v56  ;;  %v4376_v51 = vld [vmem:[%s5020_s20 + $0x74] ss:$8 sps:$4 sm:$0xff]   ;;  %v4374_v52 = vld [vmem:[%s5020_s20 + $0x70] ss:$8 sps:$4 sm:$0xff]   ;;  %v4378_v56 = vld [vmem:[%s5022_s19] sm:$0xff]  }
 0xd6c   : > { %3225 = vmatpush1.bf16.msra.mxu1 %v4362_v8  ;;  %v4380_v58 = vld [vmem:[%s5022_s19 + $0x8] sm:$0xff]  }
 0xd6d   : > { %3226 = vmatprep.subr.bf16.mxu1 %v4367_v47 }
 0xd6e   : > { %4186 = vmatpush3.bf16.msra.mxu0 %v2902_v55  ;;  %v4377_v55 = vld [vmem:[%s5022_s19 + $0x40] sm:$0xff]  }
 0xd6f   : > { %4191 = vmatprep.subr.bf16.mxu0 %v4352_v57 }
 0xd70   : > { %3227 = vmatpush1.bf16.msra.mxu1 %v4365_v12 }
 0xd71   : > { %4188 = vmatmul.mubr.msk.bf16.vlgmr.msra.gmra.mrb[36].mxu0 %vm1103_vm1, %v2898_v59  ;;  %3228 = vmatprep.subr.bf16.mxu1 %v4370_v48  ;;  %v4381_v59 = vld [vmem:[%s5022_s19 + $0x50] sm:$0xff]  }
 0xd72   : > { %4192 = vmatpush3.bf16.msra.mxu0 %v4352_v57  ;;  %v4379_v57 = vld [vmem:[%s5022_s19 + $0x48] sm:$0xff]  }
 0xd73   : > { %3973 = vmatprep.subr.bf16.mxu0 %v4377_v55 }
 0xd74   : > { %3229 = vmatpush1.bf16.msra.mxu1 %v4368_v36 }
 0xd75   : > { %3230 = vmatprep.subr.bf16.mxu1 %v4373_v49 }
 0xd78   : > { %3231 = vmatpush1.bf16.msra.mxu1 %v4371_v50 }
 0xd79   : > { %3232 = vmatprep.subr.bf16.mxu1 %v4376_v51 }
 0xd7c   : > { %3233 = vmatpush1.bf16.msra.mxu1 %v4374_v52 }
 0xe44   : > { %v4189_v61 = vpop.f32.mrb[36].mxu0 }
 0xe45   : > { %v2945_v62 = vpop.f32.mrb[37].mxu0 }
 0xe46   : > { %v4190_v60 = vpop.f32.mrb[38].mxu0 }
 0xe47   : > { %v2961_v63 = vpack.c.bf16 %v4190_v60, %v4189_v61  ;;  %v2948_v0 = vpop.f32.mrb[39].mxu0  ;;  %v4382_v61 = vld [vmem:[%s5022_s19 + $0x10] sm:$0xff]   ;;  %v4384_v60 = vld [vmem:[%s5022_s19 + $0x18] sm:$0xff]  }
 0xe48   : > { %v2960_v2 = vpack.c.bf16 %v2948_v0, %v2945_v62  ;;  %v4383_v62 = vld [vmem:[%s5022_s19 + $0x58] sm:$0xff]   ;;  %v4386_v0 = vld [vmem:[%s5022_s19 + $0x20] sm:$0xff]  }
 0xe4a   : > { %4193 = vmatprep.mubr.msk.bf16.mxu0 %vm1033_vm0, %v2960_v2  ;;  %v4387_v2 = vld [vmem:[%s5022_s19 + $0x68] sm:$0xff]  }
 0xe4b   : > { %4194 = vmatmul.mubr.msk.bf16.vlgmr.msra.gmra.mrb[12].mxu0 %vm1033_vm0, %v2961_v63  ;;  %v4385_v63 = vld [vmem:[%s5022_s19 + $0x60] sm:$0xff]  }
 0xe4c   : > { %3974 = vmatpush3.bf16.msra.mxu0 %v4378_v56 }
 0xe4d   : > { %3975 = vmatprep.subr.bf16.mxu0 %v4379_v57 }
 0xe50   : > { %3976 = vmatpush3.bf16.msra.mxu0 %v4380_v58 }
 0xe51   : > { %3977 = vmatprep.subr.bf16.mxu0 %v4381_v59 }
 0xe54   : > { %3978 = vmatpush3.bf16.msra.mxu0 %v4382_v61 }
 0xe55   : > { %3979 = vmatprep.subr.bf16.mxu0 %v4383_v62 }
 0xe58   : > { %3980 = vmatpush3.bf16.msra.mxu0 %v4384_v60 }
 0xe59   : > { %3981 = vmatprep.subr.bf16.mxu0 %v4385_v63 }
 0xe5c   : > { %3982 = vmatpush3.bf16.msra.mxu0 %v4386_v0 }
 0xe5d   : > { %3983 = vmatprep.subr.bf16.mxu0 %v4387_v2 }
 0xf1e   : > { %v4195_v7 = vpop.f32.mrb[12].mxu0 }
 0xf1f   : > { %v3008_v9 = vpop.f32.mrb[13].mxu0  ;;  %v3035_v14 = vadd.f32 %v4195_v7, %v3831_v5 }
 0xf20   : > { %v3033_v3 = vadd.f32 %v3831_v5, %v3008_v9  ;;  %v4196_v10 = vpop.f32.mrb[14].mxu0 }
 0xf21   : > { %v3011_v11 = vpop.f32.mrb[15].mxu0  ;;  %v3036_v25 = vadd.f32 %v4196_v10, %v3831_v5  ;;  %v3039_v17 = vadd.f32 %v4544_v16, %v3035_v14 }
 0xf22   : > { %v3037_v22 = vadd.f32 %v4541_v13, %v3033_v3  ;;  %v3034_v26 = vadd.f32 %v3831_v5, %v3011_v11 }
 0xf23   : > { %v3040_v24 = vadd.f32 %v4543_v23, %v3036_v25  ;;  %v3832_v23 = vld [vmem:[%s5681_s26] ss:$0 sm:$0xff] }
 0xf24   : > { %v3038_v21 = vadd.f32 %v4542_v15, %v3034_v26  ;;  %3043 = vadd.xlane.f32.xlu1 %v3037_v22 }
 0xf26   : > { %3045 = vadd.xlane.f32.xlu0 %v3038_v21 }
 0xf28   : > { %3049 = vadd.xlane.f32.xlu1 %v3040_v24 }
 0xf2a   : > { %3047 = vadd.xlane.f32.xlu0 %v3039_v17 }
 0xfb1   : > { %v3044_v32 = vpop.xlane.xlu1 %3043 }
 0xfb2   : > { %v3052_v33 = vmul.f32 0.0078125, %v3044_v32 }
 0xfb3   : > { %v3046_v34 = vpop.xlane.xlu0 %3045 }
 0xfb4   : > { %v5508_v43 = vsub.f32 %v3037_v22, %v3052_v33  ;;  %v3053_v30 = vmul.f32 0.0078125, %v3046_v34 }
 0xfb5   : > { %v3050_v37 = vpop.xlane.xlu1 %3049 }
 0xfb6   : > { %v5510_v42 = vsub.f32 %v3038_v21, %v3053_v30  ;;  %v3055_v54 = vmul.f32 0.0078125, %v3050_v37  ;;  %v3060_v38 = vmul.f32 %v5508_v43, %v5508_v43 }
 0xfb7   : > { %v3048_v39 = vpop.xlane.xlu0 %3047 }
 0xfb8   : > { %v5514_v53 = vsub.f32 %v3040_v24, %v3055_v54  ;;  %v3054_v40 = vmul.f32 0.0078125, %v3048_v39  ;;  %3064 = vadd.xlane.f32.xlu0 %v3060_v38  ;;  %v3061_v41 = vmul.f32 %v5510_v42, %v5510_v42 }
 0xfba   : > { %v5518_v4 = vsub.f32 %v3039_v17, %v3054_v40  ;;  %3066 = vadd.xlane.f32.xlu1 %v3061_v41  ;;  %v3063_v44 = vmul.f32 %v5514_v53, %v5514_v53  ;;  %v4388_v40 = vld [vmem:[%s5022_s19 + $0x28] sm:$0xff]   ;;  %v4389_v41 = vld [vmem:[%s5022_s19 + $0x70] sm:$0xff]  }
 0xfbb   : > { %3984 = vmatpush3.bf16.msra.mxu0 %v4388_v40 }
 0xfbc   : > { %v3062_v45 = vmul.f32 %v5518_v4, %v5518_v4  ;;  %3985 = vmatprep.subr.bf16.mxu0 %v4389_v41 }
 0xfbe   : > { %3070 = vadd.xlane.f32.xlu1 %v3063_v44  ;;  %3068 = vadd.xlane.f32.xlu0 %v3062_v45  ;;  %v4391_v44 = vld [vmem:[%s5022_s19 + $0x78] sm:$0xff]  }
 0xfbf   : > { %v4392_v45 = vld [vmem:[%s5022_s19 + $0x38] sm:$0xff]  }
0x1045   : > { %v3065_v5 = vpop.xlane.xlu0 %3064 }
0x1046   : > { %v3072_v7 = vmul.f32 0.0078125, %v3065_v5 }
0x1047   : > { %v3067_v9 = vpop.xlane.xlu1 %3066 }
0x1048   : > { %v3076_v3 = vadd.f32 1e-05, %v3072_v7  ;;  %v3073_v10 = vmul.f32 0.0078125, %v3067_v9 }
0x104a   : > { %4521 = vrsqrt.f32 %v3076_v3  ;;  %v3077_v11 = vadd.f32 1e-05, %v3073_v10 }
0x104b   : > { %v3071_v13 = vpop.xlane.xlu1 %3070  ;;  %v3069_v22 = vpop.xlane.xlu0 %3068 }
0x104c   : > { %4523 = vrsqrt.f32 %v3077_v11  ;;  %v3075_v25 = vmul.f32 0.0078125, %v3071_v13  ;;  %v3074_v26 = vmul.f32 0.0078125, %v3069_v22  ;;  %v3850_v11 = vld [vmem:[%s701_s22] ss:$0 sm:$0xff] }
0x104e   : > { %v3079_v14 = vadd.f32 1e-05, %v3075_v25  ;;  %v3078_v15 = vadd.f32 1e-05, %v3074_v26 }
0x1050   : > { %4525 = vrsqrt.f32 %v3079_v14 }
0x1051   : > { %4527 = vrsqrt.f32 %v3078_v15 }
0x1054   : > { %v4522_v21 = vpop.eup %4521 }
0x1055   : > { %v3084_v24 = vmul.f32 %v4522_v21, %v5508_v43 }
0x1056   : > { %v4524_v16 = vpop.eup %4523 }
0x1057   : > { %v3085_v17 = vmul.f32 %v4524_v16, %v5510_v42  ;;  %v3094_v18 = vmul.f32 %v3832_v23, %v3084_v24 }
0x1059   : > { %v3095_v20 = vmul.f32 %v3832_v23, %v3085_v17  ;;  %v5559_v33 = vadd.f32 %v3833_v19, %v3094_v18 }
0x105a   : > { %v4526_v27 = vpop.eup %4525 }
0x105b   : > { %v4528_v32 = vpop.eup %4527  ;;  %v5561_v34 = vadd.f32 %v3833_v19, %v3095_v20  ;;  %v3087_v43 = vmul.f32 %v4526_v27, %v5514_v53 }
0x105c   : > { %v3086_v30 = vmul.f32 %v4528_v32, %v5518_v4  ;;  %v4390_v4 = vld [vmem:[%s5022_s19 + $0x30] sm:$0xff]  }
0x105d   : > { %v3108_v37 = vpack.c.bf16 %v5561_v34, %v5559_v33  ;;  %v3097_v42 = vmul.f32 %v3832_v23, %v3087_v43  ;;  %3986 = vmatpush3.bf16.msra.mxu0 %v4390_v4 }
0x105e   : > { %v3096_v54 = vmul.f32 %v3832_v23, %v3086_v30  ;;  %3987 = vmatprep.subr.bf16.mxu0 %v4391_v44 }
0x105f   : > { %3251 = vmatmul.mubr.bf16.vlgmr.msra.gmra.mrb[40].mxu1 %v3108_v37  ;;  %v5570_v39 = vadd.f32 %v3833_v19, %v3097_v42 }
0x1060   : > { %3260 = vmatprep.mubr.bf16.mxu1 %v4719_v6  ;;  %v5568_v38 = vadd.f32 %v3833_v19, %v3096_v54  ;;  %v3131_v6 = vrot.slane %v3126_v1, %v767_v29 }
0x1061   : > { %3988 = vmatpush3.bf16.msra.mxu0 %v4392_v45 }
0x1062   : > { %v3109_v53 = vpack.c.bf16 %v5570_v39, %v5568_v38 }
0x1067   : > { %3261 = vmatmul.mubr.bf16.gmra.mrb[44].mxu1 %v3109_v53 }
0x1132   : > { %v3252_v35 = vpop.f32.mrb[40].mxu1 }
0x1133   : > { %v3253_v8 = vadd.f32 %v3252_v35, %v3131_v6  ;;  %v3254_v47 = vpop.f32.mrb[41].mxu1 }
0x1134   : > { %v3255_v12 = vadd.f32 %v3254_v47, %v3135_v46  ;;  %v3256_v48 = vpop.f32.mrb[42].mxu1 }
0x1135   : > { %v3257_v36 = vadd.f32 %v3256_v48, %v3131_v6  ;;  %v3258_v49 = vpop.f32.mrb[43].mxu1  ;;  %v3271_v51 = vmax.f32 %v3253_v8, 0.0 }
0x1136   : > { %v3259_v50 = vadd.f32 %v3258_v49, %v3135_v46  ;;  %v3272_v55 = vmax.f32 %v3255_v12, 0.0 }
0x1137   : > { %v3273_v52 = vmax.f32 %v3257_v36, 0.0 }
0x1138   : > { %v3274_v56 = vmax.f32 %v3259_v50, 0.0 }
0x1139   : > { %v3279_v57 = vpack.c.bf16 %v3273_v52, %v3271_v51 }
0x113a   : > { %v3280_v58 = vpack.c.bf16 %v3274_v56, %v3272_v55  ;;  %v3262_v59 = vpop.f32.mrb[44].mxu1 }
0x113b   : > { %v3263_v61 = vadd.f32 %v3262_v59, %v3131_v6  ;;  %v3264_v29 = vpop.f32.mrb[45].mxu1  ;;  %v3867_v59 = vld [vmem:[%s704_s14] ss:$0 sm:$0xff] }
0x113c   : > { %v3265_v62 = vadd.f32 %v3264_v29, %v3135_v46  ;;  %v3266_v28 = vpop.f32.mrb[46].mxu1  ;;  %3450 = vmatprep.mubr.bf16.mxu0 %v3280_v58 }
0x113d   : > { %v3267_v31 = vadd.f32 %v3266_v28, %v3131_v6  ;;  %v3268_v60 = vpop.f32.mrb[47].mxu1  ;;  %3451 = vmatmul.mubr.bf16.vlgmr.msra.gmra.mrb[40].mxu0 %v3279_v57  ;;  %v3275_v0 = vmax.f32 %v3263_v61, 0.0 }
0x113e   : > { %v3269_v63 = vadd.f32 %v3268_v60, %v3135_v46  ;;  %v3276_v5 = vmax.f32 %v3265_v62, 0.0  ;;  %v3868_v62 = vld [vmem:[%s707_s23] ss:$0 sm:$0xff]  ;;  %s5684_s23 = sld [smem:[#allocation23_spill]] (!%p3869_p5) }
0x113f   : > { %v3277_v2 = vmax.f32 %v3267_v31, 0.0 }
0x1140   : > { %v3278_v7 = vmax.f32 %v3269_v63, 0.0 }
0x1141   : > { %v3281_v9 = vpack.c.bf16 %v3277_v2, %v3275_v0 }
0x1142   : > { %v3282_v3 = vpack.c.bf16 %v3278_v7, %v3276_v5 }
0x1144   : > { %3458 = vmatprep.mubr.bf16.mxu0 %v3282_v3 }
0x1145   : > { %3459 = vmatmul.mubr.bf16.gmra.mrb[44].mxu0 %v3281_v9 }
0x1210   : > { %v3989_v10 = vpop.f32.mrb[40].mxu0 }
0x1211   : > { %v3990_v13 = vpop.f32.mrb[41].mxu0 }
0x1212   : > { %v3991_v22 = vadd.f32 %v3990_v13, %v3989_v10  ;;  %v3992_v25 = vpop.f32.mrb[42].mxu0 }
0x1213   : > { %v3993_v26 = vpop.f32.mrb[43].mxu0 }
0x1214   : > { %v3453_v14 = vadd.f32 %v3991_v22, %v3850_v11  ;;  %v3994_v15 = vadd.f32 %v3993_v26, %v3992_v25 }
0x1216   : > { %v3456_v21 = vadd.f32 %v3994_v15, %v3850_v11  ;;  %v3467_v23 = vadd.f32 %v3453_v14, %v5559_v33 }
0x1218   : > { %3473 = vadd.xlane.f32.xlu0 %v3467_v23  ;;  %v3995_v24 = vpop.f32.mrb[44].mxu0  ;;  %v3468_v16 = vadd.f32 %v3456_v21, %v5561_v34 }
0x1219   : > { %v3996_v17 = vpop.f32.mrb[45].mxu0 }
0x121a   : > { %v3997_v18 = vadd.f32 %v3996_v17, %v3995_v24  ;;  %3475 = vadd.xlane.f32.xlu1 %v3468_v16  ;;  %v3998_v19 = vpop.f32.mrb[46].mxu0 }
0x121b   : > { %v3999_v20 = vpop.f32.mrb[47].mxu0 }
0x121c   : > { %v3461_v27 = vadd.f32 %v3997_v18, %v3850_v11  ;;  %v4000_v32 = vadd.f32 %v3999_v20, %v3998_v19 }
0x121e   : > { %v3464_v43 = vadd.f32 %v4000_v32, %v3850_v11  ;;  %v3469_v30 = vadd.f32 %v3461_v27, %v5568_v38 }
0x1220   : > { %3477 = vadd.xlane.f32.xlu0 %v3469_v30  ;;  %v3470_v37 = vadd.f32 %v3464_v43, %v5570_v39 }
0x1222   : > { %3479 = vadd.xlane.f32.xlu1 %v3470_v37 }
0x12a5   : > { %v3474_v42 = vpop.xlane.xlu0 %3473 }
0x12a6   : > { %v3481_v33 = vmul.f32 0.0078125, %v3474_v42 }
0x12a7   : > { %v3476_v54 = vpop.xlane.xlu1 %3475 }
0x12a8   : > { %v3485_v53 = vsub.f32 %v3467_v23, %v3481_v33  ;;  %v3482_v40 = vmul.f32 0.0078125, %v3476_v54 }
0x12aa   : > { %v3486_v34 = vsub.f32 %v3468_v16, %v3482_v40  ;;  %v3489_v41 = vmul.f32 %v3485_v53, %v3485_v53 }
0x12ac   : > { %3493 = vadd.xlane.f32.xlu0 %v3489_v41  ;;  %v3490_v4 = vmul.f32 %v3486_v34, %v3486_v34 }
0x12ad   : > { %v3478_v44 = vpop.xlane.xlu0 %3477 }
0x12ae   : > { %v3483_v45 = vmul.f32 0.0078125, %v3478_v44  ;;  %3495 = vadd.xlane.f32.xlu1 %v3490_v4 }
0x12af   : > { %v3480_v1 = vpop.xlane.xlu1 %3479 }
0x12b0   : > { %v3487_v6 = vsub.f32 %v3469_v30, %v3483_v45  ;;  %v3484_v46 = vmul.f32 0.0078125, %v3480_v1 }
0x12b2   : > { %v3488_v38 = vsub.f32 %v3470_v37, %v3484_v46  ;;  %v3491_v35 = vmul.f32 %v3487_v6, %v3487_v6 }
0x12b4   : > { %3497 = vadd.xlane.f32.xlu0 %v3491_v35  ;;  %v3492_v39 = vmul.f32 %v3488_v38, %v3488_v38 }
0x12b6   : > { %3499 = vadd.xlane.f32.xlu1 %v3492_v39 }
0x1339   : > { %v3494_v8 = vpop.xlane.xlu0 %3493 }
0x133a   : > { %v3501_v47 = vmul.f32 0.0078125, %v3494_v8 }
0x133b   : > { %v3496_v12 = vpop.xlane.xlu1 %3495 }
0x133c   : > { %v3505_v48 = vadd.f32 1e-05, %v3501_v47  ;;  %v3502_v36 = vmul.f32 0.0078125, %v3496_v12 }
0x133e   : > { %4529 = vrsqrt.f32 %v3505_v48  ;;  %v3506_v49 = vadd.f32 1e-05, %v3502_v36 }
0x1340   : > { %4531 = vrsqrt.f32 %v3506_v49 }
0x1341   : > { %v3498_v50 = vpop.xlane.xlu0 %3497 }
0x1342   : > { %v3503_v51 = vmul.f32 0.0078125, %v3498_v50 }
0x1343   : > { %v3500_v52 = vpop.xlane.xlu1 %3499 }
0x1344   : > { %v3507_v55 = vadd.f32 1e-05, %v3503_v51  ;;  %v3504_v56 = vmul.f32 0.0078125, %v3500_v52 }
0x1346   : > { %4533 = vrsqrt.f32 %v3507_v55  ;;  %v3508_v57 = vadd.f32 1e-05, %v3504_v56 }
0x1348   : > { %v4530_v58 = vpop.eup %4529  ;;  %4535 = vrsqrt.f32 %v3508_v57 }
0x1349   : > { %v3513_v61 = vmul.f32 %v4530_v58, %v3485_v53 }
0x134a   : > { %v4532_v29 = vpop.eup %4531 }
0x134b   : > { %v3523_v28 = vmul.f32 %v3867_v59, %v3513_v61  ;;  %v3514_v31 = vmul.f32 %v4532_v29, %v3486_v34 }
0x134d   : > { %v3533_v60 = vadd.f32 %v3868_v62, %v3523_v28  ;;  %v3524_v63 = vmul.f32 %v3867_v59, %v3514_v31 }
0x134f   : > { %3537 = vst [vmem:[#allocation2] sm:$0xff] %v3533_v60  ;;  %v3534_v0 = vadd.f32 %v3868_v62, %v3524_v63  ;;  %3545 = vst [vmem:[%s5684_s23] sm:$0xff] (!%p3869_p5), %v3533_v60 }
0x1350   : > { %v4534_v2 = vpop.eup %4533 }
0x1351   : > { %3538 = vst [vmem:[#allocation2 + $0x8] sm:$0xff] %v3534_v0  ;;  %v3515_v5 = vmul.f32 %v4534_v2, %v3487_v6  ;;  %3546 = vst [vmem:[%s5684_s23 + $0x8] sm:$0xff] (!%p3869_p5), %v3534_v0 }
0x1352   : > { %v4536_v7 = vpop.eup %4535 }
0x1353   : > { %v3525_v9 = vmul.f32 %v3867_v59, %v3515_v5  ;;  %v3516_v3 = vmul.f32 %v4536_v7, %v3488_v38  ;;  %3544 = sbr.rel (%p3869_p5) target bundleno = 4954 (0x135a), region = 100 }
0x1355   : > { %v3535_v10 = vadd.f32 %v3868_v62, %v3525_v9  ;;  %v3526_v11 = vmul.f32 %v3867_v59, %v3516_v3 }
0x1357   : > { %3539 = vst [vmem:[#allocation2 + $0x10] sm:$0xff] %v3535_v10  ;;  %v3536_v13 = vadd.f32 %v3868_v62, %v3526_v11  ;;  %3547 = vst [vmem:[%s5684_s23 + $0x10] sm:$0xff] (!%p3869_p5), %v3535_v10 }
0x1359   : > { %3540 = vst [vmem:[#allocation2 + $0x18] sm:$0xff] %v3536_v13  ;;  %3548 = vst [vmem:[%s5684_s23 + $0x18] sm:$0xff] (!%p3869_p5), %v3536_v13 }
0x135a PF: > { %s5685_s16 = sld [smem:[#allocation14_spill]]  ;;  %s5686_s17 = sld [smem:[#allocation13_spill]] }
0x135b   : > { %s5687_s15 = sld [smem:[#allocation15_spill]]  ;;  %s5688_s29 = smov %s4699_s30 }
0x1360   : > { %p30_p6 = scmp.ge.s32.totalorder %s5685_s16, 10   ;;  %s5689_s30 = smov %s5686_s17 }
0x1362   :  { %32 = sbr.rel (!%p30_p6) target bundleno = 16 (0x10), region = 181 }
0x1369   :  { %3560 = vsyncpa [#allocation4], 1 }
0x136a   :  { %3562 = vsyncpa [#allocation4 + $0x1], 1 }
0x136b   :  { %3563 = vsyncpa [#allocation6], 1 }
0x136c   :  { %3565 = vsyncpa [#allocation6 + $0x1], 1 }
0x136d   :  { %3566 = vsyncpa [#allocation9], 1 }
0x136e   :  { %3568 = vsyncpa [#allocation9 + $0x1], 1 }

// kernel: closed_call.16
= control target key start
LH: loop header
LB: loop body
LE: loop exit
PB: predicated region body
PF: predicated region fallthrough
CT: control target
= control target key end

     0   :  { %s6976_s0 = inlined_call_operand.vmem [shape: f32[10,128], index: 0, kind: input, shape index: {}]   ;;  %s6977_s1 = inlined_call_operand.vmem [shape: f32[10,10], index: 1, kind: input, shape index: {}]   ;;  %s6978_s2 = inlined_call_operand.vmem [shape: f32[10,32], index: 2, kind: input, shape index: {}]   ;;  %s6979_s3 = inlined_call_operand.vmem [shape: bf16[8,32,256], index: 3, kind: input, shape index: {}]   ;;  %s6980_s4 = inlined_call_operand.vmem [shape: bf16[8,128,384], index: 4, kind: input, shape index: {}]   ;;  %s6981_s5 = inlined_call_operand.vmem [shape: f32[8,1,384], index: 5, kind: input, shape index: {}]   ;;  %s6982_s6 = inlined_call_operand.vmem [shape: bf16[8,128,128], index: 6, kind: input, shape index: {}]   ;;  %s6983_s7 = inlined_call_operand.vmem [shape: f32[8,1,128], index: 7, kind: input, shape index: {}]   ;;  %s6984_s8 = inlined_call_operand.vmem [shape: f32[8,1,128], index: 8, kind: input, shape index: {}]   ;;  %s6985_s9 = inlined_call_operand.vmem [shape: f32[8,1,128], index: 9, kind: input, shape index: {}]   ;;  %s6986_s10 = inlined_call_operand.vmem [shape: bf16[8,128,128], index: 10, kind: input, shape index: {}]   ;;  %s6987_s11 = inlined_call_operand.vmem [shape: f32[8,1,128], index: 11, kind: input, shape index: {}]   ;;  %s6988_s12 = inlined_call_operand.vmem [shape: bf16[8,128,128], index: 12, kind: input, shape index: {}]   ;;  %s6989_s13 = inlined_call_operand.vmem [shape: f32[8,1,128], index: 13, kind: input, shape index: {}]   ;;  %s6990_s14 = inlined_call_operand.vmem [shape: f32[8,1,128], index: 14, kind: input, shape index: {}]   ;;  %s6991_s15 = inlined_call_operand.vmem [shape: f32[8,1,128], index: 15, kind: input, shape index: {}]   ;;  %s6992_s16 = inlined_call_operand.vmem [shape: bf16[8,128,256], index: 16, kind: input, shape index: {}]   ;;  %s6993_s17 = inlined_call_operand.vmem [shape: f32[8,1,256], index: 17, kind: input, shape index: {}]   ;;  %s6994_s18 = inlined_call_operand.vmem [shape: bf16[8,256,128], index: 18, kind: input, shape index: {}]   ;;  %s6995_s19 = inlined_call_operand.vmem [shape: f32[8,1,128], index: 19, kind: input, shape index: {}]   ;;  %s6996_s20 = inlined_call_operand.vmem [shape: f32[8,1,128], index: 20, kind: input, shape index: {}]   ;;  %s6997_s21 = inlined_call_operand.vmem [shape: f32[8,1,128], index: 21, kind: input, shape index: {}]   ;;  %s6998_s22 = inlined_call_operand.vmem [shape: f32[10,128], index: 22, kind: output, shape index: {}]  }
   0x1   :  { %7007 = sst [smem:[#allocation7_spill]] %s6976_s0 }
   0x2   :  { %7008 = sst [smem:[#allocation8_spill]] %s6977_s1 }
   0x3   :  { %7009 = sst [smem:[#allocation9_spill]] %s6978_s2 }
   0x4   :  { %7010 = sst [smem:[#allocation10_spill]] %s6979_s3  ;;  %s6110_s3 = smov 0  }
   0x5   :  { %7011 = sst [smem:[#allocation11_spill]] %s6980_s4 }
   0x6   :  { %7012 = sst [smem:[#allocation12_spill]] %s6981_s5 }
   0x7   :  { %7013 = sst [smem:[#allocation13_spill]] %s6982_s6 }
   0x8   :  { %7014 = sst [smem:[#allocation14_spill]] %s6985_s9 }
   0x9   :  { %7015 = sst [smem:[#allocation15_spill]] %s6986_s10 }
   0xa   :  { %7016 = sst [smem:[#allocation16_spill]] %s6988_s12 }
   0xb   :  { %7017 = sst [smem:[#allocation17_spill]] %s6989_s13 }
   0xc   :  { %7018 = sst [smem:[#allocation18_spill]] %s6990_s14 }
   0xd   :  { %7019 = sst [smem:[#allocation19_spill]] %s6991_s15 }
   0xe   :  { %7020 = sst [smem:[#allocation20_spill]] %s6992_s16 }
   0xf   :  { %7021 = sst [smem:[#allocation21_spill]] %s6994_s18 }
  0x10   :  { %7022 = sst [smem:[#allocation22_spill]] %s6995_s19 }
  0x11   :  { %7023 = sst [smem:[#allocation23_spill]] %s6996_s20 }
  0x12   :  { %7024 = sst [smem:[#allocation24_spill]] %s6997_s21 }
  0x13   :  { %7025 = sst [smem:[#allocation25_spill]] %s6998_s22 }
  0x14 LB: > { %7026 = sst [smem:[#allocation3_spill]] %s5983_s3  ;;  %s6116_s28 = sadd.s32 4294967295, %s5983_s3   ;;  %s5983_s3 = sphi %s6110_s3, %s32_s3  }
  0x15   : > { %7027 = sst [smem:[#allocation4_spill]] %s6116_s28  ;;  %p5034_p0 = scmp.ge.s32.totalorder %s5983_s3, 1 }
  0x16   : > { %p765_p1 = scmp.lt.s32.totalorder %s5983_s3, 9 }
  0x18   : > { %p766_p2 = pnand %p5034_p0, %p765_p1 }
  0x1a   : > { %769 = sbr.rel (%p766_p2) target bundleno = 10097 (0x2771), region = 108 }
  0x21   : > { %p890_p3 = scmp.lt.s32.totalorder %s6116_s28, 7  ;;  %s7028_s1 = sld [smem:[#allocation10_spill]] }
  0x22   : > { %s7030_s26 = sld [smem:[#allocation11_spill]]  ;;  %s7032_s18 = sld [smem:[#allocation13_spill]] }
  0x23   : > { %s6122_s29 = scalar_select %p890_p3, %s6116_s28, 7 }
  0x24   : > { %s7031_s28 = sld [smem:[#allocation12_spill]]  ;;  %s7034_s10 = sld [smem:[#allocation15_spill]] }
  0x25   : > { %s5195_s30 = sshll.u32 %s6122_s29, 5  ;;  %s5713_s4 = smul.u32 192, %s6122_s29 }
  0x26   : > { %s5714_s24 = smul.u32 3, %s6122_s29  ;;  %s5196_s27 = sshll.u32 %s6122_s29, 6 }
  0x27   : > { %s6129_s5 = scalar_lea.vmem %s7028_s1, %s5195_s30  ;;  %s7035_s12 = sld [smem:[#allocation16_spill]] }
  0x28   : > { %7029 = sst [smem:[#allocation5_spill]] %s6129_s5  ;;  %s6135_s2 = scalar_lea.vmem %s7030_s26, %s5713_s4 }
  0x29   : > { %s6146_s0 = scalar_lea.vmem %s7032_s18, %s5196_s27  ;;  %s5199_s9 = sshll.u32 %s6122_s29, 7 }
  0x2a   : > { %s6141_s21 = scalar_lea.vmem %s7031_s28, %s5714_s24  ;;  %s6163_s19 = scalar_lea.vmem %s7034_s10, %s5196_s27 }
  0x2b   : > { %s7039_s16 = sld [smem:[#allocation20_spill]]  ;;  %s7041_s26 = sld [smem:[#allocation21_spill]] }
  0x2c   : > { %s7042_s24 = sld [smem:[#allocation22_spill]]  ;;  %s7043_s18 = sld [smem:[#allocation23_spill]] }
  0x2d   : > { %s6172_s5 = scalar_lea.vmem %s7035_s12, %s5196_s27  ;;  %s5046_s27 = sshll.u32 %s6122_s29, 1 }
  0x2e   : > { %s6196_s6 = scalar_lea.vmem %s6993_s17, %s5046_s27  ;;  %s7044_s13 = sld [smem:[#allocation24_spill]] }
  0x2f   : > { %s7045_s1 = sld [smem:[#allocation4_spill]] }
  0x31   : > { %s6190_s30 = scalar_lea.vmem %s7039_s16, %s5199_s9  ;;  %s6201_s22 = scalar_lea.vmem %s7041_s26, %s5199_s9 }
  0x32   : > { %7040 = sst [smem:[#allocation6_spill]] %s6190_s30  ;;  %s956_s10 = scalar_lea.vmem %s7042_s24, %s6122_s29 }
  0x33   : > { %s959_s20 = scalar_lea.vmem %s7043_s18, %s6122_s29 }
  0x34   : > { %s962_s30 = scalar_lea.vmem %s7044_s13, %s6122_s29 }
  0x35   : > { %p5049_p4 = scmp.ne.s32.totalorder %s7045_s1, 0 }
  0x36   : > { %s7046_s25 = sld [smem:[#allocation7_spill]] (!%p5049_p4) }
  0x37   : > { %967 = sbr.rel (%p5049_p4) target bundleno = 62 (0x3e), region = 112 }
  0x3c   : > { %v968_v0 = vld [vmem:[%s7046_s25] sm:$0xff] (!%p5049_p4)  ;;  %v969_v1 = vld [vmem:[%s7046_s25 + $0x8] sm:$0x3] (!%p5049_p4) }
  0x3d   : > { %970 = vst [vmem:[#allocation2] sm:$0xff] (!%p5049_p4), %v968_v0  ;;  %971 = vst [vmem:[#allocation2 + $0x8] sm:$0x3] (!%p5049_p4), %v969_v1 }
  0x3e PF: > { %v5733_v2 = vld [vmem:[%s6135_s2 + $0x4] ss:$12 sps:$4 sm:$0xff]   ;;  %v5735_v3 = vld [vmem:[%s6135_s2] ss:$12 sps:$4 sm:$0xff]   ;;  %v5985_v4 = vmov 0   ;;  %v5986_v22 = vmov 0.0   ;;  %v1009_v23 = vlaneseq  ;;  %s7048_s27 = scalar_lea.vmem %s6983_s7, %s6122_s29  ;;  %s7050_s4 = scalar_lea.vmem %s6984_s8, %s6122_s29 }
  0x3f   : > { %1184 = vmatprep.mubr.bf16.mxu0 %v5985_v4  ;;  %1152 = vmatprep.subr.bf16.mxu0 %v5733_v2  ;;  %v5736_v5 = vld [vmem:[%s6135_s2 + $0x1c] ss:$12 sps:$4 sm:$0xff]   ;;  %v5738_v6 = vld [vmem:[%s6135_s2 + $0x18] ss:$12 sps:$4 sm:$0xff]   ;;  %v5739_v7 = vld [vmem:[%s6135_s2 + $0x34] ss:$12 sps:$4 sm:$0xff]  }
  0x40   : > { %1153 = vmatpush1.bf16.msra.mxu0 %v5735_v3  ;;  %v5741_v8 = vld [vmem:[%s6135_s2 + $0x30] ss:$12 sps:$4 sm:$0xff]   ;;  %v5742_v9 = vld [vmem:[%s6135_s2 + $0x4c] ss:$12 sps:$4 sm:$0xff]   ;;  %v5744_v10 = vld [vmem:[%s6135_s2 + $0x48] ss:$12 sps:$4 sm:$0xff]   ;;  %5353 = vmatprep.subr.bf16.mxu1 %v5986_v22 }
  0x41   : > { %1154 = vmatprep.subr.bf16.mxu0 %v5736_v5  ;;  %v5745_v11 = vld [vmem:[%s6135_s2 + $0x64] ss:$12 sps:$4 sm:$0xff]   ;;  %v5747_v12 = vld [vmem:[%s6135_s2 + $0x60] ss:$12 sps:$4 sm:$0xff]   ;;  %v5748_v13 = vld [vmem:[%s6135_s2 + $0x7c] ss:$12 sps:$4 sm:$0xff]  }
  0x42   : > { %v5750_v14 = vld [vmem:[%s6135_s2 + $0x78] ss:$12 sps:$4 sm:$0xff]   ;;  %v5751_v15 = vld [vmem:[%s6135_s2 + $0x94] ss:$12 sps:$4 sm:$0xff]   ;;  %v5753_v16 = vld [vmem:[%s6135_s2 + $0x90] ss:$12 sps:$4 sm:$0xff]  }
  0x43   : > { %v5754_v17 = vld [vmem:[%s6135_s2 + $0xac] ss:$12 sps:$4 sm:$0xff]   ;;  %v5756_v18 = vld [vmem:[%s6135_s2 + $0xa8] ss:$12 sps:$4 sm:$0xff]   ;;  %vm5987_vm0 = vmmov 0   ;;  %v6248_v24 = vshrl.u32 %v1009_v23, 7 }
  0x44   : > { %1155 = vmatpush1.bf16.msra.mxu0 %v5738_v6  ;;  %v972_v19 = vld [vmem:[#allocation2] sm:$0xff]  ;;  %v973_v20 = vld [vmem:[#allocation2 + $0x8] sm:$0x3]  ;;  %5369 = vmatprep.mubr.msk.bf16.mxu1 %vm5987_vm0, %v5986_v22  ;;  %vm1258_vm1 = vcmask 130048   ;;  %s5988_s12 = smov 112   ;;  %s7047_s15 = sld [smem:[#allocation8_spill]] }
  0x45   : > { %1156 = vmatprep.subr.bf16.mxu0 %v5739_v7  ;;  %v6239_v21 = vpack.c.bf16 %v973_v20, %v972_v19  ;;  %v1011_v25 = vsub.s32 0, %v6248_v24  ;;  %v6252_v26 = vld [vmem:[%s6141_s21] sm:$0x7]  ;;  %v1015_v27 = vsub.s32 1, %v6248_v24  ;;  %v5757_v41 = vld [vmem:[%s6135_s2 + $0x8] ss:$12 sps:$4 sm:$0xff]  }
  0x46   : > { %5354 = vmatpush3.bf16.msra.mxu1 %v5757_v41  ;;  %v5758_v42 = vld [vmem:[%s6135_s2 + $0x20] ss:$12 sps:$4 sm:$0xff]   ;;  %v5759_v43 = vld [vmem:[%s6135_s2 + $0x38] ss:$12 sps:$4 sm:$0xff]   ;;  %v5760_v44 = vld [vmem:[%s6135_s2 + $0x50] ss:$12 sps:$4 sm:$0xff]  }
  0x47   : > { %v1012_v28 = vrot.slane %v6252_v26, %v1011_v25  ;;  %v1016_v30 = vrot.slane %v6252_v26, %v1015_v27  ;;  %5355 = vmatprep.subr.bf16.mxu1 %v5986_v22  ;;  %v5761_v47 = vld [vmem:[%s6135_s2 + $0x68] ss:$12 sps:$4 sm:$0xff]   ;;  %v5762_v48 = vld [vmem:[%s6135_s2 + $0x80] ss:$12 sps:$4 sm:$0xff]   ;;  %v5763_v50 = vld [vmem:[%s6135_s2 + $0x98] ss:$12 sps:$4 sm:$0xff]  }
  0x48   : > { %1157 = vmatpush1.bf16.msra.mxu0 %v5741_v8  ;;  %v5764_v51 = vld [vmem:[%s6135_s2 + $0xb0] ss:$12 sps:$4 sm:$0xff]   ;;  %vm1310_vm2 = vcmask 80896   ;;  %vm1314_vm3 = vcmask 74752   ;;  %s5989_s2 = smov 96   ;;  %vm1338_vm4 = vcmask 1044480  }
  0x49   : > { %1158 = vmatprep.subr.bf16.mxu0 %v5742_v9  ;;  %s5990_s3 = smov 80   ;;  %s5991_s26 = smov 64   ;;  %vm2709_vm5 = vcmask 1041408   ;;  %vm2950_vm6 = vcmask 261120   ;;  %vm2954_vm7 = vcmask 254976  }
  0x4a   : > { %5356 = vmatpush3.bf16.msra.mxu1 %v5758_v42  ;;  %v6303_v53 = vld [vmem:[%s7047_s15] sm:$0xff]  ;;  %v6308_v57 = vld [vmem:[%s7047_s15 + $0x8] sm:$0x3]  ;;  %s5992_s28 = smov 48   ;;  %s5993_s24 = smov 32  }
  0x4b   : > { %5357 = vmatprep.subr.bf16.mxu1 %v5986_v22  ;;  %s5994_s18 = smov 16   ;;  %s7049_s23 = sld [smem:[#allocation5_spill]] }
  0x4c   : > { %1159 = vmatpush1.bf16.msra.mxu0 %v5744_v10  ;;  %s7051_s16 = sld [smem:[#allocation14_spill]] }
  0x4d   : > { %1160 = vmatprep.subr.bf16.mxu0 %v5745_v11 }
  0x4e   : > { %5358 = vmatpush3.bf16.msra.mxu1 %v5759_v43 }
  0x4f   : > { %5359 = vmatprep.subr.bf16.mxu1 %v5986_v22 }
  0x50   : > { %1161 = vmatpush1.bf16.msra.mxu0 %v5747_v12 }
  0x51   : > { %1162 = vmatprep.subr.bf16.mxu0 %v5748_v13 }
  0x52   : > { %5360 = vmatpush3.bf16.msra.mxu1 %v5760_v44  ;;  %s7052_s21 = scalar_lea.vmem %s7051_s16, %s6122_s29 }
  0x53   : > { %5361 = vmatprep.subr.bf16.mxu1 %v5986_v22 }
  0x54   : > { %1163 = vmatpush1.bf16.msra.mxu0 %v5750_v14 }
  0x55   : > { %1164 = vmatprep.subr.bf16.mxu0 %v5751_v15 }
  0x56   : > { %5362 = vmatpush3.bf16.msra.mxu1 %v5761_v47 }
  0x57   : > { %5363 = vmatprep.subr.bf16.mxu1 %v5986_v22 }
  0x58   : > { %1165 = vmatpush1.bf16.msra.mxu0 %v5753_v16 }
  0x59   : > { %1166 = vmatprep.subr.bf16.mxu0 %v5754_v17  ;;  %v1019_v17 = vsub.s32 2, %v6248_v24  ;;  %v5173_v24 = vld [vmem:[%s956_s10] ss:$0 sm:$0xff] }
  0x5a   : > { %5364 = vmatpush3.bf16.msra.mxu1 %v5762_v48 }
  0x5b   : > { %5365 = vmatprep.subr.bf16.mxu1 %v5986_v22  ;;  %v1020_v20 = vrot.slane %v6252_v26, %v1019_v17 }
  0x5c   : > { %1167 = vmatpush1.bf16.msra.mxu0 %v5756_v18 }
  0x5d   : > { %5373 = vmatprep.subr.bf16.mxu0 %v5986_v22 }
  0x5e   : > { %5366 = vmatpush3.bf16.msra.mxu1 %v5763_v50 }
  0x5f   : > { %1185 = vmatmul.mubr.bf16.vlgmr.msra.gmra.mrb[0].mxu0 %v6239_v21  ;;  %5367 = vmatprep.subr.bf16.mxu1 %v5986_v22 }
  0x60   : > { %5375 = vmatprep.mubr.msk.bf16.mxu0 %vm5987_vm0, %v5986_v22 }
  0x62   : > { %5368 = vmatpush3.bf16.msra.mxu1 %v5764_v51 }
  0x63   : > { %5379 = vmatprep.subr.bf16.mxu1 %v5986_v22 }
  0x65   : > { %5370 = vmatmul.mubr.bf16.vlgmr.msra.gmra.mrb[0].mxu1 %v6239_v21 }
  0x66   : > { %5381 = vmatprep.mubr.msk.bf16.mxu1 %vm5987_vm0, %v5986_v22 }
 0x132   : > { %v1186_v29 = vpop.f32.mrb[0].mxu0 }
 0x133   : > { %v1188_v31 = vpop.f32.mrb[1].mxu0  ;;  %v1187_v33 = vadd.f32 %v1186_v29, %v1012_v28 }
 0x134   : > { %v1190_v32 = vpop.f32.mrb[2].mxu0  ;;  %v1189_v36 = vadd.f32 %v1188_v31, %v1016_v30 }
 0x135   : > { %v1191_v34 = vadd.f32 %v1190_v32, %v1012_v28  ;;  %v1192_v35 = vpop.f32.mrb[3].mxu0 }
 0x136   : > { %v1193_v37 = vadd.f32 %v1192_v35, %v1016_v30 }
 0x137   : > { %v6261_v38 = vpack.c.bf16 %v1191_v34, %v1187_v33 }
 0x138   : > { %v6263_v39 = vpack.c.bf16 %v1193_v37, %v1189_v36  ;;  %v1229_v18 = vpop.f32.mrb[0].mxu1 }
 0x139   : > { %v5371_v19 = vpop.f32.mrb[1].mxu1  ;;  %v1230_v28 = vadd.f32 %v1229_v18, %v1020_v20 }
 0x13a   : > { %1388 = vrot.lane.b32.xlu0 %v6263_v39, %s5988_s12  ;;  %v1263_v40 = vsel %vm1258_vm1, %v6263_v39, 0  ;;  %v1232_v21 = vpop.f32.mrb[2].mxu1 }
 0x13b   : > { %5374 = vmatpush3.bf16.xpose.msra.mxu0 %v1263_v40  ;;  %v5372_v23 = vpop.f32.mrb[3].mxu1  ;;  %v1233_v29 = vadd.f32 %v1232_v21, %v1020_v20 }
 0x13c   : > { %5385 = vmatprep.subr.bf16.mxu0 %v5986_v22 }
 0x13d   : > { %v6322_v30 = vpack.c.bf16 %v1233_v29, %v1230_v28 }
 0x13e   : > { %1385 = vrot.lane.b32.xlu0 %v6261_v38, %s5988_s12 }
 0x13f   : > { %v1340_v35 = vsel %vm1338_vm4, %v6322_v30, 0 }
 0x140   : > { %5380 = vmatpush3.bf16.msra.mxu1 %v1340_v35 }
 0x141   : > { %5391 = vmatprep.subr.bf16.mxu1 %v5986_v22 }
 0x142   : > { %5376 = vmatmul.mubr.msk.bf16.vlgmr.msra.gmra.mrb[4].mxu0 %vm1258_vm1, %v6261_v38 }
 0x143   : > { %5387 = vmatprep.mubr.msk.bf16.mxu0 %vm5987_vm0, %v5986_v22 }
 0x1ac   : > { %v1389_v45 = vpop.permute.xlu0 %1388 }
 0x1ad   : > { %v1394_v46 = vsel %vm1258_vm1, %v1389_v45, 0 }
 0x1ae   : > { %5386 = vmatpush3.bf16.xpose.msra.mxu0 %v1394_v46 }
 0x1af   : > { %5397 = vmatprep.subr.bf16.mxu0 %v5986_v22 }
 0x1b0   : > { %v1386_v49 = vpop.permute.xlu0 %1385 }
 0x1b5   : > { %5388 = vmatmul.mubr.msk.bf16.vlgmr.msra.gmra.mrb[8].mxu0 %vm1258_vm1, %v1386_v49 }
 0x1b6   : > { %5399 = vmatprep.mubr.msk.bf16.mxu0 %vm5987_vm0, %v5986_v22 }
 0x215   : > { %v1299_v52 = vpop.f32.mrb[4].mxu0 }
 0x216   : > { %v1306_v54 = vmul.f32 0.25, %v1299_v52  ;;  %v5377_v55 = vpop.f32.mrb[5].mxu0 }
 0x217   : > { %v1302_v56 = vpop.f32.mrb[6].mxu0  ;;  %v5766_v55 = vld [vmem:[%s6146_s0 + $0x8] sm:$0xff]  }
 0x218   : > { %v1307_v58 = vmul.f32 0.25, %v1302_v56  ;;  %v5378_v59 = vpop.f32.mrb[7].mxu0  ;;  %v1308_v60 = vadd.f32 %v1306_v54, %v6303_v53  ;;  %5398 = vmatpush3.bf16.msra.mxu0 %v5766_v55 }
 0x219   : > { %5409 = vmatprep.subr.bf16.mxu0 %v5986_v22 }
 0x21a   : > { %v1311_v61 = vsel %vm1310_vm2, %v1308_v60, -inf  ;;  %v1309_v62 = vadd.f32 %v1307_v58, %v6308_v57 }
 0x21b   : > { %1312 = vmax.xlane.f32.xlu1 %v1311_v61 }
 0x21c   : > { %v1315_v63 = vsel %vm1314_vm3, %v1309_v62, -inf }
 0x21f   : > { %1316 = vmax.xlane.f32.xlu1 %v1315_v63 }
 0x288   : > { %v1430_v0 = vpop.f32.mrb[8].mxu0 }
 0x289   : > { %v1437_v1 = vmul.f32 0.25, %v1430_v0  ;;  %v5389_v2 = vpop.f32.mrb[9].mxu0 }
 0x28a   : > { %v1433_v3 = vpop.f32.mrb[10].mxu0 }
 0x28b   : > { %v1438_v5 = vmul.f32 0.25, %v1433_v3  ;;  %v5390_v6 = vpop.f32.mrb[11].mxu0  ;;  %v1439_v7 = vadd.f32 %v1437_v1, %v6303_v53  ;;  %v5765_v1 = vld [vmem:[%s6146_s0] sm:$0xff]  }
 0x28d   : > { %v1441_v8 = vsel %vm1310_vm2, %v1439_v7, -inf  ;;  %v1440_v9 = vadd.f32 %v1438_v5, %v6308_v57 }
 0x28e   : > { %1442 = vmax.xlane.f32.xlu0 %v1441_v8 }
 0x28f   : > { %v1444_v10 = vsel %vm1314_vm3, %v1440_v9, -inf }
 0x290   : > { %1445 = vmax.xlane.f32.xlu1 %v1444_v10 }
 0x2a4   : > { %1617 = vrot.lane.b32.xlu0 %v6263_v39, %s5989_s2 }
 0x2a8   : > { %v1313_v11 = vpop.xlane.xlu1 %1312 }
 0x2a9   : > { %v1318_v12 = vsub.f32 %v1308_v60, %v1313_v11 }
 0x2ab   : > { %v1320_v13 = vmul.f32 1.442695, %v1318_v12 }
 0x2ac   : > { %v1317_v14 = vpop.xlane.xlu1 %1316 }
 0x2ad   : > { %5835 = vpow2.f32 %v1320_v13  ;;  %v1319_v15 = vsub.f32 %v1309_v62, %v1317_v14 }
 0x2af   : > { %v1322_v16 = vmul.f32 1.442695, %v1319_v15 }
 0x2b1   : > { %5837 = vpow2.f32 %v1322_v16 }
 0x2b7   : > { %v5836_v31 = vpop.eup %5835 }
 0x2b8   : > { %v1324_v32 = vsel %vm1310_vm2, %v5836_v31, 0.0 }
 0x2b9   : > { %1325 = vadd.xlane.f32.xlu1 %v1324_v32 }
 0x2bb   : > { %v5838_v33 = vpop.eup %5837 }
 0x2bc   : > { %v1327_v34 = vsel %vm1314_vm3, %v5838_v33, 0.0 }
 0x2bd   : > { %1328 = vadd.xlane.f32.xlu1 %v1327_v34 }
 0x31b   : > { %v1443_v26 = vpop.xlane.xlu0 %1442 }
 0x31c   : > { %v1447_v36 = vsub.f32 %v1439_v7, %v1443_v26 }
 0x31d   : > { %v1446_v37 = vpop.xlane.xlu1 %1445 }
 0x31e   : > { %v1449_v40 = vmul.f32 1.442695, %v1447_v36  ;;  %v1448_v41 = vsub.f32 %v1440_v9, %v1446_v37 }
 0x31f   : > { %v1618_v11 = vpop.permute.xlu0 %1617 }
 0x320   : > { %5839 = vpow2.f32 %v1449_v40  ;;  %v1451_v42 = vmul.f32 1.442695, %v1448_v41  ;;  %v1623_v15 = vsel %vm1258_vm1, %v1618_v11, 0 }
 0x322   : > { %5841 = vpow2.f32 %v1451_v42 }
 0x32a   : > { %v5840_v43 = vpop.eup %5839 }
 0x32b   : > { %v1453_v44 = vsel %vm1310_vm2, %v5840_v43, 0.0 }
 0x32c   : > { %v5842_v45 = vpop.eup %5841  ;;  %1454 = vadd.xlane.f32.xlu1 %v1453_v44 }
 0x32d   : > { %v1456_v46 = vsel %vm1314_vm3, %v5842_v45, 0.0 }
 0x330   : > { %1457 = vadd.xlane.f32.xlu1 %v1456_v46 }
 0x341   : > { %1465 = vrot.lane.b32.xlu1 %v6322_v30, %s5988_s12 }
 0x345   : > { %1615 = vrot.lane.b32.xlu1 %v6261_v38, %s5989_s2 }
 0x346   : > { %v1326_v47 = vpop.xlane.xlu1 %1325 }
 0x347   : > { %5843 = vrcp.f32 %v1326_v47 }
 0x34a   : > { %v1329_v48 = vpop.xlane.xlu1 %1328 }
 0x34b   : > { %5845 = vrcp.f32 %v1329_v48 }
 0x351   : > { %v5844_v49 = vpop.eup %5843 }
 0x352   : > { %v1332_v51 = vmul.f32 %v5844_v49, %v5836_v31 }
 0x355   : > { %v5846_v50 = vpop.eup %5845 }
 0x356   : > { %v1333_v52 = vmul.f32 %v5846_v50, %v5838_v33 }
 0x358   : > { %v1334_v54 = vpack.c.bf16 %v1333_v52, %v1332_v51 }
 0x35a   : > { %5382 = vmatmul.mubr.msk.bf16.vlgmr.msra.gmra.mrb[4].mxu1 %vm1310_vm2, %v1334_v54 }
 0x35b   : > { %5393 = vmatprep.mubr.msk.bf16.mxu1 %vm5987_vm0, %v5986_v22 }
 0x3b9   : > { %v1455_v56 = vpop.xlane.xlu1 %1454 }
 0x3ba   : > { %5847 = vrcp.f32 %v1455_v56 }
 0x3bd   : > { %v1458_v58 = vpop.xlane.xlu1 %1457 }
 0x3be   : > { %5849 = vrcp.f32 %v1458_v58 }
 0x3c1   : > { %v1466_v59 = vpop.permute.xlu1 %1465 }
 0x3c2   : > { %v1471_v60 = vsel %vm1338_vm4, %v1466_v59, 0 }
 0x3c3   : > { %5392 = vmatpush3.bf16.msra.mxu1 %v1471_v60 }
 0x3c4   : > { %5403 = vmatprep.subr.bf16.mxu1 %v5986_v22  ;;  %v5848_v61 = vpop.eup %5847 }
 0x3c5   : > { %v1461_v63 = vmul.f32 %v5848_v61, %v5840_v43  ;;  %v1616_v16 = vpop.permute.xlu1 %1615 }
 0x3c8   : > { %v5850_v62 = vpop.eup %5849 }
 0x3c9   : > { %v1462_v0 = vmul.f32 %v5850_v62, %v5842_v45 }
 0x3cb   : > { %v1463_v2 = vpack.c.bf16 %v1462_v0, %v1461_v63 }
 0x3cd   : > { %5394 = vmatmul.mubr.msk.bf16.vlgmr.msra.gmra.mrb[8].mxu1 %vm1310_vm2, %v1463_v2 }
 0x3ce   : > { %5404 = vmatpush3.bf16.msra.mxu1 %v5765_v1  ;;  %5405 = vmatprep.mubr.msk.bf16.mxu1 %vm5987_vm0, %v5986_v22 }
 0x3cf   : > { %5415 = vmatprep.subr.bf16.mxu1 %v5986_v22 }
 0x42d   : > { %v1376_v3 = vpop.f32.mrb[4].mxu1 }
 0x42e   : > { %v5383_v5 = vpop.f32.mrb[5].mxu1 }
 0x42f   : > { %v1379_v6 = vpop.f32.mrb[6].mxu1  ;;  %v5767_v5 = vld [vmem:[%s6146_s0 + $0x10] sm:$0xff]  }
 0x430   : > { %v1383_v7 = vpack.c.bf16 %v1379_v6, %v1376_v3  ;;  %v5384_v8 = vpop.f32.mrb[7].mxu1 }
 0x432   : > { %5406 = vmatmul.mubr.msk.bf16.vlgmr.msra.gmra.mrb[12].mxu1 %vm1258_vm1, %v1383_v7 }
 0x433   : > { %5417 = vmatprep.mubr.msk.bf16.mxu1 %vm5987_vm0, %v5986_v22 }
 0x4a0   : > { %v1507_v9 = vpop.f32.mrb[8].mxu1 }
 0x4a1   : > { %v5395_v10 = vpop.f32.mrb[9].mxu1 }
 0x4a2   : > { %v1510_v12 = vpop.f32.mrb[10].mxu1 }
 0x4a3   : > { %v1514_v13 = vpack.c.bf16 %v1510_v12, %v1507_v9  ;;  %v5396_v14 = vpop.f32.mrb[11].mxu1 }
 0x4a5   : > { %5400 = vmatmul.mubr.msk.bf16.vlgmr.msra.gmra.mrb[12].mxu0 %vm1258_vm1, %v1514_v13 }
 0x4a6   : > { %5410 = vmatpush3.bf16.xpose.msra.mxu0 %v1623_v15  ;;  %5411 = vmatprep.mubr.msk.bf16.mxu0 %vm5987_vm0, %v5986_v22 }
 0x4a7   : > { %5421 = vmatprep.subr.bf16.mxu0 %v5986_v22 }
 0x4ad   : > { %5412 = vmatmul.mubr.msk.bf16.vlgmr.msra.gmra.mrb[16].mxu0 %vm1258_vm1, %v1616_v16 }
 0x4ae   : > { %5423 = vmatprep.mubr.msk.bf16.mxu0 %vm5987_vm0, %v5986_v22  ;;  %5422 = vmatpush3.bf16.msra.mxu0 %v5767_v5 }
 0x4af   : > { %5433 = vmatprep.subr.bf16.mxu0 %v5986_v22 }
 0x505   : > { %v1608_v17 = vpop.f32.mrb[12].mxu1 }
 0x506   : > { %v5407_v18 = vpop.f32.mrb[13].mxu1 }
 0x507   : > { %v1611_v19 = vpop.f32.mrb[14].mxu1 }
 0x508   : > { %v5408_v20 = vpop.f32.mrb[15].mxu1 }
 0x578   : > { %v1558_v21 = vpop.f32.mrb[12].mxu0 }
 0x579   : > { %v6358_v23 = vadd.f32 %v1608_v17, %v1558_v21  ;;  %v5401_v28 = vpop.f32.mrb[13].mxu0 }
 0x57a   : > { %v1561_v29 = vpop.f32.mrb[14].mxu0 }
 0x57b   : > { %v6360_v31 = vadd.f32 %v1611_v19, %v1561_v29  ;;  %v5402_v32 = vpop.f32.mrb[15].mxu0 }
 0x580   : > { %v1659_v33 = vpop.f32.mrb[16].mxu0 }
 0x581   : > { %v1666_v34 = vmul.f32 0.25, %v1659_v33  ;;  %v5413_v35 = vpop.f32.mrb[17].mxu0 }
 0x582   : > { %v1662_v26 = vpop.f32.mrb[18].mxu0 }
 0x583   : > { %v1667_v36 = vmul.f32 0.25, %v1662_v26  ;;  %v5414_v37 = vpop.f32.mrb[19].mxu0  ;;  %v1668_v40 = vadd.f32 %v1666_v34, %v6303_v53 }
 0x585   : > { %v1670_v41 = vsel %vm1310_vm2, %v1668_v40, -inf  ;;  %v1669_v42 = vadd.f32 %v1667_v36, %v6308_v57 }
 0x586   : > { %1671 = vmax.xlane.f32.xlu1 %v1670_v41 }
 0x587   : > { %v1673_v43 = vsel %vm1314_vm3, %v1669_v42, -inf }
 0x588   : > { %1674 = vmax.xlane.f32.xlu0 %v1673_v43 }
 0x59e   : > { %1693 = vrot.lane.b32.xlu0 %v6322_v30, %s5989_s2 }
 0x613   : > { %v1672_v44 = vpop.xlane.xlu1 %1671 }
 0x614   : > { %v1676_v45 = vsub.f32 %v1668_v40, %v1672_v44 }
 0x615   : > { %v1675_v46 = vpop.xlane.xlu0 %1674 }
 0x616   : > { %v1678_v47 = vmul.f32 1.442695, %v1676_v45  ;;  %v1677_v48 = vsub.f32 %v1669_v42, %v1675_v46 }
 0x618   : > { %5851 = vpow2.f32 %v1678_v47  ;;  %v1680_v49 = vmul.f32 1.442695, %v1677_v48 }
 0x619   : > { %v1694_v50 = vpop.permute.xlu0 %1693 }
 0x61a   : > { %5853 = vpow2.f32 %v1680_v49  ;;  %v1699_v51 = vsel %vm1338_vm4, %v1694_v50, 0 }
 0x61b   : > { %5416 = vmatpush3.bf16.msra.mxu1 %v1699_v51 }
 0x61c   : > { %5427 = vmatprep.subr.bf16.mxu1 %v5986_v22 }
 0x622   : > { %v5852_v52 = vpop.eup %5851 }
 0x623   : > { %v1682_v54 = vsel %vm1310_vm2, %v5852_v52, 0.0 }
 0x624   : > { %v5854_v55 = vpop.eup %5853  ;;  %1683 = vadd.xlane.f32.xlu1 %v1682_v54 }
 0x625   : > { %v1685_v56 = vsel %vm1314_vm3, %v5854_v55, 0.0 }
 0x628   : > { %1686 = vadd.xlane.f32.xlu1 %v1685_v56 }
 0x639   : > { %1797 = vrot.lane.b32.xlu1 %v6263_v39, %s5990_s3 }
 0x63d   : > { %1795 = vrot.lane.b32.xlu1 %v6261_v38, %s5990_s3 }
 0x6b1   : > { %v1684_v58 = vpop.xlane.xlu1 %1683 }
 0x6b2   : > { %5855 = vrcp.f32 %v1684_v58  ;;  %v5768_v58 = vld [vmem:[%s6146_s0 + $0x18] sm:$0xff]  }
 0x6b5   : > { %v1687_v59 = vpop.xlane.xlu1 %1686 }
 0x6b6   : > { %5857 = vrcp.f32 %v1687_v59 }
 0x6b9   : > { %v1798_v0 = vpop.permute.xlu1 %1797 }
 0x6ba   : > { %v1803_v2 = vsel %vm1258_vm1, %v1798_v0, 0 }
 0x6bc   : > { %v5856_v60 = vpop.eup %5855 }
 0x6bd   : > { %v1690_v62 = vmul.f32 %v5856_v60, %v5852_v52  ;;  %v1796_v3 = vpop.permute.xlu1 %1795 }
 0x6c0   : > { %v5858_v61 = vpop.eup %5857 }
 0x6c1   : > { %v1691_v63 = vmul.f32 %v5858_v61, %v5854_v55 }
 0x6c3   : > { %v1692_v1 = vpack.c.bf16 %v1691_v63, %v1690_v62 }
 0x6c5   : > { %5418 = vmatmul.mubr.msk.bf16.vlgmr.msra.gmra.mrb[16].mxu1 %vm1310_vm2, %v1692_v1 }
 0x6c6   : > { %5428 = vmatpush3.bf16.xpose.msra.mxu1 %v1803_v2  ;;  %5429 = vmatprep.mubr.msk.bf16.mxu1 %vm5987_vm0, %v5986_v22 }
 0x6c7   : > { %5439 = vmatprep.subr.bf16.mxu1 %v5986_v22 }
 0x6cd   : > { %5430 = vmatmul.mubr.msk.bf16.vlgmr.msra.gmra.mrb[20].mxu1 %vm1258_vm1, %v1796_v3 }
 0x6ce   : > { %5441 = vmatprep.mubr.msk.bf16.mxu1 %vm5987_vm0, %v5986_v22  ;;  %5440 = vmatpush3.bf16.msra.mxu1 %v5768_v58 }
 0x6cf   : > { %5451 = vmatprep.subr.bf16.mxu1 %v5986_v22 }
 0x798   : > { %v1735_v6 = vpop.f32.mrb[16].mxu1 }
 0x799   : > { %v5419_v7 = vpop.f32.mrb[17].mxu1 }
 0x79a   : > { %v1738_v8 = vpop.f32.mrb[18].mxu1 }
 0x79b   : > { %v1742_v9 = vpack.c.bf16 %v1738_v8, %v1735_v6  ;;  %v5420_v10 = vpop.f32.mrb[19].mxu1 }
 0x79d   : > { %5424 = vmatmul.mubr.msk.bf16.vlgmr.msra.gmra.mrb[20].mxu0 %vm1258_vm1, %v1742_v9 }
 0x79e   : > { %5435 = vmatprep.mubr.msk.bf16.mxu0 %vm5987_vm0, %v5986_v22 }
 0x7a0   : > { %v1839_v11 = vpop.f32.mrb[20].mxu1 }
 0x7a1   : > { %v1846_v12 = vmul.f32 0.25, %v1839_v11  ;;  %v5431_v13 = vpop.f32.mrb[21].mxu1 }
 0x7a2   : > { %v1842_v14 = vpop.f32.mrb[22].mxu1 }
 0x7a3   : > { %v1847_v15 = vmul.f32 0.25, %v1842_v14  ;;  %v5432_v16 = vpop.f32.mrb[23].mxu1  ;;  %v1848_v17 = vadd.f32 %v1846_v12, %v6303_v53 }
 0x7a5   : > { %v1850_v18 = vsel %vm1310_vm2, %v1848_v17, -inf  ;;  %v1849_v19 = vadd.f32 %v1847_v15, %v6308_v57 }
 0x7a6   : > { %1851 = vmax.xlane.f32.xlu0 %v1850_v18 }
 0x7a7   : > { %v1853_v20 = vsel %vm1314_vm3, %v1849_v19, -inf }
 0x7a8   : > { %1854 = vmax.xlane.f32.xlu1 %v1853_v20 }
 0x7b9   : > { %1873 = vrot.lane.b32.xlu1 %v6322_v30, %s5990_s3 }
 0x7bd   : > { %1975 = vrot.lane.b32.xlu1 %v6261_v38, %s5991_s26 }
 0x833   : > { %v1852_v21 = vpop.xlane.xlu0 %1851 }
 0x834   : > { %v1856_v28 = vsub.f32 %v1848_v17, %v1852_v21 }
 0x835   : > { %v1855_v29 = vpop.xlane.xlu1 %1854 }
 0x836   : > { %v1858_v32 = vmul.f32 1.442695, %v1856_v28  ;;  %v1857_v33 = vsub.f32 %v1849_v19, %v1855_v29 }
 0x838   : > { %5859 = vpow2.f32 %v1858_v32  ;;  %v1860_v34 = vmul.f32 1.442695, %v1857_v33 }
 0x839   : > { %v1874_v35 = vpop.permute.xlu1 %1873 }
 0x83a   : > { %5861 = vpow2.f32 %v1860_v34  ;;  %v1879_v26 = vsel %vm1338_vm4, %v1874_v35, 0 }
 0x83b   : > { %5434 = vmatpush3.bf16.msra.mxu0 %v1879_v26 }
 0x83c   : > { %5445 = vmatprep.subr.bf16.mxu0 %v5986_v22 }
 0x842   : > { %v5860_v36 = vpop.eup %5859 }
 0x843   : > { %v1862_v37 = vsel %vm1310_vm2, %v5860_v36, 0.0 }
 0x844   : > { %v5862_v40 = vpop.eup %5861  ;;  %1863 = vadd.xlane.f32.xlu0 %v1862_v37 }
 0x845   : > { %v1865_v41 = vsel %vm1314_vm3, %v5862_v40, 0.0 }
 0x848   : > { %1866 = vadd.xlane.f32.xlu0 %v1865_v41 }
 0x85e   : > { %1977 = vrot.lane.b32.xlu0 %v6263_v39, %s5991_s26 }
 0x870   : > { %v1786_v42 = vpop.f32.mrb[20].mxu0 }
 0x871   : > { %v6404_v43 = vadd.f32 %v1786_v42, %v6358_v23  ;;  %v5425_v44 = vpop.f32.mrb[21].mxu0 }
 0x872   : > { %v1789_v45 = vpop.f32.mrb[22].mxu0 }
 0x873   : > { %v6407_v46 = vadd.f32 %v1789_v45, %v6360_v31  ;;  %v5426_v47 = vpop.f32.mrb[23].mxu0  ;;  %v1976_v31 = vpop.permute.xlu1 %1975 }
 0x8d1   : > { %v1864_v48 = vpop.xlane.xlu0 %1863 }
 0x8d2   : > { %5863 = vrcp.f32 %v1864_v48  ;;  %v5769_v48 = vld [vmem:[%s6146_s0 + $0x20] sm:$0xff]  }
 0x8d5   : > { %v1867_v49 = vpop.xlane.xlu0 %1866 }
 0x8d6   : > { %5865 = vrcp.f32 %v1867_v49 }
 0x8d9   : > { %v1978_v55 = vpop.permute.xlu0 %1977 }
 0x8da   : > { %v1983_v23 = vsel %vm1258_vm1, %v1978_v55, 0 }
 0x8dc   : > { %v5864_v50 = vpop.eup %5863 }
 0x8dd   : > { %v1870_v52 = vmul.f32 %v5864_v50, %v5860_v36 }
 0x8e0   : > { %v5866_v51 = vpop.eup %5865 }
 0x8e1   : > { %v1871_v54 = vmul.f32 %v5866_v51, %v5862_v40 }
 0x8e3   : > { %v1872_v56 = vpack.c.bf16 %v1871_v54, %v1870_v52 }
 0x8e5   : > { %5436 = vmatmul.mubr.msk.bf16.vlgmr.msra.gmra.mrb[24].mxu0 %vm1310_vm2, %v1872_v56 }
 0x8e6   : > { %5446 = vmatpush3.bf16.xpose.msra.mxu0 %v1983_v23  ;;  %5447 = vmatprep.mubr.msk.bf16.mxu0 %vm5987_vm0, %v5986_v22 }
 0x8e7   : > { %5457 = vmatprep.subr.bf16.mxu0 %v5986_v22 }
 0x8ed   : > { %5448 = vmatmul.mubr.msk.bf16.vlgmr.msra.gmra.mrb[28].mxu0 %vm1258_vm1, %v1976_v31 }
 0x8ee   : > { %5459 = vmatprep.mubr.msk.bf16.mxu0 %vm5987_vm0, %v5986_v22  ;;  %5458 = vmatpush3.bf16.msra.mxu0 %v5769_v48 }
 0x8ef   : > { %5469 = vmatprep.subr.bf16.mxu0 %v5986_v22 }
 0x9b8   : > { %v1915_v59 = vpop.f32.mrb[24].mxu0 }
 0x9b9   : > { %v5437_v60 = vpop.f32.mrb[25].mxu0 }
 0x9ba   : > { %v1918_v61 = vpop.f32.mrb[26].mxu0 }
 0x9bb   : > { %v1922_v62 = vpack.c.bf16 %v1918_v61, %v1915_v59  ;;  %v5438_v63 = vpop.f32.mrb[27].mxu0 }
 0x9bd   : > { %5442 = vmatmul.mubr.msk.bf16.vlgmr.msra.gmra.mrb[24].mxu1 %vm1258_vm1, %v1922_v62 }
 0x9be   : > { %5453 = vmatprep.mubr.msk.bf16.mxu1 %vm5987_vm0, %v5986_v22 }
 0x9c0   : > { %v2019_v0 = vpop.f32.mrb[28].mxu0 }
 0x9c1   : > { %v2026_v1 = vmul.f32 0.25, %v2019_v0  ;;  %v5449_v2 = vpop.f32.mrb[29].mxu0 }
 0x9c2   : > { %v2022_v3 = vpop.f32.mrb[30].mxu0 }
 0x9c3   : > { %v2027_v5 = vmul.f32 0.25, %v2022_v3  ;;  %v5450_v6 = vpop.f32.mrb[31].mxu0  ;;  %v2028_v7 = vadd.f32 %v2026_v1, %v6303_v53 }
 0x9c5   : > { %v2030_v8 = vsel %vm1310_vm2, %v2028_v7, -inf  ;;  %v2029_v9 = vadd.f32 %v2027_v5, %v6308_v57 }
 0x9c6   : > { %2031 = vmax.xlane.f32.xlu1 %v2030_v8 }
 0x9c7   : > { %v2033_v10 = vsel %vm1314_vm3, %v2029_v9, -inf }
 0x9c8   : > { %2034 = vmax.xlane.f32.xlu0 %v2033_v10 }
 0xa53   : > { %v2032_v11 = vpop.xlane.xlu1 %2031 }
 0xa54   : > { %v2036_v12 = vsub.f32 %v2028_v7, %v2032_v11 }
 0xa55   : > { %v2035_v13 = vpop.xlane.xlu0 %2034 }
 0xa56   : > { %v2038_v14 = vmul.f32 1.442695, %v2036_v12  ;;  %v2037_v15 = vsub.f32 %v2029_v9, %v2035_v13 }
 0xa58   : > { %5867 = vpow2.f32 %v2038_v14  ;;  %v2040_v16 = vmul.f32 1.442695, %v2037_v15 }
 0xa5a   : > { %5869 = vpow2.f32 %v2040_v16 }
 0xa62   : > { %v5868_v17 = vpop.eup %5867 }
 0xa63   : > { %v2042_v18 = vsel %vm1310_vm2, %v5868_v17, 0.0 }
 0xa64   : > { %v5870_v19 = vpop.eup %5869  ;;  %2043 = vadd.xlane.f32.xlu0 %v2042_v18 }
 0xa65   : > { %v2045_v20 = vsel %vm1314_vm3, %v5870_v19, 0.0 }
 0xa66   : > { %2046 = vadd.xlane.f32.xlu1 %v2045_v20 }
 0xa77   : > { %2157 = vrot.lane.b32.xlu1 %v6263_v39, %s5992_s28 }
 0xa7a   : > { %2053 = vrot.lane.b32.xlu0 %v6322_v30, %s5991_s26 }
 0xa7b   : > { %2155 = vrot.lane.b32.xlu1 %v6261_v38, %s5992_s28 }
 0xa90   : > { %v1966_v21 = vpop.f32.mrb[24].mxu1 }
 0xa91   : > { %v6435_v28 = vadd.f32 %v1966_v21, %v6404_v43  ;;  %v5443_v29 = vpop.f32.mrb[25].mxu1 }
 0xa92   : > { %v1969_v32 = vpop.f32.mrb[26].mxu1 }
 0xa93   : > { %v6438_v33 = vadd.f32 %v1969_v32, %v6407_v46  ;;  %v5444_v34 = vpop.f32.mrb[27].mxu1 }
 0xaf1   : > { %v2044_v35 = vpop.xlane.xlu0 %2043 }
 0xaf2   : > { %5871 = vrcp.f32 %v2044_v35 }
 0xaf3   : > { %v2047_v26 = vpop.xlane.xlu1 %2046 }
 0xaf4   : > { %5873 = vrcp.f32 %v2047_v26 }
 0xaf5   : > { %v2054_v36 = vpop.permute.xlu0 %2053 }
 0xaf6   : > { %v2059_v37 = vsel %vm1338_vm4, %v2054_v36, 0  ;;  %v5770_v36 = vld [vmem:[%s6146_s0 + $0x28] sm:$0xff]  }
 0xaf7   : > { %5452 = vmatpush3.bf16.msra.mxu1 %v2059_v37  ;;  %v2158_v44 = vpop.permute.xlu1 %2157 }
 0xaf8   : > { %5463 = vmatprep.subr.bf16.mxu1 %v5986_v22  ;;  %v2163_v46 = vsel %vm1258_vm1, %v2158_v44, 0 }
 0xafb   : > { %v2156_v47 = vpop.permute.xlu1 %2155 }
 0xafc   : > { %v5872_v40 = vpop.eup %5871 }
 0xafd   : > { %v2050_v42 = vmul.f32 %v5872_v40, %v5868_v17 }
 0xafe   : > { %v5874_v41 = vpop.eup %5873 }
 0xaff   : > { %v2051_v43 = vmul.f32 %v5874_v41, %v5870_v19 }
 0xb01   : > { %v2052_v45 = vpack.c.bf16 %v2051_v43, %v2050_v42 }
 0xb03   : > { %5454 = vmatmul.mubr.msk.bf16.vlgmr.msra.gmra.mrb[28].mxu1 %vm1310_vm2, %v2052_v45 }
 0xb04   : > { %5464 = vmatpush3.bf16.xpose.msra.mxu1 %v2163_v46  ;;  %5465 = vmatprep.mubr.msk.bf16.mxu1 %vm5987_vm0, %v5986_v22 }
 0xb05   : > { %5475 = vmatprep.subr.bf16.mxu1 %v5986_v22 }
 0xb0b   : > { %5466 = vmatmul.mubr.msk.bf16.vlgmr.msra.gmra.mrb[32].mxu1 %vm1258_vm1, %v2156_v47 }
 0xb0c   : > { %5477 = vmatprep.mubr.msk.bf16.mxu1 %vm5987_vm0, %v5986_v22  ;;  %5476 = vmatpush3.bf16.msra.mxu1 %v5770_v36 }
 0xb0d   : > { %5487 = vmatprep.subr.bf16.mxu1 %v5986_v22 }
 0xbd6   : > { %v2095_v49 = vpop.f32.mrb[28].mxu1 }
 0xbd7   : > { %v5455_v50 = vpop.f32.mrb[29].mxu1 }
 0xbd8   : > { %v2098_v51 = vpop.f32.mrb[30].mxu1 }
 0xbd9   : > { %v2102_v52 = vpack.c.bf16 %v2098_v51, %v2095_v49  ;;  %v5456_v54 = vpop.f32.mrb[31].mxu1 }
 0xbdb   : > { %5460 = vmatmul.mubr.msk.bf16.vlgmr.msra.gmra.mrb[32].mxu0 %vm1258_vm1, %v2102_v52 }
 0xbdc   : > { %5471 = vmatprep.mubr.msk.bf16.mxu0 %vm5987_vm0, %v5986_v22 }
 0xbde   : > { %v2199_v55 = vpop.f32.mrb[32].mxu1 }
 0xbdf   : > { %v2206_v56 = vmul.f32 0.25, %v2199_v55  ;;  %v5467_v23 = vpop.f32.mrb[33].mxu1 }
 0xbe0   : > { %v2202_v31 = vpop.f32.mrb[34].mxu1 }
 0xbe1   : > { %v2207_v58 = vmul.f32 0.25, %v2202_v31  ;;  %v5468_v59 = vpop.f32.mrb[35].mxu1  ;;  %v2208_v60 = vadd.f32 %v2206_v56, %v6303_v53 }
 0xbe3   : > { %v2210_v61 = vsel %vm1310_vm2, %v2208_v60, -inf  ;;  %v2209_v62 = vadd.f32 %v2207_v58, %v6308_v57 }
 0xbe4   : > { %2211 = vmax.xlane.f32.xlu0 %v2210_v61 }
 0xbe5   : > { %v2213_v63 = vsel %vm1314_vm3, %v2209_v62, -inf }
 0xbe6   : > { %2214 = vmax.xlane.f32.xlu1 %v2213_v63 }
 0xbf7   : > { %2233 = vrot.lane.b32.xlu1 %v6322_v30, %s5992_s28 }
 0xbfb   : > { %2335 = vrot.lane.b32.xlu1 %v6261_v38, %s5993_s24 }
 0xc71   : > { %v2212_v0 = vpop.xlane.xlu0 %2211 }
 0xc72   : > { %v2216_v1 = vsub.f32 %v2208_v60, %v2212_v0 }
 0xc73   : > { %v2215_v2 = vpop.xlane.xlu1 %2214 }
 0xc74   : > { %v2218_v3 = vmul.f32 1.442695, %v2216_v1  ;;  %v2217_v5 = vsub.f32 %v2209_v62, %v2215_v2 }
 0xc76   : > { %5875 = vpow2.f32 %v2218_v3  ;;  %v2220_v6 = vmul.f32 1.442695, %v2217_v5 }
 0xc77   : > { %v2234_v7 = vpop.permute.xlu1 %2233 }
 0xc78   : > { %5877 = vpow2.f32 %v2220_v6  ;;  %v2239_v8 = vsel %vm1338_vm4, %v2234_v7, 0 }
 0xc79   : > { %5470 = vmatpush3.bf16.msra.mxu0 %v2239_v8 }
 0xc7a   : > { %5481 = vmatprep.subr.bf16.mxu0 %v5986_v22 }
 0xc80   : > { %v5876_v9 = vpop.eup %5875 }
 0xc81   : > { %v2222_v10 = vsel %vm1310_vm2, %v5876_v9, 0.0 }
 0xc82   : > { %v5878_v11 = vpop.eup %5877  ;;  %2223 = vadd.xlane.f32.xlu0 %v2222_v10 }
 0xc83   : > { %v2225_v12 = vsel %vm1314_vm3, %v5878_v11, 0.0 }
 0xc86   : > { %2226 = vadd.xlane.f32.xlu0 %v2225_v12 }
 0xc9c   : > { %2337 = vrot.lane.b32.xlu0 %v6263_v39, %s5993_s24 }
 0xcae   : > { %v2146_v13 = vpop.f32.mrb[32].mxu0 }
 0xcaf   : > { %v6470_v14 = vadd.f32 %v2146_v13, %v6435_v28  ;;  %v5461_v15 = vpop.f32.mrb[33].mxu0 }
 0xcb0   : > { %v2149_v16 = vpop.f32.mrb[34].mxu0 }
 0xcb1   : > { %v6473_v17 = vadd.f32 %v2149_v16, %v6438_v33  ;;  %v5462_v18 = vpop.f32.mrb[35].mxu0  ;;  %v2336_v33 = vpop.permute.xlu1 %2335 }
 0xd0f   : > { %v2224_v19 = vpop.xlane.xlu0 %2223 }
 0xd10   : > { %5879 = vrcp.f32 %v2224_v19 }
 0xd13   : > { %v2227_v20 = vpop.xlane.xlu0 %2226 }
 0xd14   : > { %5881 = vrcp.f32 %v2227_v20 }
 0xd17   : > { %v2338_v35 = vpop.permute.xlu0 %2337 }
 0xd18   : > { %v2343_v28 = vsel %vm1258_vm1, %v2338_v35, 0 }
 0xd1a   : > { %v5880_v21 = vpop.eup %5879 }
 0xd1b   : > { %v2230_v32 = vmul.f32 %v5880_v21, %v5876_v9 }
 0xd1e   : > { %v5882_v29 = vpop.eup %5881 }
 0xd1f   : > { %v2231_v34 = vmul.f32 %v5882_v29, %v5878_v11 }
 0xd21   : > { %v2232_v26 = vpack.c.bf16 %v2231_v34, %v2230_v32 }
 0xd23   : > { %5472 = vmatmul.mubr.msk.bf16.vlgmr.msra.gmra.mrb[36].mxu0 %vm1310_vm2, %v2232_v26 }
 0xd24   : > { %5482 = vmatpush3.bf16.xpose.msra.mxu0 %v2343_v28  ;;  %5483 = vmatprep.mubr.msk.bf16.mxu0 %vm5987_vm0, %v5986_v22 }
 0xd25   : > { %5493 = vmatprep.subr.bf16.mxu0 %v5986_v22 }
 0xd2b   : > { %5484 = vmatmul.mubr.msk.bf16.vlgmr.msra.gmra.mrb[40].mxu0 %vm1258_vm1, %v2336_v33 }
 0xd2c   : > { %5495 = vmatprep.mubr.msk.bf16.mxu0 %vm5987_vm0, %v5986_v22 }
 0xdf6   : > { %v2275_v37 = vpop.f32.mrb[36].mxu0 }
 0xdf7   : > { %v5473_v40 = vpop.f32.mrb[37].mxu0 }
 0xdf8   : > { %v2278_v41 = vpop.f32.mrb[38].mxu0 }
 0xdf9   : > { %v2282_v42 = vpack.c.bf16 %v2278_v41, %v2275_v37  ;;  %v5474_v43 = vpop.f32.mrb[39].mxu0 }
 0xdfb   : > { %5478 = vmatmul.mubr.msk.bf16.vlgmr.msra.gmra.mrb[36].mxu1 %vm1258_vm1, %v2282_v42 }
 0xdfc   : > { %5489 = vmatprep.mubr.msk.bf16.mxu1 %vm5987_vm0, %v5986_v22 }
 0xdfe   : > { %v2379_v44 = vpop.f32.mrb[40].mxu0 }
 0xdff   : > { %v2386_v45 = vmul.f32 0.25, %v2379_v44  ;;  %v5485_v46 = vpop.f32.mrb[41].mxu0 }
 0xe00   : > { %v2382_v47 = vpop.f32.mrb[42].mxu0 }
 0xe01   : > { %v2387_v48 = vmul.f32 0.25, %v2382_v47  ;;  %v5486_v49 = vpop.f32.mrb[43].mxu0  ;;  %v2388_v50 = vadd.f32 %v2386_v45, %v6303_v53 }
 0xe03   : > { %v2390_v51 = vsel %vm1310_vm2, %v2388_v50, -inf  ;;  %v2389_v52 = vadd.f32 %v2387_v48, %v6308_v57 }
 0xe04   : > { %2391 = vmax.xlane.f32.xlu1 %v2390_v51  ;;  %v5772_v51 = vld [vmem:[%s6146_s0 + $0x38] sm:$0xff]  }
 0xe05   : > { %v2393_v54 = vsel %vm1314_vm3, %v2389_v52, -inf }
 0xe06   : > { %2394 = vmax.xlane.f32.xlu0 %v2393_v54 }
 0xe91   : > { %v2392_v55 = vpop.xlane.xlu1 %2391 }
 0xe92   : > { %v2396_v56 = vsub.f32 %v2388_v50, %v2392_v55 }
 0xe93   : > { %v2395_v23 = vpop.xlane.xlu0 %2394 }
 0xe94   : > { %v2398_v31 = vmul.f32 1.442695, %v2396_v56  ;;  %v2397_v58 = vsub.f32 %v2389_v52, %v2395_v23 }
 0xe96   : > { %5883 = vpow2.f32 %v2398_v31  ;;  %v2400_v59 = vmul.f32 1.442695, %v2397_v58 }
 0xe98   : > { %5885 = vpow2.f32 %v2400_v59 }
 0xea0   : > { %v5884_v60 = vpop.eup %5883 }
 0xea1   : > { %v2402_v61 = vsel %vm1310_vm2, %v5884_v60, 0.0 }
 0xea2   : > { %v5886_v62 = vpop.eup %5885  ;;  %2403 = vadd.xlane.f32.xlu0 %v2402_v61 }
 0xea3   : > { %v2405_v63 = vsel %vm1314_vm3, %v5886_v62, 0.0 }
 0xea4   : > { %2406 = vadd.xlane.f32.xlu1 %v2405_v63 }
 0xeb5   : > { %2517 = vrot.lane.b32.xlu1 %v6263_v39, %s5994_s18 }
 0xeb8   : > { %2413 = vrot.lane.b32.xlu0 %v6322_v30, %s5993_s24 }
 0xeb9   : > { %2515 = vrot.lane.b32.xlu1 %v6261_v38, %s5994_s18 }
 0xece   : > { %v2326_v0 = vpop.f32.mrb[36].mxu1 }
 0xecf   : > { %v6501_v1 = vadd.f32 %v2326_v0, %v6470_v14  ;;  %v5479_v2 = vpop.f32.mrb[37].mxu1 }
 0xed0   : > { %v2329_v3 = vpop.f32.mrb[38].mxu1 }
 0xed1   : > { %v6504_v5 = vadd.f32 %v2329_v3, %v6473_v17  ;;  %v5480_v6 = vpop.f32.mrb[39].mxu1  ;;  %v5771_v17 = vld [vmem:[%s6146_s0 + $0x30] sm:$0xff]   ;;  %s7060_s0 = sld [smem:[#allocation19_spill]] }
 0xed2   : > { %5494 = vmatpush3.bf16.msra.mxu0 %v5771_v17  ;;  %v5976_v17 = vld [vmem:[#allocation2] sm:$0xff] }
 0xed3   : > { %5505 = vmatprep.subr.bf16.mxu0 %v5986_v22 }
 0xed7   : > { %s7061_s1 = scalar_lea.vmem %s7060_s0, %s6122_s29 }
 0xf2f   : > { %v2404_v7 = vpop.xlane.xlu0 %2403 }
 0xf30   : > { %5887 = vrcp.f32 %v2404_v7 }
 0xf31   : > { %v2407_v8 = vpop.xlane.xlu1 %2406 }
 0xf32   : > { %5889 = vrcp.f32 %v2407_v8 }
 0xf33   : > { %v2414_v39 = vpop.permute.xlu0 %2413 }
 0xf34   : > { %v2419_v9 = vsel %vm1338_vm4, %v2414_v39, 0 }
 0xf35   : > { %5488 = vmatpush3.bf16.msra.mxu1 %v2419_v9  ;;  %v2518_v13 = vpop.permute.xlu1 %2517 }
 0xf36   : > { %5499 = vmatprep.subr.bf16.mxu1 %v5986_v22  ;;  %v2523_v15 = vsel %vm1258_vm1, %v2518_v13, 0  ;;  %v5975_v13 = vld [vmem:[#allocation2 + $0x8] sm:$0x3] }
 0xf39   : > { %v2516_v16 = vpop.permute.xlu1 %2515 }
 0xf3a   : > { %v5888_v38 = vpop.eup %5887 }
 0xf3b   : > { %v2410_v11 = vmul.f32 %v5888_v38, %v5884_v60 }
 0xf3c   : > { %v5890_v10 = vpop.eup %5889 }
 0xf3d   : > { %v2411_v12 = vmul.f32 %v5890_v10, %v5886_v62 }
 0xf3f   : > { %v2412_v14 = vpack.c.bf16 %v2411_v12, %v2410_v11  ;;  %v5106_v11 = vld [vmem:[%s7048_s27] ss:$0 sm:$0xff]  ;;  %s7053_s27 = scalar_lea.vmem %s6987_s11, %s6122_s29 }
 0xf41   : > { %5490 = vmatmul.mubr.msk.bf16.vlgmr.msra.gmra.mrb[40].mxu1 %vm1310_vm2, %v2412_v14 }
 0xf42   : > { %5500 = vmatpush3.bf16.xpose.msra.mxu1 %v2523_v15  ;;  %5501 = vmatprep.mubr.msk.bf16.mxu1 %vm5987_vm0, %v5986_v22 }
 0xf43   : > { %5511 = vmatprep.subr.bf16.mxu1 %v5986_v22 }
 0xf49   : > { %5502 = vmatmul.mubr.msk.bf16.vlgmr.msra.gmra.mrb[44].mxu1 %vm1258_vm1, %v2516_v16 }
 0xf4a   : > { %5513 = vmatprep.mubr.msk.bf16.mxu1 %vm5987_vm0, %v5986_v22  ;;  %5512 = vmatpush3.bf16.msra.mxu1 %v5772_v51 }
 0xf4b   : > { %5537 = vmatprep.subr.bf16.mxu1 %v5986_v22 }
0x1014   : > { %v2455_v18 = vpop.f32.mrb[40].mxu1 }
0x1015   : > { %v5491_v19 = vpop.f32.mrb[41].mxu1 }
0x1016   : > { %v2458_v20 = vpop.f32.mrb[42].mxu1  ;;  %v5773_v19 = vld [vmem:[%s6163_s19] sm:$0xff]  }
0x1017   : > { %v2462_v21 = vpack.c.bf16 %v2458_v20, %v2455_v18  ;;  %v5492_v29 = vpop.f32.mrb[43].mxu1 }
0x1019   : > { %5496 = vmatmul.mubr.msk.bf16.vlgmr.msra.gmra.mrb[44].mxu0 %vm1258_vm1, %v2462_v21 }
0x101a   : > { %5507 = vmatprep.mubr.msk.bf16.mxu0 %vm5987_vm0, %v5986_v22 }
0x101c   : > { %v2559_v32 = vpop.f32.mrb[44].mxu1 }
0x101d   : > { %v2566_v34 = vmul.f32 0.25, %v2559_v32  ;;  %v5503_v35 = vpop.f32.mrb[45].mxu1 }
0x101e   : > { %v2562_v26 = vpop.f32.mrb[46].mxu1 }
0x101f   : > { %v2567_v28 = vmul.f32 0.25, %v2562_v26  ;;  %v5504_v33 = vpop.f32.mrb[47].mxu1  ;;  %v2568_v36 = vadd.f32 %v2566_v34, %v6303_v53 }
0x1021   : > { %v2570_v37 = vsel %vm1310_vm2, %v2568_v36, -inf  ;;  %v2569_v40 = vadd.f32 %v2567_v28, %v6308_v57 }
0x1022   : > { %2571 = vmax.xlane.f32.xlu0 %v2570_v37  ;;  %v5775_v37 = vld [vmem:[%s6163_s19 + $0x10] sm:$0xff]  }
0x1023   : > { %v2573_v41 = vsel %vm1314_vm3, %v2569_v40, -inf }
0x1024   : > { %2574 = vmax.xlane.f32.xlu1 %v2573_v41  ;;  %v5777_v41 = vld [vmem:[%s6163_s19 + $0x20] sm:$0xff]  }
0x1035   : > { %2593 = vrot.lane.b32.xlu1 %v6322_v30, %s5994_s18 }
0x10af   : > { %v2572_v42 = vpop.xlane.xlu0 %2571 }
0x10b0   : > { %v2576_v43 = vsub.f32 %v2568_v36, %v2572_v42  ;;  %v5774_v36 = vld [vmem:[%s6163_s19 + $0x8] sm:$0xff]  }
0x10b1   : > { %v2575_v44 = vpop.xlane.xlu1 %2574  ;;  %v5778_v42 = vld [vmem:[%s6163_s19 + $0x28] sm:$0xff]  }
0x10b2   : > { %v2578_v45 = vmul.f32 1.442695, %v2576_v43  ;;  %v2577_v46 = vsub.f32 %v2569_v40, %v2575_v44  ;;  %v5776_v40 = vld [vmem:[%s6163_s19 + $0x18] sm:$0xff]   ;;  %v5779_v43 = vld [vmem:[%s6163_s19 + $0x30] sm:$0xff]  }
0x10b3   : > { %v5780_v44 = vld [vmem:[%s6163_s19 + $0x38] sm:$0xff]  }
0x10b4   : > { %5891 = vpow2.f32 %v2578_v45  ;;  %v2580_v47 = vmul.f32 1.442695, %v2577_v46  ;;  %v6565_v45 = vld [vmem:[%s7049_s23] ss:$8 sps:$4 sm:$0xff]  }
0x10b5   : > { %v2594_v53 = vpop.permute.xlu1 %2593  ;;  %v2900_v46 = vsel %vm1258_vm1, %v6565_v45, 0 }
0x10b6   : > { %5893 = vpow2.f32 %v2580_v47  ;;  %v2599_v48 = vsel %vm1338_vm4, %v2594_v53, 0 }
0x10b7   : > { %5506 = vmatpush3.bf16.msra.mxu0 %v2599_v48 }
0x10b8   : > { %5517 = vmatprep.subr.bf16.mxu0 %v5986_v22 }
0x10be   : > { %v5892_v57 = vpop.eup %5891 }
0x10bf   : > { %v2582_v49 = vsel %vm1310_vm2, %v5892_v57, 0.0 }
0x10c0   : > { %v5894_v50 = vpop.eup %5893  ;;  %2583 = vadd.xlane.f32.xlu0 %v2582_v49 }
0x10c1   : > { %v2585_v30 = vsel %vm1314_vm3, %v5894_v50, 0.0 }
0x10c4   : > { %2586 = vadd.xlane.f32.xlu0 %v2585_v30 }
0x10ec   : > { %v2506_v52 = vpop.f32.mrb[44].mxu0 }
0x10ed   : > { %v2513_v54 = vadd.f32 %v2506_v52, %v6501_v1  ;;  %v5497_v55 = vpop.f32.mrb[45].mxu0  ;;  %v5107_v52 = vld [vmem:[%s7050_s4] ss:$0 sm:$0xff]  ;;  %s7054_s4 = sld [smem:[#allocation9_spill]] }
0x10ee   : > { %v2509_v56 = vpop.f32.mrb[46].mxu0 }
0x10ef   : > { %v2514_v23 = vadd.f32 %v2509_v56, %v6504_v5  ;;  %v5498_v31 = vpop.f32.mrb[47].mxu0 }
0x114d   : > { %v2584_v58 = vpop.xlane.xlu0 %2583 }
0x114e   : > { %5895 = vrcp.f32 %v2584_v58 }
0x1151   : > { %v2587_v59 = vpop.xlane.xlu0 %2586 }
0x1152   : > { %5897 = vrcp.f32 %v2587_v59 }
0x1158   : > { %v5896_v60 = vpop.eup %5895 }
0x1159   : > { %v2590_v62 = vmul.f32 %v5896_v60, %v5892_v57 }
0x115c   : > { %v5898_v61 = vpop.eup %5897 }
0x115d   : > { %v2591_v63 = vmul.f32 %v5898_v61, %v5894_v50  ;;  %v6589_v61 = vld [vmem:[%s7049_s23 + $0x10] ss:$8 sps:$4 sm:$0xff]  }
0x115f   : > { %v2592_v0 = vpack.c.bf16 %v2591_v63, %v2590_v62  ;;  %v2903_v62 = vsel %vm1258_vm1, %v6589_v61, 0  ;;  %v5109_v63 = vld [vmem:[%s7053_s27] ss:$0 sm:$0xff] }
0x1161   : > { %5508 = vmatmul.mubr.msk.bf16.vlgmr.msra.gmra.mrb[48].mxu0 %vm1310_vm2, %v2592_v0 }
0x1162   : > { %5533 = vmatprep.mubr.msk.bf16.mxu0 %vm5987_vm0, %v5986_v22  ;;  %5518 = vmatpush3.bf16.msra.mxu0 %v5773_v19 }
0x1163   : > { %5519 = vmatprep.subr.bf16.mxu0 %v5986_v22 }
0x1166   : > { %5520 = vmatpush3.bf16.msra.mxu0 %v5774_v36  ;;  %v6629_v36 = vld [vmem:[%s7049_s23 + $0x14] ss:$8 sps:$4 sm:$0xff]  }
0x1167   : > { %5521 = vmatprep.subr.bf16.mxu0 %v5986_v22 }
0x116a   : > { %5522 = vmatpush3.bf16.msra.mxu0 %v5775_v37 }
0x116b   : > { %5523 = vmatprep.subr.bf16.mxu0 %v5986_v22 }
0x116e   : > { %5524 = vmatpush3.bf16.msra.mxu0 %v5776_v40 }
0x116f   : > { %5525 = vmatprep.subr.bf16.mxu0 %v5986_v22 }
0x1172   : > { %5526 = vmatpush3.bf16.msra.mxu0 %v5777_v41 }
0x1173   : > { %5527 = vmatprep.subr.bf16.mxu0 %v5986_v22 }
0x1176   : > { %5528 = vmatpush3.bf16.msra.mxu0 %v5778_v42 }
0x1177   : > { %5529 = vmatprep.subr.bf16.mxu0 %v5986_v22 }
0x117a   : > { %5530 = vmatpush3.bf16.msra.mxu0 %v5779_v43 }
0x117b   : > { %5531 = vmatprep.subr.bf16.mxu0 %v5986_v22 }
0x117e   : > { %5532 = vmatpush3.bf16.msra.mxu0 %v5780_v44 }
0x117f   : > { %5561 = vmatprep.subr.bf16.mxu0 %v5986_v22 }
0x1234   : > { %v2635_v1 = vpop.f32.mrb[48].mxu0 }
0x1235   : > { %v5509_v2 = vpop.f32.mrb[49].mxu0 }
0x1236   : > { %v2638_v3 = vpop.f32.mrb[50].mxu0 }
0x1237   : > { %v2642_v5 = vpack.c.bf16 %v2638_v3, %v2635_v1  ;;  %v5510_v6 = vpop.f32.mrb[51].mxu0 }
0x1239   : > { %5514 = vmatmul.mubr.msk.bf16.vlgmr.msra.gmra.mrb[48].mxu1 %vm1258_vm1, %v2642_v5 }
0x123a   : > { %5541 = vmatprep.mubr.msk.bf16.mxu1 %vm5987_vm0, %v5986_v22  ;;  %5538 = vmatpush3.bf16.xpose.msra.mxu1 %v2900_v46 }
0x123b   : > { %5539 = vmatprep.subr.bf16.mxu1 %v5986_v22 }
0x1242   : > { %5540 = vmatpush3.bf16.xpose.msra.mxu1 %v2903_v62 }
0x1243   : > { %5545 = vmatprep.subr.bf16.mxu1 %v5986_v22 }
0x130c   : > { %v2686_v7 = vpop.f32.mrb[48].mxu1 }
0x130d   : > { %v2693_v8 = vadd.f32 %v2686_v7, %v2513_v54  ;;  %v5515_v39 = vpop.f32.mrb[49].mxu1 }
0x130e   : > { %v2689_v9 = vpop.f32.mrb[50].mxu1  ;;  %v6608_v39 = vld [vmem:[%s7054_s4] sm:$0xff] }
0x130f   : > { %v2694_v38 = vadd.f32 %v2689_v9, %v2514_v23  ;;  %v5516_v10 = vpop.f32.mrb[51].mxu1  ;;  %v2701_v15 = vadd.f32 %v5106_v11, %v2693_v8  ;;  %v5108_v23 = vld [vmem:[%s7052_s21] ss:$0 sm:$0xff] }
0x1311   : > { %v2702_v12 = vadd.f32 %v5106_v11, %v2694_v38  ;;  %v2703_v18 = vadd.f32 %v5976_v17, %v2701_v15  ;;  %v6613_v11 = vld [vmem:[%s7054_s4 + $0x8] sm:$0x3] }
0x1313   : > { %v2704_v14 = vadd.f32 %v5975_v13, %v2702_v12 }
0x1315   : > { %v2710_v16 = vsel %vm2709_vm5, %v2704_v14, 0.0 }
0x1316   : > { %2711 = vadd.xlane.f32.xlu0 %v2710_v16 }
0x131a   : > { %2707 = vadd.xlane.f32.xlu0 %v2703_v18 }
0x13a3   : > { %v2712_v20 = vpop.xlane.xlu0 %2711 }
0x13a4   : > { %v2715_v21 = vmul.f32 0.0078125, %v2712_v20 }
0x13a6   : > { %v2717_v34 = vsub.f32 %v2704_v14, %v2715_v21 }
0x13a7   : > { %v2708_v29 = vpop.xlane.xlu0 %2707 }
0x13a8   : > { %v2714_v32 = vmul.f32 0.0078125, %v2708_v29  ;;  %v2719_v28 = vmul.f32 %v2717_v34, %v2717_v34 }
0x13aa   : > { %v2716_v35 = vsub.f32 %v2703_v18, %v2714_v32  ;;  %v2722_v33 = vsel %vm2709_vm5, %v2719_v28, 0.0 }
0x13ac   : > { %v2718_v26 = vmul.f32 %v2716_v35, %v2716_v35 }
0x13ae   : > { %2720 = vadd.xlane.f32.xlu0 %v2718_v26 }
0x13b2   : > { %2723 = vadd.xlane.f32.xlu0 %v2722_v33  ;;  %v6624_v33 = vld [vmem:[%s7049_s23 + $0x4] ss:$8 sps:$4 sm:$0xff]  }
0x143b   : > { %v2721_v47 = vpop.xlane.xlu0 %2720 }
0x143c   : > { %v2725_v53 = vmul.f32 0.0078125, %v2721_v47 }
0x143e   : > { %v2727_v48 = vadd.f32 1e-05, %v2725_v53 }
0x143f   : > { %v2724_v57 = vpop.xlane.xlu0 %2723 }
0x1440   : > { %5899 = vrsqrt.f32 %v2727_v48  ;;  %v2726_v49 = vmul.f32 0.0078125, %v2724_v57 }
0x1442   : > { %v2728_v50 = vadd.f32 1e-05, %v2726_v49 }
0x1444   : > { %5901 = vrsqrt.f32 %v2728_v50  ;;  %v5787_v50 = vld [vmem:[%s6172_s5] sm:$0xff]  }
0x144a   : > { %v5900_v30 = vpop.eup %5899 }
0x144b   : > { %v2731_v51 = vmul.f32 %v5900_v30, %v2716_v35 }
0x144d   : > { %v2739_v56 = vmul.f32 %v5107_v52, %v2731_v51 }
0x144e   : > { %v5902_v54 = vpop.eup %5901 }
0x144f   : > { %v2732_v55 = vmul.f32 %v5902_v54, %v2717_v34  ;;  %v6580_v58 = vadd.f32 %v5108_v23, %v2739_v56 }
0x1451   : > { %v2740_v31 = vmul.f32 %v5107_v52, %v2732_v55 }
0x1453   : > { %v6582_v59 = vadd.f32 %v5108_v23, %v2740_v31 }
0x1455   : > { %v2749_v60 = vpack.c.bf16 %v6582_v59, %v6580_v58 }
0x1457   : > { %5534 = vmatmul.mubr.bf16.vlgmr.msra.gmra.mrb[52].mxu0 %v2749_v60 }
0x1458   : > { %5565 = vmatprep.mubr.msk.bf16.mxu0 %vm5987_vm0, %v5986_v22 }
0x152a   : > { %v2855_v0 = vpop.f32.mrb[52].mxu0 }
0x152b   : > { %v5535_v1 = vpop.f32.mrb[53].mxu0  ;;  %v2856_v3 = vadd.f32 %v5109_v63, %v2855_v0 }
0x152c   : > { %v2858_v2 = vpop.f32.mrb[54].mxu0 }
0x152d   : > { %v2859_v5 = vadd.f32 %v5109_v63, %v2858_v2  ;;  %v5536_v6 = vpop.f32.mrb[55].mxu0 }
0x152f   : > { %v6599_v7 = vpack.c.bf16 %v2859_v5, %v2856_v3 }
0x1531   : > { %5542 = vmatmul.mubr.msk.bf16.vlgmr.msra.gmra.mrb[52].mxu1 %vm1258_vm1, %v6599_v7 }
0x1532   : > { %5549 = vmatprep.mubr.msk.bf16.mxu1 %vm5987_vm0, %v5986_v22  ;;  %5546 = vmatpush3.bf16.msra.mxu1 %v6624_v33 }
0x1533   : > { %5547 = vmatprep.subr.bf16.mxu1 %v5986_v22 }
0x1536   : > { %5548 = vmatpush3.bf16.msra.mxu1 %v6629_v36 }
0x1537   : > { %5553 = vmatprep.subr.bf16.mxu1 %v5986_v22 }
0x1604   : > { %v2939_v8 = vpop.f32.mrb[52].mxu1 }
0x1605   : > { %v2946_v9 = vmul.f32 0.25, %v2939_v8  ;;  %v5543_v38 = vpop.f32.mrb[53].mxu1 }
0x1606   : > { %v2942_v10 = vpop.f32.mrb[54].mxu1 }
0x1607   : > { %v2947_v12 = vmul.f32 0.25, %v2942_v10  ;;  %v5544_v13 = vpop.f32.mrb[55].mxu1  ;;  %v2948_v14 = vadd.f32 %v2946_v9, %v6608_v39 }
0x1609   : > { %v2951_v15 = vsel %vm2950_vm6, %v2948_v14, -inf  ;;  %v2949_v16 = vadd.f32 %v2947_v12, %v6613_v11 }
0x160a   : > { %2952 = vmax.xlane.f32.xlu1 %v2951_v15 }
0x160b   : > { %v2955_v17 = vsel %vm2954_vm7, %v2949_v16, -inf }
0x160c   : > { %2956 = vmax.xlane.f32.xlu0 %v2955_v17 }
0x161b   : > { %3029 = vrot.lane.b32.xlu1 %v6599_v7, %s5988_s12 }
0x1697   : > { %v2953_v18 = vpop.xlane.xlu1 %2952 }
0x1698   : > { %v2958_v19 = vsub.f32 %v2948_v14, %v2953_v18 }
0x1699   : > { %v2957_v20 = vpop.xlane.xlu0 %2956 }
0x169a   : > { %v2960_v21 = vmul.f32 1.442695, %v2958_v19  ;;  %v2959_v29 = vsub.f32 %v2949_v16, %v2957_v20 }
0x169b   : > { %v3030_v49 = vpop.permute.xlu1 %3029 }
0x169c   : > { %5903 = vpow2.f32 %v2960_v21  ;;  %v2962_v32 = vmul.f32 1.442695, %v2959_v29 }
0x169e   : > { %5905 = vpow2.f32 %v2962_v32 }
0x16a6   : > { %v5904_v34 = vpop.eup %5903 }
0x16a7   : > { %v2964_v35 = vsel %vm2950_vm6, %v5904_v34, 0.0 }
0x16a8   : > { %v5906_v26 = vpop.eup %5905  ;;  %2965 = vadd.xlane.f32.xlu0 %v2964_v35 }
0x16a9   : > { %v2967_v28 = vsel %vm2954_vm7, %v5906_v26, 0.0 }
0x16ac   : > { %2968 = vadd.xlane.f32.xlu0 %v2967_v28 }
0x16c2   : > { %3031 = vrot.lane.b32.xlu0 %v6565_v45, %s5988_s12 }
0x16c6   : > { %3033 = vrot.lane.b32.xlu0 %v6589_v61, %s5988_s12 }
0x1735   : > { %v2966_v37 = vpop.xlane.xlu0 %2965 }
0x1736   : > { %5907 = vrcp.f32 %v2966_v37  ;;  %v5788_v37 = vld [vmem:[%s6172_s5 + $0x8] sm:$0xff]  }
0x1739   : > { %v2969_v40 = vpop.xlane.xlu0 %2968 }
0x173a   : > { %5909 = vrcp.f32 %v2969_v40 }
0x173d   : > { %v3032_v43 = vpop.permute.xlu0 %3031 }
0x173e   : > { %v3039_v47 = vsel %vm1258_vm1, %v3032_v43, 0 }
0x1740   : > { %v5908_v41 = vpop.eup %5907 }
0x1741   : > { %v2972_v44 = vmul.f32 %v5908_v41, %v5904_v34  ;;  %v3034_v48 = vpop.permute.xlu0 %3033 }
0x1742   : > { %v3042_v57 = vsel %vm1258_vm1, %v3034_v48, 0 }
0x1744   : > { %v5910_v42 = vpop.eup %5909 }
0x1745   : > { %v2973_v46 = vmul.f32 %v5910_v42, %v5906_v26 }
0x1747   : > { %v2974_v53 = vpack.c.bf16 %v2973_v46, %v2972_v44 }
0x1749   : > { %5550 = vmatmul.mubr.msk.bf16.vlgmr.msra.gmra.mrb[56].mxu1 %vm2950_vm6, %v2974_v53 }
0x174a   : > { %5554 = vmatpush3.bf16.xpose.msra.mxu1 %v3039_v47  ;;  %5557 = vmatprep.mubr.msk.bf16.mxu1 %vm5987_vm0, %v5986_v22 }
0x174b   : > { %5555 = vmatprep.subr.bf16.mxu1 %v5986_v22 }
0x1752   : > { %5556 = vmatpush3.bf16.xpose.msra.mxu1 %v3042_v57 }
0x1753   : > { %5575 = vmatprep.subr.bf16.mxu1 %v5986_v22 }
0x1759   : > { %5558 = vmatmul.mubr.msk.bf16.vlgmr.msra.gmra.mrb[60].mxu1 %vm1258_vm1, %v3030_v49 }
0x175a   : > { %5577 = vmatprep.mubr.msk.bf16.mxu1 %vm5987_vm0, %v5986_v22  ;;  %5576 = vmatpush3.bf16.msra.mxu1 %v5787_v50 }
0x175b   : > { %5589 = vmatprep.subr.bf16.mxu1 %v5986_v22 }
0x181c   : > { %v3020_v30 = vpop.f32.mrb[56].mxu1 }
0x181d   : > { %v5551_v51 = vpop.f32.mrb[57].mxu1 }
0x181e   : > { %v3023_v52 = vpop.f32.mrb[58].mxu1 }
0x181f   : > { %v3027_v54 = vpack.c.bf16 %v3023_v52, %v3020_v30  ;;  %v5552_v55 = vpop.f32.mrb[59].mxu1 }
0x1821   : > { %5578 = vmatmul.mubr.msk.bf16.vlgmr.msra.gmra.mrb[64].mxu1 %vm1258_vm1, %v3027_v54 }
0x1822   : > { %5593 = vmatprep.mubr.msk.bf16.mxu1 %vm5987_vm0, %v5986_v22 }
0x182c   : > { %v3078_v56 = vpop.f32.mrb[60].mxu1 }
0x182d   : > { %v3085_v23 = vmul.f32 0.25, %v3078_v56  ;;  %v5559_v31 = vpop.f32.mrb[61].mxu1 }
0x182e   : > { %v3081_v60 = vpop.f32.mrb[62].mxu1 }
0x182f   : > { %v3086_v62 = vmul.f32 0.25, %v3081_v60  ;;  %v5560_v63 = vpop.f32.mrb[63].mxu1  ;;  %v3087_v0 = vadd.f32 %v3085_v23, %v6608_v39 }
0x1831   : > { %v3089_v1 = vsel %vm2950_vm6, %v3087_v0, -inf  ;;  %v3088_v2 = vadd.f32 %v3086_v62, %v6613_v11 }
0x1832   : > { %3090 = vmax.xlane.f32.xlu0 %v3089_v1 }
0x1833   : > { %v3092_v3 = vsel %vm2954_vm7, %v3088_v2, -inf }
0x1834   : > { %3093 = vmax.xlane.f32.xlu1 %v3092_v3 }
0x1845   : > { %3114 = vrot.lane.b32.xlu1 %v6629_v36, %s5988_s12 }
0x1849   : > { %3263 = vrot.lane.b32.xlu1 %v6599_v7, %s5989_s2 }
0x184d   : > { %3453 = vrot.lane.b32.xlu1 %v6589_v61, %s5990_s3 }
0x18bf   : > { %v3091_v5 = vpop.xlane.xlu0 %3090 }
0x18c0   : > { %v3095_v6 = vsub.f32 %v3087_v0, %v3091_v5 }
0x18c1   : > { %v3094_v8 = vpop.xlane.xlu1 %3093 }
0x18c2   : > { %v3097_v9 = vmul.f32 1.442695, %v3095_v6  ;;  %v3096_v38 = vsub.f32 %v3088_v2, %v3094_v8 }
0x18c4   : > { %5911 = vpow2.f32 %v3097_v9  ;;  %v3099_v10 = vmul.f32 1.442695, %v3096_v38 }
0x18c5   : > { %v3115_v32 = vpop.permute.xlu1 %3114 }
0x18c6   : > { %5913 = vpow2.f32 %v3099_v10 }
0x18c9   : > { %v3264_v30 = vpop.permute.xlu1 %3263 }
0x18cd   : > { %v3454_v51 = vpop.permute.xlu1 %3453 }
0x18ce   : > { %v5912_v12 = vpop.eup %5911  ;;  %v3462_v52 = vsel %vm1258_vm1, %v3454_v51, 0 }
0x18cf   : > { %v3101_v13 = vsel %vm2950_vm6, %v5912_v12, 0.0 }
0x18d0   : > { %v5914_v14 = vpop.eup %5913  ;;  %3102 = vadd.xlane.f32.xlu0 %v3101_v13 }
0x18d1   : > { %v3104_v15 = vsel %vm2954_vm7, %v5914_v14, 0.0 }
0x18d4   : > { %3105 = vadd.xlane.f32.xlu0 %v3104_v15 }
0x18ea   : > { %3112 = vrot.lane.b32.xlu0 %v6624_v33, %s5988_s12  ;;  %s7055_s12 = sld [smem:[#allocation6_spill]] }
0x18ee   : > { %3265 = vrot.lane.b32.xlu0 %v6565_v45, %s5989_s2 }
0x18f2   : > { %3267 = vrot.lane.b32.xlu0 %v6589_v61, %s5989_s2 }
0x18f4   : > { %v3256_v16 = vpop.f32.mrb[64].mxu1 }
0x18f5   : > { %v5579_v17 = vpop.f32.mrb[65].mxu1 }
0x18f6   : > { %3451 = vrot.lane.b32.xlu0 %v6565_v45, %s5990_s3  ;;  %v3259_v18 = vpop.f32.mrb[66].mxu1 }
0x18f7   : > { %v5580_v19 = vpop.f32.mrb[67].mxu1 }
0x18fa   : > { %3449 = vrot.lane.b32.xlu0 %v6599_v7, %s5990_s3 }
0x195d   : > { %v3103_v20 = vpop.xlane.xlu0 %3102 }
0x195e   : > { %5915 = vrcp.f32 %v3103_v20 }
0x1961   : > { %v3106_v21 = vpop.xlane.xlu0 %3105 }
0x1962   : > { %5917 = vrcp.f32 %v3106_v21 }
0x1965   : > { %v3113_v29 = vpop.permute.xlu0 %3112 }
0x1966   : > { %5562 = vmatpush3.bf16.msra.mxu0 %v3113_v29 }
0x1967   : > { %5563 = vmatprep.subr.bf16.mxu0 %v5986_v22 }
0x1968   : > { %v5916_v34 = vpop.eup %5915 }
0x1969   : > { %v3109_v26 = vmul.f32 %v5916_v34, %v5912_v12  ;;  %v3266_v43 = vpop.permute.xlu0 %3265 }
0x196a   : > { %5564 = vmatpush3.bf16.msra.mxu0 %v3115_v32  ;;  %v3273_v46 = vsel %vm1258_vm1, %v3266_v43, 0 }
0x196b   : > { %5569 = vmatprep.subr.bf16.mxu0 %v5986_v22 }
0x196c   : > { %v5918_v35 = vpop.eup %5917 }
0x196d   : > { %v3110_v28 = vmul.f32 %v5918_v35, %v5914_v14  ;;  %v3268_v48 = vpop.permute.xlu0 %3267 }
0x196e   : > { %v3276_v57 = vsel %vm1258_vm1, %v3268_v48, 0 }
0x196f   : > { %v3111_v40 = vpack.c.bf16 %v3110_v28, %v3109_v26 }
0x1971   : > { %5566 = vmatmul.mubr.msk.bf16.vlgmr.msra.gmra.mrb[56].mxu0 %vm2950_vm6, %v3111_v40  ;;  %v3452_v49 = vpop.permute.xlu0 %3451 }
0x1972   : > { %5570 = vmatpush3.bf16.msra.mxu0 %v5788_v37  ;;  %5571 = vmatprep.mubr.msk.bf16.mxu0 %vm5987_vm0, %v5986_v22  ;;  %v3459_v50 = vsel %vm1258_vm1, %v3452_v49, 0 }
0x1973   : > { %5581 = vmatprep.subr.bf16.mxu0 %v5986_v22 }
0x1975   : > { %v3450_v54 = vpop.permute.xlu0 %3449 }
0x1a44   : > { %v3155_v41 = vpop.f32.mrb[56].mxu0 }
0x1a45   : > { %v5567_v42 = vpop.f32.mrb[57].mxu0 }
0x1a46   : > { %v3158_v44 = vpop.f32.mrb[58].mxu0 }
0x1a47   : > { %v3162_v47 = vpack.c.bf16 %v3158_v44, %v3155_v41  ;;  %v5568_v53 = vpop.f32.mrb[59].mxu0 }
0x1a49   : > { %5572 = vmatmul.mubr.msk.bf16.vlgmr.msra.gmra.mrb[60].mxu0 %vm1258_vm1, %v3162_v47 }
0x1a4a   : > { %5582 = vmatpush3.bf16.xpose.msra.mxu0 %v3273_v46  ;;  %5585 = vmatprep.mubr.msk.bf16.mxu0 %vm5987_vm0, %v5986_v22 }
0x1a4b   : > { %5583 = vmatprep.subr.bf16.mxu0 %v5986_v22 }
0x1a52   : > { %5584 = vmatpush3.bf16.xpose.msra.mxu0 %v3276_v57 }
0x1a53   : > { %5603 = vmatprep.subr.bf16.mxu0 %v5986_v22 }
0x1a59   : > { %5586 = vmatmul.mubr.msk.bf16.vlgmr.msra.gmra.mrb[64].mxu0 %vm1258_vm1, %v3264_v30 }
0x1a5a   : > { %5604 = vmatpush3.bf16.xpose.msra.mxu0 %v3459_v50  ;;  %5607 = vmatprep.mubr.msk.bf16.mxu0 %vm5987_vm0, %v5986_v22 }
0x1a5b   : > { %5605 = vmatprep.subr.bf16.mxu0 %v5986_v22 }
0x1a62   : > { %5606 = vmatpush3.bf16.xpose.msra.mxu0 %v3462_v52 }
0x1a63   : > { %5625 = vmatprep.subr.bf16.mxu0 %v5986_v22 }
0x1a69   : > { %5608 = vmatmul.mubr.msk.bf16.vlgmr.msra.gmra.mrb[68].mxu0 %vm1258_vm1, %v3450_v54 }
0x1a6a   : > { %5629 = vmatprep.mubr.msk.bf16.mxu0 %vm5987_vm0, %v5986_v22 }
0x1b1c   : > { %v3206_v55 = vpop.f32.mrb[60].mxu0 }
0x1b1d   : > { %v6698_v56 = vadd.f32 %v3256_v16, %v3206_v55  ;;  %v5573_v23 = vpop.f32.mrb[61].mxu0 }
0x1b1e   : > { %v3209_v31 = vpop.f32.mrb[62].mxu0 }
0x1b1f   : > { %v6700_v60 = vadd.f32 %v3259_v18, %v3209_v31  ;;  %v5574_v62 = vpop.f32.mrb[63].mxu0 }
0x1b2c   : > { %v3312_v63 = vpop.f32.mrb[64].mxu0 }
0x1b2d   : > { %v3319_v0 = vmul.f32 0.25, %v3312_v63  ;;  %v5587_v1 = vpop.f32.mrb[65].mxu0 }
0x1b2e   : > { %v3315_v2 = vpop.f32.mrb[66].mxu0 }
0x1b2f   : > { %v3320_v3 = vmul.f32 0.25, %v3315_v2  ;;  %v5588_v5 = vpop.f32.mrb[67].mxu0  ;;  %v3321_v6 = vadd.f32 %v3319_v0, %v6608_v39 }
0x1b31   : > { %v3323_v8 = vsel %vm2950_vm6, %v3321_v6, -inf  ;;  %v3322_v9 = vadd.f32 %v3320_v3, %v6613_v11 }
0x1b32   : > { %3324 = vmax.xlane.f32.xlu1 %v3323_v8 }
0x1b33   : > { %v3326_v38 = vsel %vm2954_vm7, %v3322_v9, -inf }
0x1b34   : > { %3327 = vmax.xlane.f32.xlu0 %v3326_v38 }
0x1b3c   : > { %v3498_v10 = vpop.f32.mrb[68].mxu0 }
0x1b3d   : > { %v5609_v12 = vpop.f32.mrb[69].mxu0  ;;  %v3505_v35 = vmul.f32 0.25, %v3498_v10 }
0x1b3e   : > { %v3501_v13 = vpop.f32.mrb[70].mxu0  ;;  %v5789_v12 = vld [vmem:[%s6172_s5 + $0x10] sm:$0xff]  }
0x1b3f   : > { %v5610_v14 = vpop.f32.mrb[71].mxu0  ;;  %v3507_v26 = vadd.f32 %v3505_v35, %v6608_v39  ;;  %v3506_v28 = vmul.f32 0.25, %v3501_v13 }
0x1b41   : > { %v3509_v37 = vsel %vm2950_vm6, %v3507_v26, -inf  ;;  %v3508_v40 = vadd.f32 %v3506_v28, %v6613_v11 }
0x1b43   : > { %v3512_v41 = vsel %vm2954_vm7, %v3508_v40, -inf }
0x1bbf   : > { %v3325_v15 = vpop.xlane.xlu1 %3324 }
0x1bc0   : > { %v3329_v16 = vsub.f32 %v3321_v6, %v3325_v15 }
0x1bc1   : > { %v3328_v17 = vpop.xlane.xlu0 %3327 }
0x1bc2   : > { %v3331_v18 = vmul.f32 1.442695, %v3329_v16  ;;  %v3330_v19 = vsub.f32 %v3322_v9, %v3328_v17 }
0x1bc4   : > { %5919 = vpow2.f32 %v3331_v18  ;;  %v3333_v20 = vmul.f32 1.442695, %v3330_v19 }
0x1bc6   : > { %5921 = vpow2.f32 %v3333_v20 }
0x1bce   : > { %v5920_v21 = vpop.eup %5919 }
0x1bcf   : > { %v3335_v29 = vsel %vm2950_vm6, %v5920_v21, 0.0 }
0x1bd0   : > { %v5922_v32 = vpop.eup %5921  ;;  %3336 = vadd.xlane.f32.xlu0 %v3335_v29 }
0x1bd1   : > { %v3338_v34 = vsel %vm2954_vm7, %v5922_v32, 0.0 }
0x1bd2   : > { %3339 = vadd.xlane.f32.xlu1 %v3338_v34 }
0x1be3   : > { %3348 = vrot.lane.b32.xlu1 %v6629_v36, %s5989_s2 }
0x1be6   : > { %3346 = vrot.lane.b32.xlu0 %v6624_v33, %s5989_s2  ;;  %s7065_s2 = sld [smem:[#allocation4_spill]] }
0x1be7   : > { %3637 = vrot.lane.b32.xlu1 %v6565_v45, %s5991_s26 }
0x1bea   : > { %3639 = vrot.lane.b32.xlu0 %v6589_v61, %s5991_s26 }
0x1beb   : > { %3635 = vrot.lane.b32.xlu1 %v6599_v7, %s5991_s26 }
0x1bec   : > { %p5192_p5 = scmp.ne.s32.totalorder %s7065_s2, 7 }
0x1c09   : > { %3510 = vmax.xlane.f32.xlu0 %v3509_v37 }
0x1c0f   : > { %3513 = vmax.xlane.f32.xlu1 %v3512_v41 }
0x1c20   : > { %3532 = vrot.lane.b32.xlu1 %v6624_v33, %s5990_s3 }
0x1c24   : > { %3823 = vrot.lane.b32.xlu1 %v6565_v45, %s5992_s28 }
0x1c28   : > { %3825 = vrot.lane.b32.xlu1 %v6589_v61, %s5992_s28 }
0x1c5d   : > { %v3337_v42 = vpop.xlane.xlu0 %3336 }
0x1c5e   : > { %5923 = vrcp.f32 %v3337_v42 }
0x1c5f   : > { %v3340_v43 = vpop.xlane.xlu1 %3339 }
0x1c60   : > { %5925 = vrcp.f32 %v3340_v43 }
0x1c61   : > { %v3347_v44 = vpop.permute.xlu0 %3346 }
0x1c62   : > { %5590 = vmatpush3.bf16.msra.mxu1 %v3347_v44 }
0x1c63   : > { %v3349_v46 = vpop.permute.xlu1 %3348  ;;  %5591 = vmatprep.subr.bf16.mxu1 %v5986_v22 }
0x1c65   : > { %v3640_v30 = vpop.permute.xlu0 %3639 }
0x1c66   : > { %5592 = vmatpush3.bf16.msra.mxu1 %v3349_v46  ;;  %v3648_v52 = vsel %vm1258_vm1, %v3640_v30, 0 }
0x1c67   : > { %v3638_v47 = vpop.permute.xlu1 %3637  ;;  %5597 = vmatprep.subr.bf16.mxu1 %v5986_v22 }
0x1c68   : > { %v5924_v53 = vpop.eup %5923  ;;  %v3645_v48 = vsel %vm1258_vm1, %v3638_v47, 0 }
0x1c69   : > { %5626 = vmatpush3.bf16.xpose.msra.mxu0 %v3645_v48  ;;  %v3343_v49 = vmul.f32 %v5924_v53, %v5920_v21  ;;  %v5790_v48 = vld [vmem:[%s6172_s5 + $0x18] sm:$0xff]  }
0x1c6a   : > { %v5926_v57 = vpop.eup %5925  ;;  %5627 = vmatprep.subr.bf16.mxu0 %v5986_v22 }
0x1c6b   : > { %v3344_v50 = vmul.f32 %v5926_v57, %v5922_v32  ;;  %v3636_v54 = vpop.permute.xlu1 %3635 }
0x1c6d   : > { %v3345_v51 = vpack.c.bf16 %v3344_v50, %v3343_v49 }
0x1c6f   : > { %5594 = vmatmul.mubr.msk.bf16.vlgmr.msra.gmra.mrb[68].mxu1 %vm2950_vm6, %v3345_v51 }
0x1c70   : > { %5599 = vmatprep.mubr.msk.bf16.mxu1 %vm5987_vm0, %v5986_v22  ;;  %5598 = vmatpush3.bf16.msra.mxu1 %v5789_v12 }
0x1c71   : > { %5628 = vmatpush3.bf16.xpose.msra.mxu0 %v3648_v52  ;;  %5611 = vmatprep.subr.bf16.mxu1 %v5986_v22 }
0x1c72   : > { %5647 = vmatprep.subr.bf16.mxu0 %v5986_v22 }
0x1c78   : > { %5630 = vmatmul.mubr.msk.bf16.vlgmr.msra.gmra.mrb[72].mxu0 %vm1258_vm1, %v3636_v54 }
0x1c79   : > { %5651 = vmatprep.mubr.msk.bf16.mxu0 %vm5987_vm0, %v5986_v22 }
0x1c96   : > { %v3511_v55 = vpop.xlane.xlu0 %3510 }
0x1c97   : > { %v3515_v23 = vsub.f32 %v3507_v26, %v3511_v55 }
0x1c99   : > { %v3517_v31 = vmul.f32 1.442695, %v3515_v23 }
0x1c9b   : > { %5927 = vpow2.f32 %v3517_v31 }
0x1c9c   : > { %v3514_v62 = vpop.xlane.xlu1 %3513 }
0x1c9d   : > { %v3516_v63 = vsub.f32 %v3508_v40, %v3514_v62 }
0x1c9f   : > { %v3519_v0 = vmul.f32 1.442695, %v3516_v63 }
0x1ca0   : > { %v3533_v1 = vpop.permute.xlu1 %3532 }
0x1ca1   : > { %5929 = vpow2.f32 %v3519_v0 }
0x1ca4   : > { %v3824_v2 = vpop.permute.xlu1 %3823 }
0x1ca5   : > { %v5928_v3 = vpop.eup %5927  ;;  %v3831_v5 = vsel %vm1258_vm1, %v3824_v2, 0 }
0x1ca6   : > { %v3521_v6 = vsel %vm2950_vm6, %v5928_v3, 0.0  ;;  %5648 = vmatpush3.bf16.xpose.msra.mxu0 %v3831_v5 }
0x1ca7   : > { %3522 = vadd.xlane.f32.xlu0 %v3521_v6  ;;  %5649 = vmatprep.subr.bf16.mxu0 %v5986_v22 }
0x1ca8   : > { %v3826_v38 = vpop.permute.xlu1 %3825 }
0x1ca9   : > { %v3834_v10 = vsel %vm1258_vm1, %v3826_v38, 0 }
0x1cab   : > { %v5930_v8 = vpop.eup %5929 }
0x1cac   : > { %v3524_v9 = vsel %vm2954_vm7, %v5930_v8, 0.0 }
0x1cad   : > { %3525 = vadd.xlane.f32.xlu0 %v3524_v9 }
0x1cae   : > { %5650 = vmatpush3.bf16.xpose.msra.mxu0 %v3834_v10 }
0x1caf   : > { %5669 = vmatprep.subr.bf16.mxu0 %v5986_v22 }
0x1cc3   : > { %3534 = vrot.lane.b32.xlu0 %v6629_v36, %s5990_s3 }
0x1cc7   : > { %3821 = vrot.lane.b32.xlu0 %v6599_v7, %s5992_s28 }
0x1d34   : > { %v3523_v13 = vpop.xlane.xlu0 %3522 }
0x1d3a   : > { %v3526_v14 = vpop.xlane.xlu0 %3525 }
0x1d3b   : > { %5931 = vrcp.f32 %v3526_v14 }
0x1d3c   : > { %5933 = vrcp.f32 %v3523_v13 }
0x1d3e   : > { %v3535_v15 = vpop.permute.xlu0 %3534 }
0x1d42   : > { %v3389_v16 = vpop.f32.mrb[68].mxu1  ;;  %v3822_v17 = vpop.permute.xlu0 %3821 }
0x1d43   : > { %v5595_v18 = vpop.f32.mrb[69].mxu1  ;;  %5652 = vmatmul.mubr.msk.bf16.vlgmr.msra.gmra.mrb[76].mxu0 %vm1258_vm1, %v3822_v17 }
0x1d44   : > { %v3392_v19 = vpop.f32.mrb[70].mxu1  ;;  %5673 = vmatprep.mubr.msk.bf16.mxu0 %vm5987_vm0, %v5986_v22 }
0x1d45   : > { %v3396_v20 = vpack.c.bf16 %v3392_v19, %v3389_v16  ;;  %v5596_v21 = vpop.f32.mrb[71].mxu1  ;;  %v5932_v29 = vpop.eup %5931 }
0x1d46   : > { %v5934_v32 = vpop.eup %5933  ;;  %v3530_v34 = vmul.f32 %v5932_v29, %v5930_v8 }
0x1d47   : > { %5600 = vmatmul.mubr.msk.bf16.vlgmr.msra.gmra.mrb[72].mxu1 %vm1258_vm1, %v3396_v20  ;;  %v3529_v35 = vmul.f32 %v5934_v32, %v5928_v3 }
0x1d48   : > { %5612 = vmatpush3.bf16.msra.mxu1 %v3533_v1  ;;  %5615 = vmatprep.mubr.msk.bf16.mxu1 %vm5987_vm0, %v5986_v22 }
0x1d49   : > { %5613 = vmatprep.subr.bf16.mxu1 %v5986_v22  ;;  %v3531_v41 = vpack.c.bf16 %v3530_v34, %v3529_v35 }
0x1d4b   : > { %v3684_v26 = vpop.f32.mrb[72].mxu0 }
0x1d4c   : > { %v3691_v28 = vmul.f32 0.25, %v3684_v26  ;;  %5614 = vmatpush3.bf16.msra.mxu1 %v3535_v15  ;;  %v5631_v37 = vpop.f32.mrb[73].mxu0 }
0x1d4d   : > { %v3687_v40 = vpop.f32.mrb[74].mxu0  ;;  %5619 = vmatprep.subr.bf16.mxu1 %v5986_v22 }
0x1d4e   : > { %v3692_v42 = vmul.f32 0.25, %v3687_v40  ;;  %v5632_v43 = vpop.f32.mrb[75].mxu0  ;;  %v3693_v44 = vadd.f32 %v3691_v28, %v6608_v39 }
0x1d4f   : > { %5616 = vmatmul.mubr.msk.bf16.vlgmr.msra.gmra.mrb[76].mxu1 %vm2950_vm6, %v3531_v41 }
0x1d50   : > { %v3694_v46 = vadd.f32 %v3692_v42, %v6613_v11  ;;  %v3695_v47 = vsel %vm2950_vm6, %v3693_v44, -inf  ;;  %5621 = vmatprep.mubr.msk.bf16.mxu1 %vm5987_vm0, %v5986_v22  ;;  %5620 = vmatpush3.bf16.msra.mxu1 %v5790_v48 }
0x1d51   : > { %3696 = vmax.xlane.f32.xlu1 %v3695_v47  ;;  %5633 = vmatprep.subr.bf16.mxu1 %v5986_v22 }
0x1d52   : > { %v3698_v53 = vsel %vm2954_vm7, %v3694_v46, -inf }
0x1d53   : > { %3699 = vmax.xlane.f32.xlu0 %v3698_v53 }
0x1dde   : > { %v3697_v57 = vpop.xlane.xlu1 %3696 }
0x1ddf   : > { %v3701_v49 = vsub.f32 %v3693_v44, %v3697_v57 }
0x1de0   : > { %v3700_v50 = vpop.xlane.xlu0 %3699 }
0x1de1   : > { %v3703_v30 = vmul.f32 1.442695, %v3701_v49  ;;  %v3702_v51 = vsub.f32 %v3694_v46, %v3700_v50 }
0x1de3   : > { %5935 = vpow2.f32 %v3703_v30  ;;  %v3705_v52 = vmul.f32 1.442695, %v3702_v51 }
0x1de5   : > { %5937 = vpow2.f32 %v3705_v52 }
0x1ded   : > { %v5936_v54 = vpop.eup %5935 }
0x1dee   : > { %v3707_v55 = vsel %vm2950_vm6, %v5936_v54, 0.0 }
0x1def   : > { %v5938_v23 = vpop.eup %5937  ;;  %3708 = vadd.xlane.f32.xlu0 %v3707_v55 }
0x1df0   : > { %v3710_v31 = vsel %vm2954_vm7, %v5938_v23, 0.0 }
0x1df1   : > { %3711 = vadd.xlane.f32.xlu1 %v3710_v31 }
0x1e02   : > { %3720 = vrot.lane.b32.xlu1 %v6629_v36, %s5991_s26 }
0x1e05   : > { %3718 = vrot.lane.b32.xlu0 %v6624_v33, %s5991_s26  ;;  %s7056_s26 = sld [smem:[#allocation17_spill]] }
0x1e06   : > { %4009 = vrot.lane.b32.xlu1 %v6565_v45, %s5993_s24 }
0x1e09   : > { %4011 = vrot.lane.b32.xlu0 %v6589_v61, %s5993_s24 }
0x1e0a   : > { %4007 = vrot.lane.b32.xlu1 %v6599_v7, %s5993_s24 }
0x1e16   : > { %v3870_v62 = vpop.f32.mrb[76].mxu0 }
0x1e17   : > { %v5653_v63 = vpop.f32.mrb[77].mxu0  ;;  %v3877_v38 = vmul.f32 0.25, %v3870_v62 }
0x1e18   : > { %v3873_v0 = vpop.f32.mrb[78].mxu0 }
0x1e19   : > { %v5654_v1 = vpop.f32.mrb[79].mxu0  ;;  %v3879_v12 = vadd.f32 %v3877_v38, %v6608_v39  ;;  %v3878_v15 = vmul.f32 0.25, %v3873_v0 }
0x1e1a   : > { %v3440_v2 = vpop.f32.mrb[72].mxu1 }
0x1e1b   : > { %v6782_v3 = vadd.f32 %v3440_v2, %v6698_v56  ;;  %v5601_v5 = vpop.f32.mrb[73].mxu1  ;;  %v3881_v56 = vsel %vm2950_vm6, %v3879_v12, -inf }
0x1e1c   : > { %v3443_v6 = vpop.f32.mrb[74].mxu1 }
0x1e1d   : > { %v6785_v8 = vadd.f32 %v3443_v6, %v6700_v60  ;;  %v5602_v9 = vpop.f32.mrb[75].mxu1  ;;  %v3880_v60 = vadd.f32 %v3878_v15, %v6613_v11 }
0x1e1f   : > { %v3884_v18 = vsel %vm2954_vm7, %v3880_v60, -inf }
0x1e22   : > { %v3575_v10 = vpop.f32.mrb[76].mxu1 }
0x1e23   : > { %v5617_v13 = vpop.f32.mrb[77].mxu1 }
0x1e24   : > { %v3578_v14 = vpop.f32.mrb[78].mxu1 }
0x1e25   : > { %v3582_v16 = vpack.c.bf16 %v3578_v14, %v3575_v10  ;;  %v5618_v17 = vpop.f32.mrb[79].mxu1 }
0x1e27   : > { %5622 = vmatmul.mubr.msk.bf16.vlgmr.msra.gmra.mrb[80].mxu1 %vm1258_vm1, %v3582_v16 }
0x1e28   : > { %3882 = vmax.xlane.f32.xlu0 %v3881_v56  ;;  %5637 = vmatprep.mubr.msk.bf16.mxu1 %vm5987_vm0, %v5986_v22 }
0x1e2e   : > { %3885 = vmax.xlane.f32.xlu1 %v3884_v18 }
0x1e3f   : > { %3904 = vrot.lane.b32.xlu1 %v6624_v33, %s5992_s28 }
0x1e43   : > { %4195 = vrot.lane.b32.xlu1 %v6565_v45, %s5994_s18 }
0x1e47   : > { %4197 = vrot.lane.b32.xlu1 %v6589_v61, %s5994_s18 }
0x1e7c   : > { %v3709_v19 = vpop.xlane.xlu0 %3708 }
0x1e7d   : > { %5939 = vrcp.f32 %v3709_v19 }
0x1e7e   : > { %v3712_v20 = vpop.xlane.xlu1 %3711 }
0x1e7f   : > { %5941 = vrcp.f32 %v3712_v20 }
0x1e80   : > { %v3719_v21 = vpop.permute.xlu0 %3718 }
0x1e81   : > { %5634 = vmatpush3.bf16.msra.mxu1 %v3719_v21 }
0x1e82   : > { %v3721_v29 = vpop.permute.xlu1 %3720  ;;  %5635 = vmatprep.subr.bf16.mxu1 %v5986_v22 }
0x1e84   : > { %v4012_v28 = vpop.permute.xlu0 %4011 }
0x1e85   : > { %5636 = vmatpush3.bf16.msra.mxu1 %v3721_v29  ;;  %v4020_v40 = vsel %vm1258_vm1, %v4012_v28, 0 }
0x1e86   : > { %v4010_v32 = vpop.permute.xlu1 %4009  ;;  %5641 = vmatprep.subr.bf16.mxu1 %v5986_v22 }
0x1e87   : > { %v5940_v34 = vpop.eup %5939  ;;  %v4017_v35 = vsel %vm1258_vm1, %v4010_v32, 0 }
0x1e88   : > { %5670 = vmatpush3.bf16.xpose.msra.mxu0 %v4017_v35  ;;  %v3715_v61 = vmul.f32 %v5940_v34, %v5936_v54  ;;  %v5792_v35 = vld [vmem:[%s6172_s5 + $0x28] sm:$0xff]  }
0x1e89   : > { %v5942_v45 = vpop.eup %5941  ;;  %5671 = vmatprep.subr.bf16.mxu0 %v5986_v22 }
0x1e8a   : > { %v3716_v26 = vmul.f32 %v5942_v45, %v5938_v23  ;;  %v4008_v41 = vpop.permute.xlu1 %4007  ;;  %v5791_v23 = vld [vmem:[%s6172_s5 + $0x20] sm:$0xff]  }
0x1e8c   : > { %v3717_v37 = vpack.c.bf16 %v3716_v26, %v3715_v61 }
0x1e8e   : > { %5638 = vmatmul.mubr.msk.bf16.vlgmr.msra.gmra.mrb[84].mxu1 %vm2950_vm6, %v3717_v37 }
0x1e8f   : > { %5643 = vmatprep.mubr.msk.bf16.mxu1 %vm5987_vm0, %v5986_v22  ;;  %5642 = vmatpush3.bf16.msra.mxu1 %v5791_v23 }
0x1e90   : > { %5672 = vmatpush3.bf16.xpose.msra.mxu0 %v4020_v40  ;;  %5655 = vmatprep.subr.bf16.mxu1 %v5986_v22 }
0x1e91   : > { %5691 = vmatprep.subr.bf16.mxu0 %v5986_v22 }
0x1e97   : > { %5674 = vmatmul.mubr.msk.bf16.vlgmr.msra.gmra.mrb[80].mxu0 %vm1258_vm1, %v4008_v41 }
0x1e98   : > { %5695 = vmatprep.mubr.msk.bf16.mxu0 %vm5987_vm0, %v5986_v22 }
0x1eb5   : > { %v3883_v42 = vpop.xlane.xlu0 %3882 }
0x1eb6   : > { %v3887_v43 = vsub.f32 %v3879_v12, %v3883_v42 }
0x1eb8   : > { %v3889_v44 = vmul.f32 1.442695, %v3887_v43 }
0x1eba   : > { %5943 = vpow2.f32 %v3889_v44 }
0x1ebb   : > { %v3886_v46 = vpop.xlane.xlu1 %3885 }
0x1ebc   : > { %v3888_v47 = vsub.f32 %v3880_v60, %v3886_v46 }
0x1ebe   : > { %v3891_v53 = vmul.f32 1.442695, %v3888_v47 }
0x1ebf   : > { %v3905_v48 = vpop.permute.xlu1 %3904 }
0x1ec0   : > { %5945 = vpow2.f32 %v3891_v53 }
0x1ec3   : > { %v4196_v57 = vpop.permute.xlu1 %4195 }
0x1ec4   : > { %v5944_v49 = vpop.eup %5943  ;;  %v4203_v50 = vsel %vm1258_vm1, %v4196_v57, 0 }
0x1ec5   : > { %v3893_v30 = vsel %vm2950_vm6, %v5944_v49, 0.0  ;;  %5692 = vmatpush3.bf16.xpose.msra.mxu0 %v4203_v50 }
0x1ec6   : > { %3894 = vadd.xlane.f32.xlu0 %v3893_v30  ;;  %5693 = vmatprep.subr.bf16.mxu0 %v5986_v22 }
0x1ec7   : > { %v4198_v54 = vpop.permute.xlu1 %4197 }
0x1ec8   : > { %v4206_v55 = vsel %vm1258_vm1, %v4198_v54, 0 }
0x1eca   : > { %v5946_v51 = vpop.eup %5945 }
0x1ecb   : > { %v3896_v52 = vsel %vm2954_vm7, %v5946_v51, 0.0 }
0x1ecc   : > { %3897 = vadd.xlane.f32.xlu0 %v3896_v52 }
0x1ecd   : > { %5694 = vmatpush3.bf16.xpose.msra.mxu0 %v4206_v55 }
0x1ee2   : > { %3906 = vrot.lane.b32.xlu0 %v6629_v36, %s5992_s28  ;;  %s7057_s28 = scalar_lea.vmem %s7056_s26, %s6122_s29 }
0x1ee6   : > { %4193 = vrot.lane.b32.xlu0 %v6599_v7, %s5994_s18 }
0x1efa   : > { %v3626_v31 = vpop.f32.mrb[80].mxu1 }
0x1efb   : > { %v6824_v62 = vadd.f32 %v3626_v31, %v6782_v3  ;;  %v5623_v63 = vpop.f32.mrb[81].mxu1 }
0x1efc   : > { %v3629_v0 = vpop.f32.mrb[82].mxu1 }
0x1efd   : > { %v6827_v1 = vadd.f32 %v3629_v0, %v6785_v8  ;;  %v5624_v2 = vpop.f32.mrb[83].mxu1 }
0x1f53   : > { %v3895_v5 = vpop.xlane.xlu0 %3894 }
0x1f59   : > { %v3898_v6 = vpop.xlane.xlu0 %3897 }
0x1f5a   : > { %5947 = vrcp.f32 %v3898_v6 }
0x1f5b   : > { %5949 = vrcp.f32 %v3895_v5 }
0x1f5d   : > { %v3907_v9 = vpop.permute.xlu0 %3906 }
0x1f61   : > { %v3761_v38 = vpop.f32.mrb[84].mxu1  ;;  %v4194_v10 = vpop.permute.xlu0 %4193 }
0x1f62   : > { %v5639_v12 = vpop.f32.mrb[85].mxu1  ;;  %5696 = vmatmul.mubr.msk.bf16.vlgmr.msra.gmra.mrb[84].mxu0 %vm1258_vm1, %v4194_v10 }
0x1f63   : > { %v3764_v7 = vpop.f32.mrb[86].mxu1  ;;  %4572 = vmatprep.mubr.bf16.mxu0 %v5985_v4 }
0x1f64   : > { %v3768_v3 = vpack.c.bf16 %v3764_v7, %v3761_v38  ;;  %v5640_v13 = vpop.f32.mrb[87].mxu1  ;;  %v5948_v14 = vpop.eup %5947 }
0x1f65   : > { %v5950_v8 = vpop.eup %5949  ;;  %v3902_v15 = vmul.f32 %v5948_v14, %v5946_v51 }
0x1f66   : > { %5644 = vmatmul.mubr.msk.bf16.vlgmr.msra.gmra.mrb[88].mxu1 %vm1258_vm1, %v3768_v3  ;;  %v3901_v16 = vmul.f32 %v5950_v8, %v5944_v49 }
0x1f67   : > { %5656 = vmatpush3.bf16.msra.mxu1 %v3905_v48  ;;  %5659 = vmatprep.mubr.msk.bf16.mxu1 %vm5987_vm0, %v5986_v22 }
0x1f68   : > { %5657 = vmatprep.subr.bf16.mxu1 %v5986_v22  ;;  %v3903_v18 = vpack.c.bf16 %v3902_v15, %v3901_v16 }
0x1f6a   : > { %v4056_v17 = vpop.f32.mrb[80].mxu0 }
0x1f6b   : > { %v4063_v56 = vmul.f32 0.25, %v4056_v17  ;;  %5658 = vmatpush3.bf16.msra.mxu1 %v3907_v9  ;;  %v5675_v60 = vpop.f32.mrb[81].mxu0 }
0x1f6c   : > { %v4059_v4 = vpop.f32.mrb[82].mxu0  ;;  %5663 = vmatprep.subr.bf16.mxu1 %v5986_v22 }
0x1f6d   : > { %v4065_v19 = vadd.f32 %v4063_v56, %v6608_v39  ;;  %v4064_v20 = vmul.f32 0.25, %v4059_v4  ;;  %v5676_v21 = vpop.f32.mrb[83].mxu0 }
0x1f6e   : > { %5660 = vmatmul.mubr.msk.bf16.vlgmr.msra.gmra.mrb[92].mxu1 %vm2950_vm6, %v3903_v18 }
0x1f6f   : > { %v4066_v29 = vadd.f32 %v4064_v20, %v6613_v11  ;;  %v4067_v32 = vsel %vm2950_vm6, %v4065_v19, -inf  ;;  %5665 = vmatprep.mubr.msk.bf16.mxu1 %vm5987_vm0, %v5986_v22  ;;  %5664 = vmatpush3.bf16.msra.mxu1 %v5792_v35  ;;  %v5793_v20 = vld [vmem:[%s6172_s5 + $0x30] sm:$0xff]  }
0x1f70   : > { %4068 = vmax.xlane.f32.xlu1 %v4067_v32  ;;  %5677 = vmatprep.subr.bf16.mxu1 %v5986_v22 }
0x1f71   : > { %v4070_v34 = vsel %vm2954_vm7, %v4066_v29, -inf }
0x1f72   : > { %4071 = vmax.xlane.f32.xlu0 %v4070_v34 }
0x1ffd   : > { %v4069_v45 = vpop.xlane.xlu1 %4068 }
0x1ffe   : > { %v4073_v61 = vsub.f32 %v4065_v19, %v4069_v45 }
0x1fff   : > { %v4072_v26 = vpop.xlane.xlu0 %4071 }
0x2000   : > { %v4075_v28 = vmul.f32 1.442695, %v4073_v61  ;;  %v4074_v37 = vsub.f32 %v4066_v29, %v4072_v26 }
0x2002   : > { %5951 = vpow2.f32 %v4075_v28  ;;  %v4077_v40 = vmul.f32 1.442695, %v4074_v37 }
0x2004   : > { %5953 = vpow2.f32 %v4077_v40 }
0x200c   : > { %v5952_v41 = vpop.eup %5951 }
0x200d   : > { %v4079_v42 = vsel %vm2950_vm6, %v5952_v41, 0.0 }
0x200e   : > { %v5954_v43 = vpop.eup %5953  ;;  %4080 = vadd.xlane.f32.xlu0 %v4079_v42 }
0x200f   : > { %v4082_v44 = vsel %vm2954_vm7, %v5954_v43, 0.0 }
0x2010   : > { %4083 = vadd.xlane.f32.xlu1 %v4082_v44 }
0x2021   : > { %4092 = vrot.lane.b32.xlu1 %v6629_v36, %s5993_s24 }
0x2024   : > { %4090 = vrot.lane.b32.xlu0 %v6624_v33, %s5993_s24 }
0x2035   : > { %v4242_v46 = vpop.f32.mrb[84].mxu0 }
0x2036   : > { %v5697_v47 = vpop.f32.mrb[85].mxu0  ;;  %v4249_v52 = vmul.f32 0.25, %v4242_v46 }
0x2037   : > { %v4245_v53 = vpop.f32.mrb[86].mxu0 }
0x2038   : > { %v5698_v48 = vpop.f32.mrb[87].mxu0  ;;  %v4250_v49 = vmul.f32 0.25, %v4245_v53  ;;  %v4251_v31 = vadd.f32 %v4249_v52, %v6608_v39 }
0x2039   : > { %v3812_v57 = vpop.f32.mrb[88].mxu1  ;;  %v5794_v48 = vld [vmem:[%s6172_s5 + $0x38] sm:$0xff]  }
0x203a   : > { %v3819_v50 = vadd.f32 %v3812_v57, %v6824_v62  ;;  %v5645_v30 = vpop.f32.mrb[89].mxu1  ;;  %v4252_v23 = vadd.f32 %v4250_v49, %v6613_v11  ;;  %v4253_v62 = vsel %vm2950_vm6, %v4251_v31, -inf }
0x203b   : > { %v3815_v51 = vpop.f32.mrb[90].mxu1 }
0x203c   : > { %v3820_v54 = vadd.f32 %v3815_v51, %v6827_v1  ;;  %v5646_v55 = vpop.f32.mrb[91].mxu1  ;;  %v4256_v2 = vsel %vm2954_vm7, %v4252_v23, -inf }
0x2041   : > { %v3947_v63 = vpop.f32.mrb[92].mxu1 }
0x2042   : > { %v5661_v0 = vpop.f32.mrb[93].mxu1 }
0x2043   : > { %v3950_v5 = vpop.f32.mrb[94].mxu1  ;;  %4257 = vmax.xlane.f32.xlu0 %v4256_v2 }
0x2044   : > { %v3954_v6 = vpack.c.bf16 %v3950_v5, %v3947_v63  ;;  %v5662_v9 = vpop.f32.mrb[95].mxu1 }
0x2045   : > { %4254 = vmax.xlane.f32.xlu1 %v4253_v62 }
0x2046   : > { %5666 = vmatmul.mubr.msk.bf16.vlgmr.msra.gmra.mrb[96].mxu1 %vm1258_vm1, %v3954_v6 }
0x2047   : > { %5681 = vmatprep.mubr.msk.bf16.mxu1 %vm5987_vm0, %v5986_v22 }
0x209b   : > { %v4081_v1 = vpop.xlane.xlu0 %4080 }
0x209c   : > { %5955 = vrcp.f32 %v4081_v1 }
0x209d   : > { %v4084_v11 = vpop.xlane.xlu1 %4083 }
0x209e   : > { %5957 = vrcp.f32 %v4084_v11 }
0x209f   : > { %v4091_v39 = vpop.permute.xlu0 %4090 }
0x20a0   : > { %5678 = vmatpush3.bf16.msra.mxu1 %v4091_v39 }
0x20a1   : > { %5679 = vmatprep.subr.bf16.mxu1 %v5986_v22  ;;  %v4093_v38 = vpop.permute.xlu1 %4092 }
0x20a4   : > { %5680 = vmatpush3.bf16.msra.mxu1 %v4093_v38 }
0x20a5   : > { %5685 = vmatprep.subr.bf16.mxu1 %v5986_v22 }
0x20a6   : > { %v5956_v10 = vpop.eup %5955 }
0x20a7   : > { %v4087_v7 = vmul.f32 %v5956_v10, %v5952_v41 }
0x20a8   : > { %v5958_v12 = vpop.eup %5957 }
0x20a9   : > { %v4088_v3 = vmul.f32 %v5958_v12, %v5954_v43  ;;  %v5795_v12 = vld [vmem:[%s7055_s12] ss:$8 sps:$4 sm:$0xff]  }
0x20ab   : > { %v4089_v13 = vpack.c.bf16 %v4088_v3, %v4087_v7  ;;  %v5797_v7 = vld [vmem:[%s7055_s12 + $0x4] ss:$8 sps:$4 sm:$0xff]   ;;  %v5800_v3 = vld [vmem:[%s7055_s12 + $0x14] ss:$8 sps:$4 sm:$0xff]  }
0x20ac   : > { %4540 = vmatprep.subr.bf16.mxu0 %v5797_v7 }
0x20ad   : > { %5682 = vmatmul.mubr.msk.bf16.vlgmr.msra.gmra.mrb[100].mxu1 %vm2950_vm6, %v4089_v13  ;;  %4541 = vmatpush1.bf16.msra.mxu0 %v5795_v12  ;;  %v5798_v13 = vld [vmem:[%s7055_s12 + $0x10] ss:$8 sps:$4 sm:$0xff]  }
0x20ae   : > { %5687 = vmatprep.mubr.msk.bf16.mxu1 %vm5987_vm0, %v5986_v22  ;;  %5686 = vmatpush3.bf16.msra.mxu1 %v5793_v20  ;;  %v5804_v20 = vld [vmem:[%s7055_s12 + $0x30] ss:$8 sps:$4 sm:$0xff]  }
0x20af   : > { %5699 = vmatprep.subr.bf16.mxu1 %v5986_v22  ;;  %4542 = vmatprep.subr.bf16.mxu0 %v5800_v3 }
0x20b1   : > { %4543 = vmatpush1.bf16.msra.mxu0 %v5798_v13 }
0x20d0   : > { %v4258_v14 = vpop.xlane.xlu0 %4257 }
0x20d1   : > { %v4260_v8 = vsub.f32 %v4252_v23, %v4258_v14 }
0x20d2   : > { %v4255_v15 = vpop.xlane.xlu1 %4254 }
0x20d3   : > { %v4263_v16 = vmul.f32 1.442695, %v4260_v8  ;;  %v4259_v17 = vsub.f32 %v4251_v31, %v4255_v15 }
0x20d5   : > { %5959 = vpow2.f32 %v4263_v16  ;;  %v4261_v56 = vmul.f32 1.442695, %v4259_v17 }
0x20d7   : > { %5961 = vpow2.f32 %v4261_v56 }
0x20df   : > { %v5960_v60 = vpop.eup %5959 }
0x20e0   : > { %v4268_v4 = vsel %vm2954_vm7, %v5960_v60, 0.0 }
0x20e1   : > { %v5962_v18 = vpop.eup %5961  ;;  %4269 = vadd.xlane.f32.xlu1 %v4268_v4  ;;  %v5803_v4 = vld [vmem:[%s7055_s12 + $0x24] ss:$8 sps:$4 sm:$0xff]  }
0x20e2   : > { %v4265_v19 = vsel %vm2950_vm6, %v5962_v18, 0.0  ;;  %4544 = vmatprep.subr.bf16.mxu0 %v5803_v4 }
0x20e3   : > { %4266 = vadd.xlane.f32.xlu0 %v4265_v19  ;;  %v5806_v19 = vld [vmem:[%s7055_s12 + $0x34] ss:$8 sps:$4 sm:$0xff]  }
0x20f2   : > { %4278 = vrot.lane.b32.xlu1 %v6629_v36, %s5994_s18 }
0x20f9   : > { %4276 = vrot.lane.b32.xlu0 %v6624_v33, %s5994_s18  ;;  %s7058_s18 = sld [smem:[#allocation18_spill]] }
0x20ff   : > { %s7059_s23 = scalar_lea.vmem %s7058_s18, %s6122_s29 }
0x2119   : > { %v3998_v21 = vpop.f32.mrb[96].mxu1 }
0x211a   : > { %v4005_v29 = vadd.f32 %v3998_v21, %v3819_v50  ;;  %v5667_v32 = vpop.f32.mrb[97].mxu1  ;;  %v5809_v21 = vld [vmem:[%s7055_s12 + $0x44] ss:$8 sps:$4 sm:$0xff]  }
0x211b   : > { %v4001_v34 = vpop.f32.mrb[98].mxu1  ;;  %v5812_v32 = vld [vmem:[%s7055_s12 + $0x54] ss:$8 sps:$4 sm:$0xff]  }
0x211c   : > { %v4006_v35 = vadd.f32 %v4001_v34, %v3820_v54  ;;  %v5668_v45 = vpop.f32.mrb[99].mxu1  ;;  %v5810_v34 = vld [vmem:[%s7055_s12 + $0x50] ss:$8 sps:$4 sm:$0xff]  }
0x211d   : > { %v5813_v45 = vld [vmem:[%s7055_s12 + $0x60] ss:$8 sps:$4 sm:$0xff]  }
0x216e   : > { %v4270_v26 = vpop.xlane.xlu1 %4269 }
0x2170   : > { %v4267_v61 = vpop.xlane.xlu0 %4266 }
0x2171   : > { %5963 = vrcp.f32 %v4267_v61  ;;  %v5818_v61 = vld [vmem:[%s7055_s12 + $0x74] ss:$8 sps:$4 sm:$0xff]  }
0x2172   : > { %5965 = vrcp.f32 %v4270_v26  ;;  %v4279_v46 = vpop.permute.xlu1 %4278  ;;  %v5816_v26 = vld [vmem:[%s7055_s12 + $0x70] ss:$8 sps:$4 sm:$0xff]  }
0x2174   : > { %v4277_v33 = vpop.permute.xlu0 %4276 }
0x217b   : > { %v5964_v42 = vpop.eup %5963 }
0x217c   : > { %v5966_v43 = vpop.eup %5965  ;;  %v4273_v44 = vmul.f32 %v5964_v42, %v5962_v18  ;;  %v5801_v18 = vld [vmem:[%s7055_s12 + $0x20] ss:$8 sps:$4 sm:$0xff]   ;;  %v5825_v42 = vld [vmem:[%s6201_s22 + $0x58] sm:$0xff]  }
0x217d   : > { %v4274_v47 = vmul.f32 %v5966_v43, %v5960_v60  ;;  %4545 = vmatpush1.bf16.msra.mxu0 %v5801_v18  ;;  %v5826_v43 = vld [vmem:[%s6201_s22 + $0x18] sm:$0xff]  }
0x217e   : > { %4546 = vmatprep.subr.bf16.mxu0 %v5806_v19 }
0x217f   : > { %v4275_v53 = vpack.c.bf16 %v4274_v47, %v4273_v44  ;;  %v5827_v44 = vld [vmem:[%s6201_s22 + $0x60] sm:$0xff]   ;;  %v5829_v47 = vld [vmem:[%s6201_s22 + $0x68] sm:$0xff]  }
0x2180   : > { %v4133_v28 = vpop.f32.mrb[100].mxu1 }
0x2181   : > { %v5683_v37 = vpop.f32.mrb[101].mxu1  ;;  %4547 = vmatpush1.bf16.msra.mxu0 %v5804_v20 }
0x2182   : > { %v4136_v36 = vpop.f32.mrb[102].mxu1  ;;  %4548 = vmatprep.subr.bf16.mxu0 %v5809_v21  ;;  %v5820_v37 = vld [vmem:[%s6201_s22] sm:$0xff]  }
0x2183   : > { %v4140_v40 = vpack.c.bf16 %v4136_v36, %v4133_v28  ;;  %v5684_v41 = vpop.f32.mrb[103].mxu1  ;;  %v5819_v28 = vld [vmem:[%s6201_s22 + $0x40] sm:$0xff]   ;;  %v5821_v36 = vld [vmem:[%s6201_s22 + $0x48] sm:$0xff]  }
0x2184   : > { %v5823_v41 = vld [vmem:[%s6201_s22 + $0x50] sm:$0xff]  }
0x2185   : > { %5688 = vmatmul.mubr.msk.bf16.vlgmr.msra.gmra.mrb[104].mxu1 %vm1258_vm1, %v4140_v40  ;;  %v5822_v40 = vld [vmem:[%s6201_s22 + $0x8] sm:$0xff]  }
0x2186   : > { %5700 = vmatpush3.bf16.msra.mxu1 %v4277_v33  ;;  %5703 = vmatprep.mubr.msk.bf16.mxu1 %vm5987_vm0, %v5986_v22  ;;  %v5824_v33 = vld [vmem:[%s6201_s22 + $0x10] sm:$0xff]  }
0x2187   : > { %5701 = vmatprep.subr.bf16.mxu1 %v5986_v22 }
0x218a   : > { %5702 = vmatpush3.bf16.msra.mxu1 %v4279_v46  ;;  %v5828_v46 = vld [vmem:[%s6201_s22 + $0x20] sm:$0xff]  }
0x218b   : > { %5707 = vmatprep.subr.bf16.mxu1 %v5986_v22 }
0x218d   : > { %5704 = vmatmul.mubr.msk.bf16.vlgmr.msra.gmra.mrb[108].mxu1 %vm2950_vm6, %v4275_v53 }
0x218e   : > { %5709 = vmatprep.mubr.msk.bf16.mxu1 %vm5987_vm0, %v5986_v22  ;;  %5708 = vmatpush3.bf16.msra.mxu1 %v5794_v48  ;;  %v5154_v22 = vld [vmem:[%s7057_s28] ss:$0 sm:$0xff] }
0x218f   : > { %5331 = vmatprep.subr.bf16.mxu1 %v5819_v28 }
0x2258   : > { %v4184_v57 = vpop.f32.mrb[104].mxu1 }
0x2259   : > { %v4191_v49 = vadd.f32 %v4184_v57, %v4005_v29  ;;  %v5689_v50 = vpop.f32.mrb[105].mxu1  ;;  %v5807_v29 = vld [vmem:[%s7055_s12 + $0x40] ss:$8 sps:$4 sm:$0xff]  }
0x225a   : > { %v4187_v30 = vpop.f32.mrb[106].mxu1  ;;  %4549 = vmatpush1.bf16.msra.mxu0 %v5807_v29 }
0x225b   : > { %v4192_v51 = vadd.f32 %v4187_v30, %v4006_v35  ;;  %v5690_v52 = vpop.f32.mrb[107].mxu1  ;;  %4550 = vmatprep.subr.bf16.mxu0 %v5812_v32  ;;  %v5815_v35 = vld [vmem:[%s7055_s12 + $0x64] ss:$8 sps:$4 sm:$0xff]  }
0x225e   : > { %4551 = vmatpush1.bf16.msra.mxu0 %v5810_v34 }
0x225f   : > { %4552 = vmatprep.subr.bf16.mxu0 %v5815_v35 }
0x2260   : > { %v4319_v54 = vpop.f32.mrb[108].mxu1 }
0x2261   : > { %v5705_v55 = vpop.f32.mrb[109].mxu1 }
0x2262   : > { %v4322_v23 = vpop.f32.mrb[110].mxu1  ;;  %4553 = vmatpush1.bf16.msra.mxu0 %v5813_v45 }
0x2263   : > { %v4326_v31 = vpack.c.bf16 %v4322_v23, %v4319_v54  ;;  %v5706_v63 = vpop.f32.mrb[111].mxu1  ;;  %4554 = vmatprep.subr.bf16.mxu0 %v5818_v61  ;;  %v5155_v54 = vld [vmem:[%s7059_s23] ss:$0 sm:$0xff] }
0x2264   : > { %v5156_v63 = vld [vmem:[%s7061_s1] ss:$0 sm:$0xff] }
0x2265   : > { %5710 = vmatmul.mubr.msk.bf16.vlgmr.msra.gmra.mrb[112].mxu1 %vm1258_vm1, %v4326_v31 }
0x2266   : > { %4555 = vmatpush1.bf16.msra.mxu0 %v5816_v26  ;;  %5332 = vmatpush3.bf16.msra.mxu1 %v5820_v37 }
0x2267   : > { %5333 = vmatprep.subr.bf16.mxu1 %v5821_v36 }
0x226a   : > { %5334 = vmatpush3.bf16.msra.mxu1 %v5822_v40 }
0x226b   : > { %5335 = vmatprep.subr.bf16.mxu1 %v5823_v41 }
0x226e   : > { %5336 = vmatpush3.bf16.msra.mxu1 %v5824_v33 }
0x226f   : > { %5337 = vmatprep.subr.bf16.mxu1 %v5825_v42 }
0x2272   : > { %5338 = vmatpush3.bf16.msra.mxu1 %v5826_v43 }
0x2273   : > { %5339 = vmatprep.subr.bf16.mxu1 %v5827_v44 }
0x2276   : > { %5340 = vmatpush3.bf16.msra.mxu1 %v5828_v46 }
0x2277   : > { %5341 = vmatprep.subr.bf16.mxu1 %v5829_v47 }
0x2338   : > { %v4370_v0 = vpop.f32.mrb[112].mxu1 }
0x2339   : > { %v4377_v2 = vadd.f32 %v4370_v0, %v4191_v49  ;;  %v5711_v5 = vpop.f32.mrb[113].mxu1 }
0x233a   : > { %v4373_v6 = vpop.f32.mrb[114].mxu1 }
0x233b   : > { %v4385_v9 = vadd.f32 %v5154_v22, %v4377_v2  ;;  %v4378_v62 = vadd.f32 %v4373_v6, %v4192_v51  ;;  %v5712_v1 = vpop.f32.mrb[115].mxu1  ;;  %v5830_v6 = vld [vmem:[%s6201_s22 + $0x28] sm:$0xff]  }
0x233c   : > { %5342 = vmatpush3.bf16.msra.mxu1 %v5830_v6  ;;  %v5833_v1 = vld [vmem:[%s6201_s22 + $0x78] sm:$0xff]  }
0x233d   : > { %v4386_v11 = vadd.f32 %v5154_v22, %v4378_v62  ;;  %v4387_v39 = vadd.f32 %v4385_v9, %v6580_v58  ;;  %v5831_v9 = vld [vmem:[%s6201_s22 + $0x70] sm:$0xff]  }
0x233e   : > { %v5832_v62 = vld [vmem:[%s6201_s22 + $0x30] sm:$0xff]   ;;  %5343 = vmatprep.subr.bf16.mxu1 %v5831_v9 }
0x233f   : > { %4391 = vadd.xlane.f32.xlu0 %v4387_v39  ;;  %v4388_v38 = vadd.f32 %v4386_v11, %v6582_v59  ;;  %v5834_v11 = vld [vmem:[%s6201_s22 + $0x38] sm:$0xff]  }
0x2340   : > { %5344 = vmatpush3.bf16.msra.mxu1 %v5832_v62 }
0x2341   : > { %v4393_v10 = vsel %vm2709_vm5, %v4388_v38, 0.0  ;;  %5345 = vmatprep.subr.bf16.mxu1 %v5833_v1 }
0x2342   : > { %4394 = vadd.xlane.f32.xlu1 %v4393_v10 }
0x2344   : > { %5346 = vmatpush3.bf16.msra.mxu1 %v5834_v11 }
0x23cc   : > { %v4392_v14 = vpop.xlane.xlu0 %4391 }
0x23cd   : > { %v4396_v58 = vmul.f32 0.0078125, %v4392_v14 }
0x23cf   : > { %v6895_v8 = vsub.f32 %v4387_v39, %v4396_v58  ;;  %v4395_v59 = vpop.xlane.xlu1 %4394  ;;  %v4448_v39 = vld [vmem:[%s6196_s6] sm:$0x3] }
0x23d0   : > { %v4397_v15 = vmul.f32 0.0078125, %v4395_v59  ;;  %v4457_v10 = vrot.slane %v4448_v39, %v1015_v27 }
0x23d1   : > { %v4400_v16 = vmul.f32 %v6895_v8, %v6895_v8 }
0x23d2   : > { %v6899_v17 = vsub.f32 %v4388_v38, %v4397_v15  ;;  %v4453_v38 = vrot.slane %v4448_v39, %v1011_v25 }
0x23d3   : > { %4402 = vadd.xlane.f32.xlu0 %v4400_v16 }
0x23d4   : > { %v4401_v56 = vmul.f32 %v6899_v17, %v6899_v17 }
0x23d6   : > { %v4404_v60 = vsel %vm2709_vm5, %v4401_v56, 0.0 }
0x23d7   : > { %4405 = vadd.xlane.f32.xlu1 %v4404_v60 }
0x2460   : > { %v4403_v53 = vpop.xlane.xlu0 %4402 }
0x2461   : > { %v4407_v48 = vmul.f32 0.0078125, %v4403_v53 }
0x2463   : > { %v4409_v57 = vadd.f32 1e-05, %v4407_v48 }
0x2464   : > { %v4406_v49 = vpop.xlane.xlu1 %4405 }
0x2465   : > { %5967 = vrsqrt.f32 %v4409_v57  ;;  %v4408_v50 = vmul.f32 0.0078125, %v4406_v49  ;;  %v5190_v49 = vld [vmem:[%s959_s20] ss:$0 sm:$0xff]  ;;  %s7066_s20 = sld [smem:[#allocation25_spill]] (!%p5192_p5) }
0x2467   : > { %v4410_v30 = vadd.f32 1e-05, %v4408_v50 }
0x2469   : > { %5969 = vrsqrt.f32 %v4410_v30  ;;  %v5191_v30 = vld [vmem:[%s962_s30] ss:$0 sm:$0xff] }
0x246f   : > { %v5968_v51 = vpop.eup %5967 }
0x2470   : > { %v4413_v52 = vmul.f32 %v5968_v51, %v6895_v8 }
0x2472   : > { %v4421_v31 = vmul.f32 %v5155_v54, %v4413_v52 }
0x2473   : > { %v5970_v55 = vpop.eup %5969 }
0x2474   : > { %v4414_v23 = vmul.f32 %v5970_v55, %v6899_v17  ;;  %v4429_v0 = vadd.f32 %v5156_v63, %v4421_v31 }
0x2476   : > { %v4422_v22 = vmul.f32 %v5155_v54, %v4414_v23 }
0x2478   : > { %v4430_v2 = vadd.f32 %v5156_v63, %v4422_v22 }
0x247a   : > { %v4431_v5 = vpack.c.bf16 %v4430_v2, %v4429_v0 }
0x247c   : > { %4573 = vmatmul.mubr.bf16.vlgmr.msra.gmra.mrb[88].mxu0 %v4431_v5 }
0x254f   : > { %v4574_v12 = vpop.f32.mrb[88].mxu0 }
0x2550   : > { %v4575_v7 = vadd.f32 %v4574_v12, %v4453_v38  ;;  %v4576_v3 = vpop.f32.mrb[89].mxu0 }
0x2551   : > { %v4577_v13 = vadd.f32 %v4576_v3, %v4457_v10  ;;  %v4578_v14 = vpop.f32.mrb[90].mxu0 }
0x2552   : > { %v4579_v58 = vadd.f32 %v4578_v14, %v4453_v38  ;;  %v4580_v8 = vpop.f32.mrb[91].mxu0  ;;  %v4583_v15 = vmax.f32 %v4575_v7, 0.0 }
0x2553   : > { %v4581_v59 = vadd.f32 %v4580_v8, %v4457_v10  ;;  %v4584_v17 = vmax.f32 %v4577_v13, 0.0 }
0x2554   : > { %v4585_v16 = vmax.f32 %v4579_v58, 0.0 }
0x2555   : > { %v4586_v56 = vmax.f32 %v4581_v59, 0.0 }
0x2556   : > { %v4587_v60 = vpack.c.bf16 %v4585_v16, %v4583_v15 }
0x2557   : > { %v4588_v4 = vpack.c.bf16 %v4586_v56, %v4584_v17 }
0x2559   : > { %4756 = vmatprep.mubr.bf16.mxu1 %v4588_v4 }
0x255a   : > { %4757 = vmatmul.mubr.bf16.vlgmr.msra.gmra.mrb[116].mxu1 %v4587_v60 }
0x262d   : > { %v5347_v25 = vpop.f32.mrb[116].mxu1 }
0x262e   : > { %v5348_v27 = vpop.f32.mrb[117].mxu1 }
0x262f   : > { %v5349_v18 = vadd.f32 %v5348_v27, %v5347_v25  ;;  %v5350_v19 = vpop.f32.mrb[118].mxu1 }
0x2630   : > { %v5351_v20 = vpop.f32.mrb[119].mxu1 }
0x2631   : > { %v4759_v21 = vadd.f32 %v5349_v18, %v5173_v24  ;;  %v5352_v29 = vadd.f32 %v5351_v20, %v5350_v19 }
0x2633   : > { %v4762_v32 = vadd.f32 %v5352_v29, %v5173_v24  ;;  %v4765_v34 = vadd.f32 %v4759_v21, %v4429_v0 }
0x2635   : > { %4769 = vadd.xlane.f32.xlu1 %v4765_v34  ;;  %v4766_v35 = vadd.f32 %v4762_v32, %v4430_v2 }
0x2637   : > { %v4771_v45 = vsel %vm2709_vm5, %v4766_v35, 0.0 }
0x2638   : > { %4772 = vadd.xlane.f32.xlu0 %v4771_v45 }
0x26c2   : > { %v4770_v61 = vpop.xlane.xlu1 %4769 }
0x26c3   : > { %v4774_v26 = vmul.f32 0.0078125, %v4770_v61 }
0x26c5   : > { %v4776_v28 = vsub.f32 %v4765_v34, %v4774_v26  ;;  %v4773_v37 = vpop.xlane.xlu0 %4772 }
0x26c6   : > { %v4775_v36 = vmul.f32 0.0078125, %v4773_v37 }
0x26c7   : > { %v4778_v40 = vmul.f32 %v4776_v28, %v4776_v28 }
0x26c8   : > { %v4777_v41 = vsub.f32 %v4766_v35, %v4775_v36 }
0x26c9   : > { %4780 = vadd.xlane.f32.xlu0 %v4778_v40 }
0x26ca   : > { %v4779_v33 = vmul.f32 %v4777_v41, %v4777_v41 }
0x26cc   : > { %v4782_v42 = vsel %vm2709_vm5, %v4779_v33, 0.0 }
0x26cd   : > { %4783 = vadd.xlane.f32.xlu1 %v4782_v42 }
0x2756   : > { %v4781_v43 = vpop.xlane.xlu0 %4780 }
0x2757   : > { %v4785_v44 = vmul.f32 0.0078125, %v4781_v43 }
0x2759   : > { %v4787_v46 = vadd.f32 1e-05, %v4785_v44 }
0x275a   : > { %v4784_v47 = vpop.xlane.xlu1 %4783 }
0x275b   : > { %5971 = vrsqrt.f32 %v4787_v46  ;;  %v4786_v53 = vmul.f32 0.0078125, %v4784_v47 }
0x275d   : > { %v4788_v48 = vadd.f32 1e-05, %v4786_v53 }
0x275f   : > { %5973 = vrsqrt.f32 %v4788_v48 }
0x2765   : > { %v5972_v57 = vpop.eup %5971 }
0x2766   : > { %v4791_v50 = vmul.f32 %v5972_v57, %v4776_v28 }
0x2768   : > { %v4799_v51 = vmul.f32 %v5190_v49, %v4791_v50 }
0x2769   : > { %v5974_v52 = vpop.eup %5973 }
0x276a   : > { %v4807_v54 = vadd.f32 %v5191_v30, %v4799_v51  ;;  %v4792_v55 = vmul.f32 %v5974_v52, %v4777_v41  ;;  %4814 = sbr.rel (%p5192_p5) target bundleno = 10097 (0x2771), region = 116 }
0x276c   : > { %4809 = vst [vmem:[#allocation2] sm:$0xff] %v4807_v54  ;;  %v4800_v23 = vmul.f32 %v5190_v49, %v4792_v55  ;;  %4815 = vst [vmem:[%s7066_s20] sm:$0xff] (!%p5192_p5), %v4807_v54 }
0x276e   : > { %v4808_v31 = vadd.f32 %v5191_v30, %v4800_v23 }
0x2770   : > { %4810 = vst [vmem:[#allocation2 + $0x8] sm:$0x3] %v4808_v31  ;;  %4816 = vst [vmem:[%s7066_s20 + $0x8] sm:$0x3] (!%p5192_p5), %v4808_v31 }
0x2771 PF: > { %s7067_s29 = sld [smem:[#allocation3_spill]] }
0x2777   : > { %s32_s3 = sadd.s32 1, %s7067_s29  }
0x2778   : > { %p29_p6 = scmp.ge.s32.totalorder %s32_s3, 10  }
0x277a   :  { %31 = sbr.rel (!%p29_p6) target bundleno = 20 (0x14), region = 196 }

</bundles_post_ra>
